<compile_context>
chip_gen: v6e
topology: v6e:2x2x1
jax: 0.10.0
libtpu: 0.0.40
codegen_flags: <defaults>
</compile_context>

<pallas_src>
import jax
import jax.numpy as jnp
from jax.experimental import pallas as pl
from jax.experimental.pallas import tpu as pltpu

_K = 7      # conv kernel size
_PAD = 3    # conv padding

# (name, cin, cin_padded_for_kernel, cout)
_CONV_SPECS = (
    ("conv1", 12, 16, 32),
    ("conv2", 32, 32, 32),
    ("conv3", 64, 64, 32),
    ("conv4", 96, 96, 24),
    ("conv5", 24, 24, 24),
    ("conv6", 48, 48, 24),
    ("conv7", 72, 72, 16),
    ("conv8", 16, 16, 16),
    ("conv9", 32, 32, 16),
)


# -----------------------------------------------------------------------------
# Fused kernel: full forward pass for one batch element.
# -----------------------------------------------------------------------------
def _fused_kernel(*refs):
    x_ref = refs[0]
    (w1, b1, w2, b2, w3, b3, w4, b4, w5, b5, w6, b6,
     w7, b7, w8, b8, w9, b9,
     fw1, fb1, fw2, fb2, fw3, fb3) = refs[1:25]
    o_ref = refs[25]
    pad_ref = refs[26]   # (96, 512) f32 VMEM staging buffer for padded inputs

    def conv_relu(x, w_ref, b_ref, cpad=None):
        """Conv1d(k=7, pad=3, stride=1) + bias + ReLU as one MXU matmul."""
        cin, length = x.shape
        cp = cin if cpad is None else cpad
        if cp != cin:
            # zero the whole staging region (covers the extra zero channels)
            pad_ref[0:cp, 0:length + 2 * _PAD] = jnp.zeros(
                (cp, length + 2 * _PAD), jnp.float32)
        else:
            zeros3 = jnp.zeros((cp, _PAD), jnp.float32)
            pad_ref[0:cp, 0:_PAD] = zeros3
            pad_ref[0:cp, length + _PAD:length + 2 * _PAD] = zeros3
        pad_ref[0:cin, _PAD:_PAD + length] = x
        # im2col slab: row (k*cp + ci) holds x_padded[ci, l + k]
        slab = jnp.concatenate(
            [pad_ref[0:cp, k:k + length] for k in range(_K)], axis=0)
        acc = jnp.dot(w_ref[...], slab, preferred_element_type=jnp.float32)
        return jnp.maximum(acc + b_ref[...], 0.0)

    def avgpool2(x):
        """AvgPool1d(kernel=2, stride=2) via an in-register 0/0.5 matrix."""
        _, length = x.shape
        half = length // 2
        rows = jax.lax.broadcasted_iota(jnp.int32, (length, half), 0)
        cols = jax.lax.broadcasted_iota(jnp.int32, (length, half), 1)
        pool = jnp.where((rows == 2 * cols) | (rows == 2 * cols + 1), 0.5, 0.0)
        return jnp.dot(x, pool, preferred_element_type=jnp.float32)

    x0 = x_ref[0]                                               # (12, 496)
    a = conv_relu(x0, w1, b1, cpad=16)                          # (32, 496)
    a = conv_relu(a, w2, b2)                                    # (32, 496)
    p1 = avgpool2(a)                                            # (32, 248)
    x1 = conv_relu(p1, w2, b2)                                  # shared conv2
    x2 = conv_relu(jnp.concatenate([p1, x1], axis=0), w3, b3)   # (32, 248)
    a4 = conv_relu(jnp.concatenate([p1, x1, x2], axis=0), w4, b4)   # (24, 248)
    p2 = avgpool2(a4)                                           # (24, 124)
    x3 = conv_relu(p2, w5, b5)                                  # (24, 124)
    x4 = conv_relu(jnp.concatenate([p2, x3], axis=0), w6, b6)   # (24, 124)
    a7 = conv_relu(jnp.concatenate([p2, x3, x4], axis=0), w7, b7)   # (16, 124)
    p3 = avgpool2(a7)                                           # (16, 62)
    x5 = conv_relu(p3, w8, b8)                                  # (16, 62)
    x6 = conv_relu(jnp.concatenate([p3, x5], axis=0), w9, b9)   # (16, 62)
    feat = jnp.concatenate([p3, x5, x6], axis=0)                # (48, 62)

    # fc1 over the channel-major flatten of feat, without reshaping feat:
    #   fc1[j] = sum_{c,l} W1[j, c*62 + l] * feat[c, l]
    # fw1 is pre-reshaped to (16*48, 62); replicate feat 16x on sublanes,
    # reduce lanes, then collapse each 48-row group with an iota selector.
    n_out = 16
    n_ch = feat.shape[0]                                        # 48
    g_rep = jnp.concatenate([feat] * n_out, axis=0)             # (768, 62)
    row_dot = jnp.sum(fw1[...] * g_rep, axis=1, keepdims=True)  # (768, 1)
    rr = jax.lax.broadcasted_iota(jnp.int32, (n_out, n_out * n_ch), 0)
    cc = jax.lax.broadcasted_iota(jnp.int32, (n_out, n_out * n_ch), 1)
    sel = jnp.where((cc >= rr * n_ch) & (cc < (rr + 1) * n_ch), 1.0, 0.0)
    s = jnp.dot(sel, row_dot, preferred_element_type=jnp.float32)   # (16, 1)

    h = jnp.maximum(s + fb1[...], 0.0)                              # (16, 1)
    h = jnp.maximum(
        jnp.dot(fw2[...], h, preferred_element_type=jnp.float32) + fb2[...],
        0.0)                                                        # (64, 1)
    o_ref[0] = (jnp.dot(fw3[...], h, preferred_element_type=jnp.float32)
                + fb3[...])                                         # (1, 1)


# -----------------------------------------------------------------------------
# Parameters: PyTorch-shaped init + one-time re-layout for the kernel.
# -----------------------------------------------------------------------------
def init_params(key):
    keys = jax.random.split(key, len(_CONV_SPECS) + 3)
    p = {}
    for i, (name, cin, _, cout) in enumerate(_CONV_SPECS):
        k1, k2 = jax.random.split(keys[i])
        fan = float(cin * _K)
        p[name] = (
            jax.random.normal(k1, (cout, cin, _K), jnp.float32) / jnp.sqrt(fan),
            jax.random.normal(k2, (cout,), jnp.float32) * 0.01,
        )

    def fc_p(k, out_f, in_f):
        k1, k2 = jax.random.split(k)
        return (
            jax.random.normal(k1, (out_f, in_f), jnp.float32)
            / jnp.sqrt(float(in_f)),
            jax.random.normal(k2, (out_f,), jnp.float32) * 0.01,
        )

    p["fc1"] = fc_p(keys[-3], 16, 2976)
    p["fc2"] = fc_p(keys[-2], 64, 16)
    p["fc3"] = fc_p(keys[-1], 1, 64)
    return p


def prepare_params(params):
    """One-time (outside jit) re-layout of weights into kernel format."""
    flat = []
    for name, cin, cpad, cout in _CONV_SPECS:
        w, b = params[name]                       # (cout, cin, 7), (cout,)
        if cpad != cin:                           # pad conv1 input channels
            w = jnp.pad(w, ((0, 0), (0, cpad - cin), (0, 0)))
        # (cout, cin, k) -> (cout, k, cin) -> (cout, k*cin): col = k*cin + ci
        wf = jnp.transpose(w, (0, 2, 1)).reshape(cout, _K * cpad)
        flat += [wf, b.reshape(cout, 1)]
    w1, b1 = params["fc1"]
    w2, b2 = params["fc2"]
    w3, b3 = params["fc3"]
    flat += [
        w1.reshape(16 * 48, 2976 // 48), b1.reshape(16, 1),   # (768, 62), (16,1)
        w2, b2.reshape(64, 1),                                # (64, 16), (64,1)
        w3, b3.reshape(1, 1),                                 # (1, 64),  (1,1)
    ]
    return tuple(flat)


# -----------------------------------------------------------------------------
# Forward: a single fused pallas_call over the batch.
# -----------------------------------------------------------------------------
def _weight_spec(a):
    nd = a.ndim
    return pl.BlockSpec(a.shape, lambda b, _n=nd: (0,) * _n)


@jax.jit
def ml4cvd_shallow_forward(prepped, x):
    B, cin, L = x.shape
    out = pl.pallas_call(
        _fused_kernel,
        out_shape=jax.ShapeDtypeStruct((B, 1, 1), jnp.float32),
        grid=(B,),
        in_specs=[pl.BlockSpec((1, cin, L), lambda b: (b, 0, 0))]
                 + [_weight_spec(a) for a in prepped],
        out_specs=pl.BlockSpec((1, 1, 1), lambda b: (b, 0, 0)),
        scratch_shapes=[pltpu.VMEM((96, 512), jnp.float32)],
        compiler_params=pltpu.CompilerParams(
            dimension_semantics=("parallel",)),
    )(x, *prepped)
    return out.reshape(B, 1)


if __name__ == "__main__":
    key = jax.random.PRNGKey(0)
    kp, kx = jax.random.split(key)
    params = init_params(kp)
    prepped = prepare_params(params)     # one-time re-layout, outside jit

    # fc1 expects 2976 = 48 * 62 features -> input length L = 62 * 8 = 496.
    B, Cin, L = 2, 12, 496
    x = jax.random.normal(kx, (B, Cin, L), jnp.float32)

    out = ml4cvd_shallow_forward(prepped, x)
    jax.block_until_ready(out)
    assert out.shape == (B, 1) and out.dtype == jnp.float32
    print("KERNEL_OK")
</pallas_src>

<mosaic_0001>
module attributes {stable_mosaic.version = 11 : i64} {
  func.func @_fused_kernel(%arg0: i32, %arg1: memref<1x12x496xf32, #tpu.memory_space<vmem>>, %arg2: memref<32x112xf32, #tpu.memory_space<vmem>>, %arg3: memref<32x1xf32, #tpu.memory_space<vmem>>, %arg4: memref<32x224xf32, #tpu.memory_space<vmem>>, %arg5: memref<32x1xf32, #tpu.memory_space<vmem>>, %arg6: memref<32x448xf32, #tpu.memory_space<vmem>>, %arg7: memref<32x1xf32, #tpu.memory_space<vmem>>, %arg8: memref<24x672xf32, #tpu.memory_space<vmem>>, %arg9: memref<24x1xf32, #tpu.memory_space<vmem>>, %arg10: memref<24x168xf32, #tpu.memory_space<vmem>>, %arg11: memref<24x1xf32, #tpu.memory_space<vmem>>, %arg12: memref<24x336xf32, #tpu.memory_space<vmem>>, %arg13: memref<24x1xf32, #tpu.memory_space<vmem>>, %arg14: memref<16x504xf32, #tpu.memory_space<vmem>>, %arg15: memref<16x1xf32, #tpu.memory_space<vmem>>, %arg16: memref<16x112xf32, #tpu.memory_space<vmem>>, %arg17: memref<16x1xf32, #tpu.memory_space<vmem>>, %arg18: memref<16x224xf32, #tpu.memory_space<vmem>>, %arg19: memref<16x1xf32, #tpu.memory_space<vmem>>, %arg20: memref<768x62xf32, #tpu.memory_space<vmem>>, %arg21: memref<16x1xf32, #tpu.memory_space<vmem>>, %arg22: memref<64x16xf32, #tpu.memory_space<vmem>>, %arg23: memref<64x1xf32, #tpu.memory_space<vmem>>, %arg24: memref<1x64xf32, #tpu.memory_space<vmem>>, %arg25: memref<1x1xf32, #tpu.memory_space<vmem>>, %arg26: memref<1x1x1xf32, #tpu.memory_space<vmem>>, %arg27: memref<96x512xf32, #tpu.memory_space<vmem>>) attributes {dimension_semantics = [#tpu.dimension_semantics<parallel>], iteration_bounds = array<i64: 2>, scalar_prefetch = 0 : i64, scratch_operands = 1 : i64, tpu.core_type = #tpu.core_type<tc>, window_params = [{transform_indices = @transform_0, window_bounds = array<i64: 1, 12, 496>}, {pipeline_mode = #tpu.pipeline_mode<synchronous>, transform_indices = @transform_1, window_bounds = array<i64: 32, 112>}, {pipeline_mode = #tpu.pipeline_mode<synchronous>, transform_indices = @transform_2, window_bounds = array<i64: 32, 1>}, {pipeline_mode = #tpu.pipeline_mode<synchronous>, transform_indices = @transform_3, window_bounds = array<i64: 32, 224>}, {pipeline_mode = #tpu.pipeline_mode<synchronous>, transform_indices = @transform_4, window_bounds = array<i64: 32, 1>}, {pipeline_mode = #tpu.pipeline_mode<synchronous>, transform_indices = @transform_5, window_bounds = array<i64: 32, 448>}, {pipeline_mode = #tpu.pipeline_mode<synchronous>, transform_indices = @transform_6, window_bounds = array<i64: 32, 1>}, {pipeline_mode = #tpu.pipeline_mode<synchronous>, transform_indices = @transform_7, window_bounds = array<i64: 24, 672>}, {pipeline_mode = #tpu.pipeline_mode<synchronous>, transform_indices = @transform_8, window_bounds = array<i64: 24, 1>}, {pipeline_mode = #tpu.pipeline_mode<synchronous>, transform_indices = @transform_9, window_bounds = array<i64: 24, 168>}, {pipeline_mode = #tpu.pipeline_mode<synchronous>, transform_indices = @transform_10, window_bounds = array<i64: 24, 1>}, {pipeline_mode = #tpu.pipeline_mode<synchronous>, transform_indices = @transform_11, window_bounds = array<i64: 24, 336>}, {pipeline_mode = #tpu.pipeline_mode<synchronous>, transform_indices = @transform_12, window_bounds = array<i64: 24, 1>}, {pipeline_mode = #tpu.pipeline_mode<synchronous>, transform_indices = @transform_13, window_bounds = array<i64: 16, 504>}, {pipeline_mode = #tpu.pipeline_mode<synchronous>, transform_indices = @transform_14, window_bounds = array<i64: 16, 1>}, {pipeline_mode = #tpu.pipeline_mode<synchronous>, transform_indices = @transform_15, window_bounds = array<i64: 16, 112>}, {pipeline_mode = #tpu.pipeline_mode<synchronous>, transform_indices = @transform_16, window_bounds = array<i64: 16, 1>}, {pipeline_mode = #tpu.pipeline_mode<synchronous>, transform_indices = @transform_17, window_bounds = array<i64: 16, 224>}, {pipeline_mode = #tpu.pipeline_mode<synchronous>, transform_indices = @transform_18, window_bounds = array<i64: 16, 1>}, {pipeline_mode = #tpu.pipeline_mode<synchronous>, transform_indices = @transform_19, window_bounds = array<i64: 768, 62>}, {pipeline_mode = #tpu.pipeline_mode<synchronous>, transform_indices = @transform_20, window_bounds = array<i64: 16, 1>}, {pipeline_mode = #tpu.pipeline_mode<synchronous>, transform_indices = @transform_21, window_bounds = array<i64: 64, 16>}, {pipeline_mode = #tpu.pipeline_mode<synchronous>, transform_indices = @transform_22, window_bounds = array<i64: 64, 1>}, {pipeline_mode = #tpu.pipeline_mode<synchronous>, transform_indices = @transform_23, window_bounds = array<i64: 1, 64>}, {pipeline_mode = #tpu.pipeline_mode<synchronous>, transform_indices = @transform_24, window_bounds = array<i64: 1, 1>}, {transform_indices = @transform_25, window_bounds = array<i64: 1, 1, 1>}]} {
    %c0 = arith.constant 0 : index
    %c0_0 = arith.constant 0 : index
    %c0_1 = arith.constant 0 : index
    %0 = vector.load %arg1[%c0, %c0_0, %c0_1] : memref<1x12x496xf32, #tpu.memory_space<vmem>>, vector<1x12x496xf32>
    %1 = vector.shape_cast %0 : vector<1x12x496xf32> to vector<12x496xf32>
    %cst = arith.constant 0.000000e+00 : f32
    %2 = vector.broadcast %cst : f32 to vector<16x502xf32>
    %c0_2 = arith.constant 0 : index
    %c0_3 = arith.constant 0 : index
    %3 = vector.load %arg27[%c0_2, %c0_3] : memref<96x512xf32, #tpu.memory_space<vmem>>, vector<16x502xf32>
    tpu.vector_store %arg27[%c0_2, %c0_3], %2 {strides = array<i32>} : memref<96x512xf32, #tpu.memory_space<vmem>>, vector<16x502xf32>,
    %c0_4 = arith.constant 0 : index
    %c3 = arith.constant 3 : index
    %4 = vector.load %arg27[%c0_4, %c3] : memref<96x512xf32, #tpu.memory_space<vmem>>, vector<12x496xf32>
    tpu.vector_store %arg27[%c0_4, %c3], %1 {strides = array<i32>} : memref<96x512xf32, #tpu.memory_space<vmem>>, vector<12x496xf32>,
    %c0_5 = arith.constant 0 : index
    %c0_6 = arith.constant 0 : index
    %5 = vector.load %arg27[%c0_5, %c0_6] : memref<96x512xf32, #tpu.memory_space<vmem>>, vector<16x496xf32>
    %c0_7 = arith.constant 0 : index
    %c1 = arith.constant 1 : index
    %6 = vector.load %arg27[%c0_7, %c1] : memref<96x512xf32, #tpu.memory_space<vmem>>, vector<16x496xf32>
    %c0_8 = arith.constant 0 : index
    %c2 = arith.constant 2 : index
    %7 = vector.load %arg27[%c0_8, %c2] : memref<96x512xf32, #tpu.memory_space<vmem>>, vector<16x496xf32>
    %c0_9 = arith.constant 0 : index
    %c3_10 = arith.constant 3 : index
    %8 = vector.load %arg27[%c0_9, %c3_10] : memref<96x512xf32, #tpu.memory_space<vmem>>, vector<16x496xf32>
    %c0_11 = arith.constant 0 : index
    %c4 = arith.constant 4 : index
    %9 = vector.load %arg27[%c0_11, %c4] : memref<96x512xf32, #tpu.memory_space<vmem>>, vector<16x496xf32>
    %c0_12 = arith.constant 0 : index
    %c5 = arith.constant 5 : index
    %10 = vector.load %arg27[%c0_12, %c5] : memref<96x512xf32, #tpu.memory_space<vmem>>, vector<16x496xf32>
    %c0_13 = arith.constant 0 : index
    %c6 = arith.constant 6 : index
    %11 = vector.load %arg27[%c0_13, %c6] : memref<96x512xf32, #tpu.memory_space<vmem>>, vector<16x496xf32>
    %12 = tpu.concatenate %5, %6, %7, %8, %9, %10, %11 in 0 : vector<16x496xf32>, vector<16x496xf32>, vector<16x496xf32>, vector<16x496xf32>, vector<16x496xf32>, vector<16x496xf32>, vector<16x496xf32> -> vector<112x496xf32>
    %c0_14 = arith.constant 0 : index
    %c0_15 = arith.constant 0 : index
    %13 = vector.load %arg2[%c0_14, %c0_15] : memref<32x112xf32, #tpu.memory_space<vmem>>, vector<32x112xf32>
    %cst_16 = arith.constant dense<0.000000e+00> : vector<32x496xf32>
    %14 = tpu.matmul %13, %12, %cst_16 {dimension_numbers = #tpu.dot_dimension_numbers<[1], [0], [0], [1], [0, 0, 1, 1], [], []>} : vector<32x112xf32>, vector<112x496xf32>, vector<32x496xf32> -> vector<32x496xf32>
    %c0_17 = arith.constant 0 : index
    %c0_18 = arith.constant 0 : index
    %15 = vector.load %arg3[%c0_17, %c0_18] : memref<32x1xf32, #tpu.memory_space<vmem>>, vector<32x1xf32>
    %16 = vector.broadcast %15 : vector<32x1xf32> to vector<32x496xf32>
    %17 = arith.addf %14, %16 : vector<32x496xf32>
    %cst_19 = arith.constant 0.000000e+00 : f32
    %18 = vector.broadcast %cst_19 : f32 to vector<32x496xf32>
    %19 = arith.maximumf %17, %18 : vector<32x496xf32>
    %cst_20 = arith.constant 0.000000e+00 : f32
    %20 = vector.broadcast %cst_20 : f32 to vector<32x3xf32>
    %c0_21 = arith.constant 0 : index
    %c0_22 = arith.constant 0 : index
    %21 = vector.load %arg27[%c0_21, %c0_22] : memref<96x512xf32, #tpu.memory_space<vmem>>, vector<32x3xf32>
    tpu.vector_store %arg27[%c0_21, %c0_22], %20 {strides = array<i32>} : memref<96x512xf32, #tpu.memory_space<vmem>>, vector<32x3xf32>,
    %c0_23 = arith.constant 0 : index
    %c499 = arith.constant 499 : index
    %22 = vector.load %arg27[%c0_23, %c499] : memref<96x512xf32, #tpu.memory_space<vmem>>, vector<32x3xf32>
    tpu.vector_store %arg27[%c0_23, %c499], %20 {strides = array<i32>} : memref<96x512xf32, #tpu.memory_space<vmem>>, vector<32x3xf32>,
    %c0_24 = arith.constant 0 : index
    %c3_25 = arith.constant 3 : index
    %23 = vector.load %arg27[%c0_24, %c3_25] : memref<96x512xf32, #tpu.memory_space<vmem>>, vector<32x496xf32>
    tpu.vector_store %arg27[%c0_24, %c3_25], %19 {strides = array<i32>} : memref<96x512xf32, #tpu.memory_space<vmem>>, vector<32x496xf32>,
    %c0_26 = arith.constant 0 : index
    %c0_27 = arith.constant 0 : index
    %24 = vector.load %arg27[%c0_26, %c0_27] : memref<96x512xf32, #tpu.memory_space<vmem>>, vector<32x496xf32>
    %c0_28 = arith.constant 0 : index
    %c1_29 = arith.constant 1 : index
    %25 = vector.load %arg27[%c0_28, %c1_29] : memref<96x512xf32, #tpu.memory_space<vmem>>, vector<32x496xf32>
    %c0_30 = arith.constant 0 : index
    %c2_31 = arith.constant 2 : index
    %26 = vector.load %arg27[%c0_30, %c2_31] : memref<96x512xf32, #tpu.memory_space<vmem>>, vector<32x496xf32>
    %c0_32 = arith.constant 0 : index
    %c3_33 = arith.constant 3 : index
    %27 = vector.load %arg27[%c0_32, %c3_33] : memref<96x512xf32, #tpu.memory_space<vmem>>, vector<32x496xf32>
    %c0_34 = arith.constant 0 : index
    %c4_35 = arith.constant 4 : index
    %28 = vector.load %arg27[%c0_34, %c4_35] : memref<96x512xf32, #tpu.memory_space<vmem>>, vector<32x496xf32>
    %c0_36 = arith.constant 0 : index
    %c5_37 = arith.constant 5 : index
    %29 = vector.load %arg27[%c0_36, %c5_37] : memref<96x512xf32, #tpu.memory_space<vmem>>, vector<32x496xf32>
    %c0_38 = arith.constant 0 : index
    %c6_39 = arith.constant 6 : index
    %30 = vector.load %arg27[%c0_38, %c6_39] : memref<96x512xf32, #tpu.memory_space<vmem>>, vector<32x496xf32>
    %31 = tpu.concatenate %24, %25, %26, %27, %28, %29, %30 in 0 : vector<32x496xf32>, vector<32x496xf32>, vector<32x496xf32>, vector<32x496xf32>, vector<32x496xf32>, vector<32x496xf32>, vector<32x496xf32> -> vector<224x496xf32>
    %c0_40 = arith.constant 0 : index
    %c0_41 = arith.constant 0 : index
    %32 = vector.load %arg4[%c0_40, %c0_41] : memref<32x224xf32, #tpu.memory_space<vmem>>, vector<32x224xf32>
    %cst_42 = arith.constant dense<0.000000e+00> : vector<32x496xf32>
    %33 = tpu.matmul %32, %31, %cst_42 {dimension_numbers = #tpu.dot_dimension_numbers<[1], [0], [0], [1], [0, 0, 1, 1], [], []>} : vector<32x224xf32>, vector<224x496xf32>, vector<32x496xf32> -> vector<32x496xf32>
    %c0_43 = arith.constant 0 : index
    %c0_44 = arith.constant 0 : index
    %34 = vector.load %arg5[%c0_43, %c0_44] : memref<32x1xf32, #tpu.memory_space<vmem>>, vector<32x1xf32>
    %35 = vector.broadcast %34 : vector<32x1xf32> to vector<32x496xf32>
    %36 = arith.addf %33, %35 : vector<32x496xf32>
    %cst_45 = arith.constant 0.000000e+00 : f32
    %37 = vector.broadcast %cst_45 : f32 to vector<32x496xf32>
    %38 = arith.maximumf %36, %37 : vector<32x496xf32>
    %39 = tpu.iota {dimensions = array<i32: 0>} : vector<496x248xi32>
    %40 = tpu.iota {dimensions = array<i32: 1>} : vector<496x248xi32>
    %c2_i32 = arith.constant 2 : i32
    %41 = vector.broadcast %c2_i32 : i32 to vector<496x248xi32>
    %42 = arith.muli %41, %40 : vector<496x248xi32>
    %43 = arith.cmpi eq, %39, %42 : vector<496x248xi32>
    %c2_i32_46 = arith.constant 2 : i32
    %44 = vector.broadcast %c2_i32_46 : i32 to vector<496x248xi32>
    %45 = arith.muli %44, %40 : vector<496x248xi32>
    %c1_i32 = arith.constant 1 : i32
    %46 = vector.broadcast %c1_i32 : i32 to vector<496x248xi32>
    %47 = arith.addi %45, %46 : vector<496x248xi32>
    %48 = arith.cmpi eq, %39, %47 : vector<496x248xi32>
    %49 = arith.ori %43, %48 : vector<496x248xi1>
    %cst_47 = arith.constant 5.000000e-01 : f32
    %cst_48 = arith.constant 0.000000e+00 : f32
    %50 = vector.broadcast %cst_47 : f32 to vector<496x248xf32>
    %51 = vector.broadcast %cst_48 : f32 to vector<496x248xf32>
    %52 = arith.select %49, %50, %51 : vector<496x248xi1>, vector<496x248xf32>
    %cst_49 = arith.constant dense<0.000000e+00> : vector<32x248xf32>
    %53 = tpu.matmul %38, %52, %cst_49 {dimension_numbers = #tpu.dot_dimension_numbers<[1], [0], [0], [1], [0, 0, 1, 1], [], []>} : vector<32x496xf32>, vector<496x248xf32>, vector<32x248xf32> -> vector<32x248xf32>
    %cst_50 = arith.constant 0.000000e+00 : f32
    %54 = vector.broadcast %cst_50 : f32 to vector<32x3xf32>
    %c0_51 = arith.constant 0 : index
    %c0_52 = arith.constant 0 : index
    %55 = vector.load %arg27[%c0_51, %c0_52] : memref<96x512xf32, #tpu.memory_space<vmem>>, vector<32x3xf32>
    tpu.vector_store %arg27[%c0_51, %c0_52], %54 {strides = array<i32>} : memref<96x512xf32, #tpu.memory_space<vmem>>, vector<32x3xf32>,
    %c0_53 = arith.constant 0 : index
    %c251 = arith.constant 251 : index
    %56 = vector.load %arg27[%c0_53, %c251] : memref<96x512xf32, #tpu.memory_space<vmem>>, vector<32x3xf32>
    tpu.vector_store %arg27[%c0_53, %c251], %54 {strides = array<i32>} : memref<96x512xf32, #tpu.memory_space<vmem>>, vector<32x3xf32>,
    %c0_54 = arith.constant 0 : index
    %c3_55 = arith.constant 3 : index
    %57 = vector.load %arg27[%c0_54, %c3_55] : memref<96x512xf32, #tpu.memory_space<vmem>>, vector<32x248xf32>
    tpu.vector_store %arg27[%c0_54, %c3_55], %53 {strides = array<i32>} : memref<96x512xf32, #tpu.memory_space<vmem>>, vector<32x248xf32>,
    %c0_56 = arith.constant 0 : index
    %c0_57 = arith.constant 0 : index
    %58 = vector.load %arg27[%c0_56, %c0_57] : memref<96x512xf32, #tpu.memory_space<vmem>>, vector<32x248xf32>
    %c0_58 = arith.constant 0 : index
    %c1_59 = arith.constant 1 : index
    %59 = vector.load %arg27[%c0_58, %c1_59] : memref<96x512xf32, #tpu.memory_space<vmem>>, vector<32x248xf32>
    %c0_60 = arith.constant 0 : index
    %c2_61 = arith.constant 2 : index
    %60 = vector.load %arg27[%c0_60, %c2_61] : memref<96x512xf32, #tpu.memory_space<vmem>>, vector<32x248xf32>
    %c0_62 = arith.constant 0 : index
    %c3_63 = arith.constant 3 : index
    %61 = vector.load %arg27[%c0_62, %c3_63] : memref<96x512xf32, #tpu.memory_space<vmem>>, vector<32x248xf32>
    %c0_64 = arith.constant 0 : index
    %c4_65 = arith.constant 4 : index
    %62 = vector.load %arg27[%c0_64, %c4_65] : memref<96x512xf32, #tpu.memory_space<vmem>>, vector<32x248xf32>
    %c0_66 = arith.constant 0 : index
    %c5_67 = arith.constant 5 : index
    %63 = vector.load %arg27[%c0_66, %c5_67] : memref<96x512xf32, #tpu.memory_space<vmem>>, vector<32x248xf32>
    %c0_68 = arith.constant 0 : index
    %c6_69 = arith.constant 6 : index
    %64 = vector.load %arg27[%c0_68, %c6_69] : memref<96x512xf32, #tpu.memory_space<vmem>>, vector<32x248xf32>
    %65 = tpu.concatenate %58, %59, %60, %61, %62, %63, %64 in 0 : vector<32x248xf32>, vector<32x248xf32>, vector<32x248xf32>, vector<32x248xf32>, vector<32x248xf32>, vector<32x248xf32>, vector<32x248xf32> -> vector<224x248xf32>
    %c0_70 = arith.constant 0 : index
    %c0_71 = arith.constant 0 : index
    %66 = vector.load %arg4[%c0_70, %c0_71] : memref<32x224xf32, #tpu.memory_space<vmem>>, vector<32x224xf32>
    %cst_72 = arith.constant dense<0.000000e+00> : vector<32x248xf32>
    %67 = tpu.matmul %66, %65, %cst_72 {dimension_numbers = #tpu.dot_dimension_numbers<[1], [0], [0], [1], [0, 0, 1, 1], [], []>} : vector<32x224xf32>, vector<224x248xf32>, vector<32x248xf32> -> vector<32x248xf32>
    %c0_73 = arith.constant 0 : index
    %c0_74 = arith.constant 0 : index
    %68 = vector.load %arg5[%c0_73, %c0_74] : memref<32x1xf32, #tpu.memory_space<vmem>>, vector<32x1xf32>
    %69 = vector.broadcast %68 : vector<32x1xf32> to vector<32x248xf32>
    %70 = arith.addf %67, %69 : vector<32x248xf32>
    %cst_75 = arith.constant 0.000000e+00 : f32
    %71 = vector.broadcast %cst_75 : f32 to vector<32x248xf32>
    %72 = arith.maximumf %70, %71 : vector<32x248xf32>
    %73 = tpu.concatenate %53, %72 in 0 : vector<32x248xf32>, vector<32x248xf32> -> vector<64x248xf32>
    %cst_76 = arith.constant 0.000000e+00 : f32
    %74 = vector.broadcast %cst_76 : f32 to vector<64x3xf32>
    %c0_77 = arith.constant 0 : index
    %c0_78 = arith.constant 0 : index
    %75 = vector.load %arg27[%c0_77, %c0_78] : memref<96x512xf32, #tpu.memory_space<vmem>>, vector<64x3xf32>
    tpu.vector_store %arg27[%c0_77, %c0_78], %74 {strides = array<i32>} : memref<96x512xf32, #tpu.memory_space<vmem>>, vector<64x3xf32>,
    %c0_79 = arith.constant 0 : index
    %c251_80 = arith.constant 251 : index
    %76 = vector.load %arg27[%c0_79, %c251_80] : memref<96x512xf32, #tpu.memory_space<vmem>>, vector<64x3xf32>
    tpu.vector_store %arg27[%c0_79, %c251_80], %74 {strides = array<i32>} : memref<96x512xf32, #tpu.memory_space<vmem>>, vector<64x3xf32>,
    %c0_81 = arith.constant 0 : index
    %c3_82 = arith.constant 3 : index
    %77 = vector.load %arg27[%c0_81, %c3_82] : memref<96x512xf32, #tpu.memory_space<vmem>>, vector<64x248xf32>
    tpu.vector_store %arg27[%c0_81, %c3_82], %73 {strides = array<i32>} : memref<96x512xf32, #tpu.memory_space<vmem>>, vector<64x248xf32>,
    %c0_83 = arith.constant 0 : index
    %c0_84 = arith.constant 0 : index
    %78 = vector.load %arg27[%c0_83, %c0_84] : memref<96x512xf32, #tpu.memory_space<vmem>>, vector<64x248xf32>
    %c0_85 = arith.constant 0 : index
    %c1_86 = arith.constant 1 : index
    %79 = vector.load %arg27[%c0_85, %c1_86] : memref<96x512xf32, #tpu.memory_space<vmem>>, vector<64x248xf32>
    %c0_87 = arith.constant 0 : index
    %c2_88 = arith.constant 2 : index
    %80 = vector.load %arg27[%c0_87, %c2_88] : memref<96x512xf32, #tpu.memory_space<vmem>>, vector<64x248xf32>
    %c0_89 = arith.constant 0 : index
    %c3_90 = arith.constant 3 : index
    %81 = vector.load %arg27[%c0_89, %c3_90] : memref<96x512xf32, #tpu.memory_space<vmem>>, vector<64x248xf32>
    %c0_91 = arith.constant 0 : index
    %c4_92 = arith.constant 4 : index
    %82 = vector.load %arg27[%c0_91, %c4_92] : memref<96x512xf32, #tpu.memory_space<vmem>>, vector<64x248xf32>
    %c0_93 = arith.constant 0 : index
    %c5_94 = arith.constant 5 : index
    %83 = vector.load %arg27[%c0_93, %c5_94] : memref<96x512xf32, #tpu.memory_space<vmem>>, vector<64x248xf32>
    %c0_95 = arith.constant 0 : index
    %c6_96 = arith.constant 6 : index
    %84 = vector.load %arg27[%c0_95, %c6_96] : memref<96x512xf32, #tpu.memory_space<vmem>>, vector<64x248xf32>
    %85 = tpu.concatenate %78, %79, %80, %81, %82, %83, %84 in 0 : vector<64x248xf32>, vector<64x248xf32>, vector<64x248xf32>, vector<64x248xf32>, vector<64x248xf32>, vector<64x248xf32>, vector<64x248xf32> -> vector<448x248xf32>
    %c0_97 = arith.constant 0 : index
    %c0_98 = arith.constant 0 : index
    %86 = vector.load %arg6[%c0_97, %c0_98] : memref<32x448xf32, #tpu.memory_space<vmem>>, vector<32x448xf32>
    %cst_99 = arith.constant dense<0.000000e+00> : vector<32x248xf32>
    %87 = tpu.matmul %86, %85, %cst_99 {dimension_numbers = #tpu.dot_dimension_numbers<[1], [0], [0], [1], [0, 0, 1, 1], [], []>} : vector<32x448xf32>, vector<448x248xf32>, vector<32x248xf32> -> vector<32x248xf32>
    %c0_100 = arith.constant 0 : index
    %c0_101 = arith.constant 0 : index
    %88 = vector.load %arg7[%c0_100, %c0_101] : memref<32x1xf32, #tpu.memory_space<vmem>>, vector<32x1xf32>
    %89 = vector.broadcast %88 : vector<32x1xf32> to vector<32x248xf32>
    %90 = arith.addf %87, %89 : vector<32x248xf32>
    %cst_102 = arith.constant 0.000000e+00 : f32
    %91 = vector.broadcast %cst_102 : f32 to vector<32x248xf32>
    %92 = arith.maximumf %90, %91 : vector<32x248xf32>
    %93 = tpu.concatenate %53, %72, %92 in 0 : vector<32x248xf32>, vector<32x248xf32>, vector<32x248xf32> -> vector<96x248xf32>
    %cst_103 = arith.constant 0.000000e+00 : f32
    %94 = vector.broadcast %cst_103 : f32 to vector<96x3xf32>
    %c0_104 = arith.constant 0 : index
    %c0_105 = arith.constant 0 : index
    %95 = vector.load %arg27[%c0_104, %c0_105] : memref<96x512xf32, #tpu.memory_space<vmem>>, vector<96x3xf32>
    tpu.vector_store %arg27[%c0_104, %c0_105], %94 {strides = array<i32>} : memref<96x512xf32, #tpu.memory_space<vmem>>, vector<96x3xf32>,
    %c0_106 = arith.constant 0 : index
    %c251_107 = arith.constant 251 : index
    %96 = vector.load %arg27[%c0_106, %c251_107] : memref<96x512xf32, #tpu.memory_space<vmem>>, vector<96x3xf32>
    tpu.vector_store %arg27[%c0_106, %c251_107], %94 {strides = array<i32>} : memref<96x512xf32, #tpu.memory_space<vmem>>, vector<96x3xf32>,
    %c0_108 = arith.constant 0 : index
    %c3_109 = arith.constant 3 : index
    %97 = vector.load %arg27[%c0_108, %c3_109] : memref<96x512xf32, #tpu.memory_space<vmem>>, vector<96x248xf32>
    tpu.vector_store %arg27[%c0_108, %c3_109], %93 {strides = array<i32>} : memref<96x512xf32, #tpu.memory_space<vmem>>, vector<96x248xf32>,
    %c0_110 = arith.constant 0 : index
    %c0_111 = arith.constant 0 : index
    %98 = vector.load %arg27[%c0_110, %c0_111] : memref<96x512xf32, #tpu.memory_space<vmem>>, vector<96x248xf32>
    %c0_112 = arith.constant 0 : index
    %c1_113 = arith.constant 1 : index
    %99 = vector.load %arg27[%c0_112, %c1_113] : memref<96x512xf32, #tpu.memory_space<vmem>>, vector<96x248xf32>
    %c0_114 = arith.constant 0 : index
    %c2_115 = arith.constant 2 : index
    %100 = vector.load %arg27[%c0_114, %c2_115] : memref<96x512xf32, #tpu.memory_space<vmem>>, vector<96x248xf32>
    %c0_116 = arith.constant 0 : index
    %c3_117 = arith.constant 3 : index
    %101 = vector.load %arg27[%c0_116, %c3_117] : memref<96x512xf32, #tpu.memory_space<vmem>>, vector<96x248xf32>
    %c0_118 = arith.constant 0 : index
    %c4_119 = arith.constant 4 : index
    %102 = vector.load %arg27[%c0_118, %c4_119] : memref<96x512xf32, #tpu.memory_space<vmem>>, vector<96x248xf32>
    %c0_120 = arith.constant 0 : index
    %c5_121 = arith.constant 5 : index
    %103 = vector.load %arg27[%c0_120, %c5_121] : memref<96x512xf32, #tpu.memory_space<vmem>>, vector<96x248xf32>
    %c0_122 = arith.constant 0 : index
    %c6_123 = arith.constant 6 : index
    %104 = vector.load %arg27[%c0_122, %c6_123] : memref<96x512xf32, #tpu.memory_space<vmem>>, vector<96x248xf32>
    %105 = tpu.concatenate %98, %99, %100, %101, %102, %103, %104 in 0 : vector<96x248xf32>, vector<96x248xf32>, vector<96x248xf32>, vector<96x248xf32>, vector<96x248xf32>, vector<96x248xf32>, vector<96x248xf32> -> vector<672x248xf32>
    %c0_124 = arith.constant 0 : index
    %c0_125 = arith.constant 0 : index
    %106 = vector.load %arg8[%c0_124, %c0_125] : memref<24x672xf32, #tpu.memory_space<vmem>>, vector<24x672xf32>
    %cst_126 = arith.constant dense<0.000000e+00> : vector<24x248xf32>
    %107 = tpu.matmul %106, %105, %cst_126 {dimension_numbers = #tpu.dot_dimension_numbers<[1], [0], [0], [1], [0, 0, 1, 1], [], []>} : vector<24x672xf32>, vector<672x248xf32>, vector<24x248xf32> -> vector<24x248xf32>
    %c0_127 = arith.constant 0 : index
    %c0_128 = arith.constant 0 : index
    %108 = vector.load %arg9[%c0_127, %c0_128] : memref<24x1xf32, #tpu.memory_space<vmem>>, vector<24x1xf32>
    %109 = vector.broadcast %108 : vector<24x1xf32> to vector<24x248xf32>
    %110 = arith.addf %107, %109 : vector<24x248xf32>
    %cst_129 = arith.constant 0.000000e+00 : f32
    %111 = vector.broadcast %cst_129 : f32 to vector<24x248xf32>
    %112 = arith.maximumf %110, %111 : vector<24x248xf32>
    %113 = tpu.iota {dimensions = array<i32: 0>} : vector<248x124xi32>
    %114 = tpu.iota {dimensions = array<i32: 1>} : vector<248x124xi32>
    %c2_i32_130 = arith.constant 2 : i32
    %115 = vector.broadcast %c2_i32_130 : i32 to vector<248x124xi32>
    %116 = arith.muli %115, %114 : vector<248x124xi32>
    %117 = arith.cmpi eq, %113, %116 : vector<248x124xi32>
    %c2_i32_131 = arith.constant 2 : i32
    %118 = vector.broadcast %c2_i32_131 : i32 to vector<248x124xi32>
    %119 = arith.muli %118, %114 : vector<248x124xi32>
    %c1_i32_132 = arith.constant 1 : i32
    %120 = vector.broadcast %c1_i32_132 : i32 to vector<248x124xi32>
    %121 = arith.addi %119, %120 : vector<248x124xi32>
    %122 = arith.cmpi eq, %113, %121 : vector<248x124xi32>
    %123 = arith.ori %117, %122 : vector<248x124xi1>
    %cst_133 = arith.constant 5.000000e-01 : f32
    %cst_134 = arith.constant 0.000000e+00 : f32
    %124 = vector.broadcast %cst_133 : f32 to vector<248x124xf32>
    %125 = vector.broadcast %cst_134 : f32 to vector<248x124xf32>
    %126 = arith.select %123, %124, %125 : vector<248x124xi1>, vector<248x124xf32>
    %cst_135 = arith.constant dense<0.000000e+00> : vector<24x124xf32>
    %127 = tpu.matmul %112, %126, %cst_135 {dimension_numbers = #tpu.dot_dimension_numbers<[1], [0], [0], [1], [0, 0, 1, 1], [], []>} : vector<24x248xf32>, vector<248x124xf32>, vector<24x124xf32> -> vector<24x124xf32>
    %cst_136 = arith.constant 0.000000e+00 : f32
    %128 = vector.broadcast %cst_136 : f32 to vector<24x3xf32>
    %c0_137 = arith.constant 0 : index
    %c0_138 = arith.constant 0 : index
    %129 = vector.load %arg27[%c0_137, %c0_138] : memref<96x512xf32, #tpu.memory_space<vmem>>, vector<24x3xf32>
    tpu.vector_store %arg27[%c0_137, %c0_138], %128 {strides = array<i32>} : memref<96x512xf32, #tpu.memory_space<vmem>>, vector<24x3xf32>,
    %c0_139 = arith.constant 0 : index
    %c127 = arith.constant 127 : index
    %130 = vector.load %arg27[%c0_139, %c127] : memref<96x512xf32, #tpu.memory_space<vmem>>, vector<24x3xf32>
    tpu.vector_store %arg27[%c0_139, %c127], %128 {strides = array<i32>} : memref<96x512xf32, #tpu.memory_space<vmem>>, vector<24x3xf32>,
    %c0_140 = arith.constant 0 : index
    %c3_141 = arith.constant 3 : index
    %131 = vector.load %arg27[%c0_140, %c3_141] : memref<96x512xf32, #tpu.memory_space<vmem>>, vector<24x124xf32>
    tpu.vector_store %arg27[%c0_140, %c3_141], %127 {strides = array<i32>} : memref<96x512xf32, #tpu.memory_space<vmem>>, vector<24x124xf32>,
    %c0_142 = arith.constant 0 : index
    %c0_143 = arith.constant 0 : index
    %132 = vector.load %arg27[%c0_142, %c0_143] : memref<96x512xf32, #tpu.memory_space<vmem>>, vector<24x124xf32>
    %c0_144 = arith.constant 0 : index
    %c1_145 = arith.constant 1 : index
    %133 = vector.load %arg27[%c0_144, %c1_145] : memref<96x512xf32, #tpu.memory_space<vmem>>, vector<24x124xf32>
    %c0_146 = arith.constant 0 : index
    %c2_147 = arith.constant 2 : index
    %134 = vector.load %arg27[%c0_146, %c2_147] : memref<96x512xf32, #tpu.memory_space<vmem>>, vector<24x124xf32>
    %c0_148 = arith.constant 0 : index
    %c3_149 = arith.constant 3 : index
    %135 = vector.load %arg27[%c0_148, %c3_149] : memref<96x512xf32, #tpu.memory_space<vmem>>, vector<24x124xf32>
    %c0_150 = arith.constant 0 : index
    %c4_151 = arith.constant 4 : index
    %136 = vector.load %arg27[%c0_150, %c4_151] : memref<96x512xf32, #tpu.memory_space<vmem>>, vector<24x124xf32>
    %c0_152 = arith.constant 0 : index
    %c5_153 = arith.constant 5 : index
    %137 = vector.load %arg27[%c0_152, %c5_153] : memref<96x512xf32, #tpu.memory_space<vmem>>, vector<24x124xf32>
    %c0_154 = arith.constant 0 : index
    %c6_155 = arith.constant 6 : index
    %138 = vector.load %arg27[%c0_154, %c6_155] : memref<96x512xf32, #tpu.memory_space<vmem>>, vector<24x124xf32>
    %139 = tpu.concatenate %132, %133, %134, %135, %136, %137, %138 in 0 : vector<24x124xf32>, vector<24x124xf32>, vector<24x124xf32>, vector<24x124xf32>, vector<24x124xf32>, vector<24x124xf32>, vector<24x124xf32> -> vector<168x124xf32>
    %c0_156 = arith.constant 0 : index
    %c0_157 = arith.constant 0 : index
    %140 = vector.load %arg10[%c0_156, %c0_157] : memref<24x168xf32, #tpu.memory_space<vmem>>, vector<24x168xf32>
    %cst_158 = arith.constant dense<0.000000e+00> : vector<24x124xf32>
    %141 = tpu.matmul %140, %139, %cst_158 {dimension_numbers = #tpu.dot_dimension_numbers<[1], [0], [0], [1], [0, 0, 1, 1], [], []>} : vector<24x168xf32>, vector<168x124xf32>, vector<24x124xf32> -> vector<24x124xf32>
    %c0_159 = arith.constant 0 : index
    %c0_160 = arith.constant 0 : index
    %142 = vector.load %arg11[%c0_159, %c0_160] : memref<24x1xf32, #tpu.memory_space<vmem>>, vector<24x1xf32>
    %143 = vector.broadcast %142 : vector<24x1xf32> to vector<24x124xf32>
    %144 = arith.addf %141, %143 : vector<24x124xf32>
    %cst_161 = arith.constant 0.000000e+00 : f32
    %145 = vector.broadcast %cst_161 : f32 to vector<24x124xf32>
    %146 = arith.maximumf %144, %145 : vector<24x124xf32>
    %147 = tpu.concatenate %127, %146 in 0 : vector<24x124xf32>, vector<24x124xf32> -> vector<48x124xf32>
    %cst_162 = arith.constant 0.000000e+00 : f32
    %148 = vector.broadcast %cst_162 : f32 to vector<48x3xf32>
    %c0_163 = arith.constant 0 : index
    %c0_164 = arith.constant 0 : index
    %149 = vector.load %arg27[%c0_163, %c0_164] : memref<96x512xf32, #tpu.memory_space<vmem>>, vector<48x3xf32>
    tpu.vector_store %arg27[%c0_163, %c0_164], %148 {strides = array<i32>} : memref<96x512xf32, #tpu.memory_space<vmem>>, vector<48x3xf32>,
    %c0_165 = arith.constant 0 : index
    %c127_166 = arith.constant 127 : index
    %150 = vector.load %arg27[%c0_165, %c127_166] : memref<96x512xf32, #tpu.memory_space<vmem>>, vector<48x3xf32>
    tpu.vector_store %arg27[%c0_165, %c127_166], %148 {strides = array<i32>} : memref<96x512xf32, #tpu.memory_space<vmem>>, vector<48x3xf32>,
    %c0_167 = arith.constant 0 : index
    %c3_168 = arith.constant 3 : index
    %151 = vector.load %arg27[%c0_167, %c3_168] : memref<96x512xf32, #tpu.memory_space<vmem>>, vector<48x124xf32>
    tpu.vector_store %arg27[%c0_167, %c3_168], %147 {strides = array<i32>} : memref<96x512xf32, #tpu.memory_space<vmem>>, vector<48x124xf32>,
    %c0_169 = arith.constant 0 : index
    %c0_170 = arith.constant 0 : index
    %152 = vector.load %arg27[%c0_169, %c0_170] : memref<96x512xf32, #tpu.memory_space<vmem>>, vector<48x124xf32>
    %c0_171 = arith.constant 0 : index
    %c1_172 = arith.constant 1 : index
    %153 = vector.load %arg27[%c0_171, %c1_172] : memref<96x512xf32, #tpu.memory_space<vmem>>, vector<48x124xf32>
    %c0_173 = arith.constant 0 : index
    %c2_174 = arith.constant 2 : index
    %154 = vector.load %arg27[%c0_173, %c2_174] : memref<96x512xf32, #tpu.memory_space<vmem>>, vector<48x124xf32>
    %c0_175 = arith.constant 0 : index
    %c3_176 = arith.constant 3 : index
    %155 = vector.load %arg27[%c0_175, %c3_176] : memref<96x512xf32, #tpu.memory_space<vmem>>, vector<48x124xf32>
    %c0_177 = arith.constant 0 : index
    %c4_178 = arith.constant 4 : index
    %156 = vector.load %arg27[%c0_177, %c4_178] : memref<96x512xf32, #tpu.memory_space<vmem>>, vector<48x124xf32>
    %c0_179 = arith.constant 0 : index
    %c5_180 = arith.constant 5 : index
    %157 = vector.load %arg27[%c0_179, %c5_180] : memref<96x512xf32, #tpu.memory_space<vmem>>, vector<48x124xf32>
    %c0_181 = arith.constant 0 : index
    %c6_182 = arith.constant 6 : index
    %158 = vector.load %arg27[%c0_181, %c6_182] : memref<96x512xf32, #tpu.memory_space<vmem>>, vector<48x124xf32>
    %159 = tpu.concatenate %152, %153, %154, %155, %156, %157, %158 in 0 : vector<48x124xf32>, vector<48x124xf32>, vector<48x124xf32>, vector<48x124xf32>, vector<48x124xf32>, vector<48x124xf32>, vector<48x124xf32> -> vector<336x124xf32>
    %c0_183 = arith.constant 0 : index
    %c0_184 = arith.constant 0 : index
    %160 = vector.load %arg12[%c0_183, %c0_184] : memref<24x336xf32, #tpu.memory_space<vmem>>, vector<24x336xf32>
    %cst_185 = arith.constant dense<0.000000e+00> : vector<24x124xf32>
    %161 = tpu.matmul %160, %159, %cst_185 {dimension_numbers = #tpu.dot_dimension_numbers<[1], [0], [0], [1], [0, 0, 1, 1], [], []>} : vector<24x336xf32>, vector<336x124xf32>, vector<24x124xf32> -> vector<24x124xf32>
    %c0_186 = arith.constant 0 : index
    %c0_187 = arith.constant 0 : index
    %162 = vector.load %arg13[%c0_186, %c0_187] : memref<24x1xf32, #tpu.memory_space<vmem>>, vector<24x1xf32>
    %163 = vector.broadcast %162 : vector<24x1xf32> to vector<24x124xf32>
    %164 = arith.addf %161, %163 : vector<24x124xf32>
    %cst_188 = arith.constant 0.000000e+00 : f32
    %165 = vector.broadcast %cst_188 : f32 to vector<24x124xf32>
    %166 = arith.maximumf %164, %165 : vector<24x124xf32>
    %167 = tpu.concatenate %127, %146, %166 in 0 : vector<24x124xf32>, vector<24x124xf32>, vector<24x124xf32> -> vector<72x124xf32>
    %cst_189 = arith.constant 0.000000e+00 : f32
    %168 = vector.broadcast %cst_189 : f32 to vector<72x3xf32>
    %c0_190 = arith.constant 0 : index
    %c0_191 = arith.constant 0 : index
    %169 = vector.load %arg27[%c0_190, %c0_191] : memref<96x512xf32, #tpu.memory_space<vmem>>, vector<72x3xf32>
    tpu.vector_store %arg27[%c0_190, %c0_191], %168 {strides = array<i32>} : memref<96x512xf32, #tpu.memory_space<vmem>>, vector<72x3xf32>,
    %c0_192 = arith.constant 0 : index
    %c127_193 = arith.constant 127 : index
    %170 = vector.load %arg27[%c0_192, %c127_193] : memref<96x512xf32, #tpu.memory_space<vmem>>, vector<72x3xf32>
    tpu.vector_store %arg27[%c0_192, %c127_193], %168 {strides = array<i32>} : memref<96x512xf32, #tpu.memory_space<vmem>>, vector<72x3xf32>,
    %c0_194 = arith.constant 0 : index
    %c3_195 = arith.constant 3 : index
    %171 = vector.load %arg27[%c0_194, %c3_195] : memref<96x512xf32, #tpu.memory_space<vmem>>, vector<72x124xf32>
    tpu.vector_store %arg27[%c0_194, %c3_195], %167 {strides = array<i32>} : memref<96x512xf32, #tpu.memory_space<vmem>>, vector<72x124xf32>,
    %c0_196 = arith.constant 0 : index
    %c0_197 = arith.constant 0 : index
    %172 = vector.load %arg27[%c0_196, %c0_197] : memref<96x512xf32, #tpu.memory_space<vmem>>, vector<72x124xf32>
    %c0_198 = arith.constant 0 : index
    %c1_199 = arith.constant 1 : index
    %173 = vector.load %arg27[%c0_198, %c1_199] : memref<96x512xf32, #tpu.memory_space<vmem>>, vector<72x124xf32>
    %c0_200 = arith.constant 0 : index
    %c2_201 = arith.constant 2 : index
    %174 = vector.load %arg27[%c0_200, %c2_201] : memref<96x512xf32, #tpu.memory_space<vmem>>, vector<72x124xf32>
    %c0_202 = arith.constant 0 : index
    %c3_203 = arith.constant 3 : index
    %175 = vector.load %arg27[%c0_202, %c3_203] : memref<96x512xf32, #tpu.memory_space<vmem>>, vector<72x124xf32>
    %c0_204 = arith.constant 0 : index
    %c4_205 = arith.constant 4 : index
    %176 = vector.load %arg27[%c0_204, %c4_205] : memref<96x512xf32, #tpu.memory_space<vmem>>, vector<72x124xf32>
    %c0_206 = arith.constant 0 : index
    %c5_207 = arith.constant 5 : index
    %177 = vector.load %arg27[%c0_206, %c5_207] : memref<96x512xf32, #tpu.memory_space<vmem>>, vector<72x124xf32>
    %c0_208 = arith.constant 0 : index
    %c6_209 = arith.constant 6 : index
    %178 = vector.load %arg27[%c0_208, %c6_209] : memref<96x512xf32, #tpu.memory_space<vmem>>, vector<72x124xf32>
    %179 = tpu.concatenate %172, %173, %174, %175, %176, %177, %178 in 0 : vector<72x124xf32>, vector<72x124xf32>, vector<72x124xf32>, vector<72x124xf32>, vector<72x124xf32>, vector<72x124xf32>, vector<72x124xf32> -> vector<504x124xf32>
    %c0_210 = arith.constant 0 : index
    %c0_211 = arith.constant 0 : index
    %180 = vector.load %arg14[%c0_210, %c0_211] : memref<16x504xf32, #tpu.memory_space<vmem>>, vector<16x504xf32>
    %cst_212 = arith.constant dense<0.000000e+00> : vector<16x124xf32>
    %181 = tpu.matmul %180, %179, %cst_212 {dimension_numbers = #tpu.dot_dimension_numbers<[1], [0], [0], [1], [0, 0, 1, 1], [], []>} : vector<16x504xf32>, vector<504x124xf32>, vector<16x124xf32> -> vector<16x124xf32>
    %c0_213 = arith.constant 0 : index
    %c0_214 = arith.constant 0 : index
    %182 = vector.load %arg15[%c0_213, %c0_214] : memref<16x1xf32, #tpu.memory_space<vmem>>, vector<16x1xf32>
    %183 = vector.broadcast %182 : vector<16x1xf32> to vector<16x124xf32>
    %184 = arith.addf %181, %183 : vector<16x124xf32>
    %cst_215 = arith.constant 0.000000e+00 : f32
    %185 = vector.broadcast %cst_215 : f32 to vector<16x124xf32>
    %186 = arith.maximumf %184, %185 : vector<16x124xf32>
    %187 = tpu.iota {dimensions = array<i32: 0>} : vector<124x62xi32>
    %188 = tpu.iota {dimensions = array<i32: 1>} : vector<124x62xi32>
    %c2_i32_216 = arith.constant 2 : i32
    %189 = vector.broadcast %c2_i32_216 : i32 to vector<124x62xi32>
    %190 = arith.muli %189, %188 : vector<124x62xi32>
    %191 = arith.cmpi eq, %187, %190 : vector<124x62xi32>
    %c2_i32_217 = arith.constant 2 : i32
    %192 = vector.broadcast %c2_i32_217 : i32 to vector<124x62xi32>
    %193 = arith.muli %192, %188 : vector<124x62xi32>
    %c1_i32_218 = arith.constant 1 : i32
    %194 = vector.broadcast %c1_i32_218 : i32 to vector<124x62xi32>
    %195 = arith.addi %193, %194 : vector<124x62xi32>
    %196 = arith.cmpi eq, %187, %195 : vector<124x62xi32>
    %197 = arith.ori %191, %196 : vector<124x62xi1>
    %cst_219 = arith.constant 5.000000e-01 : f32
    %cst_220 = arith.constant 0.000000e+00 : f32
    %198 = vector.broadcast %cst_219 : f32 to vector<124x62xf32>
    %199 = vector.broadcast %cst_220 : f32 to vector<124x62xf32>
    %200 = arith.select %197, %198, %199 : vector<124x62xi1>, vector<124x62xf32>
    %cst_221 = arith.constant dense<0.000000e+00> : vector<16x62xf32>
    %201 = tpu.matmul %186, %200, %cst_221 {dimension_numbers = #tpu.dot_dimension_numbers<[1], [0], [0], [1], [0, 0, 1, 1], [], []>} : vector<16x124xf32>, vector<124x62xf32>, vector<16x62xf32> -> vector<16x62xf32>
    %cst_222 = arith.constant 0.000000e+00 : f32
    %202 = vector.broadcast %cst_222 : f32 to vector<16x3xf32>
    %c0_223 = arith.constant 0 : index
    %c0_224 = arith.constant 0 : index
    %203 = vector.load %arg27[%c0_223, %c0_224] : memref<96x512xf32, #tpu.memory_space<vmem>>, vector<16x3xf32>
    tpu.vector_store %arg27[%c0_223, %c0_224], %202 {strides = array<i32>} : memref<96x512xf32, #tpu.memory_space<vmem>>, vector<16x3xf32>,
    %c0_225 = arith.constant 0 : index
    %c65 = arith.constant 65 : index
    %204 = vector.load %arg27[%c0_225, %c65] : memref<96x512xf32, #tpu.memory_space<vmem>>, vector<16x3xf32>
    tpu.vector_store %arg27[%c0_225, %c65], %202 {strides = array<i32>} : memref<96x512xf32, #tpu.memory_space<vmem>>, vector<16x3xf32>,
    %c0_226 = arith.constant 0 : index
    %c3_227 = arith.constant 3 : index
    %205 = vector.load %arg27[%c0_226, %c3_227] : memref<96x512xf32, #tpu.memory_space<vmem>>, vector<16x62xf32>
    tpu.vector_store %arg27[%c0_226, %c3_227], %201 {strides = array<i32>} : memref<96x512xf32, #tpu.memory_space<vmem>>, vector<16x62xf32>,
    %c0_228 = arith.constant 0 : index
    %c0_229 = arith.constant 0 : index
    %206 = vector.load %arg27[%c0_228, %c0_229] : memref<96x512xf32, #tpu.memory_space<vmem>>, vector<16x62xf32>
    %c0_230 = arith.constant 0 : index
    %c1_231 = arith.constant 1 : index
    %207 = vector.load %arg27[%c0_230, %c1_231] : memref<96x512xf32, #tpu.memory_space<vmem>>, vector<16x62xf32>
    %c0_232 = arith.constant 0 : index
    %c2_233 = arith.constant 2 : index
    %208 = vector.load %arg27[%c0_232, %c2_233] : memref<96x512xf32, #tpu.memory_space<vmem>>, vector<16x62xf32>
    %c0_234 = arith.constant 0 : index
    %c3_235 = arith.constant 3 : index
    %209 = vector.load %arg27[%c0_234, %c3_235] : memref<96x512xf32, #tpu.memory_space<vmem>>, vector<16x62xf32>
    %c0_236 = arith.constant 0 : index
    %c4_237 = arith.constant 4 : index
    %210 = vector.load %arg27[%c0_236, %c4_237] : memref<96x512xf32, #tpu.memory_space<vmem>>, vector<16x62xf32>
    %c0_238 = arith.constant 0 : index
    %c5_239 = arith.constant 5 : index
    %211 = vector.load %arg27[%c0_238, %c5_239] : memref<96x512xf32, #tpu.memory_space<vmem>>, vector<16x62xf32>
    %c0_240 = arith.constant 0 : index
    %c6_241 = arith.constant 6 : index
    %212 = vector.load %arg27[%c0_240, %c6_241] : memref<96x512xf32, #tpu.memory_space<vmem>>, vector<16x62xf32>
    %213 = tpu.concatenate %206, %207, %208, %209, %210, %211, %212 in 0 : vector<16x62xf32>, vector<16x62xf32>, vector<16x62xf32>, vector<16x62xf32>, vector<16x62xf32>, vector<16x62xf32>, vector<16x62xf32> -> vector<112x62xf32>
    %c0_242 = arith.constant 0 : index
    %c0_243 = arith.constant 0 : index
    %214 = vector.load %arg16[%c0_242, %c0_243] : memref<16x112xf32, #tpu.memory_space<vmem>>, vector<16x112xf32>
    %cst_244 = arith.constant dense<0.000000e+00> : vector<16x62xf32>
    %215 = tpu.matmul %214, %213, %cst_244 {dimension_numbers = #tpu.dot_dimension_numbers<[1], [0], [0], [1], [0, 0, 1, 1], [], []>} : vector<16x112xf32>, vector<112x62xf32>, vector<16x62xf32> -> vector<16x62xf32>
    %c0_245 = arith.constant 0 : index
    %c0_246 = arith.constant 0 : index
    %216 = vector.load %arg17[%c0_245, %c0_246] : memref<16x1xf32, #tpu.memory_space<vmem>>, vector<16x1xf32>
    %217 = vector.broadcast %216 : vector<16x1xf32> to vector<16x62xf32>
    %218 = arith.addf %215, %217 : vector<16x62xf32>
    %cst_247 = arith.constant 0.000000e+00 : f32
    %219 = vector.broadcast %cst_247 : f32 to vector<16x62xf32>
    %220 = arith.maximumf %218, %219 : vector<16x62xf32>
    %221 = tpu.concatenate %201, %220 in 0 : vector<16x62xf32>, vector<16x62xf32> -> vector<32x62xf32>
    %cst_248 = arith.constant 0.000000e+00 : f32
    %222 = vector.broadcast %cst_248 : f32 to vector<32x3xf32>
    %c0_249 = arith.constant 0 : index
    %c0_250 = arith.constant 0 : index
    %223 = vector.load %arg27[%c0_249, %c0_250] : memref<96x512xf32, #tpu.memory_space<vmem>>, vector<32x3xf32>
    tpu.vector_store %arg27[%c0_249, %c0_250], %222 {strides = array<i32>} : memref<96x512xf32, #tpu.memory_space<vmem>>, vector<32x3xf32>,
    %c0_251 = arith.constant 0 : index
    %c65_252 = arith.constant 65 : index
    %224 = vector.load %arg27[%c0_251, %c65_252] : memref<96x512xf32, #tpu.memory_space<vmem>>, vector<32x3xf32>
    tpu.vector_store %arg27[%c0_251, %c65_252], %222 {strides = array<i32>} : memref<96x512xf32, #tpu.memory_space<vmem>>, vector<32x3xf32>,
    %c0_253 = arith.constant 0 : index
    %c3_254 = arith.constant 3 : index
    %225 = vector.load %arg27[%c0_253, %c3_254] : memref<96x512xf32, #tpu.memory_space<vmem>>, vector<32x62xf32>
    tpu.vector_store %arg27[%c0_253, %c3_254], %221 {strides = array<i32>} : memref<96x512xf32, #tpu.memory_space<vmem>>, vector<32x62xf32>,
    %c0_255 = arith.constant 0 : index
    %c0_256 = arith.constant 0 : index
    %226 = vector.load %arg27[%c0_255, %c0_256] : memref<96x512xf32, #tpu.memory_space<vmem>>, vector<32x62xf32>
    %c0_257 = arith.constant 0 : index
    %c1_258 = arith.constant 1 : index
    %227 = vector.load %arg27[%c0_257, %c1_258] : memref<96x512xf32, #tpu.memory_space<vmem>>, vector<32x62xf32>
    %c0_259 = arith.constant 0 : index
    %c2_260 = arith.constant 2 : index
    %228 = vector.load %arg27[%c0_259, %c2_260] : memref<96x512xf32, #tpu.memory_space<vmem>>, vector<32x62xf32>
    %c0_261 = arith.constant 0 : index
    %c3_262 = arith.constant 3 : index
    %229 = vector.load %arg27[%c0_261, %c3_262] : memref<96x512xf32, #tpu.memory_space<vmem>>, vector<32x62xf32>
    %c0_263 = arith.constant 0 : index
    %c4_264 = arith.constant 4 : index
    %230 = vector.load %arg27[%c0_263, %c4_264] : memref<96x512xf32, #tpu.memory_space<vmem>>, vector<32x62xf32>
    %c0_265 = arith.constant 0 : index
    %c5_266 = arith.constant 5 : index
    %231 = vector.load %arg27[%c0_265, %c5_266] : memref<96x512xf32, #tpu.memory_space<vmem>>, vector<32x62xf32>
    %c0_267 = arith.constant 0 : index
    %c6_268 = arith.constant 6 : index
    %232 = vector.load %arg27[%c0_267, %c6_268] : memref<96x512xf32, #tpu.memory_space<vmem>>, vector<32x62xf32>
    %233 = tpu.concatenate %226, %227, %228, %229, %230, %231, %232 in 0 : vector<32x62xf32>, vector<32x62xf32>, vector<32x62xf32>, vector<32x62xf32>, vector<32x62xf32>, vector<32x62xf32>, vector<32x62xf32> -> vector<224x62xf32>
    %c0_269 = arith.constant 0 : index
    %c0_270 = arith.constant 0 : index
    %234 = vector.load %arg18[%c0_269, %c0_270] : memref<16x224xf32, #tpu.memory_space<vmem>>, vector<16x224xf32>
    %cst_271 = arith.constant dense<0.000000e+00> : vector<16x62xf32>
    %235 = tpu.matmul %234, %233, %cst_271 {dimension_numbers = #tpu.dot_dimension_numbers<[1], [0], [0], [1], [0, 0, 1, 1], [], []>} : vector<16x224xf32>, vector<224x62xf32>, vector<16x62xf32> -> vector<16x62xf32>
    %c0_272 = arith.constant 0 : index
    %c0_273 = arith.constant 0 : index
    %236 = vector.load %arg19[%c0_272, %c0_273] : memref<16x1xf32, #tpu.memory_space<vmem>>, vector<16x1xf32>
    %237 = vector.broadcast %236 : vector<16x1xf32> to vector<16x62xf32>
    %238 = arith.addf %235, %237 : vector<16x62xf32>
    %cst_274 = arith.constant 0.000000e+00 : f32
    %239 = vector.broadcast %cst_274 : f32 to vector<16x62xf32>
    %240 = arith.maximumf %238, %239 : vector<16x62xf32>
    %241 = tpu.concatenate %201, %220, %240 in 0 : vector<16x62xf32>, vector<16x62xf32>, vector<16x62xf32> -> vector<48x62xf32>
    %242 = tpu.concatenate %241, %241, %241, %241, %241, %241, %241, %241, %241, %241, %241, %241, %241, %241, %241, %241 in 0 : vector<48x62xf32>, vector<48x62xf32>, vector<48x62xf32>, vector<48x62xf32>, vector<48x62xf32>, vector<48x62xf32>, vector<48x62xf32>, vector<48x62xf32>, vector<48x62xf32>, vector<48x62xf32>, vector<48x62xf32>, vector<48x62xf32>, vector<48x62xf32>, vector<48x62xf32>, vector<48x62xf32>, vector<48x62xf32> -> vector<768x62xf32>
    %c0_275 = arith.constant 0 : index
    %c0_276 = arith.constant 0 : index
    %243 = vector.load %arg20[%c0_275, %c0_276] : memref<768x62xf32, #tpu.memory_space<vmem>>, vector<768x62xf32>
    %244 = arith.mulf %243, %242 : vector<768x62xf32>
    %cst_277 = arith.constant dense<0.000000e+00> : vector<768xf32>
    %245 = vector.multi_reduction <add>, %244, %cst_277 [1] : vector<768x62xf32> to vector<768xf32>
    %246 = vector.shape_cast %245 : vector<768xf32> to vector<768x1xf32>
    %247 = tpu.iota {dimensions = array<i32: 0>} : vector<16x768xi32>
    %248 = tpu.iota {dimensions = array<i32: 1>} : vector<16x768xi32>
    %c48_i32 = arith.constant 48 : i32
    %249 = vector.broadcast %c48_i32 : i32 to vector<16x768xi32>
    %250 = arith.muli %247, %249 : vector<16x768xi32>
    %251 = arith.cmpi sge, %248, %250 : vector<16x768xi32>
    %c1_i32_278 = arith.constant 1 : i32
    %252 = vector.broadcast %c1_i32_278 : i32 to vector<16x768xi32>
    %253 = arith.addi %247, %252 : vector<16x768xi32>
    %c48_i32_279 = arith.constant 48 : i32
    %254 = vector.broadcast %c48_i32_279 : i32 to vector<16x768xi32>
    %255 = arith.muli %253, %254 : vector<16x768xi32>
    %256 = arith.cmpi slt, %248, %255 : vector<16x768xi32>
    %257 = arith.andi %251, %256 : vector<16x768xi1>
    %cst_280 = arith.constant 1.000000e+00 : f32
    %cst_281 = arith.constant 0.000000e+00 : f32
    %258 = vector.broadcast %cst_280 : f32 to vector<16x768xf32>
    %259 = vector.broadcast %cst_281 : f32 to vector<16x768xf32>
    %260 = arith.select %257, %258, %259 : vector<16x768xi1>, vector<16x768xf32>
    %cst_282 = arith.constant dense<0.000000e+00> : vector<16x1xf32>
    %261 = tpu.matmul %260, %246, %cst_282 {dimension_numbers = #tpu.dot_dimension_numbers<[1], [0], [0], [1], [0, 0, 1, 1], [], []>} : vector<16x768xf32>, vector<768x1xf32>, vector<16x1xf32> -> vector<16x1xf32>
    %c0_283 = arith.constant 0 : index
    %c0_284 = arith.constant 0 : index
    %262 = vector.load %arg21[%c0_283, %c0_284] : memref<16x1xf32, #tpu.memory_space<vmem>>, vector<16x1xf32>
    %263 = arith.addf %261, %262 : vector<16x1xf32>
    %cst_285 = arith.constant 0.000000e+00 : f32
    %264 = vector.broadcast %cst_285 : f32 to vector<16x1xf32>
    %265 = arith.maximumf %263, %264 : vector<16x1xf32>
    %c0_286 = arith.constant 0 : index
    %c0_287 = arith.constant 0 : index
    %266 = vector.load %arg22[%c0_286, %c0_287] : memref<64x16xf32, #tpu.memory_space<vmem>>, vector<64x16xf32>
    %cst_288 = arith.constant dense<0.000000e+00> : vector<64x1xf32>
    %267 = tpu.matmul %266, %265, %cst_288 {dimension_numbers = #tpu.dot_dimension_numbers<[1], [0], [0], [1], [0, 0, 1, 1], [], []>} : vector<64x16xf32>, vector<16x1xf32>, vector<64x1xf32> -> vector<64x1xf32>
    %c0_289 = arith.constant 0 : index
    %c0_290 = arith.constant 0 : index
    %268 = vector.load %arg23[%c0_289, %c0_290] : memref<64x1xf32, #tpu.memory_space<vmem>>, vector<64x1xf32>
    %269 = arith.addf %267, %268 : vector<64x1xf32>
    %cst_291 = arith.constant 0.000000e+00 : f32
    %270 = vector.broadcast %cst_291 : f32 to vector<64x1xf32>
    %271 = arith.maximumf %269, %270 : vector<64x1xf32>
    %c0_292 = arith.constant 0 : index
    %c0_293 = arith.constant 0 : index
    %272 = vector.load %arg24[%c0_292, %c0_293] : memref<1x64xf32, #tpu.memory_space<vmem>>, vector<1x64xf32>
    %cst_294 = arith.constant dense<0.000000e+00> : vector<1x1xf32>
    %273 = tpu.matmul %272, %271, %cst_294 {dimension_numbers = #tpu.dot_dimension_numbers<[1], [0], [0], [1], [0, 0, 1, 1], [], []>} : vector<1x64xf32>, vector<64x1xf32>, vector<1x1xf32> -> vector<1x1xf32>
    %c0_295 = arith.constant 0 : index
    %c0_296 = arith.constant 0 : index
    %274 = vector.load %arg25[%c0_295, %c0_296] : memref<1x1xf32, #tpu.memory_space<vmem>>, vector<1x1xf32>
    %275 = arith.addf %273, %274 : vector<1x1xf32>
    %c0_297 = arith.constant 0 : index
    %c0_298 = arith.constant 0 : index
    %c0_299 = arith.constant 0 : index
    %276 = vector.load %arg26[%c0_297, %c0_298, %c0_299] : memref<1x1x1xf32, #tpu.memory_space<vmem>>, vector<1x1x1xf32>
    %277 = vector.shape_cast %276 : vector<1x1x1xf32> to vector<1x1xf32>
    %278 = vector.shape_cast %275 : vector<1x1xf32> to vector<1x1x1xf32>
    tpu.vector_store %arg26[%c0_297, %c0_298, %c0_299], %278 {strides = array<i32>} : memref<1x1x1xf32, #tpu.memory_space<vmem>>, vector<1x1x1xf32>,
    return
  }
  func.func @transform_0(%arg0: i32) -> (i32, i32, i32) {
    %c0_i32 = arith.constant 0 : i32
    %c0_i32_0 = arith.constant 0 : i32
    %c0_i32_1 = arith.constant 0 : i32
    return %arg0, %c0_i32, %c0_i32_0 : i32, i32, i32
  }
  func.func @transform_1(%arg0: i32) -> (i32, i32) {
    %c0_i32 = arith.constant 0 : i32
    %c0_i32_0 = arith.constant 0 : i32
    %c0_i32_1 = arith.constant 0 : i32
    return %c0_i32, %c0_i32_0 : i32, i32
  }
  func.func @transform_2(%arg0: i32) -> (i32, i32) {
    %c0_i32 = arith.constant 0 : i32
    %c0_i32_0 = arith.constant 0 : i32
    %c0_i32_1 = arith.constant 0 : i32
    return %c0_i32, %c0_i32_0 : i32, i32
  }
  func.func @transform_3(%arg0: i32) -> (i32, i32) {
    %c0_i32 = arith.constant 0 : i32
    %c0_i32_0 = arith.constant 0 : i32
    %c0_i32_1 = arith.constant 0 : i32
    return %c0_i32, %c0_i32_0 : i32, i32
  }
  func.func @transform_4(%arg0: i32) -> (i32, i32) {
    %c0_i32 = arith.constant 0 : i32
    %c0_i32_0 = arith.constant 0 : i32
    %c0_i32_1 = arith.constant 0 : i32
    return %c0_i32, %c0_i32_0 : i32, i32
  }
  func.func @transform_5(%arg0: i32) -> (i32, i32) {
    %c0_i32 = arith.constant 0 : i32
    %c0_i32_0 = arith.constant 0 : i32
    %c0_i32_1 = arith.constant 0 : i32
    return %c0_i32, %c0_i32_0 : i32, i32
  }
  func.func @transform_6(%arg0: i32) -> (i32, i32) {
    %c0_i32 = arith.constant 0 : i32
    %c0_i32_0 = arith.constant 0 : i32
    %c0_i32_1 = arith.constant 0 : i32
    return %c0_i32, %c0_i32_0 : i32, i32
  }
  func.func @transform_7(%arg0: i32) -> (i32, i32) {
    %c0_i32 = arith.constant 0 : i32
    %c0_i32_0 = arith.constant 0 : i32
    %c0_i32_1 = arith.constant 0 : i32
    return %c0_i32, %c0_i32_0 : i32, i32
  }
  func.func @transform_8(%arg0: i32) -> (i32, i32) {
    %c0_i32 = arith.constant 0 : i32
    %c0_i32_0 = arith.constant 0 : i32
    %c0_i32_1 = arith.constant 0 : i32
    return %c0_i32, %c0_i32_0 : i32, i32
  }
  func.func @transform_9(%arg0: i32) -> (i32, i32) {
    %c0_i32 = arith.constant 0 : i32
    %c0_i32_0 = arith.constant 0 : i32
    %c0_i32_1 = arith.constant 0 : i32
    return %c0_i32, %c0_i32_0 : i32, i32
  }
  func.func @transform_10(%arg0: i32) -> (i32, i32) {
    %c0_i32 = arith.constant 0 : i32
    %c0_i32_0 = arith.constant 0 : i32
    %c0_i32_1 = arith.constant 0 : i32
    return %c0_i32, %c0_i32_0 : i32, i32
  }
  func.func @transform_11(%arg0: i32) -> (i32, i32) {
    %c0_i32 = arith.constant 0 : i32
    %c0_i32_0 = arith.constant 0 : i32
    %c0_i32_1 = arith.constant 0 : i32
    return %c0_i32, %c0_i32_0 : i32, i32
  }
  func.func @transform_12(%arg0: i32) -> (i32, i32) {
    %c0_i32 = arith.constant 0 : i32
    %c0_i32_0 = arith.constant 0 : i32
    %c0_i32_1 = arith.constant 0 : i32
    return %c0_i32, %c0_i32_0 : i32, i32
  }
  func.func @transform_13(%arg0: i32) -> (i32, i32) {
    %c0_i32 = arith.constant 0 : i32
    %c0_i32_0 = arith.constant 0 : i32
    %c0_i32_1 = arith.constant 0 : i32
    return %c0_i32, %c0_i32_0 : i32, i32
  }
  func.func @transform_14(%arg0: i32) -> (i32, i32) {
    %c0_i32 = arith.constant 0 : i32
    %c0_i32_0 = arith.constant 0 : i32
    %c0_i32_1 = arith.constant 0 : i32
    return %c0_i32, %c0_i32_0 : i32, i32
  }
  func.func @transform_15(%arg0: i32) -> (i32, i32) {
    %c0_i32 = arith.constant 0 : i32
    %c0_i32_0 = arith.constant 0 : i32
    %c0_i32_1 = arith.constant 0 : i32
    return %c0_i32, %c0_i32_0 : i32, i32
  }
  func.func @transform_16(%arg0: i32) -> (i32, i32) {
    %c0_i32 = arith.constant 0 : i32
    %c0_i32_0 = arith.constant 0 : i32
    %c0_i32_1 = arith.constant 0 : i32
    return %c0_i32, %c0_i32_0 : i32, i32
  }
  func.func @transform_17(%arg0: i32) -> (i32, i32) {
    %c0_i32 = arith.constant 0 : i32
    %c0_i32_0 = arith.constant 0 : i32
    %c0_i32_1 = arith.constant 0 : i32
    return %c0_i32, %c0_i32_0 : i32, i32
  }
  func.func @transform_18(%arg0: i32) -> (i32, i32) {
    %c0_i32 = arith.constant 0 : i32
    %c0_i32_0 = arith.constant 0 : i32
    %c0_i32_1 = arith.constant 0 : i32
    return %c0_i32, %c0_i32_0 : i32, i32
  }
  func.func @transform_19(%arg0: i32) -> (i32, i32) {
    %c0_i32 = arith.constant 0 : i32
    %c0_i32_0 = arith.constant 0 : i32
    %c0_i32_1 = arith.constant 0 : i32
    return %c0_i32, %c0_i32_0 : i32, i32
  }
  func.func @transform_20(%arg0: i32) -> (i32, i32) {
    %c0_i32 = arith.constant 0 : i32
    %c0_i32_0 = arith.constant 0 : i32
    %c0_i32_1 = arith.constant 0 : i32
    return %c0_i32, %c0_i32_0 : i32, i32
  }
  func.func @transform_21(%arg0: i32) -> (i32, i32) {
    %c0_i32 = arith.constant 0 : i32
    %c0_i32_0 = arith.constant 0 : i32
    %c0_i32_1 = arith.constant 0 : i32
    return %c0_i32, %c0_i32_0 : i32, i32
  }
  func.func @transform_22(%arg0: i32) -> (i32, i32) {
    %c0_i32 = arith.constant 0 : i32
    %c0_i32_0 = arith.constant 0 : i32
    %c0_i32_1 = arith.constant 0 : i32
    return %c0_i32, %c0_i32_0 : i32, i32
  }
  func.func @transform_23(%arg0: i32) -> (i32, i32) {
    %c0_i32 = arith.constant 0 : i32
    %c0_i32_0 = arith.constant 0 : i32
    %c0_i32_1 = arith.constant 0 : i32
    return %c0_i32, %c0_i32_0 : i32, i32
  }
  func.func @transform_24(%arg0: i32) -> (i32, i32) {
    %c0_i32 = arith.constant 0 : i32
    %c0_i32_0 = arith.constant 0 : i32
    %c0_i32_1 = arith.constant 0 : i32
    return %c0_i32, %c0_i32_0 : i32, i32
  }
  func.func @transform_25(%arg0: i32) -> (i32, i32, i32) {
    %c0_i32 = arith.constant 0 : i32
    %c0_i32_0 = arith.constant 0 : i32
    %c0_i32_1 = arith.constant 0 : i32
    return %arg0, %c0_i32, %c0_i32_0 : i32, i32, i32
  }
}

</mosaic_0001>

<bundles_post_ra>
// kernel: ml4cvd_shallow_forward.1
= control target key start
LH: loop header
LB: loop body
LE: loop exit
PB: predicated region body
PF: predicated region fallthrough
CT: control target
= control target key end

     0   :  { %s15064_s0 = inlined_call_operand.vmem [shape: f32[2,12,496], index: 0, kind: input, shape index: {}]   ;;  %s15065_s1 = inlined_call_operand.vmem [shape: f32[32,112], index: 1, kind: input, shape index: {}]   ;;  %s15066_s2 = inlined_call_operand.vmem [shape: f32[32,1], index: 2, kind: input, shape index: {}]   ;;  %s15067_s3 = inlined_call_operand.vmem [shape: f32[32,224], index: 3, kind: input, shape index: {}]   ;;  %s15068_s4 = inlined_call_operand.vmem [shape: f32[32,1], index: 4, kind: input, shape index: {}]   ;;  %s15069_s5 = inlined_call_operand.vmem [shape: f32[32,448], index: 5, kind: input, shape index: {}]   ;;  %s15070_s6 = inlined_call_operand.vmem [shape: f32[32,1], index: 6, kind: input, shape index: {}]   ;;  %s15071_s7 = inlined_call_operand.vmem [shape: f32[24,672], index: 7, kind: input, shape index: {}]   ;;  %s15072_s8 = inlined_call_operand.vmem [shape: f32[24,1], index: 8, kind: input, shape index: {}]   ;;  %s15073_s9 = inlined_call_operand.vmem [shape: f32[24,168], index: 9, kind: input, shape index: {}]   ;;  %s15074_s10 = inlined_call_operand.vmem [shape: f32[24,1], index: 10, kind: input, shape index: {}]   ;;  %s15075_s11 = inlined_call_operand.vmem [shape: f32[24,336], index: 11, kind: input, shape index: {}]   ;;  %s15076_s12 = inlined_call_operand.vmem [shape: f32[24,1], index: 12, kind: input, shape index: {}]   ;;  %s15077_s13 = inlined_call_operand.vmem [shape: f32[16,504], index: 13, kind: input, shape index: {}]   ;;  %s15078_s14 = inlined_call_operand.vmem [shape: f32[16,1], index: 14, kind: input, shape index: {}]   ;;  %s15079_s15 = inlined_call_operand.vmem [shape: f32[16,112], index: 15, kind: input, shape index: {}]   ;;  %s15080_s16 = inlined_call_operand.vmem [shape: f32[16,1], index: 16, kind: input, shape index: {}]   ;;  %s15081_s17 = inlined_call_operand.vmem [shape: f32[16,224], index: 17, kind: input, shape index: {}]   ;;  %s15082_s18 = inlined_call_operand.vmem [shape: f32[16,1], index: 18, kind: input, shape index: {}]   ;;  %s15083_s19 = inlined_call_operand.vmem [shape: f32[768,62], index: 19, kind: input, shape index: {}]   ;;  %s15084_s20 = inlined_call_operand.vmem [shape: f32[16,1], index: 20, kind: input, shape index: {}]   ;;  %s15085_s21 = inlined_call_operand.vmem [shape: f32[64,16], index: 21, kind: input, shape index: {}]   ;;  %s15086_s22 = inlined_call_operand.vmem [shape: f32[64,1], index: 22, kind: input, shape index: {}]   ;;  %s15087_s23 = inlined_call_operand.vmem [shape: f32[1,64], index: 23, kind: input, shape index: {}]   ;;  %s15088_s24 = inlined_call_operand.<no memory space> [shape: f32[1,1], index: 24, kind: input, shape index: {}]   ;;  %s15089_s25 = inlined_call_operand.vmem [shape: f32[2,1,1], index: 25, kind: output, shape index: {}]  }
   0x1   :  { %15302 = sst [smem:[#allocation78_spill]] %s15064_s0  ;;  %v30_v0 = vstv %s15088_s24 }
   0x2   :  { %15303 = sst [smem:[#allocation79_spill]] %s15065_s1  ;;  %31 = vst [vmem:[#allocation3] sm:$0x1] %v30_v0 }
   0x3   :  { %15304 = sst [smem:[#allocation80_spill]] %s15066_s2 }
   0x4   :  { %15305 = sst [smem:[#allocation81_spill]] %s15067_s3 }
   0x5   :  { %15306 = sst [smem:[#allocation82_spill]] %s15068_s4 }
   0x6   :  { %15307 = sst [smem:[#allocation83_spill]] %s15069_s5 }
   0x7   :  { %15308 = sst [smem:[#allocation84_spill]] %s15070_s6  ;;  %s8243_s6 = smov 0  }
   0x8   :  { %15309 = sst [smem:[#allocation85_spill]] %s15071_s7 }
   0x9   :  { %15310 = sst [smem:[#allocation86_spill]] %s15072_s8 }
   0xa   :  { %15311 = sst [smem:[#allocation87_spill]] %s15073_s9 }
   0xb   :  { %15312 = sst [smem:[#allocation88_spill]] %s15087_s23 }
   0xc   :  { %15313 = sst [smem:[#allocation89_spill]] %s15089_s25 }
   0xd LB: > { %15314 = sst [smem:[#allocation4_spill]] %s8096_s6  ;;  %s7429_s30 = sadd.s32 4294967295, %s8096_s6   ;;  %s8096_s6 = sphi %s8243_s6, %s37_s6  }
   0xe   : > { %p7433_p0 = scmp.ge.s32.totalorder %s8096_s6, 1  ;;  %p689_p1 = scmp.lt.s32.totalorder %s8096_s6, 3 }
  0x10   : > { %p690_p2 = pnand %p7433_p0, %p689_p1 }
  0x12   : > { %693 = sbr.rel (%p690_p2) target bundleno = 6794 (0x1a8a), region = 120 }
  0x17   : > { %p8251_p3 = scmp.lt.s32.totalorder %s7429_s30, 1  ;;  %vm15140_vm0 = vcmask 23552   ;;  %v15113_v1 = vmov 0.0   ;;  %vm774_vm1 = vcmask 965632   ;;  %s15316_s1 = sld [smem:[#allocation78_spill]]  ;;  %vm825_vm2 = vcmask 1043480  }
  0x18   : > { %776 = vst [vmem:[#allocation2 + $0x20] sm:$0xff] %v15113_v1  ;;  %771 = vst [vmem:[#allocation2] sm:$0xff] %v15113_v1  ;;  %1138 = vmatprep.mubr.f32.mxu0 %v15113_v1  ;;  %1227 = vmatprep.mubr.f32.mxu1 %v15113_v1  ;;  %s15111_s27 = smov 3   ;;  %vm15141_vm3 = vcmask 1047576   ;;  %s15103_s4 = smov 122   ;;  %vm829_vm4 = vcmask 936960  }
  0x19   : > { %777 = vst [vmem:[#allocation2 + $0x28] sm:$0xff] %v15113_v1  ;;  %778 = vst [vmem:[#allocation2 + $0x30] sm:$0xff] %v15113_v1  ;;  %s16434_s30 = smov (!%p8251_p3, %s7429_s30), 1  ;;  %vm823_vm5 = vcmask 941056   ;;  %s15101_s28 = smov 123   ;;  %v8106_v32 = vmov 0  }
  0x1a   : > { %1270 = vst.msk [vmem:[#allocation2 + $0x40] sm:$0xff] %vm15140_vm0, %v15113_v1  ;;  %1271 = vst.msk [vmem:[#allocation2 + $0x60] sm:$0xff] %vm15140_vm0, %v15113_v1  ;;  %s7678_s24 = sshll.u32 %s16434_s30, 6  ;;  %s15099_s9 = smov 124   ;;  %8088 = vset.pattern.permute.xlu0 %v8106_v32  ;;  %8089 = vset.pattern.permute.xlu1 %v8106_v32  ;;  %vm15136_vm6 = vcmask 998400   ;;  %vm15144_vm7 = vcmask 1006592  }
  0x1b   : > { %3138 = vst.msk [vmem:[#allocation2 + $0x80] sm:$0xff] %vm15140_vm0, %v15113_v1  ;;  %3139 = vst.msk [vmem:[#allocation2 + $0xa0] sm:$0xff] %vm15140_vm0, %v15113_v1  ;;  %s15109_s5 = smov 125   ;;  %s15107_s0 = smov 126   ;;  %vm15145_vm8 = vcmask 1014784   ;;  %vm15139_vm9 = vcmask 1022976  }
  0x1c   : > { %3140 = vst.msk [vmem:[#allocation2 + $0xc0] sm:$0xff] %vm15140_vm0, %v15113_v1  ;;  %3141 = vst.msk [vmem:[#allocation2 + $0xe0] sm:$0xff] %vm15140_vm0, %v15113_v1  ;;  %s15105_s29 = smov 127   ;;  %vm15138_vm10 = vcmask 1031168   ;;  %vm15137_vm11 = vcmask 1039360   ;;  %s15318_s2 = sld [smem:[#allocation79_spill]] }
  0x1d   : > { %3817 = vst.msk [vmem:[#allocation2 + $0x100] sm:$0xff] %vm15140_vm0, %v15113_v1  ;;  %3818 = vst.msk [vmem:[#allocation2 + $0x120] sm:$0xff] %vm15140_vm0, %v15113_v1  ;;  %s759_s8 = scalar_lea.vmem %s15316_s1, %s7678_s24  ;;  %s15317_s24 = sld [smem:[#allocation80_spill]]  ;;  %vm15142_vm12 = vcmask 916480   ;;  %vm1272_vm13 = vcmask 966552   ;;  %vm15143_vm14 = vcmask 785408  }
  0x1e   : > { %3819 = vst.msk [vmem:[#allocation2 + $0x140] sm:$0xff] %vm15140_vm0, %v15113_v1  ;;  %3820 = vst.msk [vmem:[#allocation2 + $0x160] sm:$0xff] %vm15140_vm0, %v15113_v1  ;;  %v769_v2 = vld [vmem:[%s759_s8 + $0x30] sm:$0xf]  ;;  %v767_v3 = vld [vmem:[%s759_s8 + $0x20] sm:$0xf] }
  0x1f   : > { %779 = vst.msk [vmem:[#allocation2 + $0x38] sm:$0xff] %vm774_vm1, %v15113_v1  ;;  %775 = vst.msk [vmem:[#allocation2 + $0x18] sm:$0xff] %vm774_vm1, %v15113_v1  ;;  %800 = vrot.lane.b32.xlu1 %v769_v2, %s15111_s27  ;;  %796 = vrot.lane.b32.xlu0 %v767_v3, %s15111_s27  ;;  %v768_v4 = vld [vmem:[%s759_s8 + $0x28] sm:$0xf]  ;;  %v763_v5 = vld [vmem:[%s759_s8] sm:$0xff]  ;;  %s15328_s7 = smov 124  }
  0x20   : > { %v764_v6 = vld [vmem:[%s759_s8 + $0x8] sm:$0xff]  ;;  %v765_v7 = vld [vmem:[%s759_s8 + $0x10] sm:$0xff]  ;;  %v770_v8 = vld [vmem:[%s759_s8 + $0x38] sm:$0xf]  ;;  %1275 = vst.msk [vmem:[#allocation2 + $0x58] sm:$0xff] %vm1272_vm13, %v15113_v1  ;;  %s15333_s1 = sld [smem:[#allocation81_spill]] }
  0x21   : > { %v766_v9 = vld [vmem:[%s759_s8 + $0x18] sm:$0xff]  ;;  %1276 = vst.msk [vmem:[#allocation2 + $0x78] sm:$0xff] %vm1272_vm13, %v15113_v1  ;;  %s15338_s3 = sld [smem:[#allocation82_spill]]  ;;  %s15909_s26 = smov 125  }
  0x22   : > { %s16002_s23 = sld [smem:[#allocation83_spill]] }
  0x23   : > { %798 = vrot.lane.b32.xlu0 %v768_v4, %s15111_s27  ;;  %788 = vrot.lane.b32.xlu1 %v763_v5, %s15111_s27  ;;  %v1040_v30 = vld [vmem:[%s15317_s24 + $0x18] sm:$0xff]  ;;  %v1039_v31 = vld [vmem:[%s15317_s24 + $0x10] sm:$0xff]  ;;  %s16164_s6 = sld [smem:[#allocation86_spill]] }
  0x24   : > { %v1037_v33 = vld [vmem:[%s15317_s24] sm:$0xff]  ;;  %v1038_v34 = vld [vmem:[%s15317_s24 + $0x8] sm:$0xff]  ;;  %s16004_s24 = sld [smem:[#allocation84_spill]] }
  0x27   : > { %790 = vrot.lane.b32.xlu0 %v764_v6, %s15111_s27  ;;  %792 = vrot.lane.b32.xlu1 %v765_v7, %s15111_s27 }
  0x2b   : > { %802 = vrot.lane.b32.xlu0 %v770_v8, %s15111_s27  ;;  %794 = vrot.lane.b32.xlu1 %v766_v9, %s15111_s27 }
  0x91   : > { %v801_v10 = vpop.permute.xlu1 %800  ;;  %v797_v11 = vpop.permute.xlu0 %796 }
  0x92   : > { %826 = vst.msk [vmem:[#allocation2 + $0x20] sm:$0xf] %vm825_vm2, %v797_v11 }
  0x95   : > { %v799_v12 = vpop.permute.xlu0 %798  ;;  %v789_v13 = vpop.permute.xlu1 %788 }
  0x96   : > { %v808_v14 = vsel %vm15140_vm0, %v797_v11, %v799_v12  ;;  %v809_v15 = vsel %vm15140_vm0, %v799_v12, %v801_v10  ;;  %820 = vst.msk [vmem:[#allocation2] sm:$0xff] %vm15141_vm3, %v789_v13 }
  0x97   : > { %827 = vst [vmem:[#allocation2 + $0x28] sm:$0xf] %v808_v14  ;;  %828 = vst [vmem:[#allocation2 + $0x30] sm:$0xf] %v809_v15 }
  0x99   : > { %v791_v16 = vpop.permute.xlu0 %790  ;;  %v793_v17 = vpop.permute.xlu1 %792  ;;  %v8302_v18 = vld [vmem:[#allocation2 + $0x20] sm:$0xff] }
  0x9a   : > { %1010 = vrot.lane.b32.xlu0 %v8302_v18, %s15103_s4  ;;  %1269 = vst.msk [vmem:[#allocation2 + $0x20] sm:$0xff] %vm15140_vm0, %v15113_v1  ;;  %v8322_v25 = vsel %vm15140_vm0, %v789_v13, %v791_v16  ;;  %v8371_v29 = vsel %vm15140_vm0, %v791_v16, %v793_v17 }
  0x9d   : > { %v803_v19 = vpop.permute.xlu0 %802  ;;  %v8308_v20 = vld [vmem:[#allocation2] sm:$0xff]  ;;  %v795_v21 = vpop.permute.xlu1 %794 }
  0x9e   : > { %v810_v22 = vsel %vm15140_vm0, %v801_v10, %v803_v19  ;;  %1002 = vrot.lane.b32.xlu0 %v8308_v20, %s15103_s4  ;;  %1268 = vst.msk [vmem:[#allocation2] sm:$0xff] %vm15140_vm0, %v15113_v1  ;;  %v8315_v23 = vld [vmem:[#allocation2 + $0x30] sm:$0xff]  ;;  %v807_v24 = vsel %vm15140_vm0, %v793_v17, %v795_v21  ;;  %v8336_v27 = vld [vmem:[#allocation2 + $0x28] sm:$0xff] }
  0x9f   : > { %830 = vst.msk [vmem:[#allocation2 + $0x38] sm:$0xf] %vm829_vm4, %v810_v22  ;;  %1014 = vrot.lane.b32.xlu1 %v8315_v23, %s15103_s4 }
  0xa0   : > { %824 = vst.msk [vmem:[#allocation2 + $0x18] sm:$0xff] %vm823_vm5, %v807_v24 }
  0xa2   : > { %979 = vrot.lane.b32.xlu0 %v8302_v18, %s15101_s28 }
  0xa3   : > { %1004 = vrot.lane.b32.xlu1 %v8322_v25, %s15103_s4 }
  0xa6   : > { %971 = vrot.lane.b32.xlu0 %v8308_v20, %s15101_s28  ;;  %v8330_v26 = vld [vmem:[#allocation2 + $0x38] sm:$0xff] }
  0xa7   : > { %1016 = vrot.lane.b32.xlu1 %v8330_v26, %s15103_s4  ;;  %v8342_v28 = vld [vmem:[#allocation2 + $0x18] sm:$0xff]  ;;  %1274 = vst.msk [vmem:[#allocation2 + $0x38] sm:$0xff] %vm1272_vm13, %v15113_v1 }
  0xa8   : > { %1273 = vst.msk [vmem:[#allocation2 + $0x18] sm:$0xff] %vm1272_vm13, %v15113_v1 }
  0xaa   : > { %948 = vrot.lane.b32.xlu0 %v8302_v18, %s15099_s9 }
  0xab   : > { %981 = vrot.lane.b32.xlu1 %v8336_v27, %s15101_s28 }
  0xae   : > { %940 = vrot.lane.b32.xlu0 %v8308_v20, %s15099_s9 }
  0xaf   : > { %1008 = vrot.lane.b32.xlu1 %v8342_v28, %s15103_s4 }
  0xb2   : > { %917 = vrot.lane.b32.xlu0 %v8302_v18, %s15109_s5 }
  0xb3   : > { %973 = vrot.lane.b32.xlu1 %v8322_v25, %s15101_s28 }
  0xb6   : > { %909 = vrot.lane.b32.xlu0 %v8308_v20, %s15109_s5 }
  0xb7   : > { %985 = vrot.lane.b32.xlu1 %v8330_v26, %s15101_s28 }
  0xba   : > { %886 = vrot.lane.b32.xlu0 %v8302_v18, %s15107_s0 }
  0xbb   : > { %950 = vrot.lane.b32.xlu1 %v8336_v27, %s15099_s9 }
  0xbe   : > { %878 = vrot.lane.b32.xlu0 %v8308_v20, %s15107_s0 }
  0xbf   : > { %977 = vrot.lane.b32.xlu1 %v8342_v28, %s15101_s28 }
  0xc2   : > { %855 = vrot.lane.b32.xlu0 %v8302_v18, %s15105_s29 }
  0xc3   : > { %942 = vrot.lane.b32.xlu1 %v8322_v25, %s15099_s9 }
  0xc6   : > { %1012 = vrot.lane.b32.xlu0 %v8336_v27, %s15103_s4 }
  0xc7   : > { %954 = vrot.lane.b32.xlu1 %v8330_v26, %s15099_s9 }
  0xca   : > { %1006 = vrot.lane.b32.xlu0 %v8371_v29, %s15103_s4 }
  0xcb   : > { %919 = vrot.lane.b32.xlu1 %v8336_v27, %s15109_s5 }
  0xce   : > { %983 = vrot.lane.b32.xlu0 %v8315_v23, %s15101_s28 }
  0xcf   : > { %946 = vrot.lane.b32.xlu1 %v8342_v28, %s15099_s9 }
  0xd2   : > { %975 = vrot.lane.b32.xlu0 %v8371_v29, %s15101_s28  ;;  %s15885_s28 = smov 3  }
  0xd3   : > { %911 = vrot.lane.b32.xlu1 %v8322_v25, %s15109_s5 }
  0xd6   : > { %952 = vrot.lane.b32.xlu0 %v8315_v23, %s15099_s9 }
  0xd7   : > { %923 = vrot.lane.b32.xlu1 %v8330_v26, %s15109_s5 }
  0xda   : > { %944 = vrot.lane.b32.xlu0 %v8371_v29, %s15099_s9  ;;  %s15323_s9 = smov 123  }
  0xdb   : > { %888 = vrot.lane.b32.xlu1 %v8336_v27, %s15107_s0 }
  0xde   : > { %921 = vrot.lane.b32.xlu0 %v8315_v23, %s15109_s5 }
  0xdf   : > { %915 = vrot.lane.b32.xlu1 %v8342_v28, %s15109_s5 }
  0xe2   : > { %913 = vrot.lane.b32.xlu0 %v8371_v29, %s15109_s5 }
  0xe3   : > { %880 = vrot.lane.b32.xlu1 %v8322_v25, %s15107_s0 }
  0xe6   : > { %890 = vrot.lane.b32.xlu0 %v8315_v23, %s15107_s0 }
  0xe7   : > { %892 = vrot.lane.b32.xlu1 %v8330_v26, %s15107_s0 }
  0xea   : > { %882 = vrot.lane.b32.xlu0 %v8371_v29, %s15107_s0 }
  0xeb   : > { %857 = vrot.lane.b32.xlu1 %v8336_v27, %s15105_s29 }
  0xee   : > { %859 = vrot.lane.b32.xlu0 %v8315_v23, %s15105_s29 }
  0xef   : > { %884 = vrot.lane.b32.xlu1 %v8342_v28, %s15107_s0 }
  0xf2   : > { %851 = vrot.lane.b32.xlu0 %v8371_v29, %s15105_s29 }
  0xf3   : > { %849 = vrot.lane.b32.xlu1 %v8322_v25, %s15105_s29 }
  0xf6   : > { %847 = vrot.lane.b32.xlu0 %v8308_v20, %s15105_s29 }
  0xf7   : > { %861 = vrot.lane.b32.xlu1 %v8330_v26, %s15105_s29 }
  0xfa   : > { %1058 = vperm.xlu0 %8088, %v1040_v30  }
  0xfb   : > { %853 = vrot.lane.b32.xlu1 %v8342_v28, %s15105_s29 }
  0xfe   : > { %1043 = vperm.xlu0 %8088, %v1037_v33  }
  0xff   : > { %1053 = vperm.xlu1 %8089, %v1039_v31  }
 0x103   : > { %1048 = vperm.xlu1 %8089, %v1038_v34  }
 0x10c   : > { %v1011_v35 = vpop.permute.xlu0 %1010 }
 0x110   : > { %v1003_v36 = vpop.permute.xlu0 %1002 }
 0x111   : > { %v1015_v37 = vpop.permute.xlu1 %1014 }
 0x114   : > { %v980_v38 = vpop.permute.xlu0 %979 }
 0x115   : > { %v1005_v39 = vpop.permute.xlu1 %1004 }
 0x116   : > { %v1019_v2 = vsel %vm15136_vm6, %v1003_v36, %v1005_v39 }
 0x118   : > { %v972_v40 = vpop.permute.xlu0 %971 }
 0x119   : > { %v1017_v41 = vpop.permute.xlu1 %1016 }
 0x11a   : > { %1167 = vmatprep.subr.mxu1 %v1017_v41  ;;  %v1024_v42 = vsel %vm15136_vm6, %v1015_v37, %v1017_v41 }
 0x11b   : > { %1168 = vmatpush1.msra.mxu1 %v1024_v42 }
 0x11c   : > { %v949_v43 = vpop.permute.xlu0 %948 }
 0x11d   : > { %v982_v44 = vpop.permute.xlu1 %981 }
 0x11e   : > { %v991_v7 = vsel %vm15144_vm7, %v980_v38, %v982_v44 }
 0x120   : > { %v8436_v45 = vpop.permute.xlu0 %940 }
 0x121   : > { %v1009_v46 = vpop.permute.xlu1 %1008 }
 0x122   : > { %1169 = vmatprep.subr.mxu1 %v1009_v46 }
 0x124   : > { %v8438_v47 = vpop.permute.xlu0 %917 }
 0x125   : > { %v974_v48 = vpop.permute.xlu1 %973 }
 0x126   : > { %v988_v12 = vsel %vm15144_vm7, %v972_v40, %v974_v48 }
 0x128   : > { %v8440_v49 = vpop.permute.xlu0 %909 }
 0x129   : > { %v986_v50 = vpop.permute.xlu1 %985 }
 0x12c   : > { %v8442_v51 = vpop.permute.xlu0 %886 }
 0x12d   : > { %v951_v52 = vpop.permute.xlu1 %950 }
 0x12e   : > { %v960_v17 = vsel %vm15145_vm8, %v949_v43, %v951_v52 }
 0x130   : > { %v8444_v53 = vpop.permute.xlu0 %878 }
 0x131   : > { %v978_v54 = vpop.permute.xlu1 %977 }
 0x134   : > { %v8446_v55 = vpop.permute.xlu0 %855 }
 0x135   : > { %v943_v56 = vpop.permute.xlu1 %942 }
 0x136   : > { %v957_v30 = vsel %vm15145_vm8, %v8436_v45, %v943_v56 }
 0x138   : > { %v1013_v57 = vpop.permute.xlu0 %1012 }
 0x139   : > { %v955_v58 = vpop.permute.xlu1 %954  ;;  %v1023_v59 = vsel %vm15136_vm6, %v1013_v57, %v1015_v37  ;;  %v1022_v60 = vsel %vm15136_vm6, %v1011_v35, %v1013_v57 }
 0x13a   : > { %1078 = vmatprep.subr.mxu0 %v1023_v59 }
 0x13b   : > { %1079 = vmatpush1.msra.mxu0 %v1022_v60 }
 0x13c   : > { %v1007_v61 = vpop.permute.xlu0 %1006 }
 0x13d   : > { %v920_v62 = vpop.permute.xlu1 %919  ;;  %v1020_v63 = vsel %vm15136_vm6, %v1005_v39, %v1007_v61  ;;  %v1021_v0 = vsel %vm15136_vm6, %v1007_v61, %v1009_v46 }
 0x13e   : > { %1080 = vmatprep.subr.mxu0 %v1020_v63  ;;  %1170 = vmatpush1.msra.mxu1 %v1021_v0  ;;  %v929_v35 = vsel %vm15139_vm9, %v8438_v47, %v920_v62 }
 0x13f   : > { %1081 = vmatpush1.msra.mxu0 %v1019_v2  ;;  %1171 = vmatprep.subr.mxu1 %v986_v50 }
 0x140   : > { %v984_v3 = vpop.permute.xlu0 %983 }
 0x141   : > { %v947_v4 = vpop.permute.xlu1 %946  ;;  %v992_v5 = vsel %vm15144_vm7, %v982_v44, %v984_v3  ;;  %v993_v6 = vsel %vm15144_vm7, %v984_v3, %v986_v50 }
 0x142   : > { %1082 = vmatprep.subr.mxu0 %v992_v5  ;;  %1172 = vmatpush1.msra.mxu1 %v993_v6 }
 0x143   : > { %1083 = vmatpush1.msra.mxu0 %v991_v7  ;;  %1173 = vmatprep.subr.mxu1 %v978_v54 }
 0x144   : > { %v976_v8 = vpop.permute.xlu0 %975 }
 0x145   : > { %v912_v9 = vpop.permute.xlu1 %911  ;;  %v989_v10 = vsel %vm15144_vm7, %v974_v48, %v976_v8  ;;  %v990_v11 = vsel %vm15144_vm7, %v976_v8, %v978_v54 }
 0x146   : > { %1084 = vmatprep.subr.mxu0 %v989_v10  ;;  %1174 = vmatpush1.msra.mxu1 %v990_v11  ;;  %v926_v40 = vsel %vm15139_vm9, %v8440_v49, %v912_v9 }
 0x147   : > { %1085 = vmatpush1.msra.mxu0 %v988_v12  ;;  %1175 = vmatprep.subr.mxu1 %v955_v58 }
 0x148   : > { %v953_v13 = vpop.permute.xlu0 %952 }
 0x149   : > { %v924_v14 = vpop.permute.xlu1 %923  ;;  %v961_v15 = vsel %vm15145_vm8, %v951_v52, %v953_v13  ;;  %v962_v16 = vsel %vm15145_vm8, %v953_v13, %v955_v58 }
 0x14a   : > { %1086 = vmatprep.subr.mxu0 %v961_v15  ;;  %1176 = vmatpush1.msra.mxu1 %v962_v16 }
 0x14b   : > { %1087 = vmatpush1.msra.mxu0 %v960_v17  ;;  %1177 = vmatprep.subr.mxu1 %v947_v4 }
 0x14c   : > { %v945_v19 = vpop.permute.xlu0 %944 }
 0x14d   : > { %v889_v21 = vpop.permute.xlu1 %888  ;;  %v958_v22 = vsel %vm15145_vm8, %v943_v56, %v945_v19  ;;  %v959_v24 = vsel %vm15145_vm8, %v945_v19, %v947_v4 }
 0x14e   : > { %1088 = vmatprep.subr.mxu0 %v958_v22  ;;  %1178 = vmatpush1.msra.mxu1 %v959_v24  ;;  %v898_v44 = vsel %vm15138_vm10, %v8442_v51, %v889_v21 }
 0x14f   : > { %1089 = vmatpush1.msra.mxu0 %v957_v30  ;;  %1179 = vmatprep.subr.mxu1 %v924_v14 }
 0x150   : > { %v922_v31 = vpop.permute.xlu0 %921 }
 0x151   : > { %v916_v32 = vpop.permute.xlu1 %915  ;;  %v930_v33 = vsel %vm15139_vm9, %v920_v62, %v922_v31  ;;  %v931_v34 = vsel %vm15139_vm9, %v922_v31, %v924_v14 }
 0x152   : > { %1090 = vmatprep.subr.mxu0 %v930_v33  ;;  %1180 = vmatpush1.msra.mxu1 %v931_v34 }
 0x153   : > { %1091 = vmatpush1.msra.mxu0 %v929_v35  ;;  %1181 = vmatprep.subr.mxu1 %v916_v32 }
 0x154   : > { %v914_v36 = vpop.permute.xlu0 %913 }
 0x155   : > { %v881_v37 = vpop.permute.xlu1 %880  ;;  %v927_v38 = vsel %vm15139_vm9, %v912_v9, %v914_v36  ;;  %v928_v39 = vsel %vm15139_vm9, %v914_v36, %v916_v32 }
 0x156   : > { %1092 = vmatprep.subr.mxu0 %v927_v38  ;;  %1182 = vmatpush1.msra.mxu1 %v928_v39  ;;  %v895_v49 = vsel %vm15138_vm10, %v8444_v53, %v881_v37 }
 0x157   : > { %1093 = vmatpush1.msra.mxu0 %v926_v40 }
 0x158   : > { %v891_v41 = vpop.permute.xlu0 %890 }
 0x159   : > { %v893_v42 = vpop.permute.xlu1 %892  ;;  %v899_v43 = vsel %vm15138_vm10, %v889_v21, %v891_v41 }
 0x15a   : > { %1094 = vmatprep.subr.mxu0 %v899_v43  ;;  %1183 = vmatprep.subr.mxu1 %v893_v42  ;;  %v900_v45 = vsel %vm15138_vm10, %v891_v41, %v893_v42 }
 0x15b   : > { %1095 = vmatpush1.msra.mxu0 %v898_v44  ;;  %1184 = vmatpush1.msra.mxu1 %v900_v45 }
 0x15c   : > { %v883_v46 = vpop.permute.xlu0 %882 }
 0x15d   : > { %v858_v47 = vpop.permute.xlu1 %857  ;;  %v896_v48 = vsel %vm15138_vm10, %v881_v37, %v883_v46 }
 0x15e   : > { %1096 = vmatprep.subr.mxu0 %v896_v48  ;;  %v867_v51 = vsel %vm15137_vm11, %v8446_v55, %v858_v47  ;;  %v1033_v55 = vld [vmem:[%s15318_s2] sm:$0xff] }
 0x15f   : > { %1097 = vmatpush1.msra.mxu0 %v895_v49 }
 0x160   : > { %v860_v50 = vpop.permute.xlu0 %859 }
 0x161   : > { %v885_v52 = vpop.permute.xlu1 %884  ;;  %v868_v54 = vsel %vm15137_vm11, %v858_v47, %v860_v50 }
 0x162   : > { %1098 = vmatprep.subr.mxu0 %v868_v54  ;;  %1185 = vmatprep.subr.mxu1 %v885_v52  ;;  %v897_v56 = vsel %vm15138_vm10, %v883_v46, %v885_v52 }
 0x163   : > { %1099 = vmatpush1.msra.mxu0 %v867_v51  ;;  %1186 = vmatpush1.msra.mxu1 %v897_v56 }
 0x164   : > { %v852_v57 = vpop.permute.xlu0 %851 }
 0x165   : > { %v850_v58 = vpop.permute.xlu1 %849 }
 0x166   : > { %v865_v59 = vsel %vm15137_vm11, %v850_v58, %v852_v57 }
 0x167   : > { %1100 = vmatprep.subr.mxu0 %v865_v59 }
 0x168   : > { %v848_v53 = vpop.permute.xlu0 %847 }
 0x169   : > { %v862_v60 = vpop.permute.xlu1 %861  ;;  %v864_v61 = vsel %vm15137_vm11, %v848_v53, %v850_v58 }
 0x16a   : > { %1101 = vmatpush1.msra.mxu0 %v864_v61  ;;  %1187 = vmatprep.subr.mxu1 %v862_v60  ;;  %v869_v62 = vsel %vm15137_vm11, %v860_v50, %v862_v60 }
 0x16b   : > { %1102 = vmatprep.subr.mxu0 %v8336_v27  ;;  %1188 = vmatpush1.msra.mxu1 %v869_v62 }
 0x16c   : > { %1103 = vmatpush1.msra.mxu0 %v8302_v18  ;;  %v1034_v18 = vld [vmem:[%s15318_s2 + $0x8] sm:$0xff] }
 0x16d   : > { %1104 = vmatprep.subr.mxu0 %v8322_v25  ;;  %v854_v63 = vpop.permute.xlu1 %853 }
 0x16e   : > { %1105 = vmatpush1.msra.mxu0 %v8308_v20  ;;  %1189 = vmatprep.subr.mxu1 %v854_v63  ;;  %v866_v0 = vsel %vm15137_vm11, %v852_v57, %v854_v63  ;;  %v1035_v20 = vld [vmem:[%s15318_s2 + $0x10] sm:$0xff] }
 0x16f   : > { %7436 = vmatmul.mubr.msk.f32.vlgmr.msra.gmra.mxu0 %vm15142_vm12, %v1033_v55  ;;  %1190 = vmatpush1.msra.mxu1 %v866_v0 }
 0x170   : > { %1191 = vmatprep.subr.mxu1 %v8330_v26  ;;  %1144 = vmatprep.mubr.f32.mxu0 %v15113_v1 }
 0x171   : > { %1192 = vmatpush1.msra.mxu1 %v8315_v23  ;;  %v1036_v23 = vld [vmem:[%s15318_s2 + $0x18] sm:$0xff]  ;;  %s16161_s2 = sld [smem:[#allocation85_spill]] }
 0x172   : > { %1193 = vmatprep.subr.mxu1 %v8342_v28 }
 0x173   : > { %7437 = vmatmul.mubr.msk.f32.gmra.mxu0 %vm15142_vm12, %v1034_v18  ;;  %1194 = vmatpush1.msra.mxu1 %v8371_v29 }
 0x174   : > { %7440 = vmatmul.mubr.msk.f32.vlgmr.msra.gmra.mxu1 %vm15142_vm12, %v1033_v55  ;;  %1150 = vmatprep.mubr.f32.mxu0 %v15113_v1 }
 0x175   : > { %1233 = vmatprep.mubr.f32.mxu1 %v15113_v1  ;;  %v1059_v25 = vpop.permute.xlu0 %1058 }
 0x177   : > { %7438 = vmatmul.mubr.msk.f32.gmra.mxu0 %vm15142_vm12, %v1035_v20 }
 0x178   : > { %7441 = vmatmul.mubr.msk.f32.gmra.mxu1 %vm15142_vm12, %v1034_v18  ;;  %1156 = vmatprep.mubr.f32.mxu0 %v15113_v1 }
 0x179   : > { %1239 = vmatprep.mubr.f32.mxu1 %v15113_v1  ;;  %v1044_v28 = vpop.permute.xlu0 %1043 }
 0x17a   : > { %v1054_v26 = vpop.permute.xlu1 %1053 }
 0x17b   : > { %7439 = vmatmul.mubr.msk.f32.gmra.mxu0 %vm15142_vm12, %v1036_v23 }
 0x17c   : > { %7442 = vmatmul.mubr.msk.f32.gmra.mxu1 %vm15142_vm12, %v1035_v20 }
 0x17d   : > { %1245 = vmatprep.mubr.f32.mxu1 %v15113_v1 }
 0x17e   : > { %v1049_v3 = vpop.permute.xlu1 %1048 }
 0x180   : > { %7443 = vmatmul.mubr.msk.f32.gmra.mxu1 %vm15142_vm12, %v1036_v23 }
 0x22f   : > { %v1140_v27 = vpop.f32.mrf.mxu0 }
 0x230   : > { %v1141_v8 = vadd.f32 %v1140_v27, %v1044_v28 }
 0x231   : > { %v1142_v4 = vpop.f32.mrf.mxu0 }
 0x232   : > { %v1143_v10 = vadd.f32 %v1142_v4, %v1044_v28  ;;  %v1252_v15 = vmax.f32 %v1141_v8, 0.0 }
 0x233   : > { %v1146_v13 = vpop.f32.mrf.mxu0 }
 0x234   : > { %v1229_v29 = vpop.f32.mrf.mxu1  ;;  %v1253_v17 = vmax.f32 %v1143_v10, 0.0  ;;  %v1147_v21 = vadd.f32 %v1146_v13, %v1049_v3 }
 0x235   : > { %v1230_v2 = vadd.f32 %v1229_v29, %v1044_v28  ;;  %v1148_v22 = vpop.f32.mrf.mxu0 }
 0x236   : > { %v1231_v5 = vpop.f32.mrf.mxu1  ;;  %v1149_v31 = vadd.f32 %v1148_v22, %v1049_v3  ;;  %v1256_v33 = vmax.f32 %v1147_v21, 0.0 }
 0x237   : > { %v1254_v6 = vmax.f32 %v1230_v2, 0.0  ;;  %v1232_v7 = vadd.f32 %v1231_v5, %v1044_v28  ;;  %v1152_v34 = vpop.f32.mrf.mxu0 }
 0x238   : > { %v1235_v9 = vpop.f32.mrf.mxu1  ;;  %v1257_v37 = vmax.f32 %v1149_v31, 0.0  ;;  %v1153_v39 = vadd.f32 %v1152_v34, %v1054_v26 }
 0x239   : > { %v1255_v11 = vmax.f32 %v1232_v7, 0.0  ;;  %1297 = vrot.lane.b32.xlu1 %v1254_v6, %s15111_s27  ;;  %v1236_v12 = vadd.f32 %v1235_v9, %v1049_v3  ;;  %v1154_v40 = vpop.f32.mrf.mxu0 }
 0x23a   : > { %v1237_v14 = vpop.f32.mrf.mxu1  ;;  %v1155_v42 = vadd.f32 %v1154_v40, %v1054_v26  ;;  %v1260_v44 = vmax.f32 %v1153_v39, 0.0 }
 0x23b   : > { %1299 = vrot.lane.b32.xlu0 %v1255_v11, %s15111_s27  ;;  %v1238_v16 = vadd.f32 %v1237_v14, %v1049_v3  ;;  %v1258_v19 = vmax.f32 %v1236_v12, 0.0  ;;  %v1158_v45 = vpop.f32.mrf.mxu0 }
 0x23c   : > { %v1241_v24 = vpop.f32.mrf.mxu1  ;;  %v1261_v47 = vmax.f32 %v1155_v42, 0.0  ;;  %v1159_v52 = vadd.f32 %v1158_v45, %v1059_v25 }
 0x23d   : > { %1293 = vrot.lane.b32.xlu1 %v1252_v15, %s15111_s27  ;;  %v1259_v30 = vmax.f32 %v1238_v16, 0.0  ;;  %v1242_v32 = vadd.f32 %v1241_v24, %v1054_v26  ;;  %v1160_v50 = vpop.f32.mrf.mxu0 }
 0x23e   : > { %v1243_v35 = vpop.f32.mrf.mxu1  ;;  %v1161_v51 = vadd.f32 %v1160_v50, %v1059_v25  ;;  %v1264_v57 = vmax.f32 %v1159_v52, 0.0 }
 0x23f   : > { %1295 = vrot.lane.b32.xlu0 %v1253_v17, %s15111_s27  ;;  %v1244_v36 = vadd.f32 %v1243_v35, %v1054_v26  ;;  %v1262_v38 = vmax.f32 %v1242_v32, 0.0 }
 0x240   : > { %v1247_v41 = vpop.f32.mrf.mxu1  ;;  %v1265_v58 = vmax.f32 %v1161_v51, 0.0 }
 0x241   : > { %1305 = vrot.lane.b32.xlu1 %v1258_v19, %s15111_s27  ;;  %v1263_v43 = vmax.f32 %v1244_v36, 0.0  ;;  %v1248_v48 = vadd.f32 %v1247_v41, %v1059_v25 }
 0x242   : > { %v1249_v46 = vpop.f32.mrf.mxu1 }
 0x243   : > { %1307 = vrot.lane.b32.xlu0 %v1259_v30, %s15111_s27  ;;  %v1250_v49 = vadd.f32 %v1249_v46, %v1059_v25  ;;  %v1266_v54 = vmax.f32 %v1248_v48, 0.0 }
 0x245   : > { %1301 = vrot.lane.b32.xlu1 %v1256_v33, %s15111_s27  ;;  %v1267_v56 = vmax.f32 %v1250_v49, 0.0 }
 0x247   : > { %1303 = vrot.lane.b32.xlu0 %v1257_v37, %s15111_s27 }
 0x249   : > { %1313 = vrot.lane.b32.xlu1 %v1262_v38, %s15111_s27 }
 0x24b   : > { %1315 = vrot.lane.b32.xlu0 %v1263_v43, %s15111_s27 }
 0x24d   : > { %1309 = vrot.lane.b32.xlu1 %v1260_v44, %s15111_s27 }
 0x24f   : > { %1311 = vrot.lane.b32.xlu0 %v1261_v47, %s15111_s27 }
 0x251   : > { %1321 = vrot.lane.b32.xlu1 %v1266_v54, %s15111_s27 }
 0x253   : > { %1323 = vrot.lane.b32.xlu0 %v1267_v56, %s15111_s27 }
 0x255   : > { %1317 = vrot.lane.b32.xlu1 %v1264_v57, %s15111_s27 }
 0x257   : > { %1319 = vrot.lane.b32.xlu0 %v1265_v58, %s15111_s27  ;;  %s15915_s27 = smov 126  }
 0x2ab   : > { %v1298_v59 = vpop.permute.xlu1 %1297 }
 0x2ad   : > { %v1300_v53 = vpop.permute.xlu0 %1299 }
 0x2ae   : > { %v1327_v60 = vsel %vm15140_vm0, %v1298_v59, %v1300_v53 }
 0x2af   : > { %1356 = vst.msk [vmem:[#allocation2 + $0x18] sm:$0xff] %vm823_vm5, %v1327_v60  ;;  %v1294_v61 = vpop.permute.xlu1 %1293 }
 0x2b0   : > { %1353 = vst.msk [vmem:[#allocation2] sm:$0xff] %vm15141_vm3, %v1294_v61 }
 0x2b1   : > { %v1296_v62 = vpop.permute.xlu0 %1295 }
 0x2b2   : > { %v8547_v55 = vsel %vm15140_vm0, %v1294_v61, %v1296_v62  ;;  %v8550_v63 = vsel %vm15140_vm0, %v1296_v62, %v1298_v59 }
 0x2b3   : > { %15319 = vst [vmem:[#allocation5_spill] sm:$0xff] %v8547_v55  ;;  %15320 = vst [vmem:[#allocation6_spill] sm:$0xff] %v8550_v63  ;;  %v1306_v0 = vpop.permute.xlu1 %1305 }
 0x2b4   : > { %1354 = vst [vmem:[#allocation2 + $0x8] sm:$0xff] %v8547_v55 }
 0x2b5   : > { %v1308_v18 = vpop.permute.xlu0 %1307 }
 0x2b6   : > { %v1330_v20 = vsel %vm15140_vm0, %v1306_v0, %v1308_v18  ;;  %v8554_v23 = vld [vmem:[#allocation2 + $0x18] sm:$0xff] }
 0x2b7   : > { %v8556_v25 = vld [vmem:[#allocation2] sm:$0xff]  ;;  %1360 = vst.msk [vmem:[#allocation2 + $0x38] sm:$0xff] %vm823_vm5, %v1330_v20  ;;  %1527 = vrot.lane.b32.xlu0 %v8554_v23, %s15109_s5  ;;  %v1302_v26 = vpop.permute.xlu1 %1301 }
 0x2b8   : > { %15321 = vst [vmem:[#allocation7_spill] sm:$0xff] %v8556_v25  ;;  %2756 = vst.msk [vmem:[#allocation2] sm:$0xff] %vm15140_vm0, %v15113_v1  ;;  %1521 = vrot.lane.b32.xlu1 %v8556_v25, %s15109_s5 }
 0x2b9   : > { %1357 = vst.msk [vmem:[#allocation2 + $0x20] sm:$0xff] %vm15141_vm3, %v1302_v26  ;;  %v1304_v27 = vpop.permute.xlu0 %1303 }
 0x2ba   : > { %v8567_v28 = vsel %vm15140_vm0, %v1302_v26, %v1304_v27  ;;  %v8570_v29 = vsel %vm15140_vm0, %v1304_v27, %v1306_v0  ;;  %v1762_v0 = vld [vmem:[%s15333_s1 + $0x8] sm:$0xff] }
 0x2bb   : > { %1358 = vst [vmem:[#allocation2 + $0x28] sm:$0xff] %v8567_v28  ;;  %1359 = vst [vmem:[#allocation2 + $0x30] sm:$0xff] %v8570_v29  ;;  %1467 = vrot.lane.b32.xlu0 %v8554_v23, %s15107_s0  ;;  %v1314_v2 = vpop.permute.xlu1 %1313  ;;  %7448 = vmatprep.mubr.msk.f32.mxu1 %vm15143_vm14, %v1762_v0 }
 0x2bc   : > { %1461 = vrot.lane.b32.xlu1 %v8556_v25, %s15107_s0  ;;  %7444 = vmatprep.mubr.msk.f32.mxu0 %vm15143_vm14, %v1762_v0 }
 0x2bd   : > { %v1316_v3 = vpop.permute.xlu0 %1315 }
 0x2be   : > { %v1333_v4 = vsel %vm15140_vm0, %v1314_v2, %v1316_v3  ;;  %v8634_v21 = vld [vmem:[#allocation2 + $0x38] sm:$0xff] }
 0x2bf   : > { %1364 = vst.msk [vmem:[#allocation2 + $0x58] sm:$0xff] %vm823_vm5, %v1333_v4  ;;  %1407 = vrot.lane.b32.xlu0 %v8554_v23, %s15105_s29  ;;  %v1310_v6 = vpop.permute.xlu1 %1309  ;;  %v1770_v4 = vld [vmem:[%s15338_s3 + $0x8] sm:$0xff] }
 0x2c0   : > { %v8579_v5 = vld [vmem:[#allocation2 + $0x20] sm:$0xff]  ;;  %1361 = vst.msk [vmem:[#allocation2 + $0x40] sm:$0xff] %vm15141_vm3, %v1310_v6  ;;  %1401 = vrot.lane.b32.xlu1 %v8556_v25, %s15105_s29 }
 0x2c1   : > { %15322 = vst [vmem:[#allocation8_spill] sm:$0xff] %v8579_v5  ;;  %2757 = vst.msk [vmem:[#allocation2 + $0x20] sm:$0xff] %vm15140_vm0, %v15113_v1  ;;  %v1312_v7 = vpop.permute.xlu0 %1311 }
 0x2c2   : > { %v8590_v8 = vsel %vm15140_vm0, %v1310_v6, %v1312_v7  ;;  %v8593_v9 = vsel %vm15140_vm0, %v1312_v7, %v1314_v2  ;;  %v1769_v7 = vld [vmem:[%s15338_s3] sm:$0xff] }
 0x2c3   : > { %1362 = vst [vmem:[#allocation2 + $0x48] sm:$0xff] %v8590_v8  ;;  %1707 = vrot.lane.b32.xlu0 %v8554_v23, %s15103_s4  ;;  %v1322_v10 = vpop.permute.xlu1 %1321 }
 0x2c4   : > { %1701 = vrot.lane.b32.xlu1 %v8556_v25, %s15103_s4 }
 0x2c5   : > { %v1324_v11 = vpop.permute.xlu0 %1323 }
 0x2c6   : > { %v1336_v12 = vsel %vm15140_vm0, %v1322_v10, %v1324_v11  ;;  %v8676_v22 = vld [vmem:[#allocation2 + $0x58] sm:$0xff] }
 0x2c7   : > { %v8601_v13 = vld [vmem:[#allocation2 + $0x40] sm:$0xff]  ;;  %1368 = vst.msk [vmem:[#allocation2 + $0x78] sm:$0xff] %vm823_vm5, %v1336_v12  ;;  %1525 = vrot.lane.b32.xlu0 %v8550_v63, %s15109_s5  ;;  %v1318_v14 = vpop.permute.xlu1 %1317  ;;  %v1772_v11 = vld [vmem:[%s15338_s3 + $0x18] sm:$0xff] }
 0x2c8   : > { %2758 = vst.msk [vmem:[#allocation2 + $0x40] sm:$0xff] %vm15140_vm0, %v15113_v1  ;;  %1523 = vrot.lane.b32.xlu1 %v8547_v55, %s15109_s5 }
 0x2c9   : > { %1365 = vst.msk [vmem:[#allocation2 + $0x60] sm:$0xff] %vm15141_vm3, %v1318_v14  ;;  %v1320_v15 = vpop.permute.xlu0 %1319 }
 0x2ca   : > { %v8612_v16 = vsel %vm15140_vm0, %v1318_v14, %v1320_v15  ;;  %v8615_v17 = vsel %vm15140_vm0, %v1320_v15, %v1322_v10  ;;  %v1771_v14 = vld [vmem:[%s15338_s3 + $0x10] sm:$0xff] }
 0x2cb   : > { %1366 = vst [vmem:[#allocation2 + $0x68] sm:$0xff] %v8612_v16  ;;  %1465 = vrot.lane.b32.xlu0 %v8550_v63, %s15107_s0 }
 0x2cc   : > { %1463 = vrot.lane.b32.xlu1 %v8547_v55, %s15107_s0 }
 0x2ce   : > { %v8718_v24 = vld [vmem:[#allocation2 + $0x78] sm:$0xff] }
 0x2cf   : > { %1405 = vrot.lane.b32.xlu0 %v8550_v63, %s15105_s29 }
 0x2d0   : > { %v8622_v19 = vld [vmem:[#allocation2 + $0x60] sm:$0xff]  ;;  %1403 = vrot.lane.b32.xlu1 %v8547_v55, %s15105_s29 }
 0x2d1   : > { %2759 = vst.msk [vmem:[#allocation2 + $0x60] sm:$0xff] %vm15140_vm0, %v15113_v1 }
 0x2d3   : > { %1705 = vrot.lane.b32.xlu0 %v8550_v63, %s15103_s4 }
 0x2d4   : > { %1703 = vrot.lane.b32.xlu1 %v8547_v55, %s15103_s4 }
 0x2d7   : > { %1535 = vrot.lane.b32.xlu0 %v8634_v21, %s15109_s5 }
 0x2d8   : > { %1529 = vrot.lane.b32.xlu1 %v8579_v5, %s15109_s5 }
 0x2db   : > { %1475 = vrot.lane.b32.xlu0 %v8634_v21, %s15107_s0 }
 0x2dc   : > { %1469 = vrot.lane.b32.xlu1 %v8579_v5, %s15107_s0 }
 0x2df   : > { %1415 = vrot.lane.b32.xlu0 %v8634_v21, %s15105_s29 }
 0x2e0   : > { %1409 = vrot.lane.b32.xlu1 %v8579_v5, %s15105_s29 }
 0x2e3   : > { %1715 = vrot.lane.b32.xlu0 %v8634_v21, %s15103_s4 }
 0x2e4   : > { %1709 = vrot.lane.b32.xlu1 %v8579_v5, %s15103_s4 }
 0x2e7   : > { %1655 = vrot.lane.b32.xlu0 %v8634_v21, %s15323_s9 }
 0x2e8   : > { %1649 = vrot.lane.b32.xlu1 %v8579_v5, %s15323_s9 }
 0x2eb   : > { %1533 = vrot.lane.b32.xlu0 %v8570_v29, %s15109_s5 }
 0x2ec   : > { %1531 = vrot.lane.b32.xlu1 %v8567_v28, %s15109_s5 }
 0x2ef   : > { %1473 = vrot.lane.b32.xlu0 %v8570_v29, %s15107_s0 }
 0x2f0   : > { %1471 = vrot.lane.b32.xlu1 %v8567_v28, %s15107_s0 }
 0x2f3   : > { %1413 = vrot.lane.b32.xlu0 %v8570_v29, %s15105_s29 }
 0x2f4   : > { %1411 = vrot.lane.b32.xlu1 %v8567_v28, %s15105_s29 }
 0x2f7   : > { %1713 = vrot.lane.b32.xlu0 %v8570_v29, %s15103_s4 }
 0x2f8   : > { %1711 = vrot.lane.b32.xlu1 %v8567_v28, %s15103_s4 }
 0x2fb   : > { %1653 = vrot.lane.b32.xlu0 %v8570_v29, %s15323_s9 }
 0x2fc   : > { %1651 = vrot.lane.b32.xlu1 %v8567_v28, %s15323_s9 }
 0x2ff   : > { %1543 = vrot.lane.b32.xlu0 %v8676_v22, %s15109_s5 }
 0x300   : > { %1537 = vrot.lane.b32.xlu1 %v8601_v13, %s15109_s5 }
 0x303   : > { %1483 = vrot.lane.b32.xlu0 %v8676_v22, %s15107_s0 }
 0x304   : > { %1477 = vrot.lane.b32.xlu1 %v8601_v13, %s15107_s0 }
 0x307   : > { %1423 = vrot.lane.b32.xlu0 %v8676_v22, %s15105_s29 }
 0x308   : > { %1417 = vrot.lane.b32.xlu1 %v8601_v13, %s15105_s29 }
 0x30b   : > { %1723 = vrot.lane.b32.xlu0 %v8676_v22, %s15103_s4 }
 0x30c   : > { %1717 = vrot.lane.b32.xlu1 %v8601_v13, %s15103_s4 }
 0x30f   : > { %1663 = vrot.lane.b32.xlu0 %v8676_v22, %s15323_s9 }
 0x310   : > { %1657 = vrot.lane.b32.xlu1 %v8601_v13, %s15323_s9 }
 0x313   : > { %1541 = vrot.lane.b32.xlu0 %v8593_v9, %s15109_s5 }
 0x314   : > { %1539 = vrot.lane.b32.xlu1 %v8590_v8, %s15109_s5 }
 0x317   : > { %1481 = vrot.lane.b32.xlu0 %v8593_v9, %s15107_s0 }
 0x318   : > { %1479 = vrot.lane.b32.xlu1 %v8590_v8, %s15107_s0 }
 0x31b   : > { %1421 = vrot.lane.b32.xlu0 %v8593_v9, %s15105_s29 }
 0x31c   : > { %1419 = vrot.lane.b32.xlu1 %v8590_v8, %s15105_s29 }
 0x31f   : > { %1721 = vrot.lane.b32.xlu0 %v8593_v9, %s15103_s4 }
 0x320   : > { %1719 = vrot.lane.b32.xlu1 %v8590_v8, %s15103_s4 }
 0x323   : > { %1661 = vrot.lane.b32.xlu0 %v8593_v9, %s15323_s9 }
 0x324   : > { %1659 = vrot.lane.b32.xlu1 %v8590_v8, %s15323_s9 }
 0x327   : > { %1551 = vrot.lane.b32.xlu0 %v8718_v24, %s15109_s5 }
 0x328   : > { %1545 = vrot.lane.b32.xlu1 %v8622_v19, %s15109_s5 }
 0x329   : > { %v8724_v30 = vpop.permute.xlu0 %1527 }
 0x32a   : > { %v8726_v31 = vpop.permute.xlu1 %1521 }
 0x32b   : > { %1491 = vrot.lane.b32.xlu0 %v8718_v24, %s15107_s0 }
 0x32c   : > { %1485 = vrot.lane.b32.xlu1 %v8622_v19, %s15107_s0 }
 0x32d   : > { %v8732_v32 = vpop.permute.xlu0 %1467 }
 0x32e   : > { %v8734_v33 = vpop.permute.xlu1 %1461 }
 0x32f   : > { %1431 = vrot.lane.b32.xlu0 %v8718_v24, %s15105_s29 }
 0x330   : > { %1425 = vrot.lane.b32.xlu1 %v8622_v19, %s15105_s29 }
 0x331   : > { %v8740_v34 = vpop.permute.xlu0 %1407 }
 0x332   : > { %v8742_v35 = vpop.permute.xlu1 %1401 }
 0x333   : > { %1731 = vrot.lane.b32.xlu0 %v8718_v24, %s15103_s4 }
 0x334   : > { %1725 = vrot.lane.b32.xlu1 %v8622_v19, %s15103_s4 }
 0x335   : > { %v8748_v36 = vpop.permute.xlu0 %1707 }
 0x336   : > { %15324 = vst [vmem:[#allocation9_spill] sm:$0xff] %v8748_v36  ;;  %v8750_v37 = vpop.permute.xlu1 %1701 }
 0x337   : > { %15325 = vst [vmem:[#allocation10_spill] sm:$0xff] %v8750_v37  ;;  %1671 = vrot.lane.b32.xlu0 %v8718_v24, %s15323_s9 }
 0x338   : > { %1665 = vrot.lane.b32.xlu1 %v8622_v19, %s15323_s9 }
 0x339   : > { %v8756_v38 = vpop.permute.xlu0 %1525 }
 0x33a   : > { %v8758_v39 = vpop.permute.xlu1 %1523 }
 0x33b   : > { %1549 = vrot.lane.b32.xlu0 %v8615_v17, %s15109_s5 }
 0x33c   : > { %1547 = vrot.lane.b32.xlu1 %v8612_v16, %s15109_s5  ;;  %s15926_s5 = smov 122  }
 0x33d   : > { %v8764_v40 = vpop.permute.xlu0 %1465 }
 0x33e   : > { %v8766_v41 = vpop.permute.xlu1 %1463 }
 0x33f   : > { %1645 = vrot.lane.b32.xlu0 %v8550_v63, %s15323_s9 }
 0x340   : > { %1643 = vrot.lane.b32.xlu1 %v8547_v55, %s15323_s9 }
 0x341   : > { %v8772_v42 = vpop.permute.xlu0 %1405 }
 0x342   : > { %v8774_v43 = vpop.permute.xlu1 %1403 }
 0x343   : > { %1489 = vrot.lane.b32.xlu0 %v8615_v17, %s15107_s0 }
 0x344   : > { %1487 = vrot.lane.b32.xlu1 %v8612_v16, %s15107_s0 }
 0x345   : > { %v8780_v44 = vpop.permute.xlu0 %1705 }
 0x346   : > { %15326 = vst [vmem:[#allocation11_spill] sm:$0xff] %v8780_v44  ;;  %v8782_v45 = vpop.permute.xlu1 %1703 }
 0x347   : > { %15327 = vst [vmem:[#allocation12_spill] sm:$0xff] %v8782_v45  ;;  %1647 = vrot.lane.b32.xlu0 %v8554_v23, %s15323_s9 }
 0x348   : > { %1641 = vrot.lane.b32.xlu1 %v8556_v25, %s15323_s9 }
 0x349   : > { %v8788_v46 = vpop.permute.xlu0 %1535 }
 0x34a   : > { %v8790_v47 = vpop.permute.xlu1 %1529 }
 0x34b   : > { %1429 = vrot.lane.b32.xlu0 %v8615_v17, %s15105_s29 }
 0x34c   : > { %1427 = vrot.lane.b32.xlu1 %v8612_v16, %s15105_s29 }
 0x34d   : > { %v8796_v48 = vpop.permute.xlu0 %1475 }
 0x34e   : > { %v8798_v49 = vpop.permute.xlu1 %1469 }
 0x34f   : > { %1611 = vrot.lane.b32.xlu0 %v8718_v24, %s15328_s7 }
 0x350   : > { %1605 = vrot.lane.b32.xlu1 %v8622_v19, %s15328_s7 }
 0x351   : > { %v8804_v50 = vpop.permute.xlu0 %1415 }
 0x352   : > { %v8806_v52 = vpop.permute.xlu1 %1409 }
 0x353   : > { %1601 = vrot.lane.b32.xlu0 %v8593_v9, %s15328_s7 }
 0x354   : > { %1599 = vrot.lane.b32.xlu1 %v8590_v8, %s15328_s7 }
 0x355   : > { %v8812_v54 = vpop.permute.xlu0 %1715 }
 0x356   : > { %15329 = vst [vmem:[#allocation13_spill] sm:$0xff] %v8812_v54  ;;  %v8814_v51 = vpop.permute.xlu1 %1709 }
 0x357   : > { %15330 = vst [vmem:[#allocation14_spill] sm:$0xff] %v8814_v51  ;;  %1603 = vrot.lane.b32.xlu0 %v8676_v22, %s15328_s7 }
 0x358   : > { %1597 = vrot.lane.b32.xlu1 %v8601_v13, %s15328_s7 }
 0x359   : > { %v8820_v56 = vpop.permute.xlu0 %1655 }
 0x35a   : > { %15331 = vst [vmem:[#allocation15_spill] sm:$0xff] %v8820_v56  ;;  %v8822_v57 = vpop.permute.xlu1 %1649 }
 0x35b   : > { %15332 = vst [vmem:[#allocation16_spill] sm:$0xff] %v8822_v57  ;;  %1729 = vrot.lane.b32.xlu0 %v8615_v17, %s15103_s4 }
 0x35c   : > { %1727 = vrot.lane.b32.xlu1 %v8612_v16, %s15103_s4  ;;  %s15919_s4 = smov 127  }
 0x35d   : > { %v8828_v58 = vpop.permute.xlu0 %1533 }
 0x35e   : > { %v8830_v59 = vpop.permute.xlu1 %1531 }
 0x35f   : > { %1593 = vrot.lane.b32.xlu0 %v8570_v29, %s15328_s7 }
 0x360   : > { %1591 = vrot.lane.b32.xlu1 %v8567_v28, %s15328_s7 }
 0x361   : > { %v8836_v53 = vpop.permute.xlu0 %1473 }
 0x362   : > { %v8838_v60 = vpop.permute.xlu1 %1471 }
 0x363   : > { %1669 = vrot.lane.b32.xlu0 %v8615_v17, %s15323_s9 }
 0x364   : > { %1667 = vrot.lane.b32.xlu1 %v8612_v16, %s15323_s9 }
 0x365   : > { %v8844_v61 = vpop.permute.xlu0 %1413 }
 0x366   : > { %v8846_v62 = vpop.permute.xlu1 %1411 }
 0x367   : > { %1595 = vrot.lane.b32.xlu0 %v8634_v21, %s15328_s7 }
 0x368   : > { %1589 = vrot.lane.b32.xlu1 %v8579_v5, %s15328_s7 }
 0x369   : > { %v8857_v18 = vpop.permute.xlu0 %1713 }
 0x36a   : > { %15334 = vst [vmem:[#allocation17_spill] sm:$0xff] %v8857_v18  ;;  %v8859_v20 = vpop.permute.xlu1 %1711 }
 0x36b   : > { %15335 = vst [vmem:[#allocation18_spill] sm:$0xff] %v8859_v20  ;;  %1609 = vrot.lane.b32.xlu0 %v8615_v17, %s15328_s7 }
 0x36c   : > { %1607 = vrot.lane.b32.xlu1 %v8612_v16, %s15328_s7 }
 0x36d   : > { %v8865_v26 = vpop.permute.xlu0 %1653 }
 0x36e   : > { %15336 = vst [vmem:[#allocation19_spill] sm:$0xff] %v8865_v26  ;;  %v8867_v27 = vpop.permute.xlu1 %1651 }
 0x36f   : > { %15337 = vst [vmem:[#allocation20_spill] sm:$0xff] %v8867_v27  ;;  %1585 = vrot.lane.b32.xlu0 %v8550_v63, %s15328_s7 }
 0x370   : > { %1583 = vrot.lane.b32.xlu1 %v8547_v55, %s15328_s7 }
 0x371   : > { %v1544_v2 = vpop.permute.xlu0 %1543 }
 0x372   : > { %v1538_v3 = vpop.permute.xlu1 %1537 }
 0x373   : > { %1587 = vrot.lane.b32.xlu0 %v8554_v23, %s15328_s7 }
 0x374   : > { %1581 = vrot.lane.b32.xlu1 %v8556_v25, %s15328_s7 }
 0x375   : > { %v8880_v6 = vpop.permute.xlu0 %1483 }
 0x376   : > { %v8885_v10 = vpop.permute.xlu1 %1477 }
 0x377   : > { %1780 = vperm.xlu0 %8088, %v1770_v4  }
 0x378   : > { %1775 = vperm.xlu1 %8089, %v1769_v7  }
 0x379   : > { %v8890_v12 = vpop.permute.xlu0 %1423 }
 0x37a   : > { %v8895_v15 = vpop.permute.xlu1 %1417 }
 0x37b   : > { %1790 = vperm.xlu0 %8088, %v1772_v11  }
 0x37c   : > { %1785 = vperm.xlu1 %8089, %v1771_v14  }
 0x37d   : > { %v8897_v0 = vpop.permute.xlu0 %1723 }
 0x37e   : > { %15339 = vst [vmem:[#allocation21_spill] sm:$0xff] %v8897_v0  ;;  %v8899_v1 = vpop.permute.xlu1 %1717 }
 0x37f   : > { %15340 = vst [vmem:[#allocation22_spill] sm:$0xff] %v8899_v1 }
 0x381   : > { %v8901_v4 = vpop.permute.xlu0 %1663 }
 0x382   : > { %15341 = vst [vmem:[#allocation23_spill] sm:$0xff] %v8901_v4  ;;  %v8903_v7 = vpop.permute.xlu1 %1657 }
 0x383   : > { %15342 = vst [vmem:[#allocation24_spill] sm:$0xff] %v8903_v7 }
 0x385   : > { %v1542_v57 = vpop.permute.xlu0 %1541 }
 0x386   : > { %v1540_v27 = vpop.permute.xlu1 %1539  ;;  %v1561_v63 = vsel %vm15139_vm9, %v1542_v57, %v1544_v2 }
 0x389   : > { %v8905_v26 = vpop.permute.xlu0 %1481 }
 0x38a   : > { %v8907_v56 = vpop.permute.xlu1 %1479 }
 0x38d   : > { %v8909_v37 = vpop.permute.xlu0 %1421 }
 0x38e   : > { %v8911_v51 = vpop.permute.xlu1 %1419 }
 0x391   : > { %v8913_v11 = vpop.permute.xlu0 %1721 }
 0x392   : > { %15343 = vst [vmem:[#allocation25_spill] sm:$0xff] %v8913_v11  ;;  %v8915_v14 = vpop.permute.xlu1 %1719 }
 0x393   : > { %15344 = vst [vmem:[#allocation26_spill] sm:$0xff] %v8915_v14 }
 0x395   : > { %v8917_v45 = vpop.permute.xlu0 %1661 }
 0x396   : > { %15345 = vst [vmem:[#allocation27_spill] sm:$0xff] %v8917_v45  ;;  %v8919_v44 = vpop.permute.xlu1 %1659 }
 0x397   : > { %15346 = vst [vmem:[#allocation28_spill] sm:$0xff] %v8919_v44 }
 0x399   : > { %v1552_v4 = vpop.permute.xlu0 %1551 }
 0x39a   : > { %1895 = vmatprep.subr.mxu1 %v1552_v4  ;;  %v1546_v7 = vpop.permute.xlu1 %1545 }
 0x39d   : > { %v1492_v36 = vpop.permute.xlu0 %1491 }
 0x39e   : > { %v1486_v20 = vpop.permute.xlu1 %1485 }
 0x3a1   : > { %v8921_v18 = vpop.permute.xlu0 %1431 }
 0x3a2   : > { %v8923_v1 = vpop.permute.xlu1 %1425 }
 0x3a5   : > { %v8925_v54 = vpop.permute.xlu0 %1731 }
 0x3a6   : > { %15347 = vst [vmem:[#allocation29_spill] sm:$0xff] %v8925_v54  ;;  %v8927_v0 = vpop.permute.xlu1 %1725 }
 0x3a9   : > { %v8929_v11 = vpop.permute.xlu0 %1671 }
 0x3aa   : > { %15348 = vst [vmem:[#allocation30_spill] sm:$0xff] %v8929_v11  ;;  %v8931_v14 = vpop.permute.xlu1 %1665  ;;  %v1560_v11 = vsel %vm15139_vm9, %v1540_v27, %v1542_v57 }
 0x3ab   : > { %15349 = vst [vmem:[#allocation31_spill] sm:$0xff] %v8931_v14 }
 0x3ad   : > { %v1550_v45 = vpop.permute.xlu0 %1549 }
 0x3ae   : > { %v1548_v25 = vpop.permute.xlu1 %1547  ;;  %v1564_v44 = vsel %vm15139_vm9, %v1550_v45, %v1552_v4  ;;  %v2000_v4 = vlaneseq }
 0x3af   : > { %1896 = vmatpush1.msra.mxu1 %v1564_v44  ;;  %v1563_v55 = vsel %vm15139_vm9, %v1548_v25, %v1550_v45  ;;  %v1562_v5 = vsel %vm15139_vm9, %v1546_v7, %v1548_v25  ;;  %v1559_v44 = vsel %vm15139_vm9, %v1538_v3, %v1540_v27  ;;  %v1555_v25 = vsel %vm15139_vm9, %v8756_v38, %v8724_v30  ;;  %v15359_v7 = vld [vmem:[#allocation25_spill] sm:$0xff] }
 0x3b0   : > { %1806 = vmatprep.subr.mxu0 %v1563_v55  ;;  %1897 = vmatprep.subr.mxu1 %v1544_v2  ;;  %v1558_v55 = vsel %vm15139_vm9, %v8828_v58, %v8788_v46  ;;  %v1497_v2 = vsel %vm15138_vm10, %v8838_v60, %v8836_v53 }
 0x3b1   : > { %1898 = vmatpush1.msra.mxu1 %v1561_v63  ;;  %v8937_v54 = vpop.permute.xlu0 %1645  ;;  %1807 = vmatpush1.msra.mxu0 %v1562_v5  ;;  %v1557_v63 = vsel %vm15139_vm9, %v8830_v59, %v8828_v58  ;;  %v1556_v5 = vsel %vm15139_vm9, %v8790_v47, %v8830_v59  ;;  %v1553_v58 = vsel %vm15139_vm9, %v8726_v31, %v8758_v39 }
 0x3b2   : > { %1808 = vmatprep.subr.mxu0 %v1560_v11  ;;  %1899 = vmatprep.subr.mxu1 %v8788_v46  ;;  %v8941_v14 = vpop.permute.xlu1 %1643  ;;  %v1554_v46 = vsel %vm15139_vm9, %v8758_v39, %v8756_v38  ;;  %v1501_v38 = vsel %vm15138_vm10, %v8905_v26, %v8880_v6  ;;  %v1500_v31 = vsel %vm15138_vm10, %v8907_v56, %v8905_v26 }
 0x3b3   : > { %1809 = vmatpush1.msra.mxu0 %v1559_v44  ;;  %1900 = vmatpush1.msra.mxu1 %v1558_v55  ;;  %v1499_v39 = vsel %vm15138_vm10, %v8885_v10, %v8907_v56  ;;  %v1495_v26 = vsel %vm15138_vm10, %v8764_v40, %v8732_v32  ;;  %v1496_v56 = vsel %vm15138_vm10, %v8798_v49, %v8838_v60  ;;  %v15360_v55 = vld [vmem:[#allocation26_spill] sm:$0xff] }
 0x3b4   : > { %1810 = vmatprep.subr.mxu0 %v1557_v63  ;;  %1901 = vmatprep.subr.mxu1 %v8724_v30  ;;  %v1740_v63 = vsel %vm15136_vm6, %v15360_v55, %v15359_v7 }
 0x3b5   : > { %1902 = vmatpush1.msra.mxu1 %v1555_v25  ;;  %v1490_v45 = vpop.permute.xlu0 %1489  ;;  %1811 = vmatpush1.msra.mxu0 %v1556_v5  ;;  %v15362_v5 = vld [vmem:[#allocation22_spill] sm:$0xff] }
 0x3b6   : > { %1812 = vmatprep.subr.mxu0 %v1554_v46  ;;  %1903 = vmatprep.subr.mxu1 %v1492_v36  ;;  %v1488_v57 = vpop.permute.xlu1 %1487  ;;  %v1504_v30 = vsel %vm15138_vm10, %v1490_v45, %v1492_v36  ;;  %v15363_v46 = vld [vmem:[#allocation17_spill] sm:$0xff] }
 0x3b7   : > { %1813 = vmatpush1.msra.mxu0 %v1553_v58  ;;  %1904 = vmatpush1.msra.mxu1 %v1504_v30  ;;  %v1503_v47 = vsel %vm15138_vm10, %v1488_v57, %v1490_v45  ;;  %v1502_v59 = vsel %vm15138_vm10, %v1486_v20, %v1488_v57  ;;  %v1498_v20 = vsel %vm15138_vm10, %v8836_v53, %v8796_v48 }
 0x3b8   : > { %1814 = vmatprep.subr.mxu0 %v1503_v47  ;;  %1905 = vmatprep.subr.mxu1 %v8880_v6  ;;  %v1493_v6 = vsel %vm15138_vm10, %v8734_v33, %v8766_v41  ;;  %v1440_v33 = vsel %vm15137_vm11, %v8911_v51, %v8909_v37  ;;  %v1739_v45 = vsel %vm15136_vm6, %v15362_v5, %v15360_v55  ;;  %v15364_v47 = vld [vmem:[#allocation18_spill] sm:$0xff]  ;;  %v15379_v55 = vld [vmem:[#allocation24_spill] sm:$0xff] }
 0x3b9   : > { %1906 = vmatpush1.msra.mxu1 %v1501_v38  ;;  %v8970_v27 = vpop.permute.xlu0 %1647  ;;  %1815 = vmatpush1.msra.mxu0 %v1502_v59  ;;  %v1737_v59 = vsel %vm15136_vm6, %v15364_v47, %v15363_v46  ;;  %v15365_v38 = vld [vmem:[#allocation9_spill] sm:$0xff] }
 0x3ba   : > { %1816 = vmatprep.subr.mxu0 %v1500_v31  ;;  %1907 = vmatprep.subr.mxu1 %v8796_v48  ;;  %v8976_v36 = vpop.permute.xlu1 %1641  ;;  %v1494_v48 = vsel %vm15138_vm10, %v8766_v41, %v8764_v40  ;;  %v1441_v40 = vsel %vm15137_vm11, %v8909_v37, %v8890_v12  ;;  %v1435_v37 = vsel %vm15137_vm11, %v8772_v42, %v8740_v34  ;;  %v15366_v31 = vld [vmem:[#allocation11_spill] sm:$0xff] }
 0x3bb   : > { %1817 = vmatpush1.msra.mxu0 %v1499_v39  ;;  %1908 = vmatpush1.msra.mxu1 %v1498_v20  ;;  %v1735_v39 = vsel %vm15136_vm6, %v15366_v31, %v15365_v38  ;;  %v15367_v20 = vld [vmem:[#allocation12_spill] sm:$0xff]  ;;  %v1675_v5 = vsel %vm15144_vm7, %v8937_v54, %v8970_v27 }
 0x3bc   : > { %1818 = vmatprep.subr.mxu0 %v1497_v2  ;;  %1909 = vmatprep.subr.mxu1 %v8732_v32  ;;  %v1734_v2 = vsel %vm15136_vm6, %v15367_v20, %v15366_v31 }
 0x3bd   : > { %1910 = vmatpush1.msra.mxu1 %v1495_v26  ;;  %v1430_v3 = vpop.permute.xlu0 %1429  ;;  %1819 = vmatpush1.msra.mxu0 %v1496_v56  ;;  %v15368_v56 = vld [vmem:[#allocation14_spill] sm:$0xff] }
 0x3be   : > { %1820 = vmatprep.subr.mxu0 %v1494_v48  ;;  %1911 = vmatprep.subr.mxu1 %v8921_v18  ;;  %v1428_v53 = vpop.permute.xlu1 %1427  ;;  %v1444_v32 = vsel %vm15137_vm11, %v1430_v3, %v8921_v18  ;;  %v1438_v18 = vsel %vm15137_vm11, %v8844_v61, %v8804_v50  ;;  %v15369_v48 = vld [vmem:[#allocation10_spill] sm:$0xff] }
 0x3bf   : > { %1821 = vmatpush1.msra.mxu0 %v1493_v6  ;;  %1912 = vmatpush1.msra.mxu1 %v1444_v32  ;;  %v1443_v49 = vsel %vm15137_vm11, %v1428_v53, %v1430_v3  ;;  %v1442_v60 = vsel %vm15137_vm11, %v8923_v1, %v1428_v53  ;;  %v1439_v1 = vsel %vm15137_vm11, %v8895_v15, %v8911_v51  ;;  %v15370_v6 = vld [vmem:[#allocation15_spill] sm:$0xff] }
 0x3c0   : > { %1822 = vmatprep.subr.mxu0 %v1443_v49  ;;  %1913 = vmatprep.subr.mxu1 %v8890_v12  ;;  %v1437_v12 = vsel %vm15137_vm11, %v8846_v62, %v8844_v61  ;;  %v1436_v51 = vsel %vm15137_vm11, %v8806_v52, %v8846_v62  ;;  %v15358_v62 = vld [vmem:[#allocation21_spill] sm:$0xff]  ;;  %v1736_v3 = vsel %vm15136_vm6, %v15368_v56, %v15364_v47  ;;  %v15371_v32 = vld [vmem:[#allocation19_spill] sm:$0xff] }
 0x3c1   : > { %1914 = vmatpush1.msra.mxu1 %v1441_v40  ;;  %v9010_v10 = vpop.permute.xlu0 %1611  ;;  %1823 = vmatpush1.msra.mxu0 %v1442_v60  ;;  %v1741_v11 = vsel %vm15136_vm6, %v15359_v7, %v15358_v62  ;;  %v1733_v53 = vsel %vm15136_vm6, %v15369_v48, %v15367_v20  ;;  %v1678_v49 = vsel %vm15144_vm7, %v15371_v32, %v15370_v6  ;;  %v15500_v48 = vmov 0 }
 0x3c2   : > { %1824 = vmatprep.subr.mxu0 %v1440_v33  ;;  %1915 = vmatprep.subr.mxu1 %v8804_v50  ;;  %v9016_v41 = vpop.permute.xlu1 %1605  ;;  %v1434_v50 = vsel %vm15137_vm11, %v8774_v43, %v8772_v42  ;;  %v15372_v33 = vld [vmem:[#allocation20_spill] sm:$0xff]  ;;  %v1673_v47 = vsel %vm15144_vm7, %v8976_v36, %v8941_v14 }
 0x3c3   : > { %1825 = vmatpush1.msra.mxu0 %v1439_v1  ;;  %1916 = vmatpush1.msra.mxu1 %v1438_v18  ;;  %v1677_v1 = vsel %vm15144_vm7, %v15372_v33, %v15371_v32  ;;  %v15373_v18 = vld [vmem:[#allocation16_spill] sm:$0xff] }
 0x3c4   : > { %1826 = vmatprep.subr.mxu0 %v1437_v12  ;;  %1917 = vmatprep.subr.mxu1 %v8740_v34  ;;  %v1433_v34 = vsel %vm15137_vm11, %v8742_v35, %v8774_v43  ;;  %v9056_v35 = vand.u32 127, %v2000_v4  ;;  %v1676_v12 = vsel %vm15144_vm7, %v15373_v18, %v15372_v33  ;;  %v1761_v33 = vld [vmem:[%s15333_s1] sm:$0xff] }
 0x3c5   : > { %1918 = vmatpush1.msra.mxu1 %v1435_v37  ;;  %v9034_v15 = vpop.permute.xlu0 %1601  ;;  %1827 = vmatpush1.msra.mxu0 %v1436_v51 }
 0x3c6   : > { %1828 = vmatprep.subr.mxu0 %v1434_v50  ;;  %1919 = vmatprep.subr.mxu1 %v8718_v24  ;;  %v9040_v61 = vpop.permute.xlu1 %1599  ;;  %15350 = vst [vmem:[#allocation32_spill] sm:$0xff] %v9056_v35  ;;  %v9078_v52 = vmul.u32 2, %v9056_v35  ;;  %v15374_v50 = vld [vmem:[#allocation30_spill] sm:$0xff] }
 0x3c7   : > { %1829 = vmatpush1.msra.mxu0 %v1433_v34  ;;  %1920 = vmatpush1.msra.mxu1 %v8615_v17  ;;  %v15352_v17 = vld [vmem:[#allocation8_spill] sm:$0xff]  ;;  %v1620_v20 = vsel %vm15145_vm8, %v9040_v61, %v9034_v15 }
 0x3c8   : > { %1830 = vmatprep.subr.mxu0 %v8612_v16  ;;  %1921 = vmatprep.subr.mxu1 %v8676_v22  ;;  %v9114_v26 = vadd.s32 1, %v9078_v52 }
 0x3c9   : > { %1922 = vmatpush1.msra.mxu1 %v8593_v9  ;;  %v9049_v42 = vpop.permute.xlu0 %1603  ;;  %1831 = vmatpush1.msra.mxu0 %v8622_v19  ;;  %v15351_v9 = vld [vmem:[#allocation6_spill] sm:$0xff]  ;;  %v15354_v19 = vld [vmem:[#allocation29_spill] sm:$0xff] }
 0x3ca   : > { %1832 = vmatprep.subr.mxu0 %v8590_v8  ;;  %1923 = vmatprep.subr.mxu1 %v8634_v21  ;;  %v9054_v24 = vpop.permute.xlu1 %1597  ;;  %v15353_v8 = vld [vmem:[#allocation5_spill] sm:$0xff]  ;;  %v1621_v31 = vsel %vm15145_vm8, %v9034_v15, %v9049_v42 }
 0x3cb   : > { %1833 = vmatpush1.msra.mxu0 %v8601_v13  ;;  %1924 = vmatpush1.msra.mxu1 %v8570_v29  ;;  %v9068_v13 = vshrl.u32 %v2000_v4, 7  ;;  %v9071_v29 = vadd.s32 128, %v9056_v35 }
 0x3cc   : > { %1834 = vmatprep.subr.mxu0 %v8567_v28  ;;  %1925 = vmatprep.subr.mxu1 %v8554_v23  ;;  %v15357_v28 = vld [vmem:[#allocation7_spill] sm:$0xff] }
 0x3cd   : > { %1926 = vmatpush1.msra.mxu1 %v15351_v9  ;;  %v1730_v16 = vpop.permute.xlu0 %1729  ;;  %1835 = vmatpush1.msra.mxu0 %v15352_v17  ;;  %15355 = vst [vmem:[#allocation6_spill] sm:$0xff] %v9068_v13  ;;  %15356 = vst [vmem:[#allocation8_spill] sm:$0xff] %v9071_v29  ;;  %v9099_v58 = vadd.s32 120, %v9068_v13  ;;  %v9102_v30 = vmul.u32 2, %v9071_v29  ;;  %v9127_v60 = vadd.s32 112, %v9068_v13  ;;  %v9136_v37 = vadd.s32 376, %v9068_v13 }
 0x3ce   : > { %1836 = vmatprep.subr.mxu0 %v15353_v8  ;;  %1935 = vmatprep.subr.mxu1 %v15354_v19  ;;  %v1728_v21 = vpop.permute.xlu1 %1727  ;;  %v1744_v22 = vsel %vm15136_vm6, %v1730_v16, %v15354_v19  ;;  %v9139_v51 = vadd.s32 104, %v9068_v13  ;;  %v15375_v17 = vld [vmem:[#allocation31_spill] sm:$0xff]  ;;  %v9179_v7 = vadd.s32 96, %v9068_v13  ;;  %v9301_v15 = vadd.s32 336, %v9068_v13 }
 0x3cf   : > { %1837 = vmatpush1.msra.mxu0 %v15357_v28  ;;  %1936 = vmatpush2.msra.mxu1 %v1744_v22  ;;  %v1743_v23 = vsel %vm15136_vm6, %v1728_v21, %v1730_v16  ;;  %v1742_v43 = vsel %vm15136_vm6, %v8927_v0, %v1728_v21  ;;  %v15361_v0 = vld [vmem:[#allocation13_spill] sm:$0xff]  ;;  %vm2099_vm15 = vcmp.eq.s32.totalorder %v9099_v58, %v9102_v30  ;;  %v9147_v9 = vadd.s32 1, %v9102_v30  ;;  %v15376_v19 = vld [vmem:[#allocation23_spill] sm:$0xff] }
 0x3d0   : > { %1846 = vmatprep.subr.mxu0 %v1743_v23  ;;  %1937 = vmatprep.subr.mxu1 %v15358_v62  ;;  %v1738_v57 = vsel %vm15136_vm6, %v15363_v46, %v15361_v0  ;;  %vm2098_vm1 = vcmp.eq.s32.totalorder %v9099_v58, %v9078_v52  ;;  %vm2224_vm2 = vcmp.eq.s32.totalorder %v9099_v58, %v9114_v26  ;;  %v15377_v21 = vld [vmem:[#allocation27_spill] sm:$0xff]  ;;  %v9167_v28 = vadd.s32 368, %v9068_v13 }
 0x3d1   : > { %1938 = vmatpush2.msra.mxu1 %v1741_v11  ;;  %v9084_v44 = vpop.permute.xlu0 %1593  ;;  %1847 = vmatpush2.msra.mxu0 %v1742_v43  ;;  %v1681_v22 = vsel %vm15144_vm7, %v15377_v21, %v15376_v19  ;;  %vm2097_vm4 = vcmp.eq.s32.totalorder %v9127_v60, %v9102_v30  ;;  %vm2096_vm5 = vcmp.eq.s32.totalorder %v9127_v60, %v9078_v52  ;;  %v15378_v43 = vld [vmem:[#allocation28_spill] sm:$0xff]  ;;  %v9412_v18 = vadd.s32 320, %v9068_v13 }
 0x3d2   : > { %1848 = vmatprep.subr.mxu0 %v1740_v63  ;;  %1939 = vmatprep.subr.mxu1 %v15361_v0  ;;  %v9090_v25 = vpop.permute.xlu1 %1591  ;;  %vm2222_vm13 = vcmp.eq.s32.totalorder %v9127_v60, %v9114_v26  ;;  %v1680_v62 = vsel %vm15144_vm7, %v15378_v43, %v15377_v21  ;;  %v1679_v63 = vsel %vm15144_vm7, %v15379_v55, %v15378_v43  ;;  %v9204_v0 = vadd.s32 360, %v9068_v13  ;;  %v1766_v43 = vld [vmem:[%s15333_s1 + $0x28] sm:$0xff] }
 0x3d3   : > { %1849 = vmatpush2.msra.mxu0 %v1739_v45  ;;  %1940 = vmatpush2.msra.mxu1 %v1738_v57  ;;  %vm2225_vm10 = vcmp.eq.s32.totalorder %v9099_v58, %v9147_v9  ;;  %vm2223_vm9 = vcmp.eq.s32.totalorder %v9127_v60, %v9147_v9  ;;  %vm2289_vm12 = vcmp.eq.s32.totalorder %v9136_v37, %v9147_v9  ;;  %v9215_v45 = vadd.s32 88, %v9068_v13 }
 0x3d4   : > { %1850 = vmatprep.subr.mxu0 %v1737_v59  ;;  %1941 = vmatprep.subr.mxu1 %v15365_v38  ;;  %vm2221_vm14 = vcmp.eq.s32.totalorder %v9139_v51, %v9147_v9  ;;  %v1674_v57 = vsel %vm15144_vm7, %v8941_v14, %v8937_v54  ;;  %v9242_v38 = vadd.s32 80, %v9068_v13  ;;  %v1619_v58 = vsel %vm15145_vm8, %v9054_v24, %v9040_v61 }
 0x3d5   : > { %1942 = vmatpush2.msra.mxu1 %v1735_v39  ;;  %v1670_v40 = vpop.permute.xlu0 %1669  ;;  %1851 = vmatpush2.msra.mxu0 %v1736_v3  ;;  %v9329_v61 = vadd.s32 64, %v9068_v13  ;;  %v1617_v24 = vsel %vm15145_vm8, %v9090_v25, %v9084_v44  ;;  %v9490_v21 = vadd.s32 40, %v9068_v13  ;;  %vm15419_vm0 = vcmp.eq.s32.totalorder %v9179_v7, %v9078_v52 }
 0x3d6   : > { %1852 = vmatprep.subr.mxu0 %v1734_v2  ;;  %1943 = vmatprep.subr.mxu1 %v15374_v50  ;;  %v1668_v34 = vpop.permute.xlu1 %1667  ;;  %v1684_v4 = vsel %vm15144_vm7, %v1670_v40, %v15374_v50  ;;  %v1764_v50 = vld [vmem:[%s15333_s1 + $0x18] sm:$0xff]  ;;  %v1767_v2 = vld [vmem:[%s15333_s1 + $0x30] sm:$0xff]  ;;  %v2056_v55 = vadd.s32 440, %v9068_v13 }
 0x3d7   : > { %1853 = vmatpush2.msra.mxu0 %v1733_v53  ;;  %1944 = vmatpush2.msra.mxu1 %v1684_v4  ;;  %v1683_v16 = vsel %vm15144_vm7, %v1668_v34, %v1670_v40  ;;  %v1682_v8 = vsel %vm15144_vm7, %v15375_v17, %v1668_v34  ;;  %vm9264_vm7 = vmor %vm2098_vm1, %vm2224_vm2  ;;  %v15387_v53 = vmov 0  ;;  %v15402_v34 = vmov 0 }
 0x3d8   : > { %1854 = vmatprep.subr.mxu0 %v1683_v16  ;;  %1945 = vmatprep.subr.mxu1 %v15376_v19  ;;  %vm9288_vm1 = vmor %vm2099_vm15, %vm2225_vm10  ;;  %v9437_v4 = vadd.s32 48, %v9068_v13  ;;  %v15407_v16 = vmov 0  ;;  %v9459_v17 = vadd.s32 312, %v9068_v13  ;;  %vm15414_vm15 = vcmp.eq.s32.totalorder %v9167_v28, %v9078_v52 }
 0x3d9   : > { %1946 = vmatpush2.msra.mxu1 %v1681_v22  ;;  %v9169_v23 = vpop.permute.xlu0 %1595  ;;  %1855 = vmatpush2.msra.mxu0 %v1682_v8  ;;  %vm9316_vm10 = vmor %vm2097_vm4, %vm2223_vm9  ;;  %vm15390_vm4 = vcmp.eq.s32.totalorder %v9136_v37, %v9102_v30  ;;  %v15411_v8 = vmov 0  ;;  %v15415_v19 = vmov 0  ;;  %v1763_v22 = vld [vmem:[%s15333_s1 + $0x10] sm:$0xff] }
 0x3da   : > { %1856 = vmatprep.subr.mxu0 %v1680_v62  ;;  %1947 = vmatprep.subr.mxu1 %v15370_v6  ;;  %v9182_v11 = vpop.permute.xlu1 %1589  ;;  %v1618_v3 = vsel %vm15145_vm8, %v9084_v44, %v9169_v23  ;;  %vm9340_vm9 = vmor %vm2096_vm5, %vm2222_vm13  ;;  %v9363_v44 = vadd.s32 328, %v9068_v13  ;;  %v15186_v62 = vmov 0.5   ;;  %v15514_v6 = vmov 0 }
 0x3db   : > { %1857 = vmatpush2.msra.mxu0 %v1679_v63  ;;  %1948 = vmatpush2.msra.mxu1 %v1678_v49  ;;  %v15388_v53 = vsel %vm9340_vm9, 4294967295, %v15387_v53  ;;  %vm9350_vm11 = vmor %vm15390_vm4, %vm2289_vm12  ;;  %v1616_v32 = vsel %vm15145_vm8, %v9182_v11, %v9090_v25  ;;  %vm15393_vm12 = vcmp.eq.s32.totalorder %v9139_v51, %v9102_v30  ;;  %v9387_v25 = vadd.s32 56, %v9068_v13 }
 0x3dc   : > { %1858 = vmatprep.subr.mxu0 %v1677_v1  ;;  %1949 = vmatprep.subr.mxu1 %v8970_v27  ;;  %v9229_v27 = vadd.s32 352, %v9068_v13  ;;  %15389 = vst [vmem:[#allocation29_spill] sm:$0xff] %v15388_v53  ;;  %vm9374_vm4 = vmor %vm15393_vm12, %vm2221_vm14  ;;  %vm15396_vm14 = vcmp.eq.s32.totalorder %v9136_v37, %v9114_v26  ;;  %vm15397_vm12 = vcmp.eq.s32.totalorder %v9136_v37, %v9078_v52  ;;  %v9543_v11 = vadd.s32 32, %v9068_v13 }
 0x3dd   : > { %1950 = vmatpush2.msra.mxu1 %v1675_v5  ;;  %v1610_v46 = vpop.permute.xlu0 %1609  ;;  %1859 = vmatpush2.msra.mxu0 %v1676_v12  ;;  %vm9399_vm2 = vmor %vm15397_vm12, %vm15396_vm14  ;;  %vm15400_vm14 = vcmp.eq.s32.totalorder %v9139_v51, %v9114_v26  ;;  %vm15401_vm12 = vcmp.eq.s32.totalorder %v9139_v51, %v9078_v52  ;;  %v9580_v5 = vadd.s32 296, %v9068_v13  ;;  %v9947_v1 = vadd.s32 248, %v9068_v13 }
 0x3de   : > { %1860 = vmatprep.subr.mxu0 %v1674_v57  ;;  %1951 = vmatprep.subr.mxu1 %v9010_v10  ;;  %v1608_v54 = vpop.permute.xlu1 %1607  ;;  %v1624_v59 = vsel %vm15145_vm8, %v1610_v46, %v9010_v10  ;;  %v9252_v10 = vadd.s32 344, %v9068_v13  ;;  %vm9424_vm13 = vmor %vm15401_vm12, %vm15400_vm14  ;;  %vm15405_vm14 = vcmp.eq.s32.totalorder %v9167_v28, %v9147_v9  ;;  %vm15406_vm12 = vcmp.eq.s32.totalorder %v9167_v28, %v9102_v30  ;;  %v1765_v57 = vld [vmem:[%s15333_s1 + $0x20] sm:$0xff] }
 0x3df   : > { %1861 = vmatpush2.msra.mxu0 %v1673_v47  ;;  %1952 = vmatpush2.msra.mxu1 %v1624_v59  ;;  %v1623_v14 = vsel %vm15145_vm8, %v1608_v54, %v1610_v46  ;;  %v1622_v36 = vsel %vm15145_vm8, %v9016_v41, %v1608_v54  ;;  %v15380_v41 = vmov 0  ;;  %v15403_v34 = vsel %vm9424_vm13, 4294967295, %v15402_v34  ;;  %vm9446_vm6 = vmor %vm15406_vm12, %vm15405_vm14 }
 0x3e0   : > { %1862 = vmatprep.subr.mxu0 %v1623_v14  ;;  %1953 = vmatprep.subr.mxu1 %v9049_v42  ;;  %v15381_v41 = vsel %vm9264_vm7, 4294967295, %v15380_v41  ;;  %v9277_v42 = vadd.s32 72, %v9068_v13  ;;  %15404 = vst [vmem:[#allocation7_spill] sm:$0xff] %v15403_v34  ;;  %v15408_v16 = vsel %vm9446_vm6, 4294967295, %v15407_v16  ;;  %vm15409_vm14 = vcmp.eq.s32.totalorder %v9179_v7, %v9147_v9 }
 0x3e1   : > { %15382 = vst [vmem:[#allocation5_spill] sm:$0xff] %v15381_v41  ;;  %1954 = vmatpush2.msra.mxu1 %v1621_v31  ;;  %v1586_v39 = vpop.permute.xlu0 %1585  ;;  %1863 = vmatpush2.msra.mxu0 %v1622_v36  ;;  %vm15410_vm12 = vcmp.eq.s32.totalorder %v9179_v7, %v9102_v30  ;;  %v15443_v46 = vmov 0  ;;  %v15448_v47 = vmov 0  ;;  %v9649_v59 = vadd.s32 288, %v9068_v13 }
 0x3e2   : > { %1864 = vmatprep.subr.mxu0 %v1620_v20  ;;  %1955 = vmatprep.subr.mxu1 %v9169_v23  ;;  %v1584_v56 = vpop.permute.xlu1 %1583  ;;  %vm9467_vm5 = vmor %vm15410_vm12, %vm15409_vm14  ;;  %v9515_v23 = vadd.s32 304, %v9068_v13  ;;  %v15457_v14 = vmov 0  ;;  %v15479_v20 = vmov 0  ;;  %v15605_v63 = vmov 0 }
 0x3e3   : > { %1865 = vmatpush2.msra.mxu0 %v1619_v58  ;;  %1956 = vmatpush2.msra.mxu1 %v1618_v3  ;;  %v1614_v40 = vsel %vm15145_vm8, %v1584_v56, %v1586_v39  ;;  %v15412_v8 = vsel %vm9467_vm5, 4294967295, %v15411_v8  ;;  %v15484_v58 = vmov 0  ;;  %v9788_v3 = vadd.s32 8, %v9068_v13 }
 0x3e4   : > { %1866 = vmatprep.subr.mxu0 %v1617_v24  ;;  %v15510_v24 = vmov 0  ;;  %v10253_v54 = vadd.s32 224, %v9068_v13  ;;  %v10318_v31 = vadd.s32 472, %v9068_v13  ;;  %v15686_v49 = vmov 0 }
 0x3e5   : > { %v1588_v60 = vpop.permute.xlu0 %1587  ;;  %1867 = vmatpush2.msra.mxu0 %v1616_v32  ;;  %15490 = vst [vmem:[#allocation22_spill] sm:$0xff] %v9788_v3  ;;  %v9882_v32 = vadd.s32 272, %v9068_v13  ;;  %v15783_v36 = vmov 0 }
 0x3e6   : > { %1868 = vmatprep.subr.mxu0 %v1614_v40  ;;  %1957 = vmatprep.subr.mxu1 %v1588_v60  ;;  %v1582_v12 = vpop.permute.xlu1 %1581  ;;  %v1615_v37 = vsel %vm15145_vm8, %v1586_v39, %v1588_v60  ;;  %v15470_v39 = vmov 0  ;;  %v15531_v60 = vmov 0  ;;  %v15536_v40 = vmov 0 }
 0x3e7   : > { %v1613_v51 = vsel %vm15145_vm8, %v1582_v12, %v1584_v56  ;;  %1958 = vmatpush2.msra.mxu1 %v1615_v37  ;;  %vm15413_vm8 = vcmp.eq.s32.totalorder %v9167_v28, %v9114_v26  ;;  %v15420_v28 = vmov 0  ;;  %v15488_v56 = vmov 0 }
 0x3e8   : > { %1869 = vmatpush2.msra.mxu0 %v1613_v51  ;;  %1960 = vmatmul.mubr.f32.vlgmr.msra.gmra.mxu1 %v1761_v33  ;;  %vm9477_vm3 = vmor %vm15414_vm15, %vm15413_vm8  ;;  %vm15417_vm8 = vcmask 785408   ;;  %vm15418_vm15 = vcmp.eq.s32.totalorder %v9179_v7, %v9114_v26  ;;  %v15546_v12 = vmov 0  ;;  %v15551_v37 = vmov 0 }
 0x3e9   : > { %v15416_v19 = vsel %vm9477_vm3, 4294967295, %v15415_v19  ;;  %1871 = vmatmul.mubr.f32.vlgmr.msra.gmra.mxu0 %v1761_v33  ;;  %7449 = vmatprep.mubr.msk.f32.mxu1 %vm15417_vm8, %v1764_v50  ;;  %vm9502_vm14 = vmor %vm15419_vm0, %vm15418_vm15  ;;  %vm15424_vm0 = vcmp.eq.s32.totalorder %v9204_v0, %v9147_v9  ;;  %vm15425_vm15 = vcmp.eq.s32.totalorder %v9204_v0, %v9102_v30  ;;  %v9944_v33 = vadd.s32 264, %v9068_v13 }
 0x3ea   : > { %v15421_v28 = vsel %vm9502_vm14, 4294967295, %v15420_v28  ;;  %vm15423_vm5 = vmmov %vm15417_vm8  ;;  %7452 = vmatprep.subr.msk.mxu0 %vm9288_vm1, %v15186_v62  ;;  %7516 = vmatprep.subr.msk.mxu1 %vm9350_vm11, %v15186_v62  ;;  %vm15432_vm1 = vcmp.eq.s32.totalorder %v9204_v0, %v9114_v26  ;;  %v15595_v7 = vmov 0 }
 0x3eb   : > { %15422 = vst [vmem:[#allocation21_spill] sm:$0xff] %v15421_v28  ;;  %7445 = vmatprep.mubr.msk.f32.mxu0 %vm15423_vm5, %v1764_v50  ;;  %vm9530_vm6 = vmor %vm15425_vm15, %vm15424_vm0  ;;  %7453 = vmatpush1.msk.msra.mxu0 %vm9264_vm7, %v15186_v62  ;;  %vm15428_vm0 = vcmp.eq.s32.totalorder %v9215_v45, %v9147_v9  ;;  %vm15429_vm15 = vcmp.eq.s32.totalorder %v9215_v45, %v9102_v30  ;;  %v15711_v50 = vmov 0 }
 0x3ec   : > { %vm9557_vm12 = vmor %vm15429_vm15, %vm15428_vm0  ;;  %vm15433_vm5 = vcmp.eq.s32.totalorder %v9204_v0, %v9078_v52  ;;  %1966 = vmatmul.mubr.f32.gmra.mxu1 %v1763_v22  ;;  %7454 = vmatprep.subr.msk.mxu0 %vm9316_vm10, %v15186_v62  ;;  %v15438_v0 = vmov 0  ;;  %vm15441_vm0 = vcmp.eq.s32.totalorder %v9229_v27, %v9147_v9  ;;  %vm15442_vm15 = vcmp.eq.s32.totalorder %v9229_v27, %v9102_v30 }
 0x3ed   : > { %vm9567_vm3 = vmor %vm15433_vm5, %vm15432_vm1  ;;  %vm15436_vm5 = vcmp.eq.s32.totalorder %v9215_v45, %v9114_v26  ;;  %vm15437_vm1 = vcmp.eq.s32.totalorder %v9215_v45, %v9078_v52  ;;  %v9614_v45 = vadd.s32 24, %v9068_v13  ;;  %1877 = vmatmul.mubr.f32.gmra.mxu0 %v1763_v22  ;;  %vm15447_vm10 = vcmp.eq.s32.totalorder %v9242_v38, %v9102_v30  ;;  %7517 = vmatpush1.msk.msra.mxu1 %vm9399_vm2, %v15186_v62 }
 0x3ee   : > { %vm9591_vm11 = vmor %vm15437_vm1, %vm15436_vm5  ;;  %vm15450_vm1 = vcmp.eq.s32.totalorder %v9229_v27, %v9114_v26  ;;  %7455 = vmatpush1.msk.msra.mxu0 %vm9340_vm9, %v15186_v62  ;;  %v15584_v22 = vmov 0 }
 0x3ef   : > { %v15439_v0 = vsel %vm9591_vm11, 4294967295, %v15438_v0  ;;  %vm9601_vm8 = vmor %vm15442_vm15, %vm15441_vm0  ;;  %vm15445_vm0 = vcmask 785408   ;;  %vm15446_vm15 = vcmp.eq.s32.totalorder %v9242_v38, %v9147_v9  ;;  %7456 = vmatprep.subr.msk.mxu0 %vm9374_vm4, %v15186_v62  ;;  %vm15469_vm4 = vcmp.eq.s32.totalorder %v9252_v10, %v9078_v52 }
 0x3f0   : > { %15440 = vst [vmem:[#allocation25_spill] sm:$0xff] %v15439_v0  ;;  %v15444_v46 = vsel %vm9601_vm8, 4294967295, %v15443_v46  ;;  %7450 = vmatprep.mubr.msk.f32.mxu1 %vm15445_vm0, %v1766_v43  ;;  %vm9626_vm5 = vmor %vm15447_vm10, %vm15446_vm15  ;;  %vm15451_vm0 = vcmp.eq.s32.totalorder %v9229_v27, %v9078_v52  ;;  %v1768_v27 = vld [vmem:[%s15333_s1 + $0x38] sm:$0xff]  ;;  %vm15461_vm15 = vcmp.eq.s32.totalorder %v9252_v10, %v9102_v30  ;;  %7457 = vmatpush1.msk.msra.mxu0 %vm9424_vm13, %v15186_v62 }
 0x3f1   : > { %v15449_v47 = vsel %vm9626_vm5, 4294967295, %v15448_v47  ;;  %vm9636_vm7 = vmor %vm15451_vm0, %vm15450_vm1  ;;  %vm15454_vm5 = vcmask 785408   ;;  %vm15455_vm1 = vcmp.eq.s32.totalorder %v9242_v38, %v9114_v26  ;;  %vm15456_vm0 = vcmp.eq.s32.totalorder %v9242_v38, %v9078_v52  ;;  %1972 = vmatmul.mubr.f32.gmra.mxu1 %v1765_v57 }
 0x3f2   : > { %7446 = vmatprep.mubr.msk.f32.mxu0 %vm15454_vm5, %v1766_v43  ;;  %vm9664_vm10 = vmor %vm15456_vm0, %vm15455_vm1  ;;  %vm15460_vm5 = vcmp.eq.s32.totalorder %v9252_v10, %v9147_v9  ;;  %v9687_v38 = vadd.s32 16, %v9068_v13  ;;  %vm15468_vm0 = vcmp.eq.s32.totalorder %v9252_v10, %v9114_v26  ;;  %v15474_v10 = vmov 0 }
 0x3f3   : > { %v15458_v14 = vsel %vm9664_vm10, 4294967295, %v15457_v14  ;;  %vm9674_vm8 = vmor %vm15461_vm15, %vm15460_vm5  ;;  %vm15464_vm15 = vcmp.eq.s32.totalorder %v9277_v42, %v9147_v9  ;;  %vm15465_vm5 = vcmp.eq.s32.totalorder %v9277_v42, %v9102_v30  ;;  %1883 = vmatmul.mubr.f32.gmra.mxu0 %v1765_v57  ;;  %vm15483_vm13 = vcmp.eq.s32.totalorder %v9329_v61, %v9102_v30 }
 0x3f4   : > { %15459 = vst [vmem:[#allocation26_spill] sm:$0xff] %v15458_v14  ;;  %vm9701_vm1 = vmor %vm15465_vm5, %vm15464_vm15  ;;  %vm15477_vm15 = vcmp.eq.s32.totalorder %v9301_v15, %v9147_v9  ;;  %vm15478_vm5 = vcmp.eq.s32.totalorder %v9301_v15, %v9102_v30  ;;  %v15590_v43 = vmov 0  ;;  %v15762_v57 = vmov 0 }
 0x3f5   : > { %vm9711_vm11 = vmor %vm15469_vm4, %vm15468_vm0  ;;  %vm15472_vm0 = vcmp.eq.s32.totalorder %v9277_v42, %v9114_v26  ;;  %vm15473_vm4 = vcmp.eq.s32.totalorder %v9277_v42, %v9078_v52  ;;  %v9755_v42 = vadd.s32 280, %v9068_v13 }
 0x3f6   : > { %v15471_v39 = vsel %vm9711_vm11, 4294967295, %v15470_v39  ;;  %vm9732_vm2 = vmor %vm15473_vm4, %vm15472_vm0  ;;  %vm15486_vm4 = vcmp.eq.s32.totalorder %v9301_v15, %v9114_v26 }
 0x3f7   : > { %v15475_v10 = vsel %vm9732_vm2, 4294967295, %v15474_v10  ;;  %vm9742_vm9 = vmor %vm15478_vm5, %vm15477_vm15  ;;  %vm15481_vm15 = vcmask 785408   ;;  %vm15482_vm5 = vcmp.eq.s32.totalorder %v9329_v61, %v9147_v9 }
 0x3f8   : > { %15476 = vst [vmem:[#allocation13_spill] sm:$0xff] %v15475_v10  ;;  %v15480_v20 = vsel %vm9742_vm9, 4294967295, %v15479_v20  ;;  %7451 = vmatprep.mubr.msk.f32.mxu1 %vm15481_vm15, %v1768_v27  ;;  %vm9767_vm0 = vmor %vm15483_vm13, %vm15482_vm5  ;;  %vm15487_vm15 = vcmp.eq.s32.totalorder %v9301_v15, %v9078_v52  ;;  %vm15491_vm5 = vcmask 785408   ;;  %vm15494_vm9 = vcmp.eq.s32.totalorder %v9329_v61, %v9078_v52 }
 0x3f9   : > { %v15485_v58 = vsel %vm9767_vm0, 4294967295, %v15484_v58  ;;  %vm9777_vm11 = vmor %vm15487_vm15, %vm15486_vm4  ;;  %7447 = vmatprep.mubr.msk.f32.mxu0 %vm15491_vm5, %v1768_v27  ;;  %vm15492_vm4 = vnez %v15408_v16  ;;  %vm15493_vm15 = vcmp.eq.s32.totalorder %v9329_v61, %v9114_v26  ;;  %v15495_v15 = vmov 0  ;;  %1978 = vmatmul.mubr.f32.gmra.mxu1 %v1767_v2 }
 0x3fa   : > { %v15489_v56 = vsel %vm9777_vm11, 4294967295, %v15488_v56  ;;  %7518 = vmatprep.subr.msk.mxu1 %vm15492_vm4, %v15186_v62  ;;  %vm9800_vm11 = vmor %vm15494_vm9, %vm15493_vm15  ;;  %vm15498_vm13 = vcmp.eq.s32.totalorder %v9363_v44, %v9147_v9  ;;  %vm15499_vm5 = vcmp.eq.s32.totalorder %v9363_v44, %v9102_v30  ;;  %vm15502_vm15 = vnez %v15412_v8  ;;  %1889 = vmatmul.mubr.f32.gmra.mxu0 %v1767_v2 }
 0x3fb   : > { %v15496_v15 = vsel %vm9800_vm11, 4294967295, %v15495_v15  ;;  %vm9810_vm2 = vmor %vm15499_vm5, %vm15498_vm13  ;;  %7458 = vmatprep.subr.msk.mxu0 %vm15502_vm15, %v15186_v62  ;;  %vm15503_vm11 = vnez %v15416_v19  ;;  %vm15504_vm13 = vcmp.eq.s32.totalorder %v9387_v25, %v9147_v9  ;;  %vm15505_vm5 = vcmp.eq.s32.totalorder %v9387_v25, %v9102_v30 }
 0x3fc   : > { %15497 = vst [vmem:[#allocation17_spill] sm:$0xff] %v15496_v15  ;;  %v15501_v48 = vsel %vm9810_vm2, 4294967295, %v15500_v48  ;;  %7519 = vmatpush1.msk.msra.mxu1 %vm15503_vm11, %v15186_v62  ;;  %vm9832_vm4 = vmor %vm15505_vm5, %vm15504_vm13  ;;  %vm15508_vm0 = vcmp.eq.s32.totalorder %v9363_v44, %v9114_v26  ;;  %vm15509_vm15 = vcmp.eq.s32.totalorder %v9363_v44, %v9078_v52  ;;  %7459 = vmatpush1.msk.msra.mxu0 %vm9502_vm14, %v15186_v62  ;;  %v15519_v44 = vmov 0 }
 0x3fd   : > { %vm9842_vm9 = vmor %vm15509_vm15, %vm15508_vm0  ;;  %vm15512_vm0 = vcmp.eq.s32.totalorder %v9387_v25, %v9114_v26  ;;  %vm15513_vm5 = vcmp.eq.s32.totalorder %v9387_v25, %v9078_v52  ;;  %vm15517_vm11 = vcmp.eq.s32.totalorder %v9412_v18, %v9147_v9  ;;  %vm15518_vm13 = vcmp.eq.s32.totalorder %v9412_v18, %v9102_v30  ;;  %7520 = vmatprep.subr.msk.mxu1 %vm9530_vm6, %v15186_v62 }
 0x3fe   : > { %v15511_v24 = vsel %vm9842_vm9, 4294967295, %v15510_v24  ;;  %vm9861_vm15 = vmor %vm15513_vm5, %vm15512_vm0  ;;  %vm15525_vm9 = vcmp.eq.s32.totalorder %v9412_v18, %v9114_v26  ;;  %vm15526_vm0 = vcmp.eq.s32.totalorder %v9412_v18, %v9078_v52  ;;  %7460 = vmatprep.subr.msk.mxu0 %vm9557_vm12, %v15186_v62  ;;  %7521 = vmatpush1.msk.msra.mxu1 %vm9567_vm3, %v15186_v62  ;;  %vm15535_vm12 = vcmp.eq.s32.totalorder %v9459_v17, %v9102_v30 }
 0x3ff   : > { %v15515_v6 = vsel %vm9861_vm15, 4294967295, %v15514_v6  ;;  %vm9871_vm2 = vmor %vm15518_vm13, %vm15517_vm11  ;;  %vm15521_vm11 = vcmp.eq.s32.totalorder %v9437_v4, %v9147_v9  ;;  %vm15522_vm13 = vcmp.eq.s32.totalorder %v9437_v4, %v9102_v30  ;;  %vm15544_vm3 = vcmp.eq.s32.totalorder %v9459_v17, %v9114_v26 }
 0x400   : > { %15516 = vst [vmem:[#allocation18_spill] sm:$0xff] %v15515_v6  ;;  %v15520_v44 = vsel %vm9871_vm2, 4294967295, %v15519_v44  ;;  %vm9893_vm5 = vmor %vm15522_vm13, %vm15521_vm11  ;;  %vm15534_vm11 = vcmp.eq.s32.totalorder %v9459_v17, %v9147_v9  ;;  %v15564_v16 = vmov 0  ;;  %v15574_v8 = vmov 0 }
 0x401   : > { %vm9903_vm14 = vmor %vm15526_vm0, %vm15525_vm9  ;;  %vm15529_vm9 = vcmp.eq.s32.totalorder %v9437_v4, %v9114_v26  ;;  %vm15530_vm0 = vcmp.eq.s32.totalorder %v9437_v4, %v9078_v52  ;;  %v10014_v4 = vadd.s32 256, %v9068_v13  ;;  %v10081_v19 = vadd.s32 240, %v9068_v13 }
 0x402   : > { %vm9925_vm13 = vmor %vm15530_vm0, %vm15529_vm9  ;;  %vm15538_vm9 = vnez %v15439_v0  ;;  %vm15540_vm0 = vcmp.eq.s32.totalorder %v9490_v21, %v9147_v9  ;;  %v15633_v27 = vmov 0  ;;  %v15670_v61 = vmov 0 }
 0x403   : > { %v15532_v60 = vsel %vm9925_vm13, 4294967295, %v15531_v60  ;;  %vm9935_vm6 = vmor %vm15535_vm12, %vm15534_vm11  ;;  %7461 = vmatpush1.msk.msra.mxu0 %vm15538_vm9, %v15186_v62  ;;  %vm15539_vm11 = vnez %v15444_v46  ;;  %vm15541_vm12 = vcmp.eq.s32.totalorder %v9490_v21, %v9102_v30  ;;  %vm15545_vm9 = vcmp.eq.s32.totalorder %v9459_v17, %v9078_v52 }
 0x404   : > { %15533 = vst [vmem:[#allocation9_spill] sm:$0xff] %v15532_v60  ;;  %v15537_v40 = vsel %vm9935_vm6, 4294967295, %v15536_v40  ;;  %7522 = vmatprep.subr.msk.mxu1 %vm15539_vm11, %v15186_v62  ;;  %vm9961_vm2 = vmor %vm15541_vm12, %vm15540_vm0  ;;  %vm15548_vm12 = vnez %v15449_v47  ;;  %vm15554_vm13 = vcmp.eq.s32.totalorder %v9515_v23, %v9147_v9  ;;  %v15569_v17 = vmov 0 }
 0x405   : > { %vm9971_vm6 = vmor %vm15545_vm9, %vm15544_vm3  ;;  %7462 = vmatprep.subr.msk.mxu0 %vm15548_vm12, %v15186_v62  ;;  %7523 = vmatpush1.msk.msra.mxu1 %vm9636_vm7, %v15186_v62  ;;  %vm15549_vm3 = vcmp.eq.s32.totalorder %v9490_v21, %v9114_v26  ;;  %vm15550_vm9 = vcmp.eq.s32.totalorder %v9490_v21, %v9078_v52  ;;  %vm15555_vm12 = vcmp.eq.s32.totalorder %v9515_v23, %v9102_v30  ;;  %v15580_v21 = vmov 0 }
 0x406   : > { %v15547_v12 = vsel %vm9971_vm6, 4294967295, %v15546_v12  ;;  %vm9993_vm11 = vmor %vm15550_vm9, %vm15549_vm3  ;;  %7463 = vmatpush1.msk.msra.mxu0 %vm9664_vm10, %v15186_v62  ;;  %7524 = vmatprep.subr.msk.mxu1 %vm9674_vm8, %v15186_v62  ;;  %vm15559_vm9 = vcmp.eq.s32.totalorder %v9543_v11, %v9102_v30  ;;  %vm15562_vm6 = vcmp.eq.s32.totalorder %v9515_v23, %v9114_v26  ;;  %vm15563_vm3 = vcmp.eq.s32.totalorder %v9515_v23, %v9078_v52 }
 0x407   : > { %v15552_v37 = vsel %vm9993_vm11, 4294967295, %v15551_v37  ;;  %vm10003_vm0 = vmor %vm15555_vm12, %vm15554_vm13  ;;  %vm15558_vm13 = vcmp.eq.s32.totalorder %v9543_v11, %v9147_v9  ;;  %7464 = vmatprep.subr.msk.mxu0 %vm9701_vm1, %v15186_v62  ;;  %vm15572_vm10 = vcmp.eq.s32.totalorder %v9580_v5, %v9147_v9  ;;  %vm15573_vm1 = vcmp.eq.s32.totalorder %v9580_v5, %v9102_v30 }
 0x408   : > { %15553 = vst [vmem:[#allocation11_spill] sm:$0xff] %v15552_v37  ;;  %vm10028_vm12 = vmor %vm15559_vm9, %vm15558_vm13  ;;  %vm15566_vm9 = vnez %v15471_v39  ;;  %v10116_v23 = vadd.s32 488, %v9068_v13  ;;  %v15615_v46 = vmov 0  ;;  %v10321_v39 = vadd.s32 216, %v9068_v13 }
 0x409   : > { %vm10038_vm7 = vmor %vm15563_vm3, %vm15562_vm6  ;;  %7525 = vmatpush1.msk.msra.mxu1 %vm15566_vm9, %v15186_v62  ;;  %vm15567_vm6 = vcmp.eq.s32.totalorder %v9543_v11, %v9114_v26  ;;  %vm15568_vm3 = vcmp.eq.s32.totalorder %v9543_v11, %v9078_v52  ;;  %vm15579_vm9 = vcmp.eq.s32.totalorder %v9614_v45, %v9102_v30  ;;  %v10151_v11 = vadd.s32 232, %v9068_v13 }
 0x40a   : > { %v15565_v16 = vsel %vm10038_vm7, 4294967295, %v15564_v16  ;;  %vm10060_vm8 = vmor %vm15568_vm3, %vm15567_vm6  ;;  %vm15576_vm3 = vnez %v15475_v10  ;;  %vm15582_vm6 = vcmp.eq.s32.totalorder %v9580_v5, %v9114_v26  ;;  %v15691_v25 = vmov 0 }
 0x40b   : > { %v15570_v17 = vsel %vm10060_vm8, 4294967295, %v15569_v17  ;;  %vm10070_vm13 = vmor %vm15573_vm1, %vm15572_vm10  ;;  %7465 = vmatpush1.msk.msra.mxu0 %vm15576_vm3, %v15186_v62  ;;  %vm15577_vm10 = vnez %v15480_v20  ;;  %vm15578_vm1 = vcmp.eq.s32.totalorder %v9614_v45, %v9147_v9  ;;  %vm15583_vm3 = vcmp.eq.s32.totalorder %v9580_v5, %v9078_v52 }
 0x40c   : > { %15571 = vst [vmem:[#allocation12_spill] sm:$0xff] %v15570_v17  ;;  %v15575_v8 = vsel %vm10070_vm13, 4294967295, %v15574_v8  ;;  %7526 = vmatprep.subr.msk.mxu1 %vm15577_vm10, %v15186_v62  ;;  %vm10095_vm7 = vmor %vm15579_vm9, %vm15578_vm1  ;;  %vm15586_vm1 = vnez %v15485_v58  ;;  %vm15589_vm8 = vcmp.eq.s32.totalorder %v9614_v45, %v9078_v52  ;;  %vm15593_vm9 = vcmp.eq.s32.totalorder %v9649_v59, %v9147_v9 }
 0x40d   : > { %v15581_v21 = vsel %vm10095_vm7, 4294967295, %v15580_v21  ;;  %vm10105_vm13 = vmor %vm15583_vm3, %vm15582_vm6  ;;  %7466 = vmatprep.subr.msk.mxu0 %vm15586_vm1, %v15186_v62  ;;  %vm15587_vm6 = vnez %v15489_v56  ;;  %vm15588_vm3 = vcmp.eq.s32.totalorder %v9614_v45, %v9114_v26  ;;  %vm15594_vm1 = vcmp.eq.s32.totalorder %v9649_v59, %v9102_v30 }
 0x40e   : > { %v15585_v22 = vsel %vm10105_vm13, 4294967295, %v15584_v22  ;;  %7527 = vmatpush1.msk.msra.mxu1 %vm15587_vm6, %v15186_v62  ;;  %vm10130_vm10 = vmor %vm15589_vm8, %vm15588_vm3  ;;  %vm15597_vm3 = vnez %v15496_v15  ;;  %vm15600_vm6 = vcmp.eq.s32.totalorder %v9687_v38, %v9102_v30  ;;  %vm15603_vm8 = vcmp.eq.s32.totalorder %v9649_v59, %v9114_v26 }
 0x40f   : > { %v15591_v43 = vsel %vm10130_vm10, 4294967295, %v15590_v43  ;;  %vm10140_vm13 = vmor %vm15594_vm1, %vm15593_vm9  ;;  %7467 = vmatpush1.msk.msra.mxu0 %vm15597_vm3, %v15186_v62  ;;  %vm15598_vm9 = vnez %v15501_v48  ;;  %vm15599_vm1 = vcmp.eq.s32.totalorder %v9687_v38, %v9147_v9  ;;  %vm15604_vm3 = vcmp.eq.s32.totalorder %v9649_v59, %v9078_v52 }
 0x410   : > { %15592 = vst [vmem:[#allocation14_spill] sm:$0xff] %v15591_v43  ;;  %v15596_v7 = vsel %vm10140_vm13, 4294967295, %v15595_v7  ;;  %7528 = vmatprep.subr.msk.mxu1 %vm15598_vm9, %v15186_v62  ;;  %vm10165_vm7 = vmor %vm15600_vm6, %vm15599_vm1  ;;  %7468 = vmatprep.subr.msk.mxu0 %vm9832_vm4, %v15186_v62  ;;  %vm15607_vm1 = vnez %v15511_v24  ;;  %v15610_v5 = vmov 0  ;;  %vm15613_vm10 = vcmp.eq.s32.totalorder %v9755_v42, %v9147_v9 }
 0x411   : > { %vm10175_vm13 = vmor %vm15604_vm3, %vm15603_vm8  ;;  %7529 = vmatpush1.msk.msra.mxu1 %vm15607_vm1, %v15186_v62  ;;  %vm15608_vm8 = vcmp.eq.s32.totalorder %v9687_v38, %v9114_v26  ;;  %vm15609_vm3 = vcmp.eq.s32.totalorder %v9687_v38, %v9078_v52  ;;  %vm15614_vm4 = vcmp.eq.s32.totalorder %v9755_v42, %v9102_v30  ;;  %v10218_v45 = vadd.s32 480, %v9068_v13  ;;  %7469 = vmatpush1.msk.msra.mxu0 %vm9861_vm15, %v15186_v62 }
 0x412   : > { %v15606_v63 = vsel %vm10175_vm13, 4294967295, %v15605_v63  ;;  %vm10197_vm9 = vmor %vm15609_vm3, %vm15608_vm8  ;;  %vm15618_vm3 = vcmp.eq.s32.totalorder %v9788_v3, %v9147_v9  ;;  %vm15622_vm8 = vcmp.eq.s32.totalorder %v9755_v42, %v9114_v26  ;;  %vm15623_vm13 = vcmp.eq.s32.totalorder %v9755_v42, %v9078_v52  ;;  %7470 = vmatprep.subr.msk.mxu0 %vm9893_vm5, %v15186_v62 }
 0x413   : > { %v15611_v5 = vsel %vm10197_vm9, 4294967295, %v15610_v5  ;;  %vm10207_vm6 = vmor %vm15614_vm4, %vm15613_vm10  ;;  %vm15617_vm10 = vnez %v15520_v44  ;;  %vm15619_vm4 = vcmp.eq.s32.totalorder %v9788_v3, %v9102_v30  ;;  %v15628_v59 = vmov 0 }
 0x414   : > { %15612 = vst [vmem:[#allocation10_spill] sm:$0xff] %v15611_v5  ;;  %v15616_v46 = vsel %vm10207_vm6, 4294967295, %v15615_v46  ;;  %7530 = vmatprep.subr.msk.mxu1 %vm15617_vm10, %v15186_v62  ;;  %vm10232_vm1 = vmor %vm15619_vm4, %vm15618_vm3  ;;  %vm15631_vm6 = vcmp.eq.s32.totalorder %v9882_v32, %v9147_v9  ;;  %vm15632_vm5 = vcmp.eq.s32.totalorder %v9882_v32, %v9102_v30  ;;  %vm15642_vm10 = vcmp.eq.s32.totalorder %v9882_v32, %v9078_v52 }
 0x415   : > { %vm10242_vm15 = vmor %vm15623_vm13, %vm15622_vm8  ;;  %7531 = vmatpush1.msk.msra.mxu1 %vm9903_vm14, %v15186_v62  ;;  %vm15626_vm13 = vcmp.eq.s32.totalorder %v9788_v3, %v9114_v26  ;;  %vm15627_vm8 = vcmp.eq.s32.totalorder %v9788_v3, %v9078_v52  ;;  %v15643_v38 = vmov 0  ;;  %v15648_v20 = vmov 0 }
 0x416   : > { %vm10267_vm4 = vmor %vm15627_vm8, %vm15626_vm13  ;;  %vm15635_vm8 = vnez %v15532_v60  ;;  %vm15641_vm13 = vcmp.eq.s32.totalorder %v9882_v32, %v9114_v26  ;;  %v15661_v58 = vmov 0  ;;  %v10388_v56 = vadd.s32 464, %v9068_v13 }
 0x417   : > { %v15629_v59 = vsel %vm10267_vm4, 4294967295, %v15628_v59  ;;  %vm10277_vm3 = vmor %vm15632_vm5, %vm15631_vm6  ;;  %7471 = vmatpush1.msk.msra.mxu0 %vm15635_vm8, %v15186_v62  ;;  %vm15636_vm4 = vnez %v15537_v40  ;;  %vm15637_vm6 = vcmp.eq.s32.totalorder %v9068_v13, %v9147_v9  ;;  %vm15638_vm5 = vcmp.eq.s32.totalorder %v9068_v13, %v9102_v30 }
 0x418   : > { %15630 = vst [vmem:[#allocation15_spill] sm:$0xff] %v15629_v59  ;;  %v15634_v27 = vsel %vm10277_vm3, 4294967295, %v15633_v27  ;;  %7532 = vmatprep.subr.msk.mxu1 %vm15636_vm4, %v15186_v62  ;;  %vm10299_vm14 = vmor %vm15638_vm5, %vm15637_vm6  ;;  %7472 = vmatprep.subr.msk.mxu0 %vm9961_vm2, %v15186_v62  ;;  %vm15647_vm6 = vcmp.eq.s32.totalorder %v9068_v13, %v9078_v52  ;;  %vm15651_vm3 = vcmp.eq.s32.totalorder %v9944_v33, %v9147_v9  ;;  %v15666_v48 = vmov 0 }
 0x419   : > { %vm10309_vm8 = vmor %vm15642_vm10, %vm15641_vm13  ;;  %vm15645_vm10 = vnez %v15547_v12  ;;  %vm15646_vm13 = vcmp.eq.s32.totalorder %v9068_v13, %v9114_v26  ;;  %vm15652_vm2 = vcmp.eq.s32.totalorder %v9944_v33, %v9102_v30  ;;  %7473 = vmatpush1.msk.msra.mxu0 %vm9993_vm11, %v15186_v62  ;;  %v10423_v24 = vadd.s32 208, %v9068_v13 }
 0x41a   : > { %v15644_v38 = vsel %vm10309_vm8, 4294967295, %v15643_v38  ;;  %7533 = vmatpush1.msk.msra.mxu1 %vm15645_vm10, %v15186_v62  ;;  %vm10335_vm5 = vmor %vm15647_vm6, %vm15646_vm13  ;;  %vm15656_vm6 = vcmp.eq.s32.totalorder %v9947_v1, %v9102_v30  ;;  %vm15659_vm8 = vcmp.eq.s32.totalorder %v9944_v33, %v9114_v26  ;;  %vm15660_vm13 = vcmp.eq.s32.totalorder %v9944_v33, %v9078_v52  ;;  %7474 = vmatprep.subr.msk.mxu0 %vm10028_vm12, %v15186_v62 }
 0x41b   : > { %v15649_v20 = vsel %vm10335_vm5, 4294967295, %v15648_v20  ;;  %vm10345_vm4 = vmor %vm15652_vm2, %vm15651_vm3  ;;  %7534 = vmatprep.subr.msk.mxu1 %vm10003_vm0, %v15186_v62  ;;  %vm15655_vm3 = vcmp.eq.s32.totalorder %v9947_v1, %v9147_v9  ;;  %vm15669_vm12 = vcmp.eq.s32.totalorder %v10014_v4, %v9102_v30  ;;  %v15676_v44 = vmov 0 }
 0x41c   : > { %15650 = vst [vmem:[#allocation19_spill] sm:$0xff] %v15649_v20  ;;  %vm10367_vm2 = vmor %vm15656_vm6, %vm15655_vm3  ;;  %vm15665_vm6 = vcmp.eq.s32.totalorder %v9947_v1, %v9078_v52  ;;  %vm15668_vm3 = vcmp.eq.s32.totalorder %v10014_v4, %v9147_v9  ;;  %v15680_v32 = vmov 0  ;;  %v10490_v40 = vadd.s32 456, %v9068_v13 }
 0x41d   : > { %vm10377_vm10 = vmor %vm15660_vm13, %vm15659_vm8  ;;  %vm15663_vm8 = vnez %v15565_v16  ;;  %vm15664_vm13 = vcmp.eq.s32.totalorder %v9947_v1, %v9114_v26  ;;  %v15701_v1 = vmov 0  ;;  %v2026_v18 = vadd.s32 200, %v9068_v13 }
 0x41e   : > { %v15662_v58 = vsel %vm10377_vm10, 4294967295, %v15661_v58  ;;  %7535 = vmatpush1.msk.msra.mxu1 %vm15663_vm8, %v15186_v62  ;;  %vm10402_vm11 = vmor %vm15665_vm6, %vm15664_vm13  ;;  %vm15672_vm6 = vnez %v15570_v17  ;;  %vm15675_vm10 = vcmp.eq.s32.totalorder %v10081_v19, %v9102_v30  ;;  %vm15678_vm13 = vcmp.eq.s32.totalorder %v10014_v4, %v9114_v26 }
 0x41f   : > { %v15667_v48 = vsel %vm10402_vm11, 4294967295, %v15666_v48  ;;  %vm10412_vm0 = vmor %vm15669_vm12, %vm15668_vm3  ;;  %7475 = vmatpush1.msk.msra.mxu0 %vm15672_vm6, %v15186_v62  ;;  %vm15673_vm3 = vnez %v15575_v8  ;;  %vm15674_vm12 = vcmp.eq.s32.totalorder %v10081_v19, %v9147_v9  ;;  %vm15679_vm6 = vcmp.eq.s32.totalorder %v10014_v4, %v9078_v52 }
 0x420   : > { %v15671_v61 = vsel %vm10412_vm0, 4294967295, %v15670_v61  ;;  %7536 = vmatprep.subr.msk.mxu1 %vm15673_vm3, %v15186_v62  ;;  %vm10437_vm8 = vmor %vm15675_vm10, %vm15674_vm12  ;;  %vm15682_vm12 = vnez %v15581_v21  ;;  %vm15689_vm10 = vcmp.eq.s32.totalorder %v10116_v23, %v9147_v9  ;;  %v15706_v12 = vmov 0 }
 0x421   : > { %v15677_v44 = vsel %vm10437_vm8, 4294967295, %v15676_v44  ;;  %vm10447_vm0 = vmor %vm15679_vm6, %vm15678_vm13  ;;  %7476 = vmatprep.subr.msk.mxu0 %vm15682_vm12, %v15186_v62  ;;  %vm15683_vm8 = vnez %v15585_v22  ;;  %vm15684_vm13 = vcmp.eq.s32.totalorder %v10081_v19, %v9114_v26  ;;  %vm15685_vm6 = vcmp.eq.s32.totalorder %v10081_v19, %v9078_v52 }
 0x422   : > { %v15681_v32 = vsel %vm10447_vm0, 4294967295, %v15680_v32  ;;  %7537 = vmatpush1.msk.msra.mxu1 %vm15683_vm8, %v15186_v62  ;;  %vm10469_vm3 = vmor %vm15685_vm6, %vm15684_vm13  ;;  %vm15690_vm12 = vcmp.eq.s32.totalorder %v10116_v23, %v9102_v30  ;;  %vm15693_vm6 = vnez %v15591_v43  ;;  %vm15696_vm0 = vcmp.eq.s32.totalorder %v10151_v11, %v9102_v30 }
 0x423   : > { %v15687_v49 = vsel %vm10469_vm3, 4294967295, %v15686_v49  ;;  %vm10479_vm11 = vmor %vm15690_vm12, %vm15689_vm10  ;;  %7477 = vmatpush1.msk.msra.mxu0 %vm15693_vm6, %v15186_v62  ;;  %vm15694_vm10 = vnez %v15596_v7  ;;  %vm15695_vm12 = vcmp.eq.s32.totalorder %v10151_v11, %v9147_v9  ;;  %vm15699_vm13 = vcmp.eq.s32.totalorder %v10116_v23, %v9114_v26 }
 0x424   : > { %15688 = vst [vmem:[#allocation20_spill] sm:$0xff] %v15687_v49  ;;  %v15692_v25 = vsel %vm10479_vm11, 4294967295, %v15691_v25  ;;  %7538 = vmatprep.subr.msk.mxu1 %vm15694_vm10, %v15186_v62  ;;  %vm10504_vm8 = vmor %vm15696_vm0, %vm15695_vm12  ;;  %vm15700_vm6 = vcmp.eq.s32.totalorder %v10116_v23, %v9078_v52  ;;  %7478 = vmatprep.subr.msk.mxu0 %vm10165_vm7, %v15186_v62  ;;  %vm15705_vm12 = vcmp.eq.s32.totalorder %v10151_v11, %v9078_v52  ;;  %v2057_v4 = vadd.s32 448, %v9068_v13 }
 0x425   : > { %vm10514_vm11 = vmor %vm15700_vm6, %vm15699_vm13  ;;  %vm15703_vm13 = vnez %v15606_v63  ;;  %vm15704_vm6 = vcmp.eq.s32.totalorder %v10151_v11, %v9114_v26  ;;  %vm15709_vm0 = vcmp.eq.s32.totalorder %v10218_v45, %v9147_v9  ;;  %vm15710_vm7 = vcmp.eq.s32.totalorder %v10218_v45, %v9102_v30  ;;  %7479 = vmatpush1.msk.msra.mxu0 %vm10197_vm9, %v15186_v62 }
 0x426   : > { %v15702_v1 = vsel %vm10514_vm11, 4294967295, %v15701_v1  ;;  %7539 = vmatpush1.msk.msra.mxu1 %vm15703_vm13, %v15186_v62  ;;  %vm10537_vm10 = vmor %vm15705_vm12, %vm15704_vm6  ;;  %vm15714_vm12 = vcmp.eq.s32.totalorder %v10253_v54, %v9147_v9  ;;  %vm15718_vm6 = vcmp.eq.s32.totalorder %v10218_v45, %v9114_v26  ;;  %vm15719_vm13 = vcmp.eq.s32.totalorder %v10218_v45, %v9078_v52  ;;  %7480 = vmatprep.subr.msk.mxu0 %vm10232_vm1, %v15186_v62 }
 0x427   : > { %v15707_v12 = vsel %vm10537_vm10, 4294967295, %v15706_v12  ;;  %vm10547_vm3 = vmor %vm15710_vm7, %vm15709_vm0  ;;  %vm15713_vm0 = vnez %v15616_v46  ;;  %vm15715_vm7 = vcmp.eq.s32.totalorder %v10253_v54, %v9102_v30  ;;  %v2025_v8 = vadd.s32 192, %v9068_v13 }
 0x428   : > { %15708 = vst [vmem:[#allocation16_spill] sm:$0xff] %v15707_v12  ;;  %v15712_v50 = vsel %vm10547_vm3, 4294967295, %v15711_v50  ;;  %7540 = vmatprep.subr.msk.mxu1 %vm15713_vm0, %v15186_v62  ;;  %vm10570_vm11 = vmor %vm15715_vm7, %vm15714_vm12  ;;  %v15724_v19 = vmov 0  ;;  %vm15727_vm12 = vcmp.eq.s32.totalorder %v10318_v31, %v9147_v9  ;;  %vm15728_vm1 = vcmp.eq.s32.totalorder %v10318_v31, %v9102_v30 }
 0x429   : > { %vm10580_vm9 = vmor %vm15719_vm13, %vm15718_vm6  ;;  %7541 = vmatpush1.msk.msra.mxu1 %vm10242_vm15, %v15186_v62  ;;  %vm15722_vm13 = vcmp.eq.s32.totalorder %v10253_v54, %v9114_v26  ;;  %vm15723_vm6 = vcmp.eq.s32.totalorder %v10253_v54, %v9078_v52  ;;  %v15729_v21 = vmov 0  ;;  %vm15737_vm3 = vcmp.eq.s32.totalorder %v10318_v31, %v9114_v26 }
 0x42a   : > { %vm10603_vm7 = vmor %vm15723_vm6, %vm15722_vm13  ;;  %vm15731_vm6 = vnez %v15629_v59  ;;  %vm15738_vm13 = vcmp.eq.s32.totalorder %v10318_v31, %v9078_v52  ;;  %v15739_v23 = vmov 0  ;;  %v15744_v7 = vmov 0 }
 0x42b   : > { %v15725_v19 = vsel %vm10603_vm7, 4294967295, %v15724_v19  ;;  %vm10613_vm0 = vmor %vm15728_vm1, %vm15727_vm12  ;;  %7481 = vmatpush1.msk.msra.mxu0 %vm15731_vm6, %v15186_v62  ;;  %vm15732_vm7 = vnez %v15634_v27  ;;  %vm15733_vm12 = vcmp.eq.s32.totalorder %v10321_v39, %v9147_v9  ;;  %vm15734_vm1 = vcmp.eq.s32.totalorder %v10321_v39, %v9102_v30 }
 0x42c   : > { %15726 = vst [vmem:[#allocation30_spill] sm:$0xff] %v15725_v19  ;;  %v15730_v21 = vsel %vm10613_vm0, 4294967295, %v15729_v21  ;;  %7542 = vmatprep.subr.msk.mxu1 %vm15732_vm7, %v15186_v62  ;;  %vm10635_vm15 = vmor %vm15734_vm1, %vm15733_vm12  ;;  %7482 = vmatprep.subr.msk.mxu0 %vm10299_vm14, %v15186_v62  ;;  %vm15741_vm1 = vnez %v15644_v38  ;;  %vm15747_vm12 = vcmp.eq.s32.totalorder %v10388_v56, %v9147_v9  ;;  %vm15748_vm14 = vcmp.eq.s32.totalorder %v10388_v56, %v9102_v30 }
 0x42d   : > { %vm10645_vm6 = vmor %vm15738_vm13, %vm15737_vm3  ;;  %7543 = vmatpush1.msk.msra.mxu1 %vm15741_vm1, %v15186_v62  ;;  %vm15742_vm3 = vcmp.eq.s32.totalorder %v10321_v39, %v9114_v26  ;;  %vm15743_vm13 = vcmp.eq.s32.totalorder %v10321_v39, %v9078_v52  ;;  %v15749_v11 = vmov 0  ;;  %7483 = vmatpush1.msk.msra.mxu0 %vm10335_vm5, %v15186_v62  ;;  %v15757_v46 = vmov 0 }
 0x42e   : > { %v15740_v23 = vsel %vm10645_vm6, 4294967295, %v15739_v23  ;;  %vm10665_vm7 = vmor %vm15743_vm13, %vm15742_vm3  ;;  %7544 = vmatprep.subr.msk.mxu1 %vm10345_vm4, %v15186_v62  ;;  %vm15752_vm13 = vcmp.eq.s32.totalorder %v10423_v24, %v9102_v30  ;;  %vm15755_vm6 = vcmp.eq.s32.totalorder %v10388_v56, %v9114_v26  ;;  %vm15756_vm3 = vcmp.eq.s32.totalorder %v10388_v56, %v9078_v52  ;;  %7484 = vmatprep.subr.msk.mxu0 %vm10367_vm2, %v15186_v62 }
 0x42f   : > { %v15745_v7 = vsel %vm10665_vm7, 4294967295, %v15744_v7  ;;  %vm10675_vm0 = vmor %vm15748_vm14, %vm15747_vm12  ;;  %vm15751_vm12 = vcmp.eq.s32.totalorder %v10423_v24, %v9147_v9  ;;  %v2024_v45 = vadd.s32 184, %v9068_v13  ;;  %vm15766_vm2 = vcmp.eq.s32.totalorder %v10490_v40, %v9102_v30 }
 0x430   : > { %15746 = vst [vmem:[#allocation31_spill] sm:$0xff] %v15745_v7  ;;  %v15750_v11 = vsel %vm10675_vm0, 4294967295, %v15749_v11  ;;  %vm10696_vm14 = vmor %vm15752_vm13, %vm15751_vm12  ;;  %vm15759_vm12 = vnez %v15662_v58  ;;  %vm15765_vm0 = vcmp.eq.s32.totalorder %v10490_v40, %v9147_v9  ;;  %v15767_v47 = vmov 0 }
 0x431   : > { %vm10706_vm1 = vmor %vm15756_vm3, %vm15755_vm6  ;;  %7545 = vmatpush1.msk.msra.mxu1 %vm15759_vm12, %v15186_v62  ;;  %vm15760_vm6 = vcmp.eq.s32.totalorder %v10423_v24, %v9114_v26  ;;  %vm15761_vm3 = vcmp.eq.s32.totalorder %v10423_v24, %v9078_v52  ;;  %v15773_v54 = vmov 0  ;;  %vm15775_vm5 = vcmp.eq.s32.totalorder %v10490_v40, %v9114_v26  ;;  %v1781_v24 = vpop.permute.xlu0 %1780 }
 0x432   : > { %v15758_v46 = vsel %vm10706_vm1, 4294967295, %v15757_v46  ;;  %vm10726_vm13 = vmor %vm15761_vm3, %vm15760_vm6  ;;  %vm15769_vm6 = vnez %v15667_v48  ;;  %vm15770_vm3 = vnez %v15671_v61  ;;  %vm15776_vm1 = vcmp.eq.s32.totalorder %v10490_v40, %v9078_v52 }
 0x433   : > { %v15763_v57 = vsel %vm10726_vm13, 4294967295, %v15762_v57  ;;  %vm10736_vm4 = vmor %vm15766_vm2, %vm15765_vm0  ;;  %7485 = vmatpush2.msk.msra.mxu0 %vm15769_vm6, %v15186_v62  ;;  %7546 = vmatprep.subr.msk.mxu1 %vm15770_vm3, %v15186_v62  ;;  %vm15771_vm13 = vcmp.eq.s32.totalorder %v2026_v18, %v9147_v9  ;;  %vm15772_vm0 = vcmp.eq.s32.totalorder %v2026_v18, %v9102_v30  ;;  %vm15787_vm6 = vcmp.eq.s32.totalorder %v2057_v4, %v9102_v30 }
 0x434   : > { %15764 = vst [vmem:[#allocation23_spill] sm:$0xff] %v15763_v57  ;;  %v15768_v47 = vsel %vm10736_vm4, 4294967295, %v15767_v47  ;;  %vm10753_vm2 = vmor %vm15772_vm0, %vm15771_vm13  ;;  %vm15779_vm13 = vnez %v15677_v44  ;;  %vm15780_vm0 = vnez %v15681_v32  ;;  %vm15782_vm4 = vcmp.eq.s32.totalorder %v2026_v18, %v9078_v52 }
 0x435   : > { %v15774_v54 = vsel %vm10753_vm2, 4294967295, %v15773_v54  ;;  %vm10763_vm12 = vmor %vm15776_vm1, %vm15775_vm5  ;;  %7486 = vmatprep.subr.msk.mxu0 %vm15779_vm13, %v15186_v62  ;;  %7547 = vmatpush1.msk.msra.mxu1 %vm15780_vm0, %v15186_v62  ;;  %vm15781_vm2 = vcmp.eq.s32.totalorder %v2026_v18, %v9114_v26  ;;  %vm15786_vm1 = vcmp.eq.s32.totalorder %v2057_v4, %v9147_v9  ;;  %v15788_v38 = vmov 0 }
 0x436   : > { %vm10779_vm5 = vmor %vm15782_vm4, %vm15781_vm2  ;;  %v2055_v31 = vadd.s32 432, %v9068_v13  ;;  %vm15790_vm4 = vnez %v15687_v49  ;;  %vm15791_vm2 = vnez %v15692_v25  ;;  %v15794_v39 = vmov 0 }
 0x437   : > { %v15784_v36 = vsel %vm10779_vm5, 4294967295, %v15783_v36  ;;  %vm10787_vm3 = vmor %vm15787_vm6, %vm15786_vm1  ;;  %7487 = vmatpush2.msk.msra.mxu0 %vm15790_vm4, %v15186_v62  ;;  %7548 = vmatprep.subr.msk.mxu1 %vm15791_vm2, %v15186_v62  ;;  %vm15792_vm5 = vcmp.eq.s32.totalorder %v2025_v8, %v9147_v9  ;;  %vm15793_vm6 = vcmp.eq.s32.totalorder %v2025_v8, %v9102_v30  ;;  %vm15796_vm13 = vcmp.eq.s32.totalorder %v2057_v4, %v9114_v26 }
 0x438   : > { %15785 = vst [vmem:[#allocation27_spill] sm:$0xff] %v15784_v36  ;;  %v15789_v38 = vsel %vm10787_vm3, 4294967295, %v15788_v38  ;;  %vm10804_vm1 = vmor %vm15793_vm6, %vm15792_vm5  ;;  %vm15797_vm0 = vcmp.eq.s32.totalorder %v2057_v4, %v9078_v52  ;;  %v15798_v42 = vmov 0  ;;  %vm2241_vm2 = vcmp.eq.s32.totalorder %v2024_v45, %v9147_v9  ;;  %7488 = vmatprep.subr.msk.mxu0 %vm10504_vm8, %v15186_v62 }
 0x439   : > { %v15795_v39 = vsel %vm10804_vm1, 4294967295, %v15794_v39  ;;  %vm10812_vm3 = vmor %vm15797_vm0, %vm15796_vm13  ;;  %v2023_v2 = vadd.s32 176, %v9068_v13  ;;  %vm15800_vm5 = vnez %v15702_v1  ;;  %vm15801_vm6 = vcmp.eq.s32.totalorder %v2025_v8, %v9114_v26  ;;  %7489 = vmatpush2.msk.msra.mxu0 %vm10537_vm10, %v15186_v62 }
 0x43a   : > { %v15799_v42 = vsel %vm10812_vm3, 4294967295, %v15798_v42  ;;  %7549 = vmatpush2.msk.msra.mxu1 %vm15800_vm5, %v15186_v62  ;;  %vm15802_vm13 = vcmp.eq.s32.totalorder %v2025_v8, %v9078_v52  ;;  %v15803_v58 = vmov 0  ;;  %vm2304_vm3 = vcmp.eq.s32.totalorder %v2056_v55, %v9114_v26  ;;  %7490 = vmatprep.subr.msk.mxu0 %vm10570_vm11, %v15186_v62 }
 0x43b   : > { %vm10829_vm0 = vmor %vm15802_vm13, %vm15801_vm6  ;;  %vm15806_vm8 = vnez %v15712_v50  ;;  %vm15807_vm5 = vcmp.eq.s32.totalorder %v2056_v55, %v9147_v9  ;;  %vm15808_vm1 = vcmp.eq.s32.totalorder %v2056_v55, %v9102_v30  ;;  %vm2240_vm4 = vcmp.eq.s32.totalorder %v2024_v45, %v9114_v26 }
 0x43c   : > { %v15804_v58 = vsel %vm10829_vm0, 4294967295, %v15803_v58  ;;  %7550 = vmatprep.subr.msk.mxu1 %vm15806_vm8, %v15186_v62  ;;  %vm10845_vm6 = vmor %vm15808_vm1, %vm15807_vm5  ;;  %vm15811_vm8 = vcmp.eq.s32.totalorder %v2024_v45, %v9102_v30  ;;  %v2054_v61 = vadd.s32 424, %v9068_v13  ;;  %vm15814_vm13 = vnez %v15725_v19 }
 0x43d   : > { %15805 = vst [vmem:[#allocation28_spill] sm:$0xff] %v15804_v58  ;;  %7551 = vmatpush2.msk.msra.mxu1 %vm10580_vm9, %v15186_v62  ;;  %vm10859_vm10 = vmor %vm15811_vm8, %vm2241_vm2  ;;  %7491 = vmatpush2.msk.msra.mxu0 %vm15814_vm13, %v15186_v62  ;;  %vm15815_vm11 = vnez %v15730_v21  ;;  %vm15816_vm9 = vcmp.eq.s32.totalorder %v2056_v55, %v9078_v52  ;;  %vm2239_vm1 = vcmp.eq.s32.totalorder %v2023_v2, %v9147_v9  ;;  %v2022_v44 = vadd.s32 168, %v9068_v13 }
 0x43e   : > { %7552 = vmatprep.subr.msk.mxu1 %vm15815_vm11, %v15186_v62  ;;  %vm10874_vm2 = vmor %vm15816_vm9, %vm2304_vm3  ;;  %7492 = vmatprep.subr.msk.mxu0 %vm10635_vm15, %v15186_v62  ;;  %vm15819_vm5 = vnez %v15740_v23  ;;  %vm15820_vm3 = vcmp.eq.s32.totalorder %v2024_v45, %v9078_v52  ;;  %v15821_v32 = vmov 0  ;;  %vm2302_vm8 = vcmp.eq.s32.totalorder %v2055_v31, %v9114_v26 }
 0x43f   : > { %7553 = vmatpush2.msk.msra.mxu1 %vm15819_vm5, %v15186_v62  ;;  %vm10891_vm11 = vmor %vm15820_vm3, %vm2240_vm4  ;;  %7493 = vmatpush2.msk.msra.mxu0 %vm10665_vm7, %v15186_v62  ;;  %vm15824_vm15 = vnez %v15750_v11  ;;  %vm15825_vm5 = vcmp.eq.s32.totalorder %v2055_v31, %v9147_v9  ;;  %vm15826_vm13 = vcmp.eq.s32.totalorder %v2055_v31, %v9102_v30  ;;  %v15827_v25 = vmov 0 }
 0x440   : > { %v15822_v32 = vsel %vm10891_vm11, 4294967295, %v15821_v32  ;;  %7554 = vmatprep.subr.msk.mxu1 %vm15824_vm15, %v15186_v62  ;;  %vm10907_vm4 = vmor %vm15826_vm13, %vm15825_vm5  ;;  %vm2238_vm9 = vcmp.eq.s32.totalorder %v2023_v2, %v9114_v26  ;;  %7494 = vmatprep.subr.msk.mxu0 %vm10696_vm14, %v15186_v62  ;;  %vm15829_vm7 = vnez %v15758_v46  ;;  %vm15830_vm15 = vcmp.eq.s32.totalorder %v2023_v2, %v9102_v30 }
 0x441   : > { %15823 = vst [vmem:[#allocation24_spill] sm:$0xff] %v15822_v32  ;;  %v15828_v25 = vsel %vm10907_vm4, 4294967295, %v15827_v25  ;;  %7555 = vmatpush2.msk.msra.mxu1 %vm15829_vm7, %v15186_v62  ;;  %vm10921_vm11 = vmor %vm15830_vm15, %vm2239_vm1  ;;  %v15831_v40 = vmov 0  ;;  %v2053_v33 = vadd.s32 416, %v9068_v13  ;;  %vm15833_vm3 = vnez %v15763_v57 }
 0x442   : > { %v15832_v40 = vsel %vm10921_vm11, 4294967295, %v15831_v40  ;;  %7495 = vmatpush2.msk.msra.mxu0 %vm15833_vm3, %v15186_v62  ;;  %vm15834_vm14 = vnez %v15768_v47  ;;  %vm15835_vm7 = vcmp.eq.s32.totalorder %v2055_v31, %v9078_v52  ;;  %v15836_v1 = vmov 0 }
 0x443   : > { %7556 = vmatprep.subr.msk.mxu1 %vm15834_vm14, %v15186_v62  ;;  %vm10936_vm1 = vmor %vm15835_vm7, %vm2302_vm8  ;;  %vm2237_vm13 = vcmp.eq.s32.totalorder %v2022_v44, %v9147_v9  ;;  %v2021_v18 = vadd.s32 160, %v9068_v13  ;;  %vm15838_vm5 = vnez %v15774_v54  ;;  %vm15839_vm8 = vcmp.eq.s32.totalorder %v2023_v2, %v9078_v52 }
 0x444   : > { %v15837_v1 = vsel %vm10936_vm1, 4294967295, %v15836_v1  ;;  %7496 = vmatprep.subr.msk.mxu0 %vm15838_vm5, %v15186_v62  ;;  %7557 = vmatpush2.msk.msra.mxu1 %vm10763_vm12, %v15186_v62  ;;  %vm10953_vm14 = vmor %vm15839_vm8, %vm2238_vm9  ;;  %v15840_v50 = vmov 0  ;;  %vm2174_vm7 = vcmp.eq.s32.totalorder %v2054_v61, %v9078_v52  ;;  %vm2300_vm15 = vcmp.eq.s32.totalorder %v2054_v61, %v9114_v26 }
 0x445   : > { %v15841_v50 = vsel %vm10953_vm14, 4294967295, %v15840_v50  ;;  %vm15843_vm3 = vnez %v15784_v36  ;;  %vm15844_vm5 = vnez %v15789_v38  ;;  %vm15845_vm12 = vcmp.eq.s32.totalorder %v2054_v61, %v9147_v9 }
 0x446   : > { %15842 = vst [vmem:[#allocation33_spill] sm:$0xff] %v15841_v50  ;;  %7497 = vmatpush2.msk.msra.mxu0 %vm15843_vm3, %v15186_v62  ;;  %7558 = vmatprep.subr.msk.mxu1 %vm15844_vm5, %v15186_v62  ;;  %vm15846_vm1 = vcmp.eq.s32.totalorder %v2054_v61, %v9102_v30  ;;  %vm2110_vm8 = vcmp.eq.s32.totalorder %v2022_v44, %v9078_v52  ;;  %vm15849_vm11 = vnez %v15795_v39  ;;  %v15856_v8 = vmov 0 }
 0x447   : > { %vm10969_vm9 = vmor %vm15846_vm1, %vm15845_vm12  ;;  %vm2236_vm14 = vcmp.eq.s32.totalorder %v2022_v44, %v9114_v26  ;;  %7498 = vmatprep.subr.msk.mxu0 %vm15849_vm11, %v15186_v62  ;;  %vm15850_vm3 = vnez %v15799_v42  ;;  %vm15851_vm5 = vcmp.eq.s32.totalorder %v2022_v44, %v9102_v30  ;;  %vm2173_vm1 = vcmp.eq.s32.totalorder %v2053_v33, %v9102_v30 }
 0x448   : > { %7559 = vmatpush2.msk.msra.mxu1 %vm15850_vm3, %v15186_v62  ;;  %vm10983_vm4 = vmor %vm15851_vm5, %vm2237_vm13  ;;  %vm2299_vm12 = vcmp.eq.s32.totalorder %v2053_v33, %v9147_v9  ;;  %7499 = vmatpush2.msk.msra.mxu0 %vm10829_vm0, %v15186_v62  ;;  %vm2109_vm3 = vcmp.eq.s32.totalorder %v2021_v18, %v9102_v30  ;;  %vm2235_vm13 = vcmp.eq.s32.totalorder %v2021_v18, %v9147_v9  ;;  %v2052_v21 = vadd.s32 408, %v9068_v13 }
 0x449   : > { %7560 = vmatprep.subr.msk.mxu1 %vm10845_vm6, %v15186_v62  ;;  %vm10995_vm11 = vmor %vm2174_vm7, %vm2300_vm15  ;;  %7500 = vmatprep.subr.msk.mxu0 %vm10859_vm10, %v15186_v62  ;;  %vm2172_vm6 = vcmp.eq.s32.totalorder %v2053_v33, %v9078_v52  ;;  %vm2298_vm15 = vcmp.eq.s32.totalorder %v2053_v33, %v9114_v26  ;;  %vm15859_vm7 = vnez %v15822_v32  ;;  %vm15860_vm0 = vnez %v15828_v25 }
 0x44a   : > { %7561 = vmatpush2.msk.msra.mxu1 %vm10874_vm2, %v15186_v62  ;;  %vm11007_vm5 = vmor %vm2110_vm8, %vm2236_vm14  ;;  %7501 = vmatpush2.msk.msra.mxu0 %vm15859_vm7, %v15186_v62  ;;  %vm15861_vm2 = vnez %v15832_v40  ;;  %vm15862_vm14 = vnez %v15837_v1  ;;  %v2020_v22 = vadd.s32 152, %v9068_v13  ;;  %v15865_v23 = vmov 0 }
 0x44b   : > { %v15857_v8 = vsel %vm11007_vm5, 4294967295, %v15856_v8  ;;  %7562 = vmatprep.subr.msk.mxu1 %vm15860_vm0, %v15186_v62  ;;  %vm2423_vm10 = vmor %vm2173_vm1, %vm2299_vm12  ;;  %7502 = vmatprep.subr.msk.mxu0 %vm15861_vm2, %v15186_v62  ;;  %vm15863_vm5 = vnez %v15841_v50  ;;  %vm2171_vm1 = vcmp.eq.s32.totalorder %v2052_v21, %v9102_v30  ;;  %vm2297_vm12 = vcmp.eq.s32.totalorder %v2052_v21, %v9147_v9 }
 0x44c   : > { %15858 = vst [vmem:[#allocation34_spill] sm:$0xff] %v15857_v8  ;;  %7563 = vmatpush2.msk.msra.mxu1 %vm15862_vm14, %v15186_v62  ;;  %vm2359_vm8 = vmor %vm2109_vm3, %vm2235_vm13  ;;  %7503 = vmatpush2.msk.msra.mxu0 %vm15863_vm5, %v15186_v62  ;;  %vm15864_vm0 = vnez %v15857_v8  ;;  %vm2107_vm3 = vcmp.eq.s32.totalorder %v2020_v22, %v9102_v30  ;;  %vm2233_vm13 = vcmp.eq.s32.totalorder %v2020_v22, %v9147_v9  ;;  %v2051_v11 = vadd.s32 400, %v9068_v13 }
 0x44d   : > { %7564 = vmatprep.subr.msk.mxu1 %vm10969_vm9, %v15186_v62  ;;  %vm2422_vm7 = vmor %vm2172_vm6, %vm2298_vm15  ;;  %7504 = vmatprep.subr.msk.mxu0 %vm10983_vm4, %v15186_v62  ;;  %vm2108_vm4 = vcmp.eq.s32.totalorder %v2021_v18, %v9078_v52  ;;  %vm2234_vm9 = vcmp.eq.s32.totalorder %v2021_v18, %v9114_v26  ;;  %vm2170_vm6 = vcmp.eq.s32.totalorder %v2052_v21, %v9078_v52  ;;  %v2019_v55 = vadd.s32 144, %v9068_v13 }
 0x44e   : > { %7565 = vmatpush2.msk.msra.mxu1 %vm10995_vm11, %v15186_v62  ;;  %7505 = vmatpush2.msk.msra.mxu0 %vm15864_vm0, %v15186_v62  ;;  %vm11049_vm11 = vmor %vm2108_vm4, %vm2234_vm9  ;;  %vm2296_vm15 = vcmp.eq.s32.totalorder %v2052_v21, %v9114_v26  ;;  %vm2232_vm2 = vcmp.eq.s32.totalorder %v2020_v22, %v9114_v26  ;;  %v2050_v63 = vadd.s32 392, %v9068_v13  ;;  %v2018_v46 = vadd.s32 136, %v9068_v13 }
 0x44f   : > { %7566 = vmatprep.subr.msk.mxu1 %vm2423_vm10, %v15186_v62  ;;  %7506 = vmatprep.subr.msk.mxu0 %vm2359_vm8, %v15186_v62  ;;  %v15866_v23 = vsel %vm11049_vm11, 4294967295, %v15865_v23  ;;  %vm2106_vm10 = vcmp.eq.s32.totalorder %v2020_v22, %v9078_v52  ;;  %vm2357_vm14 = vmor %vm2107_vm3, %vm2233_vm13  ;;  %vm2169_vm4 = vcmp.eq.s32.totalorder %v2051_v11, %v9102_v30  ;;  %vm2295_vm9 = vcmp.eq.s32.totalorder %v2051_v11, %v9147_v9 }
 0x450   : > { %7567 = vmatpush2.msk.msra.mxu1 %vm2422_vm7, %v15186_v62  ;;  %15867 = vst [vmem:[#allocation35_spill] sm:$0xff] %v15866_v23  ;;  %7507 = vmatpush2.msk.msra.mxu0 %vm11049_vm11, %v15186_v62  ;;  %vm2421_vm7 = vmor %vm2171_vm1, %vm2297_vm12  ;;  %vm2105_vm1 = vcmp.eq.s32.totalorder %v2019_v55, %v9102_v30  ;;  %vm2231_vm12 = vcmp.eq.s32.totalorder %v2019_v55, %v9147_v9  ;;  %v15868_v45 = vmov 0  ;;  %v2049_v47 = vadd.s32 384, %v9068_v13 }
 0x451   : > { %7568 = vmatprep.subr.msk.mxu1 %vm2421_vm7, %v15186_v62  ;;  %7508 = vmatprep.subr.msk.mxu0 %vm2357_vm14, %v15186_v62  ;;  %vm2420_vm8 = vmor %vm2170_vm6, %vm2296_vm15  ;;  %vm2168_vm13 = vcmp.eq.s32.totalorder %v2051_v11, %v9078_v52  ;;  %vm2294_vm6 = vcmp.eq.s32.totalorder %v2051_v11, %v9114_v26  ;;  %vm2104_vm7 = vcmp.eq.s32.totalorder %v2019_v55, %v9078_v52  ;;  %v2017_v54 = vadd.s32 128, %v9068_v13 }
 0x452   : > { %7569 = vmatpush2.msk.msra.mxu1 %vm2420_vm8, %v15186_v62  ;;  %vm11075_vm3 = vmor %vm2106_vm10, %vm2232_vm2  ;;  %vm2230_vm14 = vcmp.eq.s32.totalorder %v2019_v55, %v9114_v26  ;;  %vm2167_vm10 = vcmp.eq.s32.totalorder %v2050_v63, %v9102_v30  ;;  %vm2293_vm2 = vcmp.eq.s32.totalorder %v2050_v63, %v9147_v9  ;;  %vm2103_vm0 = vcmp.eq.s32.totalorder %v2018_v46, %v9102_v30 }
 0x453   : > { %v15869_v45 = vsel %vm11075_vm3, 4294967295, %v15868_v45  ;;  %7509 = vmatpush2.msk.msra.mxu0 %vm11075_vm3, %v15186_v62  ;;  %vm2419_vm15 = vmor %vm2169_vm4, %vm2295_vm9  ;;  %vm2229_vm5 = vcmp.eq.s32.totalorder %v2018_v46, %v9147_v9  ;;  %v15871_v27 = vmov 0  ;;  %vm2166_vm9 = vcmp.eq.s32.totalorder %v2050_v63, %v9078_v52 }
 0x454   : > { %15870 = vst [vmem:[#allocation36_spill] sm:$0xff] %v15869_v45  ;;  %7570 = vmatprep.subr.msk.mxu1 %vm2419_vm15, %v15186_v62  ;;  %vm2355_vm8 = vmor %vm2105_vm1, %vm2231_vm12  ;;  %vm2292_vm1 = vcmp.eq.s32.totalorder %v2050_v63, %v9114_v26  ;;  %vm2165_vm15 = vcmp.eq.s32.totalorder %v2049_v47, %v9102_v30  ;;  %vm2227_vm3 = vcmp.eq.s32.totalorder %v2017_v54, %v9147_v9  ;;  %v15874_v38 = vmov 0 }
 0x455   : > { %7510 = vmatprep.subr.msk.mxu0 %vm2355_vm8, %v15186_v62  ;;  %vm2418_vm11 = vmor %vm2168_vm13, %vm2294_vm6  ;;  %vm2102_vm13 = vcmp.eq.s32.totalorder %v2018_v46, %v9078_v52  ;;  %vm2228_vm6 = vcmp.eq.s32.totalorder %v2018_v46, %v9114_v26  ;;  %vm2101_vm8 = vcmp.eq.s32.totalorder %v2017_v54, %v9102_v30  ;;  %v15877_v30 = vmov 0 }
 0x456   : > { %7571 = vmatpush2.msk.msra.mxu1 %vm2418_vm11, %v15186_v62  ;;  %vm11095_vm4 = vmor %vm2104_vm7, %vm2230_vm14  ;;  %vm2291_vm7 = vcmp.eq.s32.totalorder %v2049_v47, %v9147_v9 }
 0x457   : > { %v15872_v27 = vsel %vm11095_vm4, 4294967295, %v15871_v27  ;;  %7511 = vmatpush2.msk.msra.mxu0 %vm11095_vm4, %v15186_v62  ;;  %vm2417_vm12 = vmor %vm2167_vm10, %vm2293_vm2  ;;  %vm2164_vm2 = vcmp.eq.s32.totalorder %v2049_v47, %v9078_v52 }
 0x458   : > { %15873 = vst [vmem:[#allocation37_spill] sm:$0xff] %v15872_v27  ;;  %7572 = vmatprep.subr.msk.mxu1 %vm2417_vm12, %v15186_v62  ;;  %vm2353_vm11 = vmor %vm2103_vm0, %vm2229_vm5  ;;  %vm2290_vm5 = vcmp.eq.s32.totalorder %v2049_v47, %v9114_v26 }
 0x459   : > { %7512 = vmatprep.subr.msk.mxu0 %vm2353_vm11, %v15186_v62  ;;  %vm2416_vm14 = vmor %vm2166_vm9, %vm2292_vm1  ;;  %vm2100_vm9 = vcmp.eq.s32.totalorder %v2017_v54, %v9078_v52  ;;  %vm2226_vm1 = vcmp.eq.s32.totalorder %v2017_v54, %v9114_v26  ;;  %v1776_v52 = vpop.permute.xlu1 %1775 }
 0x45a   : > { %7573 = vmatpush2.msk.msra.mxu1 %vm2416_vm14, %v15186_v62  ;;  %vm11113_vm10 = vmor %vm2102_vm13, %vm2228_vm6  ;;  %vm2760_vm14 = vcmask 1032152  }
 0x45b   : > { %v15875_v38 = vsel %vm11113_vm10, 4294967295, %v15874_v38  ;;  %7513 = vmatpush2.msk.msra.mxu0 %vm11113_vm10, %v15186_v62  ;;  %vm2415_vm0 = vmor %vm2165_vm15, %vm2291_vm7 }
 0x45c   : > { %15876 = vst [vmem:[#allocation38_spill] sm:$0xff] %v15875_v38  ;;  %7574 = vmatprep.subr.msk.mxu1 %vm2415_vm0, %v15186_v62  ;;  %vm2351_vm12 = vmor %vm2101_vm8, %vm2227_vm3  ;;  %vm15880_vm3 = vcmask 916480   ;;  %vm15886_vm8 = vcmask 1047576  }
 0x45d   : > { %7514 = vmatprep.subr.msk.mxu0 %vm2351_vm12, %v15186_v62  ;;  %vm2414_vm13 = vmor %vm2164_vm2, %vm2290_vm5  ;;  %v1786_v55 = vpop.permute.xlu1 %1785  ;;  %vm15887_vm2 = vcmask 23552   ;;  %vm15888_vm5 = vcmask 1006592  }
 0x45e   : > { %7575 = vmatpush2.msk.msra.mxu1 %vm2414_vm13, %v15186_v62  ;;  %vm11127_vm6 = vmor %vm2100_vm9, %vm2226_vm1 }
 0x45f   : > { %v15878_v30 = vsel %vm11127_vm6, 4294967295, %v15877_v30  ;;  %7515 = vmatpush2.msk.msra.mxu0 %vm11127_vm6, %v15186_v62  ;;  %vm15881_vm11 = vmmov %vm15880_vm3  ;;  %v3001_v62 = vld [vmem:[%s15338_s3] sm:$0xff] }
 0x460   : > { %15879 = vst [vmem:[#allocation39_spill] sm:$0xff] %v15878_v30  ;;  %vm15882_vm15 = vmmov %vm15880_vm3 }
 0x461   : > { %vm15883_vm7 = vmmov %vm15880_vm3 }
 0x462   : > { %vm15889_vm0 = vmmov %vm15886_vm8 }
 0x463   : > { %vm15890_vm9 = vmmov %vm15887_vm2 }
 0x464   : > { %vm15891_vm1 = vmmov %vm15888_vm5 }
 0x465   : > { %vm15892_vm12 = vmmov %vm15887_vm2 }
 0x466   : > { %vm15893_vm13 = vmmov %vm15889_vm0 }
 0x4a8   : > { %v1961_v9 = vpop.f32.mrf.mxu1 }
 0x4a9   : > { %v1872_v31 = vpop.f32.mrf.mxu0  ;;  %v1962_v26 = vadd.f32 %v1961_v9, %v1776_v52 }
 0x4aa   : > { %v1963_v39 = vpop.f32.mrf.mxu1  ;;  %v1873_v42 = vadd.f32 %v1872_v31, %v1776_v52 }
 0x4ab   : > { %v1964_v2 = vadd.f32 %v1963_v39, %v1776_v52  ;;  %v1874_v56 = vpop.f32.mrf.mxu0  ;;  %v1986_v40 = vmax.f32 %v1962_v26, 0.0 }
 0x4ac   : > { %v1875_v48 = vadd.f32 %v1874_v56, %v1776_v52  ;;  %v1967_v61 = vpop.f32.mrf.mxu1  ;;  %v1984_v4 = vmax.f32 %v1873_v42, 0.0 }
 0x4ad   : > { %v1987_v44 = vmax.f32 %v1964_v2, 0.0  ;;  %v1878_v25 = vpop.f32.mrf.mxu0  ;;  %v1968_v1 = vadd.f32 %v1967_v61, %v1781_v24 }
 0x4ae   : > { %v1985_v33 = vmax.f32 %v1875_v48, 0.0  ;;  %v1969_v18 = vpop.f32.mrf.mxu1  ;;  %v1879_v51 = vadd.f32 %v1878_v25, %v1781_v24  ;;  %v1791_v48 = vpop.permute.xlu0 %1790 }
 0x4af   : > { %v1970_v16 = vadd.f32 %v1969_v18, %v1781_v24  ;;  %v1880_v21 = vpop.f32.mrf.mxu0  ;;  %7576 = vmatprep.mubr.msk.f32.mxu1 %vm15880_vm3, %v1987_v44  ;;  %v1990_v47 = vmax.f32 %v1968_v1, 0.0  ;;  %vm15894_vm3 = vmmov %vm15889_vm0 }
 0x4b0   : > { %v1881_v22 = vadd.f32 %v1880_v21, %v1781_v24  ;;  %2642 = vmatprep.mubr.f32.mxu0 %v1985_v33  ;;  %2732 = vmatmul.mubr.f32.vlgmr.msra.gmra.mxu1 %v1986_v40  ;;  %v1988_v31 = vmax.f32 %v1879_v51, 0.0 }
 0x4b1   : > { %v1973_v11 = vpop.f32.mrf.mxu1  ;;  %v1991_v63 = vmax.f32 %v1970_v16, 0.0  ;;  %2643 = vmatmul.mubr.f32.vlgmr.msra.gmra.mxu0 %v1984_v4 }
 0x4b2   : > { %v1989_v54 = vmax.f32 %v1881_v22, 0.0  ;;  %v1974_v9 = vadd.f32 %v1973_v11, %v1786_v55 }
 0x4b3   : > { %v1884_v46 = vpop.f32.mrf.mxu0  ;;  %v1975_v52 = vpop.f32.mrf.mxu1  ;;  %7577 = vmatprep.mubr.msk.f32.mxu1 %vm15881_vm11, %v1991_v63  ;;  %vm15895_vm11 = vmmov %vm15887_vm2 }
 0x4b4   : > { %v1885_v26 = vadd.f32 %v1884_v46, %v1786_v55  ;;  %v1976_v39 = vadd.f32 %v1975_v52, %v1786_v55  ;;  %2648 = vmatprep.mubr.f32.mxu0 %v1989_v54  ;;  %2738 = vmatmul.mubr.f32.gmra.mxu1 %v1990_v47  ;;  %v1994_v44 = vmax.f32 %v1974_v9, 0.0  ;;  %v15884_v47 = vmov 0.0  }
 0x4b5   : > { %v1886_v42 = vpop.f32.mrf.mxu0  ;;  %2649 = vmatmul.mubr.f32.gmra.mxu0 %v1988_v31  ;;  %2763 = vst.msk [vmem:[#allocation2 + $0x48] sm:$0xff] %vm2760_vm14, %v15884_v47  ;;  %2761 = vst.msk [vmem:[#allocation2 + $0x8] sm:$0xff] %vm2760_vm14, %v15884_v47 }
 0x4b6   : > { %v1887_v2 = vadd.f32 %v1886_v42, %v1786_v55  ;;  %v1995_v61 = vmax.f32 %v1976_v39, 0.0  ;;  %v1992_v1 = vmax.f32 %v1885_v26, 0.0  ;;  %2762 = vst.msk [vmem:[#allocation2 + $0x28] sm:$0xff] %vm2760_vm14, %v15884_v47  ;;  %2764 = vst.msk [vmem:[#allocation2 + $0x68] sm:$0xff] %vm2760_vm14, %v15884_v47 }
 0x4b7   : > { %3146 = vst.msk [vmem:[#allocation2 + $0x88] sm:$0xff] %vm2760_vm14, %v15884_v47  ;;  %3147 = vst.msk [vmem:[#allocation2 + $0xa8] sm:$0xff] %vm2760_vm14, %v15884_v47 }
 0x4b8   : > { %v1993_v25 = vmax.f32 %v1887_v2, 0.0  ;;  %7578 = vmatprep.mubr.msk.f32.mxu1 %vm15882_vm15, %v1995_v61  ;;  %3148 = vst.msk [vmem:[#allocation2 + $0xc8] sm:$0xff] %vm2760_vm14, %v15884_v47  ;;  %3149 = vst.msk [vmem:[#allocation2 + $0xe8] sm:$0xff] %vm2760_vm14, %v15884_v47 }
 0x4b9   : > { %v1979_v56 = vpop.f32.mrf.mxu1  ;;  %2744 = vmatmul.mubr.f32.gmra.mxu1 %v1994_v44  ;;  %3829 = vst.msk [vmem:[#allocation2 + $0x108] sm:$0xff] %vm2760_vm14, %v15884_v47  ;;  %3830 = vst.msk [vmem:[#allocation2 + $0x128] sm:$0xff] %vm2760_vm14, %v15884_v47 }
 0x4ba   : > { %v1890_v24 = vpop.f32.mrf.mxu0  ;;  %v1980_v40 = vadd.f32 %v1979_v56, %v1791_v48  ;;  %2654 = vmatprep.mubr.f32.mxu0 %v1993_v25  ;;  %3831 = vst.msk [vmem:[#allocation2 + $0x148] sm:$0xff] %vm2760_vm14, %v15884_v47  ;;  %3832 = vst.msk [vmem:[#allocation2 + $0x168] sm:$0xff] %vm2760_vm14, %v15884_v47 }
 0x4bb   : > { %v1981_v33 = vpop.f32.mrf.mxu1  ;;  %v1891_v18 = vadd.f32 %v1890_v24, %v1791_v48  ;;  %2655 = vmatmul.mubr.f32.gmra.mxu0 %v1992_v1  ;;  %vm15896_vm15 = vmmov %vm15891_vm1 }
 0x4bc   : > { %v1982_v4 = vadd.f32 %v1981_v33, %v1791_v48  ;;  %v1892_v51 = vpop.f32.mrf.mxu0  ;;  %v1998_v22 = vmax.f32 %v1980_v40, 0.0 }
 0x4bd   : > { %v1893_v16 = vadd.f32 %v1892_v51, %v1791_v48  ;;  %v1996_v55 = vmax.f32 %v1891_v18, 0.0 }
 0x4be   : > { %v1999_v21 = vmax.f32 %v1982_v4, 0.0 }
 0x4bf   : > { %v1997_v11 = vmax.f32 %v1893_v16, 0.0 }
 0x4c0   : > { %7579 = vmatprep.mubr.msk.f32.mxu1 %vm15883_vm7, %v1999_v21  ;;  %vm15897_vm7 = vmmov %vm15891_vm1 }
 0x4c1   : > { %2660 = vmatprep.mubr.f32.mxu0 %v1997_v11  ;;  %2750 = vmatmul.mubr.f32.gmra.mxu1 %v1998_v22 }
 0x4c2   : > { %2661 = vmatmul.mubr.f32.gmra.mxu0 %v1996_v55 }
 0x570   : > { %v2733_v63 = vpop.f32.mrf.mxu1 }
 0x571   : > { %v2644_v46 = vpop.f32.mrf.mxu0 }
 0x572   : > { %v2735_v54 = vpop.f32.mrf.mxu1  ;;  %v2734_v16 = vadd.f32 %v2733_v63, %v2644_v46 }
 0x573   : > { %v2646_v9 = vpop.f32.mrf.mxu0 }
 0x574   : > { %v2739_v52 = vpop.f32.mrf.mxu1  ;;  %v2736_v21 = vadd.f32 %v2735_v54, %v2646_v9 }
 0x575   : > { %v2650_v31 = vpop.f32.mrf.mxu0 }
 0x576   : > { %v2741_v26 = vpop.f32.mrf.mxu1  ;;  %v2740_v4 = vadd.f32 %v2739_v52, %v2650_v31 }
 0x577   : > { %v2652_v39 = vpop.f32.mrf.mxu0 }
 0x578   : > { %v2742_v51 = vadd.f32 %v2741_v26, %v2652_v39 }
 0x579   : > { %v2745_v42 = vpop.f32.mrf.mxu1 }
 0x57b   : > { %v2656_v2 = vpop.f32.mrf.mxu0  ;;  %v2747_v48 = vpop.f32.mrf.mxu1 }
 0x57c   : > { %v2746_v56 = vadd.f32 %v2745_v42, %v2656_v2 }
 0x57d   : > { %v2658_v61 = vpop.f32.mrf.mxu0 }
 0x57e   : > { %v2748_v24 = vadd.f32 %v2747_v48, %v2658_v61  ;;  %2781 = vrot.lane.b32.xlu1 %v2746_v56, %s15885_s28 }
 0x580   : > { %2783 = vrot.lane.b32.xlu0 %v2748_v24, %s15885_s28 }
 0x581   : > { %v2751_v44 = vpop.f32.mrf.mxu1 }
 0x582   : > { %v2662_v25 = vpop.f32.mrf.mxu0 }
 0x583   : > { %v2752_v40 = vadd.f32 %v2751_v44, %v2662_v25  ;;  %v2753_v33 = vpop.f32.mrf.mxu1 }
 0x584   : > { %v2664_v1 = vpop.f32.mrf.mxu0 }
 0x585   : > { %v2754_v18 = vadd.f32 %v2753_v33, %v2664_v1  ;;  %2785 = vrot.lane.b32.xlu1 %v2752_v40, %s15885_s28 }
 0x587   : > { %2787 = vrot.lane.b32.xlu0 %v2754_v18, %s15885_s28 }
 0x589   : > { %2777 = vrot.lane.b32.xlu1 %v2740_v4, %s15885_s28 }
 0x58b   : > { %2779 = vrot.lane.b32.xlu0 %v2742_v51, %s15885_s28 }
 0x58d   : > { %2773 = vrot.lane.b32.xlu1 %v2734_v16, %s15885_s28 }
 0x58f   : > { %2775 = vrot.lane.b32.xlu0 %v2736_v21, %s15885_s28 }
 0x5f0   : > { %v2782_v22 = vpop.permute.xlu1 %2781 }
 0x5f1   : > { %2805 = vst.msk [vmem:[#allocation2 + $0x40] sm:$0xff] %vm15886_vm8, %v2782_v22  ;;  %vm15898_vm8 = vmmov %vm15887_vm2 }
 0x5f2   : > { %v2784_v11 = vpop.permute.xlu0 %2783 }
 0x5f3   : > { %v2791_v55 = vsel %vm15887_vm2, %v2782_v22, %v2784_v11  ;;  %vm15899_vm2 = vmmov %vm15889_vm0 }
 0x5f4   : > { %2806 = vst.msk [vmem:[#allocation2 + $0x48] sm:$0xff] %vm15888_vm5, %v2791_v55  ;;  %vm15900_vm5 = vmmov %vm15889_vm0 }
 0x5f7   : > { %v2786_v52 = vpop.permute.xlu1 %2785 }
 0x5f8   : > { %2807 = vst.msk [vmem:[#allocation2 + $0x60] sm:$0xff] %vm15889_vm0, %v2786_v52  ;;  %v11175_v46 = vld [vmem:[#allocation2 + $0x40] sm:$0xff]  ;;  %vm15901_vm0 = vmmov %vm15898_vm8 }
 0x5f9   : > { %v2788_v31 = vpop.permute.xlu0 %2787  ;;  %3136 = vst.msk [vmem:[#allocation2 + $0x40] sm:$0xff] %vm15892_vm12, %v15884_v47  ;;  %vm15903_vm12 = vmmov %vm15901_vm0 }
 0x5fa   : > { %v2792_v63 = vsel %vm15890_vm9, %v2786_v52, %v2788_v31  ;;  %3190 = vst.msk [vmem:[#allocation2 + $0x40] sm:$0xff] %vm15894_vm3, %v2782_v22  ;;  %vm15902_vm9 = vmmov %vm15891_vm1 }
 0x5fb   : > { %2808 = vst.msk [vmem:[#allocation2 + $0x68] sm:$0xff] %vm15891_vm1, %v2792_v63  ;;  %v2778_v54 = vpop.permute.xlu1 %2777  ;;  %v11182_v26 = vld [vmem:[#allocation2 + $0x48] sm:$0xff]  ;;  %vm15905_vm3 = vmmov %vm15899_vm2 }
 0x5fc   : > { %2803 = vst.msk [vmem:[#allocation2 + $0x20] sm:$0xff] %vm15893_vm13, %v2778_v54  ;;  %vm15904_vm13 = vmmov %vm15901_vm0 }
 0x5fd   : > { %v2780_v9 = vpop.permute.xlu0 %2779  ;;  %3144 = vst.msk [vmem:[#allocation2 + $0x48] sm:$0xff] %vm2760_vm14, %v15884_v47 }
 0x5fe   : > { %v2790_v39 = vsel %vm15895_vm11, %v2778_v54, %v2780_v9  ;;  %3191 = vst.msk [vmem:[#allocation2 + $0x48] sm:$0xff] %vm15897_vm7, %v2791_v55  ;;  %vm15906_vm11 = vmmov %vm15899_vm2 }
 0x5ff   : > { %v11187_v42 = vld [vmem:[#allocation2 + $0x60] sm:$0xff]  ;;  %2804 = vst.msk [vmem:[#allocation2 + $0x28] sm:$0xff] %vm15896_vm15, %v2790_v39  ;;  %v2774_v2 = vpop.permute.xlu1 %2773  ;;  %vm15907_vm15 = vmmov %vm15891_vm1 }
 0x600   : > { %3137 = vst.msk [vmem:[#allocation2 + $0x60] sm:$0xff] %vm15898_vm8, %v15884_v47  ;;  %vm15908_vm7 = vmmov %vm15901_vm0 }
 0x601   : > { %2801 = vst.msk [vmem:[#allocation2] sm:$0xff] %vm15899_vm2, %v2774_v2  ;;  %v2776_v56 = vpop.permute.xlu0 %2775  ;;  %v11203_v44 = vld [vmem:[#allocation2 + $0x40] sm:$0xff]  ;;  %vm15910_vm8 = vmmov %vm15891_vm1 }
 0x602   : > { %3192 = vst.msk [vmem:[#allocation2 + $0x60] sm:$0xff] %vm15900_vm5, %v2786_v52  ;;  %v11195_v48 = vld [vmem:[#allocation2 + $0x68] sm:$0xff]  ;;  %v2789_v61 = vsel %vm15901_vm0, %v2774_v2, %v2776_v56  ;;  %vm15911_vm2 = vmmov %vm15901_vm0  ;;  %v3004_v56 = vld [vmem:[%s15338_s3 + $0x18] sm:$0xff] }
 0x603   : > { %3145 = vst.msk [vmem:[#allocation2 + $0x68] sm:$0xff] %vm2760_vm14, %v15884_v47  ;;  %v11200_v24 = vld [vmem:[#allocation2 + $0x20] sm:$0xff]  ;;  %vm15912_vm5 = vmmov %vm15905_vm3 }
 0x604   : > { %2802 = vst.msk [vmem:[#allocation2 + $0x8] sm:$0xff] %vm15902_vm9, %v2789_v61  ;;  %vm15913_vm0 = vmmov %vm15905_vm3 }
 0x605   : > { %3193 = vst.msk [vmem:[#allocation2 + $0x68] sm:$0xff] %vm15891_vm1, %v2792_v63  ;;  %v11214_v40 = vld [vmem:[#allocation2 + $0x48] sm:$0xff]  ;;  %vm15914_vm9 = vmmov %vm15891_vm1 }
 0x606   : > { %3135 = vst.msk [vmem:[#allocation2 + $0x20] sm:$0xff] %vm15903_vm12, %v15884_v47  ;;  %v11212_v25 = vld [vmem:[#allocation2 + $0x28] sm:$0xff]  ;;  %vm15916_vm12 = vmmov %vm15911_vm2 }
 0x607   : > { %3811 = vst.msk [vmem:[#allocation2 + $0x40] sm:$0xff] %vm15904_vm13, %v15884_v47  ;;  %vm15917_vm13 = vmmov %vm15913_vm0 }
 0x608   : > { %3188 = vst.msk [vmem:[#allocation2 + $0x20] sm:$0xff] %vm15905_vm3, %v2778_v54  ;;  %v11218_v33 = vld [vmem:[#allocation2] sm:$0xff]  ;;  %vm15918_vm3 = vmmov %vm15911_vm2 }
 0x609   : > { %3873 = vst.msk [vmem:[#allocation2 + $0x40] sm:$0xff] %vm15906_vm11, %v2782_v22  ;;  %v11222_v1 = vld [vmem:[#allocation2 + $0x60] sm:$0xff]  ;;  %2881 = vrot.lane.b32.xlu1 %v11218_v33, %s15909_s26  ;;  %vm15286_vm11 = vcmask 15360  }
 0x60a   : > { %3143 = vst.msk [vmem:[#allocation2 + $0x28] sm:$0xff] %vm2760_vm14, %v15884_v47  ;;  %3823 = vst.msk [vmem:[#allocation2 + $0x48] sm:$0xff] %vm2760_vm14, %v15884_v47 }
 0x60b   : > { %3189 = vst.msk [vmem:[#allocation2 + $0x28] sm:$0xff] %vm15907_vm15, %v2790_v39  ;;  %v11234_v18 = vld [vmem:[#allocation2 + $0x8] sm:$0xff]  ;;  %vm15920_vm15 = vmmov %vm15891_vm1 }
 0x60c   : > { %3134 = vst.msk [vmem:[#allocation2] sm:$0xff] %vm15908_vm7, %v15884_v47  ;;  %v11236_v4 = vld [vmem:[#allocation2 + $0x68] sm:$0xff]  ;;  %2883 = vrot.lane.b32.xlu0 %v11234_v18, %s15909_s26  ;;  %vm15921_vm7 = vmmov %vm15911_vm2 }
 0x60d   : > { %3874 = vst.msk [vmem:[#allocation2 + $0x48] sm:$0xff] %vm15910_vm8, %v2791_v55  ;;  %2853 = vrot.lane.b32.xlu1 %v11218_v33, %s15915_s27  ;;  %vm15922_vm8 = vmmov %vm15913_vm0 }
 0x60e   : > { %3812 = vst.msk [vmem:[#allocation2 + $0x60] sm:$0xff] %vm15911_vm2, %v15884_v47 }
 0x60f   : > { %3186 = vst.msk [vmem:[#allocation2] sm:$0xff] %vm15912_vm5, %v2774_v2  ;;  %v11244_v51 = vld [vmem:[#allocation2 + $0x20] sm:$0xff]  ;;  %vm15923_vm5 = vmmov %vm15891_vm1 }
 0x610   : > { %3875 = vst.msk [vmem:[#allocation2 + $0x60] sm:$0xff] %vm15913_vm0, %v2786_v52  ;;  %v11252_v16 = vld [vmem:[#allocation2 + $0x40] sm:$0xff]  ;;  %2855 = vrot.lane.b32.xlu0 %v11234_v18, %s15915_s27  ;;  %vm15924_vm0 = vmmov %vm15911_vm2 }
 0x611   : > { %3142 = vst.msk [vmem:[#allocation2 + $0x8] sm:$0xff] %vm2760_vm14, %v15884_v47  ;;  %3824 = vst.msk [vmem:[#allocation2 + $0x68] sm:$0xff] %vm2760_vm14, %v15884_v47  ;;  %2825 = vrot.lane.b32.xlu1 %v11218_v33, %s15919_s4 }
 0x612   : > { %3187 = vst.msk [vmem:[#allocation2 + $0x8] sm:$0xff] %vm15914_vm9, %v2789_v61  ;;  %v11257_v21 = vld [vmem:[#allocation2 + $0x28] sm:$0xff]  ;;  %vm15925_vm9 = vmmov %vm15924_vm0 }
 0x613   : > { %3876 = vst.msk [vmem:[#allocation2 + $0x68] sm:$0xff] %vm15891_vm1, %v2792_v63  ;;  %vm15927_vm1 = vcmask 785408  }
 0x614   : > { %3810 = vst.msk [vmem:[#allocation2 + $0x20] sm:$0xff] %vm15916_vm12, %v15884_v47  ;;  %v11261_v22 = vld [vmem:[#allocation2 + $0x48] sm:$0xff]  ;;  %2827 = vrot.lane.b32.xlu0 %v11234_v18, %s15919_s4  ;;  %vm15928_vm12 = vcmask 1022976  }
 0x615   : > { %3871 = vst.msk [vmem:[#allocation2 + $0x20] sm:$0xff] %vm15917_vm13, %v2778_v54  ;;  %2885 = vrot.lane.b32.xlu1 %v11200_v24, %s15909_s26  ;;  %vm15929_vm13 = vmmov %vm15928_vm12 }
 0x616   : > { %4838 = vst.msk [vmem:[#allocation2 + $0x40] sm:$0xff] %vm15918_vm3, %v15884_v47  ;;  %v11265_v11 = vld [vmem:[#allocation2] sm:$0xff]  ;;  %vm15930_vm3 = vmmov %vm15928_vm12 }
 0x617   : > { %3822 = vst.msk [vmem:[#allocation2 + $0x28] sm:$0xff] %vm2760_vm14, %v15884_v47  ;;  %v11274_v55 = vld [vmem:[#allocation2 + $0x60] sm:$0xff] }
 0x618   : > { %4846 = vst.msk [vmem:[#allocation2 + $0x48] sm:$0xff] %vm15286_vm11, %v15884_v47  ;;  %2887 = vrot.lane.b32.xlu0 %v11212_v25, %s15909_s26 }
 0x619   : > { %3872 = vst.msk [vmem:[#allocation2 + $0x28] sm:$0xff] %vm15920_vm15, %v2790_v39  ;;  %v11279_v52 = vld [vmem:[#allocation2 + $0x8] sm:$0xff]  ;;  %2857 = vrot.lane.b32.xlu1 %v11200_v24, %s15915_s27  ;;  %vm15931_vm15 = vmmov %vm15930_vm3 }
 0x61a   : > { %3809 = vst.msk [vmem:[#allocation2] sm:$0xff] %vm15921_vm7, %v15884_v47  ;;  %v11283_v31 = vld [vmem:[#allocation2 + $0x68] sm:$0xff]  ;;  %vm15932_vm7 = vcmask 1031168  }
 0x61b   : > { %3869 = vst.msk [vmem:[#allocation2] sm:$0xff] %vm15922_vm8, %v2774_v2  ;;  %v2994_v2 = vld [vmem:[%s15333_s1 + $0x8] sm:$0xff]  ;;  %vm15933_vm8 = vmmov %vm15932_vm7 }
 0x61c   : > { %5067 = vst.msk [vmem:[#allocation2 + $0x60] sm:$0xff] %vm15911_vm2, %v15884_v47  ;;  %v11292_v63 = vld [vmem:[#allocation2 + $0x20] sm:$0xff]  ;;  %2859 = vrot.lane.b32.xlu0 %v11212_v25, %s15915_s27  ;;  %7580 = vmatprep.mubr.msk.f32.mxu1 %vm15927_vm1, %v2994_v2  ;;  %v3002_v2 = vld [vmem:[%s15338_s3 + $0x8] sm:$0xff]  ;;  %vm15934_vm2 = vmmov %vm15932_vm7 }
 0x61d   : > { %3821 = vst.msk [vmem:[#allocation2 + $0x8] sm:$0xff] %vm2760_vm14, %v15884_v47  ;;  %2829 = vrot.lane.b32.xlu1 %v11200_v24, %s15919_s4 }
 0x61e   : > { %5077 = vst.msk [vmem:[#allocation2 + $0x68] sm:$0xff] %vm15286_vm11, %v15884_v47 }
 0x61f   : > { %3870 = vst.msk [vmem:[#allocation2 + $0x8] sm:$0xff] %vm15923_vm5, %v2789_v61  ;;  %v3003_v61 = vld [vmem:[%s15338_s3 + $0x10] sm:$0xff]  ;;  %vm15935_vm5 = vmmov %vm15934_vm2 }
 0x620   : > { %4837 = vst.msk [vmem:[#allocation2 + $0x20] sm:$0xff] %vm15924_vm0, %v15884_v47  ;;  %v11298_v54 = vld [vmem:[#allocation2 + $0x28] sm:$0xff]  ;;  %2831 = vrot.lane.b32.xlu0 %v11212_v25, %s15919_s4  ;;  %vm15936_vm0 = vcmask 1039360  }
 0x621   : > { %4844 = vst.msk [vmem:[#allocation2 + $0x28] sm:$0xff] %vm15286_vm11, %v15884_v47  ;;  %2889 = vrot.lane.b32.xlu1 %v11175_v46, %s15909_s26  ;;  %vm15938_vm1 = vmmov %vm15936_vm0 }
 0x622   : > { %v11304_v9 = vld [vmem:[#allocation2] sm:$0xff] }
 0x623   : > { %4836 = vst.msk [vmem:[#allocation2] sm:$0xff] %vm15925_vm9, %v15884_v47  ;;  %vm15937_vm9 = vmmov %vm15936_vm0 }
 0x624   : > { %2891 = vrot.lane.b32.xlu0 %v11182_v26, %s15909_s26 }
 0x625   : > { %2861 = vrot.lane.b32.xlu1 %v11175_v46, %s15915_s27 }
 0x626   : > { %v11310_v39 = vld [vmem:[#allocation2 + $0x8] sm:$0xff] }
 0x627   : > { %4842 = vst.msk [vmem:[#allocation2 + $0x8] sm:$0xff] %vm15286_vm11, %v15884_v47 }
 0x628   : > { %2863 = vrot.lane.b32.xlu0 %v11182_v26, %s15915_s27 }
 0x629   : > { %2833 = vrot.lane.b32.xlu1 %v11175_v46, %s15919_s4 }
 0x62c   : > { %2835 = vrot.lane.b32.xlu0 %v11182_v26, %s15919_s4 }
 0x62d   : > { %2893 = vrot.lane.b32.xlu1 %v11187_v42, %s15909_s26 }
 0x630   : > { %2895 = vrot.lane.b32.xlu0 %v11195_v48, %s15909_s26 }
 0x631   : > { %2973 = vrot.lane.b32.xlu1 %v11175_v46, %s15926_s5 }
 0x634   : > { %2975 = vrot.lane.b32.xlu0 %v11182_v26, %s15926_s5 }
 0x635   : > { %2865 = vrot.lane.b32.xlu1 %v11187_v42, %s15915_s27 }
 0x638   : > { %2867 = vrot.lane.b32.xlu0 %v11195_v48, %s15915_s27 }
 0x639   : > { %2837 = vrot.lane.b32.xlu1 %v11187_v42, %s15919_s4 }
 0x63c   : > { %2971 = vrot.lane.b32.xlu0 %v11212_v25, %s15926_s5 }
 0x63d   : > { %2977 = vrot.lane.b32.xlu1 %v11187_v42, %s15926_s5 }
 0x640   : > { %2839 = vrot.lane.b32.xlu0 %v11195_v48, %s15919_s4 }
 0x641   : > { %2969 = vrot.lane.b32.xlu1 %v11200_v24, %s15926_s5 }
 0x644   : > { %2967 = vrot.lane.b32.xlu0 %v11234_v18, %s15926_s5 }
 0x645   : > { %2965 = vrot.lane.b32.xlu1 %v11218_v33, %s15926_s5 }
 0x648   : > { %2947 = vrot.lane.b32.xlu0 %v11182_v26, %s15323_s9 }
 0x649   : > { %2949 = vrot.lane.b32.xlu1 %v11187_v42, %s15323_s9 }
 0x64c   : > { %2943 = vrot.lane.b32.xlu0 %v11212_v25, %s15323_s9 }
 0x64d   : > { %2945 = vrot.lane.b32.xlu1 %v11175_v46, %s15323_s9 }
 0x650   : > { %2979 = vrot.lane.b32.xlu0 %v11195_v48, %s15926_s5 }
 0x651   : > { %2941 = vrot.lane.b32.xlu1 %v11200_v24, %s15323_s9 }
 0x654   : > { %2939 = vrot.lane.b32.xlu0 %v11234_v18, %s15323_s9 }
 0x655   : > { %2937 = vrot.lane.b32.xlu1 %v11218_v33, %s15323_s9 }
 0x658   : > { %2951 = vrot.lane.b32.xlu0 %v11195_v48, %s15323_s9 }
 0x659   : > { %2921 = vrot.lane.b32.xlu1 %v11187_v42, %s15328_s7 }
 0x65c   : > { %2919 = vrot.lane.b32.xlu0 %v11182_v26, %s15328_s7 }
 0x65d   : > { %2917 = vrot.lane.b32.xlu1 %v11175_v46, %s15328_s7 }
 0x660   : > { %2923 = vrot.lane.b32.xlu0 %v11195_v48, %s15328_s7 }
 0x661   : > { %2913 = vrot.lane.b32.xlu1 %v11200_v24, %s15328_s7 }
 0x664   : > { %2915 = vrot.lane.b32.xlu0 %v11212_v25, %s15328_s7 }
 0x665   : > { %2909 = vrot.lane.b32.xlu1 %v11218_v33, %s15328_s7 }
 0x668   : > { %2911 = vrot.lane.b32.xlu0 %v11234_v18, %s15328_s7 }
 0x669   : > { %3022 = vperm.xlu1 %8089, %v3004_v56  }
 0x66c   : > { %3017 = vperm.xlu0 %8088, %v3003_v61  }
 0x66d   : > { %3012 = vperm.xlu1 %8089, %v3002_v2  }
 0x670   : > { %3007 = vperm.xlu0 %8088, %v3001_v62  }
 0x671   : > { %3238 = vrot.lane.b32.xlu1 %v11244_v51, %s15919_s4 }
 0x674   : > { %3236 = vrot.lane.b32.xlu0 %v11279_v52, %s15919_s4 }
 0x675   : > { %3234 = vrot.lane.b32.xlu1 %v11265_v11, %s15919_s4 }
 0x678   : > { %3460 = vrot.lane.b32.xlu0 %v11279_v52, %s15323_s9 }
 0x679   : > { %3462 = vrot.lane.b32.xlu1 %v11244_v51, %s15323_s9 }
 0x67b   : > { %v2882_v56 = vpop.permute.xlu1 %2881 }
 0x67c   : > { %3348 = vrot.lane.b32.xlu0 %v11279_v52, %s15909_s26 }
 0x67d   : > { %3458 = vrot.lane.b32.xlu1 %v11265_v11, %s15323_s9 }
 0x67e   : > { %v2884_v62 = vpop.permute.xlu0 %2883 }
 0x67f   : > { %v11420_v61 = vpop.permute.xlu1 %2853 }
 0x680   : > { %3240 = vrot.lane.b32.xlu0 %v11257_v21, %s15919_s4 }
 0x681   : > { %3350 = vrot.lane.b32.xlu1 %v11244_v51, %s15909_s26 }
 0x682   : > { %v11426_v2 = vpop.permute.xlu0 %2855 }
 0x683   : > { %v11428_v3 = vpop.permute.xlu1 %2825 }
 0x684   : > { %3464 = vrot.lane.b32.xlu0 %v11257_v21, %s15323_s9 }
 0x685   : > { %3346 = vrot.lane.b32.xlu1 %v11265_v11, %s15909_s26 }
 0x686   : > { %v11434_v35 = vpop.permute.xlu0 %2827 }
 0x687   : > { %v2886_v29 = vpop.permute.xlu1 %2885 }
 0x688   : > { %3352 = vrot.lane.b32.xlu0 %v11257_v21, %s15909_s26 }
 0x689   : > { %3406 = vrot.lane.b32.xlu1 %v11244_v51, %s15328_s7 }
 0x68a   : > { %v2888_v13 = vpop.permute.xlu0 %2887 }
 0x68b   : > { %v2858_v30 = vpop.permute.xlu1 %2857  ;;  %v2898_v5 = vsel %vm15930_vm3, %v2886_v29, %v2888_v13 }
 0x68c   : > { %3408 = vrot.lane.b32.xlu0 %v11257_v21, %s15328_s7 }
 0x68d   : > { %3242 = vrot.lane.b32.xlu1 %v11203_v44, %s15919_s4 }
 0x68e   : > { %v2860_v38 = vpop.permute.xlu0 %2859 }
 0x68f   : > { %v11444_v27 = vpop.permute.xlu1 %2829 }
 0x690   : > { %3244 = vrot.lane.b32.xlu0 %v11214_v40, %s15919_s4 }
 0x691   : > { %3466 = vrot.lane.b32.xlu1 %v11203_v44, %s15323_s9 }
 0x692   : > { %v11450_v45 = vpop.permute.xlu0 %2831 }
 0x693   : > { %v2890_v23 = vpop.permute.xlu1 %2889 }
 0x694   : > { %3468 = vrot.lane.b32.xlu0 %v11214_v40, %s15323_s9 }
 0x695   : > { %3354 = vrot.lane.b32.xlu1 %v11203_v44, %s15909_s26 }
 0x696   : > { %v2892_v8 = vpop.permute.xlu0 %2891 }
 0x697   : > { %v2862_v50 = vpop.permute.xlu1 %2861  ;;  %v2899_v49 = vsel %vm15929_vm13, %v2890_v23, %v2892_v8  ;;  %vm15940_vm13 = vcmask 998400  }
 0x698   : > { %3356 = vrot.lane.b32.xlu0 %v11214_v40, %s15909_s26  ;;  %vm15941_vm3 = vmmov %vm15940_vm13 }
 0x699   : > { %3410 = vrot.lane.b32.xlu1 %v11203_v44, %s15328_s7 }
 0x69a   : > { %v2864_v32 = vpop.permute.xlu0 %2863 }
 0x69b   : > { %v2834_v58 = vpop.permute.xlu1 %2833 }
 0x69c   : > { %3412 = vrot.lane.b32.xlu0 %v11214_v40, %s15328_s7 }
 0x69d   : > { %3246 = vrot.lane.b32.xlu1 %v11222_v1, %s15919_s4 }
 0x69e   : > { %v2836_v36 = vpop.permute.xlu0 %2835 }
 0x69f   : > { %v2894_v57 = vpop.permute.xlu1 %2893 }
 0x6a0   : > { %3248 = vrot.lane.b32.xlu0 %v11236_v4, %s15919_s4 }
 0x6a1   : > { %3470 = vrot.lane.b32.xlu1 %v11222_v1, %s15323_s9 }
 0x6a2   : > { %v2896_v7 = vpop.permute.xlu0 %2895 }
 0x6a3   : > { %v11468_v19 = vpop.permute.xlu1 %2973  ;;  %3037 = vmatprep.subr.mxu1 %v2896_v7  ;;  %v2900_v12 = vsel %vm15928_vm12, %v2894_v57, %v2896_v7  ;;  %vm15939_vm12 = vmmov %vm15936_vm0 }
 0x6a4   : > { %3038 = vmatpush1.msra.mxu1 %v2900_v12  ;;  %3472 = vrot.lane.b32.xlu0 %v11236_v4, %s15323_s9  ;;  %v2897_v12 = vsel %vm15931_vm15, %v2882_v56, %v2884_v62  ;;  %vm15942_vm15 = vmmov %vm15941_vm3 }
 0x6a5   : > { %3358 = vrot.lane.b32.xlu1 %v11222_v1, %s15909_s26  ;;  %3039 = vmatprep.subr.mxu1 %v2892_v8  ;;  %v2870_v8 = vsel %vm15934_vm2, %v2858_v30, %v2860_v38  ;;  %v2842_v30 = vsel %vm15938_vm1, %v11444_v27, %v11450_v45 }
 0x6a6   : > { %3040 = vmatpush1.msra.mxu1 %v2899_v49  ;;  %v2976_v20 = vpop.permute.xlu0 %2975 }
 0x6a7   : > { %v2866_v59 = vpop.permute.xlu1 %2865  ;;  %3041 = vmatprep.subr.mxu1 %v2888_v13  ;;  %v2871_v13 = vsel %vm15933_vm8, %v2862_v50, %v2864_v32  ;;  %v2983_v27 = vsel %vm15941_vm3, %v11468_v19, %v2976_v20  ;;  %vm15944_vm8 = vcmask 1006592  }
 0x6a8   : > { %3042 = vmatpush1.msra.mxu1 %v2898_v5  ;;  %3360 = vrot.lane.b32.xlu0 %v11236_v4, %s15909_s26  ;;  %vm15945_vm2 = vmmov %vm15944_vm8 }
 0x6a9   : > { %3414 = vrot.lane.b32.xlu1 %v11222_v1, %s15328_s7  ;;  %3043 = vmatprep.subr.mxu1 %v2884_v62 }
 0x6aa   : > { %3044 = vmatpush1.msra.mxu1 %v2897_v12  ;;  %v2868_v7 = vpop.permute.xlu0 %2867 }
 0x6ab   : > { %v2838_v57 = vpop.permute.xlu1 %2837  ;;  %3045 = vmatprep.subr.mxu1 %v2868_v7  ;;  %v2872_v49 = vsel %vm15932_vm7, %v2866_v59, %v2868_v7  ;;  %v2869_v59 = vsel %vm15935_vm5, %v11420_v61, %v11426_v2  ;;  %v2841_v61 = vsel %vm15939_vm12, %v11428_v3, %v11434_v35  ;;  %vm15943_vm7 = vmmov %vm15941_vm3  ;;  %vm15952_vm3 = vcmask 785408  }
 0x6ac   : > { %3046 = vmatpush1.msra.mxu1 %v2872_v49  ;;  %3416 = vrot.lane.b32.xlu0 %v11236_v4, %s15328_s7  ;;  %vm15946_vm5 = vmmov %vm15945_vm2 }
 0x6ad   : > { %3047 = vmatprep.subr.mxu1 %v2864_v32  ;;  %v2843_v32 = vsel %vm15937_vm9, %v2834_v58, %v2836_v36  ;;  %vm15948_vm9 = vcmask 1014784  }
 0x6ae   : > { %3048 = vmatpush1.msra.mxu1 %v2871_v13  ;;  %v2972_v29 = vpop.permute.xlu0 %2971  ;;  %vm15949_vm1 = vmmov %vm15948_vm9 }
 0x6af   : > { %v2978_v5 = vpop.permute.xlu1 %2977  ;;  %3049 = vmatprep.subr.mxu1 %v2860_v38  ;;  %vm15950_vm12 = vmmov %vm15949_vm1 }
 0x6b0   : > { %3050 = vmatpush1.msra.mxu1 %v2870_v8 }
 0x6b1   : > { %3051 = vmatprep.subr.mxu1 %v11426_v2 }
 0x6b2   : > { %3052 = vmatpush1.msra.mxu1 %v2869_v59  ;;  %v2840_v23 = vpop.permute.xlu0 %2839 }
 0x6b3   : > { %v2970_v56 = vpop.permute.xlu1 %2969  ;;  %3053 = vmatprep.subr.mxu1 %v2840_v23  ;;  %v2844_v62 = vsel %vm15936_vm0, %v2838_v57, %v2840_v23  ;;  %vm15947_vm0 = vmmov %vm15945_vm2 }
 0x6b4   : > { %3054 = vmatpush1.msra.mxu1 %v2844_v62  ;;  %v2993_v62 = vld [vmem:[%s15333_s1] sm:$0xff] }
 0x6b5   : > { %3055 = vmatprep.subr.mxu1 %v2836_v36 }
 0x6b6   : > { %3056 = vmatpush1.msra.mxu1 %v2843_v32  ;;  %v2968_v50 = vpop.permute.xlu0 %2967 }
 0x6b7   : > { %v2966_v38 = vpop.permute.xlu1 %2965  ;;  %3057 = vmatprep.subr.mxu1 %v11450_v45 }
 0x6b8   : > { %3058 = vmatpush1.msra.mxu1 %v2842_v30  ;;  %v2998_v30 = vld [vmem:[%s15333_s1 + $0x28] sm:$0xff] }
 0x6b9   : > { %3059 = vmatprep.subr.mxu1 %v11434_v35 }
 0x6ba   : > { %3060 = vmatpush1.msra.mxu1 %v2841_v61  ;;  %v2948_v2 = vpop.permute.xlu0 %2947  ;;  %v2997_v61 = vld [vmem:[%s15333_s1 + $0x20] sm:$0xff] }
 0x6bb   : > { %v2950_v12 = vpop.permute.xlu1 %2949  ;;  %3061 = vmatprep.subr.mxu1 %v11195_v48  ;;  %v2981_v48 = vsel %vm15943_vm7, %v2966_v38, %v2968_v50  ;;  %v2995_v38 = vld [vmem:[%s15333_s1 + $0x10] sm:$0xff]  ;;  %vm15954_vm7 = vmmov %vm15952_vm3 }
 0x6bc   : > { %3062 = vmatpush1.msra.mxu1 %v11187_v42 }
 0x6bd   : > { %3063 = vmatprep.subr.mxu1 %v11182_v26  ;;  %v2982_v26 = vsel %vm15942_vm15, %v2970_v56, %v2972_v29  ;;  %vm15953_vm15 = vmmov %vm15952_vm3 }
 0x6be   : > { %3064 = vmatpush1.msra.mxu1 %v11175_v46  ;;  %v2944_v36 = vpop.permute.xlu0 %2943 }
 0x6bf   : > { %v2946_v58 = vpop.permute.xlu1 %2945  ;;  %3065 = vmatprep.subr.mxu1 %v11212_v25 }
 0x6c0   : > { %3066 = vmatpush1.msra.mxu1 %v11200_v24 }
 0x6c1   : > { %3067 = vmatprep.subr.mxu1 %v11234_v18  ;;  %v2955_v18 = vsel %vm15945_vm2, %v2946_v58, %v2948_v2  ;;  %vm15970_vm2 = vcmask 23552  }
 0x6c2   : > { %3068 = vmatpush1.msra.mxu1 %v11218_v33  ;;  %v2980_v35 = vpop.permute.xlu0 %2979 }
 0x6c3   : > { %v2942_v3 = vpop.permute.xlu1 %2941  ;;  %3077 = vmatprep.subr.mxu1 %v2980_v35  ;;  %v2984_v45 = vsel %vm15940_vm13, %v2978_v5, %v2980_v35  ;;  %vm15951_vm13 = vmmov %vm15949_vm1 }
 0x6c4   : > { %3078 = vmatpush2.msra.mxu1 %v2984_v45  ;;  %v2954_v19 = vsel %vm15946_vm5, %v2942_v3, %v2944_v36  ;;  %vm15971_vm5 = vmmov %vm15947_vm0 }
 0x6c5   : > { %3079 = vmatprep.subr.mxu1 %v2976_v20 }
 0x6c6   : > { %3080 = vmatpush2.msra.mxu1 %v2983_v27  ;;  %v2940_v46 = vpop.permute.xlu0 %2939 }
 0x6c7   : > { %v2938_v42 = vpop.permute.xlu1 %2937  ;;  %3081 = vmatprep.subr.mxu1 %v2972_v29 }
 0x6c8   : > { %3082 = vmatpush2.msra.mxu1 %v2982_v26  ;;  %v2953_v57 = vsel %vm15947_vm0, %v2938_v42, %v2940_v46 }
 0x6c9   : > { %3083 = vmatprep.subr.mxu1 %v2968_v50  ;;  %v2996_v50 = vld [vmem:[%s15333_s1 + $0x18] sm:$0xff] }
 0x6ca   : > { %3084 = vmatpush2.msra.mxu1 %v2981_v48  ;;  %v2952_v24 = vpop.permute.xlu0 %2951 }
 0x6cb   : > { %v2922_v25 = vpop.permute.xlu1 %2921  ;;  %3085 = vmatprep.subr.mxu1 %v2952_v24  ;;  %v2956_v33 = vsel %vm15944_vm8, %v2950_v12, %v2952_v24  ;;  %v2999_v12 = vld [vmem:[%s15333_s1 + $0x30] sm:$0xff]  ;;  %vm15969_vm8 = vcmask 1047576  }
 0x6cc   : > { %3086 = vmatpush2.msra.mxu1 %v2956_v33  ;;  %vm15972_vm0 = vmmov %vm15969_vm8 }
 0x6cd   : > { %3087 = vmatprep.subr.mxu1 %v2948_v2  ;;  %v3000_v2 = vld [vmem:[%s15333_s1 + $0x38] sm:$0xff]  ;;  %s16165_s1 = smov %s16164_s6 }
 0x6ce   : > { %3088 = vmatpush2.msra.mxu1 %v2955_v18  ;;  %v2920_v20 = vpop.permute.xlu0 %2919 }
 0x6cf   : > { %v2918_v7 = vpop.permute.xlu1 %2917  ;;  %3089 = vmatprep.subr.mxu1 %v2944_v36 }
 0x6d0   : > { %3090 = vmatpush2.msra.mxu1 %v2954_v19  ;;  %v2927_v5 = vsel %vm15949_vm1, %v2918_v7, %v2920_v20  ;;  %vm15974_vm1 = vmmov %vm15971_vm5 }
 0x6d1   : > { %3091 = vmatprep.subr.mxu1 %v2940_v46 }
 0x6d2   : > { %3092 = vmatpush2.msra.mxu1 %v2953_v57  ;;  %v2924_v49 = vpop.permute.xlu0 %2923 }
 0x6d3   : > { %3093 = vmatprep.subr.mxu1 %v2924_v49  ;;  %v2928_v13 = vsel %vm15948_vm9, %v2922_v25, %v2924_v49  ;;  %v2914_v29 = vpop.permute.xlu1 %2913  ;;  %vm15973_vm9 = vmmov %vm15970_vm2 }
 0x6d4   : > { %3094 = vmatpush2.msra.mxu1 %v2928_v13 }
 0x6d5   : > { %3095 = vmatprep.subr.mxu1 %v2920_v20 }
 0x6d6   : > { %3096 = vmatpush2.msra.mxu1 %v2927_v5  ;;  %v2916_v8 = vpop.permute.xlu0 %2915 }
 0x6d7   : > { %3097 = vmatprep.subr.mxu1 %v2916_v8  ;;  %v2926_v59 = vsel %vm15950_vm12, %v2914_v29, %v2916_v8  ;;  %v2910_v23 = vpop.permute.xlu1 %2909  ;;  %vm15975_vm12 = vmmov %vm15970_vm2 }
 0x6d8   : > { %3098 = vmatpush2.msra.mxu1 %v2926_v59 }
 0x6da   : > { %v2912_v56 = vpop.permute.xlu0 %2911 }
 0x6db   : > { %3099 = vmatprep.subr.mxu1 %v2912_v56  ;;  %v2925_v32 = vsel %vm15951_vm13, %v2910_v23, %v2912_v56  ;;  %vm15976_vm13 = vmmov %vm15972_vm0 }
 0x6dc   : > { %3100 = vmatpush2.msra.mxu1 %v2925_v32 }
 0x6dd   : > { %3102 = vmatmul.mubr.f32.vlgmr.msra.gmra.mxu1 %v2993_v62 }
 0x6de   : > { %7581 = vmatprep.mubr.msk.f32.mxu1 %vm15952_vm3, %v2996_v50  ;;  %vm15977_vm3 = vmmov %vm15972_vm0 }
 0x6e1   : > { %3108 = vmatmul.mubr.f32.gmra.mxu1 %v2995_v38 }
 0x6e2   : > { %7582 = vmatprep.mubr.msk.f32.mxu1 %vm15953_vm15, %v2998_v30  ;;  %vm15978_vm15 = vmmov %vm15970_vm2 }
 0x6e4   : > { %v3023_v58 = vpop.permute.xlu1 %3022 }
 0x6e5   : > { %3114 = vmatmul.mubr.f32.gmra.mxu1 %v2997_v61 }
 0x6e6   : > { %7583 = vmatprep.mubr.msk.f32.mxu1 %vm15954_vm7, %v3000_v2  ;;  %vm15979_vm7 = vmmov %vm15974_vm1 }
 0x6e7   : > { %v3018_v36 = vpop.permute.xlu0 %3017 }
 0x6e8   : > { %v3013_v42 = vpop.permute.xlu1 %3012 }
 0x6e9   : > { %3120 = vmatmul.mubr.f32.gmra.mxu1 %v2999_v12 }
 0x6eb   : > { %v3008_v35 = vpop.permute.xlu0 %3007 }
 0x6ec   : > { %v11558_v50 = vpop.permute.xlu1 %3238 }
 0x6ef   : > { %v11560_v38 = vpop.permute.xlu0 %3236 }
 0x6f0   : > { %v11562_v30 = vpop.permute.xlu1 %3234 }
 0x6f3   : > { %v11564_v61 = vpop.permute.xlu0 %3460 }
 0x6f4   : > { %v11566_v2 = vpop.permute.xlu1 %3462 }
 0x6f7   : > { %v11568_v12 = vpop.permute.xlu0 %3348 }
 0x6f8   : > { %15955 = vst [vmem:[#allocation40_spill] sm:$0xff] %v11568_v12 }
 0x79d   : > { %v3103_v3 = vpop.f32.mrf.mxu1 }
 0x79e   : > { %v3104_v45 = vadd.f32 %v3103_v3, %v3008_v35 }
 0x79f   : > { %v3105_v27 = vpop.f32.mrf.mxu1 }
 0x7a0   : > { %v3126_v46 = vmax.f32 %v3104_v45, 0.0  ;;  %v3106_v26 = vadd.f32 %v3105_v27, %v3008_v35 }
 0x7a1   : > { %v3109_v48 = vpop.f32.mrf.mxu1 }
 0x7a2   : > { %v3127_v24 = vmax.f32 %v3106_v26, 0.0  ;;  %v3110_v25 = vadd.f32 %v3109_v48, %v3013_v42  ;;  %3158 = vrot.lane.b32.xlu1 %v3126_v46, %s15885_s28 }
 0x7a3   : > { %v3111_v33 = vpop.f32.mrf.mxu1 }
 0x7a4   : > { %v3128_v18 = vmax.f32 %v3110_v25, 0.0  ;;  %v3112_v20 = vadd.f32 %v3111_v33, %v3013_v42  ;;  %3160 = vrot.lane.b32.xlu0 %v3127_v24, %s15885_s28 }
 0x7a5   : > { %v3115_v19 = vpop.f32.mrf.mxu1 }
 0x7a6   : > { %v3129_v7 = vmax.f32 %v3112_v20, 0.0  ;;  %v3116_v57 = vadd.f32 %v3115_v19, %v3018_v36  ;;  %3162 = vrot.lane.b32.xlu1 %v3128_v18, %s15885_s28 }
 0x7a7   : > { %v3117_v49 = vpop.f32.mrf.mxu1 }
 0x7a8   : > { %v3130_v13 = vmax.f32 %v3116_v57, 0.0  ;;  %v3118_v29 = vadd.f32 %v3117_v49, %v3018_v36  ;;  %3164 = vrot.lane.b32.xlu0 %v3129_v7, %s15885_s28  ;;  %v11570_v36 = vpop.permute.xlu1 %3458 }
 0x7a9   : > { %v3121_v5 = vpop.f32.mrf.mxu1 }
 0x7aa   : > { %v3131_v8 = vmax.f32 %v3118_v29, 0.0  ;;  %v3122_v59 = vadd.f32 %v3121_v5, %v3023_v58  ;;  %3166 = vrot.lane.b32.xlu1 %v3130_v13, %s15885_s28 }
 0x7ab   : > { %v3123_v23 = vpop.f32.mrf.mxu1 }
 0x7ac   : > { %v3132_v56 = vmax.f32 %v3122_v59, 0.0  ;;  %v3124_v62 = vadd.f32 %v3123_v23, %v3023_v58  ;;  %3168 = vrot.lane.b32.xlu0 %v3131_v8, %s15885_s28  ;;  %v11572_v58 = vpop.permute.xlu0 %3240  ;;  %v11574_v35 = vpop.permute.xlu1 %3350 }
 0x7ad   : > { %15956 = vst [vmem:[#allocation41_spill] sm:$0xff] %v11574_v35  ;;  %v3588_v35 = vld [vmem:[%s16004_s24 + $0x10] sm:$0xff] }
 0x7ae   : > { %v3133_v32 = vmax.f32 %v3124_v62, 0.0  ;;  %3170 = vrot.lane.b32.xlu1 %v3132_v56, %s15885_s28 }
 0x7b0   : > { %3172 = vrot.lane.b32.xlu0 %v3133_v32, %s15885_s28  ;;  %v11576_v3 = vpop.permute.xlu0 %3464  ;;  %v11578_v45 = vpop.permute.xlu1 %3346 }
 0x7b1   : > { %15957 = vst [vmem:[#allocation42_spill] sm:$0xff] %v11578_v45  ;;  %v3589_v45 = vld [vmem:[%s16004_s24 + $0x18] sm:$0xff] }
 0x7b2   : > { %3402 = vrot.lane.b32.xlu1 %v11265_v11, %s15328_s7 }
 0x7b4   : > { %3404 = vrot.lane.b32.xlu0 %v11279_v52, %s15328_s7  ;;  %v11580_v27 = vpop.permute.xlu0 %3352  ;;  %v11582_v46 = vpop.permute.xlu1 %3406 }
 0x7b5   : > { %15958 = vst [vmem:[#allocation43_spill] sm:$0xff] %v11580_v27  ;;  %15959 = vst [vmem:[#allocation44_spill] sm:$0xff] %v11582_v46  ;;  %v3573_v46 = vld [vmem:[%s16002_s23 + $0x18] sm:$0xff] }
 0x7b8   : > { %v11584_v26 = vpop.permute.xlu0 %3408  ;;  %v11586_v42 = vpop.permute.xlu1 %3242 }
 0x7b9   : > { %15960 = vst [vmem:[#allocation45_spill] sm:$0xff] %v11584_v26 }
 0x7bc   : > { %v11588_v48 = vpop.permute.xlu0 %3244  ;;  %v11590_v24 = vpop.permute.xlu1 %3466 }
 0x7c0   : > { %v11592_v25 = vpop.permute.xlu0 %3468  ;;  %v11594_v33 = vpop.permute.xlu1 %3354 }
 0x7c1   : > { %15961 = vst [vmem:[#allocation46_spill] sm:$0xff] %v11594_v33 }
 0x7c4   : > { %v11596_v18 = vpop.permute.xlu0 %3356  ;;  %v11598_v20 = vpop.permute.xlu1 %3410 }
 0x7c5   : > { %15962 = vst [vmem:[#allocation47_spill] sm:$0xff] %v11596_v18  ;;  %15963 = vst [vmem:[#allocation48_spill] sm:$0xff] %v11598_v20  ;;  %v3586_v20 = vld [vmem:[%s16004_s24] sm:$0xff] }
 0x7c8   : > { %v11600_v19 = vpop.permute.xlu0 %3412  ;;  %v11602_v7 = vpop.permute.xlu1 %3246 }
 0x7c9   : > { %15964 = vst [vmem:[#allocation49_spill] sm:$0xff] %v11600_v19 }
 0x7cc   : > { %v11604_v57 = vpop.permute.xlu0 %3248  ;;  %v11606_v49 = vpop.permute.xlu1 %3470 }
 0x7d0   : > { %v11608_v13 = vpop.permute.xlu0 %3472  ;;  %v11610_v29 = vpop.permute.xlu1 %3358 }
 0x7d1   : > { %15965 = vst [vmem:[#allocation50_spill] sm:$0xff] %v11610_v29 }
 0x7d4   : > { %v11612_v5 = vpop.permute.xlu0 %3360  ;;  %v11614_v8 = vpop.permute.xlu1 %3414 }
 0x7d5   : > { %15966 = vst [vmem:[#allocation51_spill] sm:$0xff] %v11612_v5  ;;  %15967 = vst [vmem:[#allocation52_spill] sm:$0xff] %v11614_v8 }
 0x7d8   : > { %v11616_v59 = vpop.permute.xlu0 %3416 }
 0x7d9   : > { %15968 = vst [vmem:[#allocation53_spill] sm:$0xff] %v11616_v59 }
 0x814   : > { %v3159_v23 = vpop.permute.xlu1 %3158 }
 0x815   : > { %3194 = vst.msk [vmem:[#allocation2 + $0x80] sm:$0xff] %vm15969_vm8, %v3159_v23  ;;  %vm15980_vm8 = vmmov %vm15974_vm1 }
 0x816   : > { %v3161_v56 = vpop.permute.xlu0 %3160 }
 0x817   : > { %v3174_v62 = vsel %vm15970_vm2, %v3159_v23, %v3161_v56 }
 0x818   : > { %3195 = vst.msk [vmem:[#allocation2 + $0x88] sm:$0xff] %vm15971_vm5, %v3174_v62  ;;  %v3163_v32 = vpop.permute.xlu1 %3162  ;;  %vm15981_vm5 = vmmov %vm15972_vm0 }
 0x819   : > { %3196 = vst.msk [vmem:[#allocation2 + $0xa0] sm:$0xff] %vm15972_vm0, %v3163_v32 }
 0x81a   : > { %v3165_v43 = vpop.permute.xlu0 %3164 }
 0x81b   : > { %v3175_v17 = vsel %vm15973_vm9, %v3163_v32, %v3165_v43  ;;  %vm15982_vm9 = vmmov %vm15970_vm2 }
 0x81c   : > { %v11623_v37 = vld [vmem:[#allocation2 + $0x80] sm:$0xff]  ;;  %3197 = vst.msk [vmem:[#allocation2 + $0xa8] sm:$0xff] %vm15974_vm1, %v3175_v17  ;;  %v3167_v60 = vpop.permute.xlu1 %3166 }
 0x81d   : > { %3813 = vst.msk [vmem:[#allocation2 + $0x80] sm:$0xff] %vm15975_vm12, %v15884_v47  ;;  %3250 = vrot.lane.b32.xlu1 %v11623_v37, %s15919_s4  ;;  %vm15983_vm12 = vmmov %vm15974_vm1 }
 0x81e   : > { %3198 = vst.msk [vmem:[#allocation2 + $0xc0] sm:$0xff] %vm15976_vm13, %v3167_v60  ;;  %v3169_v56 = vpop.permute.xlu0 %3168  ;;  %vm15984_vm13 = vmmov %vm15970_vm2 }
 0x81f   : > { %3877 = vst.msk [vmem:[#allocation2 + $0x80] sm:$0xff] %vm15977_vm3, %v3159_v23  ;;  %v11632_v6 = vld [vmem:[#allocation2 + $0x88] sm:$0xff]  ;;  %v3176_v43 = vsel %vm15978_vm15, %v3167_v60, %v3169_v56  ;;  %vm15985_vm3 = vmmov %vm15972_vm0 }
 0x820   : > { %3825 = vst.msk [vmem:[#allocation2 + $0x88] sm:$0xff] %vm2760_vm14, %v15884_v47  ;;  %v11637_v15 = vld [vmem:[#allocation2 + $0xa0] sm:$0xff]  ;;  %v3171_v10 = vpop.permute.xlu1 %3170  ;;  %3252 = vrot.lane.b32.xlu0 %v11632_v6, %s15919_s4  ;;  %vm15986_vm15 = vmmov %vm15970_vm2 }
 0x821   : > { %3199 = vst.msk [vmem:[#allocation2 + $0xc8] sm:$0xff] %vm15979_vm7, %v3176_v43  ;;  %3474 = vrot.lane.b32.xlu1 %v11623_v37, %s15323_s9  ;;  %vm15987_vm7 = vmmov %vm15974_vm1 }
 0x822   : > { %3878 = vst.msk [vmem:[#allocation2 + $0x88] sm:$0xff] %vm15980_vm8, %v3174_v62  ;;  %v3173_v23 = vpop.permute.xlu0 %3172  ;;  %vm15988_vm8 = vmmov %vm15970_vm2 }
 0x823   : > { %3814 = vst.msk [vmem:[#allocation2 + $0xa0] sm:$0xff] %vm15970_vm2, %v15884_v47  ;;  %v11649_v56 = vld [vmem:[#allocation2 + $0xa8] sm:$0xff]  ;;  %v3177_v14 = vsel %vm15982_vm9, %v3171_v10, %v3173_v23  ;;  %vm15989_vm2 = vmmov %vm15972_vm0 }
 0x824   : > { %3200 = vst.msk [vmem:[#allocation2 + $0xe0] sm:$0xff] %vm15981_vm5, %v3171_v10  ;;  %3476 = vrot.lane.b32.xlu0 %v11632_v6, %s15323_s9  ;;  %vm15990_vm5 = vmmov %vm15988_vm8  ;;  %v11812_v41 = vpop.permute.xlu1 %3402 }
 0x825   : > { %3879 = vst.msk [vmem:[#allocation2 + $0xa0] sm:$0xff] %vm15972_vm0, %v3163_v32  ;;  %v11654_v0 = vld [vmem:[#allocation2 + $0xc0] sm:$0xff]  ;;  %3362 = vrot.lane.b32.xlu1 %v11623_v37, %s15909_s26  ;;  %vm15992_vm0 = vmmov %vm15974_vm1 }
 0x826   : > { %3826 = vst.msk [vmem:[#allocation2 + $0xa8] sm:$0xff] %vm2760_vm14, %v15884_v47  ;;  %v11664_v62 = vld [vmem:[#allocation2 + $0x80] sm:$0xff]  ;;  %vm15994_vm9 = vmmov %vm15990_vm5 }
 0x827   : > { %3201 = vst.msk [vmem:[#allocation2 + $0xe8] sm:$0xff] %vm15974_vm1, %v3177_v14  ;;  %15999 = vst [vmem:[#allocation59_spill] sm:$0xff] %v11812_v41  ;;  %v3571_v41 = vld [vmem:[%s16002_s23 + $0x8] sm:$0xff]  ;;  %vm15285_vm1 = vcmask 523264  }
 0x828   : > { %3880 = vst.msk [vmem:[#allocation2 + $0xa8] sm:$0xff] %vm15983_vm12, %v3175_v17  ;;  %v11669_v32 = vld [vmem:[#allocation2 + $0xc8] sm:$0xff]  ;;  %3364 = vrot.lane.b32.xlu0 %v11632_v6, %s15909_s26  ;;  %3687 = vmatprep.mubr.f32.mxu0 %v3571_v41  ;;  %vm16020_vm12 = vcmask 1039360  }
 0x829   : > { %3815 = vst.msk [vmem:[#allocation2 + $0xc0] sm:$0xff] %vm15984_vm13, %v15884_v47  ;;  %v11671_v23 = vld [vmem:[#allocation2 + $0x88] sm:$0xff]  ;;  %3418 = vrot.lane.b32.xlu1 %v11623_v37, %s15328_s7  ;;  %7584 = vmatprep.mubr.msk.f32.mxu1 %vm15285_vm1, %v3573_v46  ;;  %vm16021_vm13 = vmmov %vm16020_vm12 }
 0x82a   : > { %3881 = vst.msk [vmem:[#allocation2 + $0xc0] sm:$0xff] %vm15985_vm3, %v3167_v60  ;;  %v3587_v41 = vld [vmem:[%s16004_s24 + $0x8] sm:$0xff]  ;;  %vm16022_vm3 = vmmov %vm16020_vm12 }
 0x82b   : > { %5068 = vst.msk [vmem:[#allocation2 + $0x80] sm:$0xff] %vm15986_vm15, %v15884_v47  ;;  %v11675_v17 = vld [vmem:[#allocation2 + $0xe0] sm:$0xff]  ;;  %vm16023_vm15 = vmmov %vm16022_vm3 }
 0x82c   : > { %3827 = vst.msk [vmem:[#allocation2 + $0xc8] sm:$0xff] %vm2760_vm14, %v15884_v47  ;;  %v11686_v60 = vld [vmem:[#allocation2 + $0xa0] sm:$0xff]  ;;  %3420 = vrot.lane.b32.xlu0 %v11632_v6, %s15328_s7 }
 0x82d   : > { %5079 = vst.msk [vmem:[#allocation2 + $0x88] sm:$0xff] %vm15286_vm11, %v15884_v47  ;;  %3254 = vrot.lane.b32.xlu1 %v11637_v15, %s15919_s4 }
 0x82e   : > { %3882 = vst.msk [vmem:[#allocation2 + $0xc8] sm:$0xff] %vm15987_vm7, %v3176_v43  ;;  %v11691_v28 = vld [vmem:[#allocation2 + $0xe8] sm:$0xff]  ;;  %vm16024_vm7 = vmmov %vm16022_vm3 }
 0x82f   : > { %3816 = vst.msk [vmem:[#allocation2 + $0xe0] sm:$0xff] %vm15988_vm8, %v15884_v47  ;;  %v11693_v34 = vld [vmem:[#allocation2 + $0xa8] sm:$0xff]  ;;  %vm16025_vm8 = vmmov %vm16022_vm3 }
 0x830   : > { %3883 = vst.msk [vmem:[#allocation2 + $0xe0] sm:$0xff] %vm15989_vm2, %v3171_v10  ;;  %15991 = vst [vmem:[#allocation54_spill] sm:$0xff] %v11693_v34  ;;  %3256 = vrot.lane.b32.xlu0 %v11649_v56, %s15919_s4 }
 0x831   : > { %5069 = vst.msk [vmem:[#allocation2 + $0xa0] sm:$0xff] %vm15990_vm5, %v15884_v47  ;;  %v11704_v10 = vld [vmem:[#allocation2 + $0xc0] sm:$0xff]  ;;  %3478 = vrot.lane.b32.xlu1 %v11637_v15, %s15323_s9  ;;  %vm16026_vm2 = vmmov %vm16022_vm3 }
 0x832   : > { %3828 = vst.msk [vmem:[#allocation2 + $0xe8] sm:$0xff] %vm2760_vm14, %v15884_v47  ;;  %15993 = vst [vmem:[#allocation55_spill] sm:$0xff] %v11704_v10 }
 0x833   : > { %5081 = vst.msk [vmem:[#allocation2 + $0xa8] sm:$0xff] %vm15286_vm11, %v15884_v47  ;;  %vm15997_vm14 = vmmov %vm15990_vm5 }
 0x834   : > { %3884 = vst.msk [vmem:[#allocation2 + $0xe8] sm:$0xff] %vm15992_vm0, %v3177_v14  ;;  %3480 = vrot.lane.b32.xlu0 %v11649_v56, %s15323_s9  ;;  %vm16027_vm5 = vmmov %vm16026_vm2 }
 0x835   : > { %5474 = vst.msk [vmem:[#allocation2 + $0xc0] sm:$0xff] %vm15994_vm9, %v15884_v47  ;;  %v11708_v43 = vld [vmem:[#allocation2 + $0xc8] sm:$0xff]  ;;  %3366 = vrot.lane.b32.xlu1 %v11637_v15, %s15909_s26  ;;  %vm16028_vm9 = vmmov %vm15992_vm0 }
 0x836   : > { %15995 = vst [vmem:[#allocation56_spill] sm:$0xff] %v11708_v43  ;;  %5490 = vst.msk [vmem:[#allocation2 + $0xc8] sm:$0xff] %vm15286_vm11, %v15884_v47 }
 0x837   : > { %v11716_v14 = vld [vmem:[#allocation2 + $0xe0] sm:$0xff] }
 0x838   : > { %15996 = vst [vmem:[#allocation57_spill] sm:$0xff] %v11716_v14  ;;  %5475 = vst.msk [vmem:[#allocation2 + $0xe0] sm:$0xff] %vm15997_vm14, %v15884_v47  ;;  %3368 = vrot.lane.b32.xlu0 %v11649_v56, %s15909_s26 }
 0x839   : > { %3422 = vrot.lane.b32.xlu1 %v11637_v15, %s15328_s7  ;;  %vm16029_vm14 = vmmov %vm15992_vm0 }
 0x83b   : > { %v11720_v53 = vld [vmem:[#allocation2 + $0xe8] sm:$0xff] }
 0x83c   : > { %15998 = vst [vmem:[#allocation58_spill] sm:$0xff] %v11720_v53  ;;  %5492 = vst.msk [vmem:[#allocation2 + $0xe8] sm:$0xff] %vm15286_vm11, %v15884_v47  ;;  %3424 = vrot.lane.b32.xlu0 %v11649_v56, %s15328_s7  ;;  %v11818_v47 = vpop.permute.xlu0 %3404 }
 0x83d   : > { %3310 = vrot.lane.b32.xlu1 %v11637_v15, %s15915_s27  ;;  %16000 = vst [vmem:[#allocation60_spill] sm:$0xff] %v11818_v47 }
 0x840   : > { %3312 = vrot.lane.b32.xlu0 %v11649_v56, %s15915_s27 }
 0x841   : > { %3258 = vrot.lane.b32.xlu1 %v11654_v0, %s15919_s4 }
 0x844   : > { %3260 = vrot.lane.b32.xlu0 %v11669_v32, %s15919_s4 }
 0x845   : > { %3482 = vrot.lane.b32.xlu1 %v11654_v0, %s15323_s9 }
 0x848   : > { %3484 = vrot.lane.b32.xlu0 %v11669_v32, %s15323_s9 }
 0x849   : > { %3370 = vrot.lane.b32.xlu1 %v11654_v0, %s15909_s26 }
 0x84c   : > { %3372 = vrot.lane.b32.xlu0 %v11669_v32, %s15909_s26 }
 0x84d   : > { %3426 = vrot.lane.b32.xlu1 %v11654_v0, %s15328_s7 }
 0x850   : > { %3428 = vrot.lane.b32.xlu0 %v11669_v32, %s15328_s7 }
 0x851   : > { %3314 = vrot.lane.b32.xlu1 %v11654_v0, %s15915_s27 }
 0x854   : > { %3316 = vrot.lane.b32.xlu0 %v11669_v32, %s15915_s27 }
 0x855   : > { %3538 = vrot.lane.b32.xlu1 %v11654_v0, %s15926_s5 }
 0x858   : > { %3540 = vrot.lane.b32.xlu0 %v11669_v32, %s15926_s5 }
 0x859   : > { %3262 = vrot.lane.b32.xlu1 %v11675_v17, %s15919_s4 }
 0x85c   : > { %3264 = vrot.lane.b32.xlu0 %v11691_v28, %s15919_s4 }
 0x85d   : > { %3306 = vrot.lane.b32.xlu1 %v11623_v37, %s15915_s27 }
 0x860   : > { %3308 = vrot.lane.b32.xlu0 %v11632_v6, %s15915_s27 }
 0x861   : > { %3486 = vrot.lane.b32.xlu1 %v11675_v17, %s15323_s9 }
 0x864   : > { %3536 = vrot.lane.b32.xlu0 %v11649_v56, %s15926_s5 }
 0x865   : > { %3374 = vrot.lane.b32.xlu1 %v11675_v17, %s15909_s26 }
 0x868   : > { %3304 = vrot.lane.b32.xlu0 %v11236_v4, %s15915_s27 }
 0x869   : > { %3430 = vrot.lane.b32.xlu1 %v11675_v17, %s15328_s7 }
 0x86c   : > { %3488 = vrot.lane.b32.xlu0 %v11691_v28, %s15323_s9 }
 0x86d   : > { %3318 = vrot.lane.b32.xlu1 %v11675_v17, %s15915_s27 }
 0x870   : > { %3532 = vrot.lane.b32.xlu0 %v11632_v6, %s15926_s5 }
 0x871   : > { %3542 = vrot.lane.b32.xlu1 %v11675_v17, %s15926_s5 }
 0x874   : > { %3300 = vrot.lane.b32.xlu0 %v11214_v40, %s15915_s27 }
 0x875   : > { %3534 = vrot.lane.b32.xlu1 %v11637_v15, %s15926_s5 }
 0x878   : > { %3376 = vrot.lane.b32.xlu0 %v11691_v28, %s15909_s26 }
 0x879   : > { %3302 = vrot.lane.b32.xlu1 %v11222_v1, %s15915_s27 }
 0x87c   : > { %3432 = vrot.lane.b32.xlu0 %v11691_v28, %s15328_s7 }
 0x87d   : > { %3530 = vrot.lane.b32.xlu1 %v11623_v37, %s15926_s5 }
 0x880   : > { %3528 = vrot.lane.b32.xlu0 %v11236_v4, %s15926_s5 }
 0x881   : > { %3298 = vrot.lane.b32.xlu1 %v11203_v44, %s15915_s27 }
 0x884   : > { %3296 = vrot.lane.b32.xlu0 %v11257_v21, %s15915_s27 }
 0x885   : > { %3526 = vrot.lane.b32.xlu1 %v11222_v1, %s15926_s5 }
 0x888   : > { %3320 = vrot.lane.b32.xlu0 %v11691_v28, %s15915_s27 }
 0x889   : > { %3294 = vrot.lane.b32.xlu1 %v11244_v51, %s15915_s27 }
 0x88c   : > { %3544 = vrot.lane.b32.xlu0 %v11691_v28, %s15926_s5 }
 0x88d   : > { %3522 = vrot.lane.b32.xlu1 %v11203_v44, %s15926_s5 }
 0x88f   : > { %v11820_v53 = vpop.permute.xlu1 %3250 }
 0x890   : > { %3524 = vrot.lane.b32.xlu0 %v11214_v40, %s15926_s5 }
 0x891   : > { %3290 = vrot.lane.b32.xlu1 %v11265_v11, %s15915_s27 }
 0x892   : > { %v11826_v14 = vpop.permute.xlu0 %3252 }
 0x893   : > { %v11828_v43 = vpop.permute.xlu1 %3474 }
 0x894   : > { %3292 = vrot.lane.b32.xlu0 %v11279_v52, %s15915_s27 }
 0x895   : > { %3518 = vrot.lane.b32.xlu1 %v11244_v51, %s15926_s5 }
 0x896   : > { %v11834_v10 = vpop.permute.xlu0 %3476 }
 0x897   : > { %v11836_v34 = vpop.permute.xlu1 %3362 }
 0x898   : > { %16001 = vst [vmem:[#allocation61_spill] sm:$0xff] %v11836_v34  ;;  %3520 = vrot.lane.b32.xlu0 %v11257_v21, %s15926_s5 }
 0x899   : > { %3514 = vrot.lane.b32.xlu1 %v11265_v11, %s15926_s5 }
 0x89a   : > { %v11845_v47 = vpop.permute.xlu0 %3364 }
 0x89b   : > { %16003 = vst [vmem:[#allocation62_spill] sm:$0xff] %v11845_v47  ;;  %v11850_v12 = vpop.permute.xlu1 %3418 }
 0x89c   : > { %16005 = vst [vmem:[#allocation63_spill] sm:$0xff] %v11850_v12  ;;  %3516 = vrot.lane.b32.xlu0 %v11279_v52, %s15926_s5 }
 0x89d   : > { %3607 = vperm.xlu1 %8089, %v3589_v45  }
 0x89e   : > { %v11861_v26 = vpop.permute.xlu0 %3420 }
 0x89f   : > { %16006 = vst [vmem:[#allocation64_spill] sm:$0xff] %v11861_v26  ;;  %v3255_v27 = vpop.permute.xlu1 %3254 }
 0x8a0   : > { %3602 = vperm.xlu0 %8088, %v3588_v35  }
 0x8a1   : > { %3597 = vperm.xlu1 %8089, %v3587_v41  }
 0x8a2   : > { %v3257_v33 = vpop.permute.xlu0 %3256 }
 0x8a3   : > { %v11869_v46 = vpop.permute.xlu1 %3478 }
 0x8a4   : > { %3592 = vperm.xlu0 %8088, %v3586_v20  }
 0x8a5   : > { %3953 = vrot.lane.b32.xlu1 %v11274_v55, %s15919_s4 }
 0x8a6   : > { %v11873_v45 = vpop.permute.xlu0 %3480 }
 0x8a7   : > { %v11875_v19 = vpop.permute.xlu1 %3366 }
 0x8a8   : > { %16007 = vst [vmem:[#allocation65_spill] sm:$0xff] %v11875_v19  ;;  %3955 = vrot.lane.b32.xlu0 %v11283_v31, %s15919_s4 }
 0x8a9   : > { %3949 = vrot.lane.b32.xlu1 %v11252_v16, %s15919_s4 }
 0x8aa   : > { %v11881_v35 = vpop.permute.xlu0 %3368 }
 0x8ab   : > { %16008 = vst [vmem:[#allocation66_spill] sm:$0xff] %v11881_v35  ;;  %v11883_v41 = vpop.permute.xlu1 %3422 }
 0x8ac   : > { %16009 = vst [vmem:[#allocation67_spill] sm:$0xff] %v11883_v41  ;;  %3951 = vrot.lane.b32.xlu0 %v11261_v22, %s15919_s4 }
 0x8ad   : > { %3945 = vrot.lane.b32.xlu1 %v11292_v63, %s15919_s4 }
 0x8ae   : > { %v11889_v20 = vpop.permute.xlu0 %3424 }
 0x8af   : > { %16010 = vst [vmem:[#allocation68_spill] sm:$0xff] %v11889_v20  ;;  %v11891_v18 = vpop.permute.xlu1 %3310 }
 0x8b0   : > { %16011 = vst [vmem:[#allocation69_spill] sm:$0xff] %v11891_v18  ;;  %3947 = vrot.lane.b32.xlu0 %v11298_v54, %s15919_s4 }
 0x8b1   : > { %3941 = vrot.lane.b32.xlu1 %v11304_v9, %s15919_s4 }
 0x8b2   : > { %v11897_v8 = vpop.permute.xlu0 %3312 }
 0x8b3   : > { %16012 = vst [vmem:[#allocation70_spill] sm:$0xff] %v11897_v8  ;;  %v3259_v29 = vpop.permute.xlu1 %3258 }
 0x8b4   : > { %3943 = vrot.lane.b32.xlu0 %v11310_v39, %s15919_s4 }
 0x8b5   : > { %4045 = vrot.lane.b32.xlu1 %v11686_v60, %s15915_s27 }
 0x8b6   : > { %v3261_v59 = vpop.permute.xlu0 %3260 }
 0x8b7   : > { %v11903_v5 = vpop.permute.xlu1 %3482 }
 0x8b8   : > { %4043 = vrot.lane.b32.xlu0 %v11671_v23, %s15915_s27 }
 0x8b9   : > { %4041 = vrot.lane.b32.xlu1 %v11664_v62, %s15915_s27 }
 0x8ba   : > { %v11909_v18 = vpop.permute.xlu0 %3484 }
 0x8bb   : > { %v11911_v12 = vpop.permute.xlu1 %3370 }
 0x8bc   : > { %16013 = vst [vmem:[#allocation71_spill] sm:$0xff] %v11911_v12  ;;  %4039 = vrot.lane.b32.xlu0 %v11283_v31, %s15915_s27 }
 0x8bd   : > { %4037 = vrot.lane.b32.xlu1 %v11274_v55, %s15915_s27 }
 0x8be   : > { %v11917_v8 = vpop.permute.xlu0 %3372 }
 0x8bf   : > { %v11919_v34 = vpop.permute.xlu1 %3426 }
 0x8c0   : > { %16014 = vst [vmem:[#allocation72_spill] sm:$0xff] %v11919_v34  ;;  %4035 = vrot.lane.b32.xlu0 %v11261_v22, %s15915_s27 }
 0x8c1   : > { %4033 = vrot.lane.b32.xlu1 %v11252_v16, %s15915_s27 }
 0x8c2   : > { %v11925_v26 = vpop.permute.xlu0 %3428 }
 0x8c3   : > { %v11927_v47 = vpop.permute.xlu1 %3314 }
 0x8c4   : > { %16015 = vst [vmem:[#allocation73_spill] sm:$0xff] %v11927_v47  ;;  %4031 = vrot.lane.b32.xlu0 %v11298_v54, %s15915_s27 }
 0x8c5   : > { %4029 = vrot.lane.b32.xlu1 %v11292_v63, %s15915_s27 }
 0x8c6   : > { %v11933_v41 = vpop.permute.xlu0 %3316 }
 0x8c7   : > { %16016 = vst [vmem:[#allocation74_spill] sm:$0xff] %v11933_v41  ;;  %v11935_v19 = vpop.permute.xlu1 %3538 }
 0x8c8   : > { %16017 = vst [vmem:[#allocation75_spill] sm:$0xff] %v11935_v19  ;;  %4027 = vrot.lane.b32.xlu0 %v11310_v39, %s15915_s27 }
 0x8c9   : > { %4025 = vrot.lane.b32.xlu1 %v11304_v9, %s15915_s27 }
 0x8ca   : > { %v11941_v20 = vpop.permute.xlu0 %3540 }
 0x8cb   : > { %16018 = vst [vmem:[#allocation76_spill] sm:$0xff] %v11941_v20  ;;  %v3263_v35 = vpop.permute.xlu1 %3262  ;;  %v3272_v20 = vsel %vm16021_vm13, %v3259_v29, %v3261_v59  ;;  %vm16031_vm13 = vmmov %vm15992_vm0 }
 0x8cc   : > { %4127 = vrot.lane.b32.xlu0 %v11671_v23, %s15909_s26 }
 0x8cd   : > { %4129 = vrot.lane.b32.xlu1 %v11686_v60, %s15909_s26 }
 0x8ce   : > { %v3265_v47 = vpop.permute.xlu0 %3264 }
 0x8cf   : > { %v11947_v34 = vpop.permute.xlu1 %3306  ;;  %3623 = vmatprep.subr.mxu0 %v3265_v47  ;;  %v3273_v19 = vsel %vm16020_vm12, %v3263_v35, %v3265_v47  ;;  %v3270_v47 = vsel %vm16023_vm15, %v11820_v53, %v11826_v14  ;;  %v3268_v53 = vsel %vm16025_vm8, %v11586_v42, %v11588_v48  ;;  %vm16030_vm12 = vmmov %vm15992_vm0  ;;  %vm16035_vm8 = vcmask 1014784  }
 0x8d0   : > { %16019 = vst [vmem:[#allocation77_spill] sm:$0xff] %v11947_v34  ;;  %3624 = vmatpush1.msra.mxu0 %v3273_v19  ;;  %4123 = vrot.lane.b32.xlu0 %v11283_v31, %s15909_s26  ;;  %v3271_v34 = vsel %vm16022_vm3, %v3255_v27, %v3257_v33  ;;  %vm16032_vm3 = vmmov %vm15992_vm0 }
 0x8d1   : > { %4125 = vrot.lane.b32.xlu1 %v11664_v62, %s15909_s26  ;;  %3625 = vmatprep.subr.mxu0 %v3261_v59  ;;  %vm16033_vm15 = vmmov %vm15992_vm0  ;;  %v16043_v59 = vld [vmem:[#allocation65_spill] sm:$0xff] }
 0x8d2   : > { %3626 = vmatpush1.msra.mxu0 %v3272_v20  ;;  %v11955_v41 = vpop.permute.xlu0 %3308  ;;  %v16053_v20 = vld [vmem:[#allocation51_spill] sm:$0xff] }
 0x8d3   : > { %v3487_v12 = vpop.permute.xlu1 %3486  ;;  %3627 = vmatprep.subr.mxu0 %v3257_v33 }
 0x8d4   : > { %3628 = vmatpush1.msra.mxu0 %v3271_v34  ;;  %4119 = vrot.lane.b32.xlu0 %v11261_v22, %s15909_s26  ;;  %v3269_v34 = vsel %vm16024_vm7, %v11602_v7, %v11604_v57  ;;  %v3267_v7 = vsel %vm16026_vm2, %v11558_v50, %v11572_v58  ;;  %vm16034_vm7 = vmmov %vm15992_vm0  ;;  %vm16036_vm2 = vcmask 1022976  }
 0x8d5   : > { %4121 = vrot.lane.b32.xlu1 %v11274_v55, %s15909_s26  ;;  %3629 = vmatprep.subr.mxu0 %v11826_v14 }
 0x8d6   : > { %3630 = vmatpush1.msra.mxu0 %v3270_v47  ;;  %v11966_v19 = vpop.permute.xlu0 %3536  ;;  %v16054_v47 = vld [vmem:[#allocation53_spill] sm:$0xff] }
 0x8d7   : > { %v11968_v29 = vpop.permute.xlu1 %3374  ;;  %3631 = vmatprep.subr.mxu0 %v11604_v57  ;;  %v3266_v57 = vsel %vm16027_vm5, %v11562_v30, %v11560_v38  ;;  %vm16038_vm5 = vmmov %vm16036_vm2 }
 0x8d8   : > { %3632 = vmatpush1.msra.mxu0 %v3269_v34  ;;  %4115 = vrot.lane.b32.xlu0 %v11298_v54, %s15909_s26 }
 0x8d9   : > { %4117 = vrot.lane.b32.xlu1 %v11252_v16, %s15909_s26  ;;  %3633 = vmatprep.subr.mxu0 %v11588_v48 }
 0x8da   : > { %3634 = vmatpush1.msra.mxu0 %v3268_v53  ;;  %v11982_v27 = vpop.permute.xlu0 %3304  ;;  %v16057_v53 = vld [vmem:[#allocation52_spill] sm:$0xff] }
 0x8db   : > { %v11984_v33 = vpop.permute.xlu1 %3430  ;;  %3635 = vmatprep.subr.mxu0 %v11572_v58  ;;  %v3494_v58 = vsel %vm16030_vm12, %v11828_v43, %v11834_v10  ;;  %v16049_v43 = vld [vmem:[#allocation61_spill] sm:$0xff]  ;;  %vm16050_vm12 = vmmov %vm16036_vm2 }
 0x8dc   : > { %3636 = vmatpush1.msra.mxu0 %v3267_v7  ;;  %4111 = vrot.lane.b32.xlu0 %v11310_v39, %s15909_s26 }
 0x8dd   : > { %4113 = vrot.lane.b32.xlu1 %v11292_v63, %s15909_s26  ;;  %3637 = vmatprep.subr.mxu0 %v11560_v38 }
 0x8de   : > { %3638 = vmatpush1.msra.mxu0 %v3266_v57  ;;  %v3489_v42 = vpop.permute.xlu0 %3488  ;;  %v16059_v57 = vld [vmem:[#allocation47_spill] sm:$0xff] }
 0x8df   : > { %v11998_v48 = vpop.permute.xlu1 %3318  ;;  %3639 = vmatprep.subr.mxu0 %v11691_v28  ;;  %3712 = vmatprep.subr.mxu1 %v3489_v42  ;;  %v3497_v50 = vsel %vm15992_vm0, %v3487_v12, %v3489_v42  ;;  %v3496_v28 = vsel %vm16028_vm9, %v11903_v5, %v11909_v18  ;;  %v3495_v12 = vsel %vm16029_vm14, %v11869_v46, %v11873_v45  ;;  %vm16040_vm0 = vmmov %vm16035_vm8  ;;  %v16042_v5 = vld [vmem:[#allocation68_spill] sm:$0xff]  ;;  %v16051_v46 = vld [vmem:[#allocation63_spill] sm:$0xff] }
 0x8e0   : > { %3640 = vmatpush1.msra.mxu0 %v11675_v17  ;;  %3713 = vmatpush1.msra.mxu1 %v3497_v50  ;;  %vm16044_vm9 = vmmov %vm16036_vm2  ;;  %v16047_v17 = vld [vmem:[#allocation62_spill] sm:$0xff]  ;;  %v16060_v42 = vld [vmem:[#allocation49_spill] sm:$0xff] }
 0x8e1   : > { %3959 = vrot.lane.b32.xlu0 %v11671_v23, %s15919_s4  ;;  %3961 = vrot.lane.b32.xlu1 %v11686_v60, %s15919_s4  ;;  %vm16046_vm14 = vmmov %vm16040_vm0  ;;  %v3382_v14 = vsel %vm16050_vm12, %v16049_v43, %v16047_v17  ;;  %v16061_v50 = vld [vmem:[#allocation46_spill] sm:$0xff]  ;;  %vm16077_vm12 = vcmask 1031168  }
 0x8e2   : > { %3641 = vmatprep.subr.mxu0 %v11669_v32  ;;  %3714 = vmatprep.subr.mxu1 %v11909_v18  ;;  %v12012_v38 = vpop.permute.xlu0 %3532 }
 0x8e3   : > { %3642 = vmatpush1.msra.mxu0 %v11654_v0  ;;  %3715 = vmatpush1.msra.mxu1 %v3496_v28  ;;  %v12015_v30 = vpop.permute.xlu1 %3542 }
 0x8e4   : > { %3643 = vmatprep.subr.mxu0 %v11649_v56  ;;  %3716 = vmatprep.subr.mxu1 %v11873_v45 }
 0x8e5   : > { %3644 = vmatpush1.msra.mxu0 %v11637_v15  ;;  %3717 = vmatpush1.msra.mxu1 %v3495_v12  ;;  %v3493_v15 = vsel %vm16031_vm13, %v11606_v49, %v11608_v13  ;;  %vm16052_vm13 = vmmov %vm16040_vm0  ;;  %v16063_v12 = vld [vmem:[#allocation48_spill] sm:$0xff] }
 0x8e6   : > { %4291 = vrot.lane.b32.xlu0 %v11283_v31, %s15323_s9  ;;  %4109 = vrot.lane.b32.xlu1 %v11304_v9, %s15909_s26  ;;  %v12027_v0 = vpop.permute.xlu0 %3300 }
 0x8e7   : > { %3645 = vmatprep.subr.mxu0 %v11632_v6  ;;  %3718 = vmatprep.subr.mxu1 %v11834_v10  ;;  %v12034_v18 = vpop.permute.xlu1 %3534  ;;  %v16048_v10 = vld [vmem:[#allocation64_spill] sm:$0xff] }
 0x8e8   : > { %3646 = vmatpush1.msra.mxu0 %v11623_v37  ;;  %3719 = vmatpush1.msra.mxu1 %v3494_v58  ;;  %v3438_v45 = vsel %vm16052_vm13, %v16051_v46, %v16048_v10  ;;  %vm16081_vm13 = vmmov %vm16077_vm12  ;;  %v16085_v46 = vld [vmem:[#allocation70_spill] sm:$0xff] }
 0x8e9   : > { %3647 = vmatprep.subr.mxu0 %v11236_v4  ;;  %3720 = vmatprep.subr.mxu1 %v11608_v13  ;;  %v3492_v4 = vsel %vm16032_vm3, %v11590_v24, %v11592_v25  ;;  %v16041_v13 = vld [vmem:[#allocation66_spill] sm:$0xff]  ;;  %vm16056_vm3 = vmmov %vm16036_vm2 }
 0x8ea   : > { %3648 = vmatpush1.msra.mxu0 %v11222_v1  ;;  %3721 = vmatpush1.msra.mxu1 %v3493_v15  ;;  %v3377_v6 = vpop.permute.xlu0 %3376  ;;  %v3491_v1 = vsel %vm16033_vm15, %v11566_v2, %v11576_v3  ;;  %v3383_v56 = vsel %vm16044_vm9, %v16043_v59, %v16041_v13  ;;  %vm16058_vm15 = vmmov %vm16040_vm0  ;;  %v16065_v15 = vld [vmem:[#allocation43_spill] sm:$0xff] }
 0x8eb   : > { %4379 = vrot.lane.b32.xlu0 %v11671_v23, %s15926_s5  ;;  %3957 = vrot.lane.b32.xlu1 %v11664_v62, %s15919_s4  ;;  %v12047_v37 = vpop.permute.xlu1 %3302  ;;  %v3385_v2 = vsel %vm16036_vm2, %v11968_v29, %v3377_v6  ;;  %v16055_v29 = vld [vmem:[#allocation50_spill] sm:$0xff] }
 0x8ec   : > { %3649 = vmatprep.subr.mxu0 %v11214_v40  ;;  %3722 = vmatprep.subr.mxu1 %v11592_v25  ;;  %v3381_v34 = vsel %vm16056_vm3, %v16055_v29, %v16053_v20 }
 0x8ed   : > { %3650 = vmatpush1.msra.mxu0 %v11203_v44  ;;  %3723 = vmatpush1.msra.mxu1 %v3492_v4  ;;  %v3490_v44 = vsel %vm16034_vm7, %v11570_v36, %v11564_v61  ;;  %vm16062_vm7 = vmmov %vm16036_vm2  ;;  %v16067_v4 = vld [vmem:[#allocation41_spill] sm:$0xff] }
 0x8ee   : > { %3651 = vmatprep.subr.mxu0 %v11257_v21  ;;  %3724 = vmatprep.subr.mxu1 %v11576_v3  ;;  %v3433_v49 = vpop.permute.xlu0 %3432  ;;  %v3380_v28 = vsel %vm16062_vm7, %v16061_v50, %v16059_v57  ;;  %vm16087_vm7 = vmmov %vm16077_vm12 }
 0x8ef   : > { %3652 = vmatpush1.msra.mxu0 %v11244_v51  ;;  %3725 = vmatpush1.msra.mxu1 %v3491_v1  ;;  %v12061_v40 = vpop.permute.xlu1 %3530  ;;  %v3441_v51 = vsel %vm16035_vm8, %v11984_v33, %v3433_v49  ;;  %v3437_v33 = vsel %vm16058_vm15, %v16057_v53, %v16054_v47  ;;  %vm16064_vm8 = vmmov %vm16040_vm0  ;;  %v3379_v1 = vsel %vm16036_vm2, %v16067_v4, %v16065_v15 }
 0x8f0   : > { %4287 = vrot.lane.b32.xlu0 %v11261_v22, %s15323_s9  ;;  %4381 = vrot.lane.b32.xlu1 %v11686_v60, %s15926_s5  ;;  %v3436_v58 = vsel %vm16064_vm8, %v16063_v12, %v16060_v42  ;;  %v3576_v12 = vld [vmem:[%s16002_s23 + $0x30] sm:$0xff] }
 0x8f1   : > { %3653 = vmatprep.subr.mxu0 %v11279_v52  ;;  %3726 = vmatprep.subr.mxu1 %v11564_v61  ;;  %v16039_v61 = vld [vmem:[#allocation72_spill] sm:$0xff] }
 0x8f2   : > { %3654 = vmatpush1.msra.mxu0 %v11265_v11  ;;  %3727 = vmatpush1.msra.mxu1 %v3490_v44  ;;  %v12075_v21 = vpop.permute.xlu0 %3528  ;;  %v16037_v11 = vld [vmem:[#allocation71_spill] sm:$0xff]  ;;  %v3440_v36 = vsel %vm16040_vm0, %v16039_v61, %v11925_v26 }
 0x8f3   : > { %3655 = vmatprep.subr.mxu0 %v3377_v6  ;;  %3728 = vmatprep.subr.mxu1 %v3433_v49  ;;  %v12079_v3 = vpop.permute.xlu1 %3298  ;;  %v3384_v52 = vsel %vm16038_vm5, %v16037_v11, %v11917_v8  ;;  %v16066_v6 = vld [vmem:[#allocation45_spill] sm:$0xff]  ;;  %v16068_v49 = vld [vmem:[#allocation44_spill] sm:$0xff]  ;;  %vm16069_vm5 = vmmov %vm16040_vm0 }
 0x8f4   : > { %3656 = vmatpush2.msra.mxu0 %v3385_v2  ;;  %3729 = vmatpush1.msra.mxu1 %v3441_v51  ;;  %v3435_v44 = vsel %vm16069_vm5, %v16068_v49, %v16066_v6  ;;  %v16070_v11 = vld [vmem:[#allocation40_spill] sm:$0xff]  ;;  %vm16072_vm0 = vmmov %vm16036_vm2 }
 0x8f5   : > { %4375 = vrot.lane.b32.xlu0 %v11283_v31, %s15926_s5  ;;  %4289 = vrot.lane.b32.xlu1 %v11274_v55, %s15323_s9  ;;  %vm16075_vm9 = vmmov %vm16069_vm5  ;;  %v3578_v49 = vld [vmem:[%s16002_s23 + $0x40] sm:$0xff] }
 0x8f6   : > { %3657 = vmatprep.subr.mxu0 %v11917_v8  ;;  %3730 = vmatprep.subr.mxu1 %v11925_v26  ;;  %v12093_v24 = vpop.permute.xlu0 %3296  ;;  %v16045_v8 = vld [vmem:[#allocation67_spill] sm:$0xff]  ;;  %vm16090_vm2 = vmmov %vm16087_vm7 }
 0x8f7   : > { %3658 = vmatpush2.msra.mxu0 %v3384_v52  ;;  %3731 = vmatpush1.msra.mxu1 %v3440_v36  ;;  %v12095_v25 = vpop.permute.xlu1 %3526  ;;  %v3439_v32 = vsel %vm16046_vm14, %v16045_v8, %v16042_v5  ;;  %v16071_v52 = vld [vmem:[#allocation42_spill] sm:$0xff]  ;;  %v16073_v36 = vld [vmem:[#allocation60_spill] sm:$0xff]  ;;  %vm16076_vm14 = vcmask 998400   ;;  %vm16091_vm5 = vmmov %vm16090_vm2 }
 0x8f8   : > { %3659 = vmatprep.subr.mxu0 %v16041_v13  ;;  %3732 = vmatprep.subr.mxu1 %v16042_v5  ;;  %v3378_v61 = vsel %vm16072_vm0, %v16071_v52, %v16070_v11  ;;  %v16074_v13 = vld [vmem:[#allocation59_spill] sm:$0xff]  ;;  %vm16083_vm3 = vmmov %vm16076_vm14  ;;  %v3325_v53 = vsel %vm16091_vm5, %v12047_v37, %v11982_v27 }
 0x8f9   : > { %3660 = vmatpush2.msra.mxu0 %v3383_v56  ;;  %3733 = vmatpush1.msra.mxu1 %v3439_v32  ;;  %v3434_v5 = vsel %vm16075_vm9, %v16074_v13, %v16073_v36  ;;  %vm16084_vm15 = vmmov %vm16083_vm3  ;;  %v3584_v13 = vld [vmem:[%s16002_s23 + $0x70] sm:$0xff] }
 0x8fa   : > { %4283 = vrot.lane.b32.xlu0 %v11298_v54, %s15323_s9  ;;  %4377 = vrot.lane.b32.xlu1 %v11664_v62, %s15926_s5  ;;  %v3321_v26 = vpop.permute.xlu0 %3320  ;;  %vm16088_vm8 = vmmov %vm16083_vm3 }
 0x8fb   : > { %3661 = vmatprep.subr.mxu0 %v16047_v17  ;;  %3734 = vmatprep.subr.mxu1 %v16048_v10  ;;  %v12117_v35 = vpop.permute.xlu1 %3294  ;;  %v3329_v56 = vsel %vm16077_vm12, %v11998_v48, %v3321_v26  ;;  %v16078_v17 = vld [vmem:[#allocation74_spill] sm:$0xff]  ;;  %v16080_v10 = vld [vmem:[#allocation73_spill] sm:$0xff]  ;;  %v16082_v48 = vld [vmem:[#allocation75_spill] sm:$0xff] }
 0x8fc   : > { %3662 = vmatpush2.msra.mxu0 %v3382_v14  ;;  %3735 = vmatpush1.msra.mxu1 %v3438_v45  ;;  %v3328_v43 = vsel %vm16081_vm13, %v16080_v10, %v16078_v17  ;;  %v3551_v14 = vsel %vm16084_vm15, %v12034_v18, %v11966_v19  ;;  %v16086_v45 = vld [vmem:[#allocation69_spill] sm:$0xff]  ;;  %v3550_v18 = vsel %vm16088_vm8, %v12061_v40, %v12012_v38  ;;  %vm16092_vm0 = vmmov %vm16083_vm3 }
 0x8fd   : > { %3663 = vmatprep.subr.mxu0 %v16053_v20  ;;  %3736 = vmatprep.subr.mxu1 %v16054_v47  ;;  %v3327_v20 = vsel %vm16087_vm7, %v16086_v45, %v16085_v46  ;;  %vm16094_vm9 = vmmov %vm16090_vm2  ;;  %vm16102_vm7 = vcmask 1039360  }
 0x8fe   : > { %3664 = vmatpush2.msra.mxu0 %v3381_v34  ;;  %3737 = vmatpush1.msra.mxu1 %v3437_v33  ;;  %v3545_v7 = vpop.permute.xlu0 %3544  ;;  %v3549_v33 = vsel %vm16092_vm0, %v12095_v25, %v12075_v21  ;;  %vm16096_vm12 = vmmov %vm16092_vm0 }
 0x8ff   : > { %4371 = vrot.lane.b32.xlu0 %v11261_v22, %s15926_s5  ;;  %4285 = vrot.lane.b32.xlu1 %v11252_v16, %s15323_s9  ;;  %v3523_v51 = vpop.permute.xlu1 %3522  ;;  %v3553_v59 = vsel %vm16076_vm14, %v12015_v30, %v3545_v7  ;;  %v16079_v30 = vld [vmem:[#allocation76_spill] sm:$0xff]  ;;  %vm16095_vm14 = vmmov %vm16092_vm0 }
 0x900   : > { %3665 = vmatprep.subr.mxu0 %v16059_v57  ;;  %3738 = vmatprep.subr.mxu1 %v16060_v42  ;;  %vm16097_vm13 = vmmov %vm16090_vm2  ;;  %v3575_v57 = vld [vmem:[%s16002_s23 + $0x28] sm:$0xff]  ;;  %v3577_v42 = vld [vmem:[%s16002_s23 + $0x38] sm:$0xff] }
 0x901   : > { %3666 = vmatpush2.msra.mxu0 %v3380_v28  ;;  %3739 = vmatpush1.msra.mxu1 %v3436_v58  ;;  %v3323_v25 = vsel %vm16097_vm13, %v12117_v35, %v12093_v24  ;;  %v3572_v35 = vld [vmem:[%s16002_s23 + $0x10] sm:$0xff]  ;;  %vm16099_vm15 = vmmov %vm16090_vm2  ;;  %v3574_v28 = vld [vmem:[%s16002_s23 + $0x20] sm:$0xff] }
 0x902   : > { %3667 = vmatprep.subr.mxu0 %v16065_v15  ;;  %3740 = vmatprep.subr.mxu1 %v16066_v6  ;;  %v3525_v2 = vpop.permute.xlu0 %3524  ;;  %v3579_v15 = vld [vmem:[%s16002_s23 + $0x48] sm:$0xff]  ;;  %v3581_v6 = vld [vmem:[%s16002_s23 + $0x58] sm:$0xff]  ;;  %vm16103_vm8 = vmmov %vm16102_vm7 }
 0x903   : > { %3668 = vmatpush2.msra.mxu0 %v3379_v1  ;;  %3741 = vmatpush1.msra.mxu1 %v3435_v44  ;;  %v3291_v8 = vpop.permute.xlu1 %3290  ;;  %v3548_v37 = vsel %vm16095_vm14, %v3523_v51, %v3525_v2  ;;  %v16100_v1 = vld [vmem:[#allocation55_spill] sm:$0xff]  ;;  %vm16141_vm14 = vcmask 1006592  }
 0x904   : > { %4279 = vrot.lane.b32.xlu0 %v11310_v39, %s15323_s9  ;;  %4373 = vrot.lane.b32.xlu1 %v11274_v55, %s15926_s5  ;;  %v3580_v44 = vld [vmem:[%s16002_s23 + $0x50] sm:$0xff] }
 0x905   : > { %3669 = vmatprep.subr.mxu0 %v16070_v11  ;;  %3742 = vmatprep.subr.mxu1 %v16073_v36  ;;  %v3585_v11 = vld [vmem:[%s16002_s23 + $0x78] sm:$0xff]  ;;  %v3582_v36 = vld [vmem:[%s16002_s23 + $0x60] sm:$0xff] }
 0x906   : > { %3670 = vmatpush2.msra.mxu0 %v3378_v61  ;;  %3743 = vmatpush1.msra.mxu1 %v3434_v5  ;;  %v3293_v32 = vpop.permute.xlu0 %3292  ;;  %v16101_v61 = vld [vmem:[#allocation56_spill] sm:$0xff] }
 0x907   : > { %3671 = vmatprep.subr.mxu0 %v3321_v26  ;;  %3760 = vmatprep.subr.mxu1 %v3545_v7  ;;  %v3552_v26 = vsel %vm16083_vm3, %v16082_v48, %v16079_v30  ;;  %v3519_v47 = vpop.permute.xlu1 %3518  ;;  %vm16098_vm3 = vmmov %vm16092_vm0  ;;  %v3322_v7 = vsel %vm16099_vm15, %v3291_v8, %v3293_v32  ;;  %vm16139_vm0 = vcmask 1047576  }
 0x908   : > { %3672 = vmatpush2.msra.mxu0 %v3329_v56  ;;  %3761 = vmatpush2.msra.mxu1 %v3553_v59  ;;  %vm16145_vm15 = vmmov %vm16139_vm0 }
 0x909   : > { %4367 = vrot.lane.b32.xlu0 %v11298_v54, %s15926_s5  ;;  %4281 = vrot.lane.b32.xlu1 %v11292_v63, %s15323_s9 }
 0x90a   : > { %3673 = vmatprep.subr.mxu0 %v16078_v17  ;;  %3762 = vmatprep.subr.mxu1 %v16079_v30  ;;  %v3521_v29 = vpop.permute.xlu0 %3520 }
 0x90b   : > { %3674 = vmatpush2.msra.mxu0 %v3328_v43  ;;  %3763 = vmatpush2.msra.mxu1 %v3552_v26  ;;  %v3547_v40 = vsel %vm16096_vm12, %v3519_v47, %v3521_v29  ;;  %v16106_v26 = vld [vmem:[#allocation57_spill] sm:$0xff]  ;;  %vm16142_vm12 = vmmov %vm16139_vm0 }
 0x90c   : > { %3675 = vmatprep.subr.mxu0 %v16085_v46  ;;  %3764 = vmatprep.subr.mxu1 %v11966_v19  ;;  %v16089_v19 = vld [vmem:[#allocation77_spill] sm:$0xff] }
 0x90d   : > { %3676 = vmatpush2.msra.mxu0 %v3327_v20  ;;  %3765 = vmatpush2.msra.mxu1 %v3551_v14  ;;  %v3326_v34 = vsel %vm16090_vm2, %v16089_v19, %v11955_v41  ;;  %vm16104_vm2 = vmmov %vm16102_vm7  ;;  %v16107_v14 = vld [vmem:[#allocation58_spill] sm:$0xff] }
 0x90e   : > { %4363 = vrot.lane.b32.xlu0 %v11310_v39, %s15926_s5  ;;  %4369 = vrot.lane.b32.xlu1 %v11252_v16, %s15926_s5  ;;  %vm16105_vm5 = vmmov %vm16104_vm2 }
 0x90f   : > { %3677 = vmatprep.subr.mxu0 %v11955_v41  ;;  %3766 = vmatprep.subr.mxu1 %v12012_v38  ;;  %v16093_v38 = vld [vmem:[#allocation54_spill] sm:$0xff]  ;;  %v3324_v41 = vsel %vm16094_vm9, %v12079_v3, %v12027_v0  ;;  %v3570_v3 = vld [vmem:[%s16002_s23] sm:$0xff]  ;;  %vm16140_vm9 = vcmask 23552  }
 0x910   : > { %3678 = vmatpush2.msra.mxu0 %v3326_v34  ;;  %3767 = vmatpush2.msra.mxu1 %v3550_v18  ;;  %vm16143_vm13 = vmmov %vm16140_vm9 }
 0x911   : > { %3679 = vmatprep.subr.mxu0 %v11982_v27  ;;  %3768 = vmatprep.subr.mxu1 %v12075_v21  ;;  %v3515_v27 = vpop.permute.xlu1 %3514  ;;  %v3517_v21 = vpop.permute.xlu0 %3516 }
 0x912   : > { %3680 = vmatpush2.msra.mxu0 %v3325_v53  ;;  %3769 = vmatpush2.msra.mxu1 %v3549_v33 }
 0x913   : > { %4047 = vrot.lane.b32.xlu0 %v16093_v38, %s15915_s27  ;;  %4277 = vrot.lane.b32.xlu1 %v11304_v9, %s15323_s9 }
 0x914   : > { %3681 = vmatprep.subr.mxu0 %v12027_v0  ;;  %3770 = vmatprep.subr.mxu1 %v3525_v2  ;;  %v3546_v0 = vsel %vm16098_vm3, %v3515_v27, %v3517_v21  ;;  %v3583_v2 = vld [vmem:[%s16002_s23 + $0x68] sm:$0xff]  ;;  %vm16144_vm3 = vmmov %vm16141_vm14 }
 0x915   : > { %3682 = vmatpush2.msra.mxu0 %v3324_v41  ;;  %3771 = vmatpush2.msra.mxu1 %v3548_v37 }
 0x916   : > { %3683 = vmatprep.subr.mxu0 %v12093_v24  ;;  %3772 = vmatprep.subr.mxu1 %v3521_v29 }
 0x917   : > { %3684 = vmatpush2.msra.mxu0 %v3323_v25  ;;  %3773 = vmatpush2.msra.mxu1 %v3547_v40 }
 0x918   : > { %4131 = vrot.lane.b32.xlu0 %v16093_v38, %s15909_s26  ;;  %4365 = vrot.lane.b32.xlu1 %v11292_v63, %s15926_s5  ;;  %v12228_v24 = vpop.permute.xlu1 %3607 }
 0x919   : > { %3685 = vmatprep.subr.mxu0 %v3293_v32  ;;  %3774 = vmatprep.subr.mxu1 %v3517_v21 }
 0x91a   : > { %3686 = vmatpush2.msra.mxu0 %v3322_v7  ;;  %3775 = vmatpush2.msra.mxu1 %v3546_v0 }
 0x91b   : > { %3688 = vmatmul.mubr.f32.vlgmr.msra.gmra.mxu0 %v3570_v3  ;;  %3777 = vmatmul.mubr.f32.vlgmr.msra.gmra.mxu1 %v3572_v35  ;;  %v12237_v50 = vpop.permute.xlu0 %3602 }
 0x91c   : > { %3963 = vrot.lane.b32.xlu0 %v16093_v38, %s15919_s4  ;;  %4361 = vrot.lane.b32.xlu1 %v11304_v9, %s15926_s5  ;;  %v12249_v58 = vpop.permute.xlu1 %3597 }
 0x91d   : > { %3693 = vmatprep.mubr.f32.mxu0 %v3575_v57  ;;  %7585 = vmatprep.mubr.msk.f32.mxu1 %vm15285_vm1, %v3577_v42 }
 0x91f   : > { %3694 = vmatmul.mubr.f32.gmra.mxu0 %v3574_v28  ;;  %3783 = vmatmul.mubr.f32.gmra.mxu1 %v3576_v12  ;;  %v12258_v4 = vpop.permute.xlu0 %3592 }
 0x920   : > { %4383 = vrot.lane.b32.xlu0 %v16093_v38, %s15926_s5  ;;  %4049 = vrot.lane.b32.xlu1 %v16100_v1, %s15915_s27  ;;  %v3954_v51 = vpop.permute.xlu1 %3953 }
 0x921   : > { %3699 = vmatprep.mubr.f32.mxu0 %v3579_v15  ;;  %7586 = vmatprep.mubr.msk.f32.mxu1 %vm15285_vm1, %v3581_v6 }
 0x923   : > { %3700 = vmatmul.mubr.f32.gmra.mxu0 %v3578_v49  ;;  %3789 = vmatmul.mubr.f32.gmra.mxu1 %v3580_v44  ;;  %v3956_v52 = vpop.permute.xlu0 %3955 }
 0x924   : > { %4051 = vrot.lane.b32.xlu0 %v16101_v61, %s15915_s27  ;;  %4133 = vrot.lane.b32.xlu1 %v16100_v1, %s15909_s26  ;;  %v3950_v5 = vpop.permute.xlu1 %3949  ;;  %v3992_v59 = vsel %vm16102_vm7, %v3954_v51, %v3956_v52  ;;  %vm16147_vm7 = vmmov %vm16140_vm9 }
 0x925   : > { %3705 = vmatprep.mubr.f32.mxu0 %v3583_v2  ;;  %7587 = vmatprep.mubr.msk.f32.mxu1 %vm15285_vm1, %v3585_v11 }
 0x926   : > { %4491 = vmatprep.subr.mxu0 %v3956_v52 }
 0x927   : > { %3706 = vmatmul.mubr.f32.gmra.mxu0 %v3582_v36  ;;  %3795 = vmatmul.mubr.f32.gmra.mxu1 %v3584_v13  ;;  %v3952_v56 = vpop.permute.xlu0 %3951 }
 0x928   : > { %4135 = vrot.lane.b32.xlu0 %v16101_v61, %s15909_s26  ;;  %3965 = vrot.lane.b32.xlu1 %v16100_v1, %s15919_s4  ;;  %v3991_v8 = vsel %vm16103_vm8, %v3950_v5, %v3952_v56  ;;  %v3946_v32 = vpop.permute.xlu1 %3945  ;;  %vm16148_vm8 = vmmov %vm16147_vm7 }
 0x929   : > { %4492 = vmatpush1.msra.mxu0 %v3992_v59 }
 0x92a   : > { %4493 = vmatprep.subr.mxu0 %v3952_v56 }
 0x92b   : > { %4494 = vmatpush1.msra.mxu0 %v3991_v8  ;;  %v3948_v17 = vpop.permute.xlu0 %3947 }
 0x92c   : > { %3967 = vrot.lane.b32.xlu0 %v16101_v61, %s15919_s4  ;;  %4385 = vrot.lane.b32.xlu1 %v16100_v1, %s15926_s5  ;;  %v3990_v30 = vsel %vm16104_vm2, %v3946_v32, %v3948_v17  ;;  %v3942_v10 = vpop.permute.xlu1 %3941  ;;  %vm16149_vm2 = vmmov %vm16144_vm3 }
 0x92d   : > { %4495 = vmatprep.subr.mxu0 %v3948_v17 }
 0x92e   : > { %4496 = vmatpush1.msra.mxu0 %v3990_v30 }
 0x92f   : > { %v3944_v43 = vpop.permute.xlu0 %3943 }
 0x930   : > { %4387 = vrot.lane.b32.xlu0 %v16101_v61, %s15926_s5  ;;  %4217 = vrot.lane.b32.xlu1 %v16100_v1, %s15328_s7  ;;  %v3989_v48 = vsel %vm16105_vm5, %v3942_v10, %v3944_v43  ;;  %v12330_v46 = vpop.permute.xlu1 %4045  ;;  %vm16150_vm5 = vmmov %vm16139_vm0 }
 0x931   : > { %4497 = vmatprep.subr.mxu0 %v3944_v43 }
 0x932   : > { %4498 = vmatpush1.msra.mxu0 %v3989_v48 }
 0x933   : > { %v12332_v45 = vpop.permute.xlu0 %4043 }
 0x934   : > { %4219 = vrot.lane.b32.xlu0 %v16101_v61, %s15328_s7  ;;  %4053 = vrot.lane.b32.xlu1 %v16106_v26, %s15915_s27  ;;  %v12334_v20 = vpop.permute.xlu1 %4041 }
 0x937   : > { %v12336_v47 = vpop.permute.xlu0 %4039 }
 0x938   : > { %4055 = vrot.lane.b32.xlu0 %v16107_v14, %s15915_s27  ;;  %4137 = vrot.lane.b32.xlu1 %v16106_v26, %s15909_s26  ;;  %v12338_v29 = vpop.permute.xlu1 %4037 }
 0x93b   : > { %v12340_v18 = vpop.permute.xlu0 %4035 }
 0x93c   : > { %4139 = vrot.lane.b32.xlu0 %v16107_v14, %s15909_s26  ;;  %3969 = vrot.lane.b32.xlu1 %v16106_v26, %s15919_s4  ;;  %v12342_v19 = vpop.permute.xlu1 %4033 }
 0x93f   : > { %v12344_v34 = vpop.permute.xlu0 %4031 }
 0x940   : > { %3971 = vrot.lane.b32.xlu0 %v16107_v14, %s15919_s4  ;;  %4389 = vrot.lane.b32.xlu1 %v16106_v26, %s15926_s5  ;;  %v12346_v53 = vpop.permute.xlu1 %4029 }
 0x943   : > { %v12348_v33 = vpop.permute.xlu0 %4027 }
 0x944   : > { %4391 = vrot.lane.b32.xlu0 %v16107_v14, %s15926_s5  ;;  %4221 = vrot.lane.b32.xlu1 %v16106_v26, %s15328_s7  ;;  %v12350_v41 = vpop.permute.xlu1 %4025 }
 0x947   : > { %v12352_v37 = vpop.permute.xlu0 %4127 }
 0x948   : > { %4223 = vrot.lane.b32.xlu0 %v16107_v14, %s15328_s7  ;;  %4305 = vrot.lane.b32.xlu1 %v16106_v26, %s15323_s9  ;;  %v12354_v27 = vpop.permute.xlu1 %4129 }
 0x94b   : > { %v12356_v40 = vpop.permute.xlu0 %4123 }
 0x94c   : > { %4307 = vrot.lane.b32.xlu0 %v16107_v14, %s15323_s9  ;;  %v12358_v21 = vpop.permute.xlu1 %4125 }
 0x94f   : > { %v12360_v25 = vpop.permute.xlu0 %4119 }
 0x950   : > { %v12362_v0 = vpop.permute.xlu1 %4121 }
 0x953   : > { %v12364_v3 = vpop.permute.xlu0 %4115 }
 0x954   : > { %v12366_v35 = vpop.permute.xlu1 %4117 }
 0x957   : > { %v12368_v7 = vpop.permute.xlu0 %4111 }
 0x958   : > { %v12370_v57 = vpop.permute.xlu1 %4113 }
 0x95b   : > { %v12372_v42 = vpop.permute.xlu0 %3959 }
 0x95c   : > { %16108 = vst [vmem:[#allocation71_spill] sm:$0xff] %v12372_v42  ;;  %v12374_v28 = vpop.permute.xlu1 %3961 }
 0x95f   : > { %v12376_v12 = vpop.permute.xlu0 %4291 }
 0x960   : > { %16109 = vst [vmem:[#allocation72_spill] sm:$0xff] %v12376_v12  ;;  %v12378_v15 = vpop.permute.xlu1 %4109 }
 0x963   : > { %v12380_v6 = vpop.permute.xlu0 %4379 }
 0x964   : > { %16110 = vst [vmem:[#allocation66_spill] sm:$0xff] %v12380_v6  ;;  %v12382_v49 = vpop.permute.xlu1 %3957 }
 0x965   : > { %16111 = vst [vmem:[#allocation68_spill] sm:$0xff] %v12382_v49 }
 0x967   : > { %v12384_v44 = vpop.permute.xlu0 %4287 }
 0x968   : > { %16112 = vst [vmem:[#allocation65_spill] sm:$0xff] %v12384_v44  ;;  %v12386_v51 = vpop.permute.xlu1 %4381 }
 0x969   : > { %16113 = vst [vmem:[#allocation67_spill] sm:$0xff] %v12386_v51 }
 0x96b   : > { %v12388_v2 = vpop.permute.xlu0 %4375 }
 0x96c   : > { %16114 = vst [vmem:[#allocation62_spill] sm:$0xff] %v12388_v2  ;;  %v12391_v59 = vpop.permute.xlu1 %4289 }
 0x96d   : > { %16115 = vst [vmem:[#allocation64_spill] sm:$0xff] %v12391_v59 }
 0x96f   : > { %v12394_v30 = vpop.permute.xlu0 %4283 }
 0x970   : > { %16116 = vst [vmem:[#allocation61_spill] sm:$0xff] %v12394_v30 }
 0x9db   : > { %v3689_v11 = vpop.f32.mrf.mxu0  ;;  %v3778_v52 = vpop.f32.mrf.mxu1 }
 0x9dc   : > { %v3690_v36 = vadd.f32 %v3689_v11, %v12258_v4 }
 0x9dd   : > { %v3691_v13 = vpop.f32.mrf.mxu0  ;;  %v3780_v5 = vpop.f32.mrf.mxu1 }
 0x9de   : > { %v3692_v56 = vadd.f32 %v3691_v13, %v12258_v4  ;;  %v3779_v8 = vadd.f32 %v3778_v52, %v3690_v36  ;;  %v12399_v4 = vpop.permute.xlu1 %4377 }
 0x9df   : > { %v3695_v32 = vpop.f32.mrf.mxu0  ;;  %v3784_v17 = vpop.f32.mrf.mxu1  ;;  %16117 = vst [vmem:[#allocation63_spill] sm:$0xff] %v12399_v4 }
 0x9e0   : > { %v3801_v10 = vmax.f32 %v3779_v8, 0.0  ;;  %v3696_v43 = vadd.f32 %v3695_v32, %v12249_v58  ;;  %v3781_v48 = vadd.f32 %v3780_v5, %v3692_v56  ;;  %v12403_v56 = vpop.permute.xlu0 %4371 }
 0x9e1   : > { %v3697_v44 = vpop.f32.mrf.mxu0  ;;  %v3786_v2 = vpop.f32.mrf.mxu1  ;;  %16118 = vst [vmem:[#allocation51_spill] sm:$0xff] %v12403_v56 }
 0x9e2   : > { %v3802_v12 = vmax.f32 %v3781_v48, 0.0  ;;  %v3698_v11 = vadd.f32 %v3697_v44, %v12249_v58  ;;  %v3785_v6 = vadd.f32 %v3784_v17, %v3696_v43  ;;  %3841 = vrot.lane.b32.xlu1 %v3801_v10, %s15885_s28 }
 0x9e3   : > { %v3701_v59 = vpop.f32.mrf.mxu0  ;;  %v3790_v51 = vpop.f32.mrf.mxu1 }
 0x9e4   : > { %v3803_v52 = vmax.f32 %v3785_v6, 0.0  ;;  %v3702_v36 = vadd.f32 %v3701_v59, %v12237_v50  ;;  %v3787_v13 = vadd.f32 %v3786_v2, %v3698_v11  ;;  %3843 = vrot.lane.b32.xlu0 %v3802_v12, %s15885_s28  ;;  %v12409_v59 = vpop.permute.xlu1 %4285 }
 0x9e5   : > { %v3703_v8 = vpop.f32.mrf.mxu0  ;;  %v3792_v5 = vpop.f32.mrf.mxu1  ;;  %16119 = vst [vmem:[#allocation53_spill] sm:$0xff] %v12409_v59 }
 0x9e6   : > { %v3804_v32 = vmax.f32 %v3787_v13, 0.0  ;;  %v3704_v58 = vadd.f32 %v3703_v8, %v12237_v50  ;;  %v3791_v44 = vadd.f32 %v3790_v51, %v3702_v36  ;;  %3845 = vrot.lane.b32.xlu1 %v3803_v52, %s15885_s28  ;;  %v12413_v50 = vpop.permute.xlu0 %4279 }
 0x9e7   : > { %v3707_v17 = vpop.f32.mrf.mxu0  ;;  %v3796_v10 = vpop.f32.mrf.mxu1  ;;  %16120 = vst [vmem:[#allocation50_spill] sm:$0xff] %v12413_v50 }
 0x9e8   : > { %v3805_v43 = vmax.f32 %v3791_v44, 0.0  ;;  %v3708_v6 = vadd.f32 %v3707_v17, %v12228_v24  ;;  %v3793_v48 = vadd.f32 %v3792_v5, %v3704_v58  ;;  %3847 = vrot.lane.b32.xlu0 %v3804_v32, %s15885_s28  ;;  %v12417_v8 = vpop.permute.xlu1 %4373 }
 0x9e9   : > { %v3709_v2 = vpop.f32.mrf.mxu0  ;;  %v3798_v12 = vpop.f32.mrf.mxu1  ;;  %16121 = vst [vmem:[#allocation52_spill] sm:$0xff] %v12417_v8 }
 0x9ea   : > { %v3806_v11 = vmax.f32 %v3793_v48, 0.0  ;;  %v3710_v13 = vadd.f32 %v3709_v2, %v12228_v24  ;;  %v3797_v30 = vadd.f32 %v3796_v10, %v3708_v6  ;;  %3849 = vrot.lane.b32.xlu1 %v3805_v43, %s15885_s28  ;;  %v12420_v5 = vpop.permute.xlu0 %4367 }
 0x9eb   : > { %16122 = vst [vmem:[#allocation47_spill] sm:$0xff] %v12420_v5 }
 0x9ec   : > { %v3807_v51 = vmax.f32 %v3797_v30, 0.0  ;;  %v3799_v52 = vadd.f32 %v3798_v12, %v3710_v13  ;;  %3851 = vrot.lane.b32.xlu0 %v3806_v11, %s15885_s28  ;;  %v12426_v24 = vpop.permute.xlu1 %4281 }
 0x9ed   : > { %16123 = vst [vmem:[#allocation49_spill] sm:$0xff] %v12426_v24 }
 0x9ee   : > { %v3808_v36 = vmax.f32 %v3799_v52, 0.0  ;;  %3853 = vrot.lane.b32.xlu1 %v3807_v51, %s15885_s28  ;;  %v12428_v30 = vpop.permute.xlu0 %4363 }
 0x9ef   : > { %16124 = vst [vmem:[#allocation46_spill] sm:$0xff] %v12428_v30 }
 0x9f0   : > { %3855 = vrot.lane.b32.xlu0 %v3808_v36, %s15885_s28  ;;  %v12430_v32 = vpop.permute.xlu1 %4369 }
 0x9f1   : > { %16125 = vst [vmem:[#allocation48_spill] sm:$0xff] %v12430_v32 }
 0x9f2   : > { %4213 = vrot.lane.b32.xlu1 %v11686_v60, %s15328_s7  ;;  %v12432_v58 = vpop.permute.xlu0 %4047 }
 0x9f4   : > { %4215 = vrot.lane.b32.xlu0 %v16093_v38, %s15328_s7  ;;  %v12434_v44 = vpop.permute.xlu1 %4277 }
 0x9f5   : > { %16126 = vst [vmem:[#allocation43_spill] sm:$0xff] %v12434_v44 }
 0x9f6   : > { %v12436_v17 = vpop.permute.xlu0 %4131 }
 0x9f8   : > { %v12438_v10 = vpop.permute.xlu1 %4365 }
 0x9f9   : > { %16127 = vst [vmem:[#allocation45_spill] sm:$0xff] %v12438_v10 }
 0x9fa   : > { %v12440_v43 = vpop.permute.xlu0 %3963 }
 0x9fc   : > { %v12442_v6 = vpop.permute.xlu1 %4361 }
 0x9fd   : > { %16128 = vst [vmem:[#allocation41_spill] sm:$0xff] %v12442_v6 }
 0x9fe   : > { %v12444_v48 = vpop.permute.xlu0 %4383 }
 0x9ff   : > { %16129 = vst [vmem:[#allocation44_spill] sm:$0xff] %v12444_v48 }
 0xa00   : > { %v12446_v2 = vpop.permute.xlu1 %4049 }
 0xa02   : > { %v12448_v12 = vpop.permute.xlu0 %4051 }
 0xa04   : > { %v12450_v11 = vpop.permute.xlu1 %4133 }
 0xa06   : > { %v12452_v13 = vpop.permute.xlu0 %4135 }
 0xa08   : > { %v12454_v51 = vpop.permute.xlu1 %3965 }
 0xa0a   : > { %v12456_v52 = vpop.permute.xlu0 %3967 }
 0xa0c   : > { %v12458_v36 = vpop.permute.xlu1 %4385 }
 0xa0d   : > { %16130 = vst [vmem:[#allocation40_spill] sm:$0xff] %v12458_v36 }
 0xa0e   : > { %v12460_v30 = vpop.permute.xlu0 %4387 }
 0xa0f   : > { %16131 = vst [vmem:[#allocation42_spill] sm:$0xff] %v12460_v30 }
 0xa10   : > { %v12462_v44 = vpop.permute.xlu1 %4217 }
 0xa11   : > { %16132 = vst [vmem:[#allocation60_spill] sm:$0xff] %v12462_v44 }
 0xa12   : > { %v12464_v6 = vpop.permute.xlu0 %4219 }
 0xa13   : > { %16133 = vst [vmem:[#allocation59_spill] sm:$0xff] %v12464_v6 }
 0xa14   : > { %v12466_v50 = vpop.permute.xlu1 %4053 }
 0xa16   : > { %v12468_v10 = vpop.permute.xlu0 %4055 }
 0xa18   : > { %v12470_v5 = vpop.permute.xlu1 %4137 }
 0xa1a   : > { %v12472_v24 = vpop.permute.xlu0 %4139 }
 0xa1c   : > { %v12474_v32 = vpop.permute.xlu1 %3969 }
 0xa1e   : > { %v12476_v56 = vpop.permute.xlu0 %3971 }
 0xa20   : > { %v12478_v59 = vpop.permute.xlu1 %4389 }
 0xa21   : > { %16134 = vst [vmem:[#allocation74_spill] sm:$0xff] %v12478_v59 }
 0xa22   : > { %v12480_v8 = vpop.permute.xlu0 %4391 }
 0xa24   : > { %v12482_v4 = vpop.permute.xlu1 %4221 }
 0xa25   : > { %16135 = vst [vmem:[#allocation76_spill] sm:$0xff] %v12482_v4 }
 0xa26   : > { %v12484_v44 = vpop.permute.xlu0 %4223 }
 0xa27   : > { %16136 = vst [vmem:[#allocation73_spill] sm:$0xff] %v12484_v44 }
 0xa28   : > { %v12486_v6 = vpop.permute.xlu1 %4305 }
 0xa29   : > { %16137 = vst [vmem:[#allocation75_spill] sm:$0xff] %v12486_v6 }
 0xa2a   : > { %v12488_v48 = vpop.permute.xlu0 %4307 }
 0xa2b   : > { %16138 = vst [vmem:[#allocation70_spill] sm:$0xff] %v12488_v48  ;;  %v16146_v48 = vmov 0.0  }
 0xa54   : > { %v3842_v36 = vpop.permute.xlu1 %3841 }
 0xa55   : > { %3885 = vst.msk [vmem:[#allocation2 + $0x100] sm:$0xff] %vm16139_vm0, %v3842_v36  ;;  %vm16151_vm0 = vmmov %vm16147_vm7 }
 0xa56   : > { %v3844_v30 = vpop.permute.xlu0 %3843 }
 0xa57   : > { %v3857_v49 = vsel %vm16140_vm9, %v3842_v36, %v3844_v30  ;;  %vm16152_vm9 = vmmov %vm16149_vm2 }
 0xa58   : > { %3886 = vst.msk [vmem:[#allocation2 + $0x108] sm:$0xff] %vm16141_vm14, %v3857_v49  ;;  %v3846_v42 = vpop.permute.xlu1 %3845  ;;  %vm16153_vm14 = vcmask 1031168  }
 0xa59   : > { %3887 = vst.msk [vmem:[#allocation2 + $0x120] sm:$0xff] %vm16142_vm12, %v3846_v42  ;;  %vm16154_vm12 = vmmov %vm16153_vm14 }
 0xa5a   : > { %v3848_v59 = vpop.permute.xlu0 %3847 }
 0xa5b   : > { %v3858_v4 = vsel %vm16143_vm13, %v3846_v42, %v3848_v59  ;;  %vm16155_vm13 = vmmov %vm16154_vm12 }
 0xa5c   : > { %3888 = vst.msk [vmem:[#allocation2 + $0x128] sm:$0xff] %vm16144_vm3, %v3858_v4  ;;  %v3850_v44 = vpop.permute.xlu1 %3849  ;;  %v12496_v6 = vld [vmem:[#allocation2 + $0x100] sm:$0xff]  ;;  %vm16156_vm3 = vmmov %vm16154_vm12 }
 0xa5d   : > { %3889 = vst.msk [vmem:[#allocation2 + $0x140] sm:$0xff] %vm16145_vm15, %v3850_v44  ;;  %4141 = vrot.lane.b32.xlu1 %v12496_v6, %s15909_s26  ;;  %vm16157_vm15 = vmmov %vm16156_vm3 }
 0xa5e   : > { %5476 = vst.msk [vmem:[#allocation2 + $0x100] sm:$0xff] %vm16147_vm7, %v16146_v48  ;;  %v3852_v49 = vpop.permute.xlu0 %3851  ;;  %vm16158_vm7 = vmmov %vm16156_vm3 }
 0xa5f   : > { %v12503_v30 = vld [vmem:[#allocation2 + $0x108] sm:$0xff]  ;;  %v3859_v36 = vsel %vm16148_vm8, %v3850_v44, %v3852_v49  ;;  %vm16159_vm8 = vmmov %vm16156_vm3 }
 0xa60   : > { %5494 = vst.msk [vmem:[#allocation2 + $0x108] sm:$0xff] %vm15286_vm11, %v16146_v48  ;;  %v3854_v42 = vpop.permute.xlu1 %3853  ;;  %4143 = vrot.lane.b32.xlu0 %v12503_v30, %s15909_s26 }
 0xa61   : > { %3890 = vst.msk [vmem:[#allocation2 + $0x148] sm:$0xff] %vm16149_vm2, %v3859_v36  ;;  %3973 = vrot.lane.b32.xlu1 %v12496_v6, %s15919_s4  ;;  %vm16160_vm2 = vmmov %vm16156_vm3 }
 0xa62   : > { %3891 = vst.msk [vmem:[#allocation2 + $0x160] sm:$0xff] %vm16150_vm5, %v3854_v42  ;;  %v3856_v4 = vpop.permute.xlu0 %3855  ;;  %vm16166_vm5 = vcmask 1022976  }
 0xa63   : > { %v3860_v59 = vsel %vm16151_vm0, %v3854_v42, %v3856_v4  ;;  %v12540_v4 = vld [vmem:[#allocation2 + $0x128] sm:$0xff]  ;;  %vm16167_vm0 = vmmov %vm16166_vm5 }
 0xa64   : > { %3892 = vst.msk [vmem:[#allocation2 + $0x168] sm:$0xff] %vm16152_vm9, %v3860_v59  ;;  %3975 = vrot.lane.b32.xlu0 %v12503_v30, %s15919_s4  ;;  %v12537_v42 = vld [vmem:[#allocation2 + $0x140] sm:$0xff]  ;;  %vm16168_vm9 = vmmov %vm16167_vm0 }
 0xa65   : > { %4057 = vrot.lane.b32.xlu1 %v12496_v6, %s15915_s27  ;;  %v12545_v59 = vld [vmem:[#allocation2 + $0x120] sm:$0xff] }
 0xa68   : > { %4059 = vrot.lane.b32.xlu0 %v12503_v30, %s15915_s27  ;;  %v12534_v36 = vld [vmem:[#allocation2 + $0x148] sm:$0xff] }
 0xa69   : > { %4225 = vrot.lane.b32.xlu1 %v12496_v6, %s15328_s7  ;;  %v12529_v49 = vld [vmem:[#allocation2 + $0x160] sm:$0xff] }
 0xa6b   : > { %v12524_v44 = vld [vmem:[#allocation2 + $0x168] sm:$0xff] }
 0xa6c   : > { %4227 = vrot.lane.b32.xlu0 %v12503_v30, %s15328_s7  ;;  %4499 = vmatprep.subr.mxu0 %v12524_v44 }
 0xa6d   : > { %4309 = vrot.lane.b32.xlu1 %v12496_v6, %s15323_s9  ;;  %4500 = vmatpush1.msra.mxu0 %v12529_v49 }
 0xa6e   : > { %4501 = vmatprep.subr.mxu0 %v12534_v36 }
 0xa6f   : > { %4502 = vmatpush1.msra.mxu0 %v12537_v42 }
 0xa70   : > { %4311 = vrot.lane.b32.xlu0 %v12503_v30, %s15323_s9  ;;  %4503 = vmatprep.subr.mxu0 %v12540_v4 }
 0xa71   : > { %4145 = vrot.lane.b32.xlu1 %v12545_v59, %s15909_s26  ;;  %4504 = vmatpush1.msra.mxu0 %v12545_v59 }
 0xa72   : > { %4505 = vmatprep.subr.mxu0 %v12503_v30 }
 0xa73   : > { %4506 = vmatpush1.msra.mxu0 %v12496_v6 }
 0xa74   : > { %4147 = vrot.lane.b32.xlu0 %v12540_v4, %s15909_s26  ;;  %4507 = vmatprep.subr.mxu0 %v16107_v14  ;;  %v4079_v14 = vsel %vm16154_vm12, %v12446_v2, %v12448_v12  ;;  %v4076_v2 = vsel %vm16157_vm15, %v12338_v29, %v12336_v47  ;;  %vm16170_vm12 = vcmask 1039360   ;;  %vm16173_vm15 = vmmov %vm16167_vm0 }
 0xa75   : > { %3977 = vrot.lane.b32.xlu1 %v12545_v59, %s15919_s4  ;;  %4508 = vmatpush1.msra.mxu0 %v16106_v26  ;;  %v4080_v26 = vsel %vm16153_vm14, %v12466_v50, %v12468_v10  ;;  %v4078_v50 = vsel %vm16155_vm13, %v12330_v46, %v12432_v58  ;;  %v4075_v46 = vsel %vm16158_vm7, %v12342_v19, %v12340_v18  ;;  %vm16169_vm14 = vmmov %vm16167_vm0 }
 0xa76   : > { %4509 = vmatprep.subr.mxu0 %v16101_v61  ;;  %vm16171_vm13 = vmmov %vm16167_vm0 }
 0xa77   : > { %4510 = vmatpush1.msra.mxu0 %v16100_v1 }
 0xa78   : > { %3979 = vrot.lane.b32.xlu0 %v12540_v4, %s15919_s4  ;;  %4511 = vmatprep.subr.mxu0 %v16093_v38 }
 0xa79   : > { %4061 = vrot.lane.b32.xlu1 %v12545_v59, %s15915_s27  ;;  %4512 = vmatpush1.msra.mxu0 %v11686_v60 }
 0xa7a   : > { %4513 = vmatprep.subr.mxu0 %v11671_v23 }
 0xa7b   : > { %4514 = vmatpush1.msra.mxu0 %v11664_v62 }
 0xa7c   : > { %4063 = vrot.lane.b32.xlu0 %v12540_v4, %s15915_s27  ;;  %4515 = vmatprep.subr.mxu0 %v11283_v31 }
 0xa7d   : > { %4229 = vrot.lane.b32.xlu1 %v12545_v59, %s15328_s7  ;;  %4516 = vmatpush1.msra.mxu0 %v11274_v55 }
 0xa7e   : > { %4517 = vmatprep.subr.mxu0 %v11261_v22 }
 0xa7f   : > { %4518 = vmatpush1.msra.mxu0 %v11252_v16 }
 0xa80   : > { %4231 = vrot.lane.b32.xlu0 %v12540_v4, %s15328_s7  ;;  %4519 = vmatprep.subr.mxu0 %v11298_v54 }
 0xa81   : > { %4313 = vrot.lane.b32.xlu1 %v12545_v59, %s15323_s9  ;;  %4520 = vmatpush1.msra.mxu0 %v11292_v63 }
 0xa82   : > { %4521 = vmatprep.subr.mxu0 %v11310_v39 }
 0xa83   : > { %4522 = vmatpush1.msra.mxu0 %v11304_v9 }
 0xa84   : > { %4315 = vrot.lane.b32.xlu0 %v12540_v4, %s15323_s9  ;;  %4523 = vmatprep.subr.mxu0 %v12468_v10  ;;  %v4077_v10 = vsel %vm16156_vm3, %v12334_v20, %v12332_v45  ;;  %v4073_v20 = vsel %vm16160_vm2, %v12350_v41, %v12348_v33  ;;  %vm16172_vm3 = vmmov %vm16170_vm12 }
 0xa85   : > { %4149 = vrot.lane.b32.xlu1 %v12537_v42, %s15909_s26  ;;  %4524 = vmatpush2.msra.mxu0 %v4080_v26  ;;  %vm16174_vm7 = vmmov %vm16172_vm3 }
 0xa86   : > { %4525 = vmatprep.subr.mxu0 %v12448_v12  ;;  %vm16176_vm2 = vmmov %vm16167_vm0 }
 0xa87   : > { %4526 = vmatpush2.msra.mxu0 %v4079_v14 }
 0xa88   : > { %4151 = vrot.lane.b32.xlu0 %v12534_v36, %s15909_s26  ;;  %4527 = vmatprep.subr.mxu0 %v12432_v58 }
 0xa89   : > { %3981 = vrot.lane.b32.xlu1 %v12537_v42, %s15919_s4  ;;  %4528 = vmatpush2.msra.mxu0 %v4078_v50 }
 0xa8a   : > { %4529 = vmatprep.subr.mxu0 %v12332_v45  ;;  %v4074_v45 = vsel %vm16159_vm8, %v12346_v53, %v12344_v34  ;;  %vm16175_vm8 = vmmov %vm16167_vm0 }
 0xa8b   : > { %4530 = vmatpush2.msra.mxu0 %v4077_v10 }
 0xa8c   : > { %3983 = vrot.lane.b32.xlu0 %v12534_v36, %s15919_s4  ;;  %4531 = vmatprep.subr.mxu0 %v12336_v47  ;;  %v4446_v47 = vld [vmem:[%s16161_s2 + $0x8] sm:$0xff] }
 0xa8d   : > { %4065 = vrot.lane.b32.xlu1 %v12537_v42, %s15915_s27  ;;  %4532 = vmatpush2.msra.mxu0 %v4076_v2 }
 0xa8e   : > { %4533 = vmatprep.subr.mxu0 %v12340_v18  ;;  %4555 = vmatprep.mubr.f32.mxu0 %v4446_v47 }
 0xa8f   : > { %4534 = vmatpush2.msra.mxu0 %v4075_v46 }
 0xa90   : > { %4067 = vrot.lane.b32.xlu0 %v12534_v36, %s15915_s27  ;;  %4535 = vmatprep.subr.mxu0 %v12344_v34 }
 0xa91   : > { %4233 = vrot.lane.b32.xlu1 %v12537_v42, %s15328_s7  ;;  %4536 = vmatpush2.msra.mxu0 %v4074_v45 }
 0xa92   : > { %4537 = vmatprep.subr.mxu0 %v12348_v33 }
 0xa93   : > { %4538 = vmatpush2.msra.mxu0 %v4073_v20 }
 0xa94   : > { %4235 = vrot.lane.b32.xlu0 %v12534_v36, %s15328_s7 }
 0xa95   : > { %4317 = vrot.lane.b32.xlu1 %v12537_v42, %s15323_s9 }
 0xa98   : > { %4319 = vrot.lane.b32.xlu0 %v12534_v36, %s15323_s9 }
 0xa99   : > { %4153 = vrot.lane.b32.xlu1 %v12529_v49, %s15909_s26 }
 0xa9c   : > { %4155 = vrot.lane.b32.xlu0 %v12524_v44, %s15909_s26 }
 0xa9d   : > { %4301 = vrot.lane.b32.xlu1 %v16100_v1, %s15323_s9 }
 0xaa0   : > { %4303 = vrot.lane.b32.xlu0 %v16101_v61, %s15323_s9  ;;  %v4465_v61 = vld [vmem:[%s16165_s1 + $0x10] sm:$0xff] }
 0xaa1   : > { %3985 = vrot.lane.b32.xlu1 %v12529_v49, %s15919_s4 }
 0xaa4   : > { %3987 = vrot.lane.b32.xlu0 %v12524_v44, %s15919_s4 }
 0xaa5   : > { %4069 = vrot.lane.b32.xlu1 %v12529_v49, %s15915_s27 }
 0xaa8   : > { %4211 = vrot.lane.b32.xlu0 %v11671_v23, %s15328_s7 }
 0xaa9   : > { %4237 = vrot.lane.b32.xlu1 %v12529_v49, %s15328_s7 }
 0xaac   : > { %4299 = vrot.lane.b32.xlu0 %v16093_v38, %s15323_s9  ;;  %v4464_v38 = vld [vmem:[%s16165_s1 + $0x8] sm:$0xff]  ;;  %s16327_s1 = sld [smem:[#allocation87_spill]] }
 0xaad   : > { %4321 = vrot.lane.b32.xlu1 %v12529_v49, %s15323_s9 }
 0xab0   : > { %4207 = vrot.lane.b32.xlu0 %v11283_v31, %s15328_s7  ;;  %v4448_v31 = vld [vmem:[%s16161_s2 + $0x18] sm:$0xff] }
 0xab1   : > { %4209 = vrot.lane.b32.xlu1 %v11664_v62, %s15328_s7  ;;  %4638 = vmatprep.mubr.f32.mxu1 %v4448_v31 }
 0xab4   : > { %4071 = vrot.lane.b32.xlu0 %v12524_v44, %s15915_s27 }
 0xab5   : > { %4297 = vrot.lane.b32.xlu1 %v11686_v60, %s15323_s9 }
 0xab8   : > { %4295 = vrot.lane.b32.xlu0 %v11671_v23, %s15323_s9  ;;  %v4463_v23 = vld [vmem:[%s16164_s6] sm:$0xff] }
 0xab9   : > { %4205 = vrot.lane.b32.xlu1 %v11274_v55, %s15328_s7 }
 0xabc   : > { %4203 = vrot.lane.b32.xlu0 %v11261_v22, %s15328_s7  ;;  %v12691_v22 = vpop.permute.xlu1 %4213 }
 0xabd   : > { %4293 = vrot.lane.b32.xlu1 %v11664_v62, %s15323_s9  ;;  %16162 = vst [vmem:[#allocation69_spill] sm:$0xff] %v12691_v22 }
 0xac0   : > { %4239 = vrot.lane.b32.xlu0 %v12524_v44, %s15328_s7 }
 0xac1   : > { %4201 = vrot.lane.b32.xlu1 %v11252_v16, %s15328_s7  ;;  %v12697_v16 = vpop.permute.xlu0 %4215 }
 0xac2   : > { %16163 = vst [vmem:[#allocation77_spill] sm:$0xff] %v12697_v16 }
 0xac4   : > { %4323 = vrot.lane.b32.xlu0 %v12524_v44, %s15323_s9 }
 0xac5   : > { %4405 = vrot.lane.b32.xlu1 %v12529_v49, %s15926_s5 }
 0xac8   : > { %4199 = vrot.lane.b32.xlu0 %v11298_v54, %s15328_s7 }
 0xac9   : > { %4197 = vrot.lane.b32.xlu1 %v11292_v63, %s15328_s7 }
 0xacc   : > { %4403 = vrot.lane.b32.xlu0 %v12534_v36, %s15926_s5 }
 0xacd   : > { %4401 = vrot.lane.b32.xlu1 %v12537_v42, %s15926_s5 }
 0xacf   : > { %v4142_v55 = vpop.permute.xlu1 %4141 }
 0xad0   : > { %4195 = vrot.lane.b32.xlu0 %v11310_v39, %s15328_s7 }
 0xad1   : > { %4193 = vrot.lane.b32.xlu1 %v11304_v9, %s15328_s7 }
 0xad2   : > { %v4144_v63 = vpop.permute.xlu0 %4143 }
 0xad3   : > { %v12706_v54 = vpop.permute.xlu1 %3973  ;;  %v4165_v48 = vsel %vm16169_vm14, %v4142_v55, %v4144_v63  ;;  %vm16179_vm14 = vmmov %vm16167_vm0 }
 0xad4   : > { %4407 = vrot.lane.b32.xlu0 %v12524_v44, %s15926_s5 }
 0xad5   : > { %4397 = vrot.lane.b32.xlu1 %v12545_v59, %s15926_s5 }
 0xad6   : > { %v12712_v62 = vpop.permute.xlu0 %3975 }
 0xad7   : > { %v12714_v39 = vpop.permute.xlu1 %4057 }
 0xad8   : > { %4399 = vrot.lane.b32.xlu0 %v12540_v4, %s15926_s5 }
 0xad9   : > { %4393 = vrot.lane.b32.xlu1 %v12496_v6, %s15926_s5 }
 0xada   : > { %v12720_v9 = vpop.permute.xlu0 %4059 }
 0xadb   : > { %v12725_v60 = vpop.permute.xlu1 %4225 }
 0xadc   : > { %4395 = vrot.lane.b32.xlu0 %v12503_v30, %s15926_s5 }
 0xadd   : > { %4468 = vperm.xlu1 %8089, %v4463_v23  }
 0xade   : > { %v12732_v1 = vpop.permute.xlu0 %4227 }
 0xadf   : > { %v12737_v29 = vpop.permute.xlu1 %4309 }
 0xae0   : > { %4473 = vperm.xlu0 %8088, %v4464_v38  }
 0xae1   : > { %4478 = vperm.xlu1 %8089, %v4465_v61  }
 0xae2   : > { %v12739_v18 = vpop.permute.xlu0 %4311 }
 0xae3   : > { %v4146_v19 = vpop.permute.xlu1 %4145 }
 0xae6   : > { %v4148_v34 = vpop.permute.xlu0 %4147 }
 0xae7   : > { %v3978_v53 = vpop.permute.xlu1 %3977  ;;  %v4166_v61 = vsel %vm16168_vm9, %v4146_v19, %v4148_v34  ;;  %vm16178_vm9 = vmmov %vm16172_vm3 }
 0xaea   : > { %v3980_v33 = vpop.permute.xlu0 %3979 }
 0xaeb   : > { %v12741_v41 = vpop.permute.xlu1 %4061 }
 0xaee   : > { %v12743_v58 = vpop.permute.xlu0 %4063 }
 0xaef   : > { %v12745_v6 = vpop.permute.xlu1 %4229 }
 0xaf2   : > { %v12747_v12 = vpop.permute.xlu0 %4231 }
 0xaf3   : > { %v12749_v30 = vpop.permute.xlu1 %4313 }
 0xaf6   : > { %v12751_v44 = vpop.permute.xlu0 %4315 }
 0xaf7   : > { %v4150_v49 = vpop.permute.xlu1 %4149 }
 0xafa   : > { %v4152_v36 = vpop.permute.xlu0 %4151 }
 0xafb   : > { %v3982_v42 = vpop.permute.xlu1 %3981  ;;  %v4167_v31 = vsel %vm16167_vm0, %v4150_v49, %v4152_v36  ;;  %v4164_v49 = vsel %vm16171_vm13, %v12470_v5, %v12472_v24  ;;  %v3998_v5 = vsel %vm16174_vm7, %v3978_v53, %v3980_v33  ;;  %vm16181_vm13 = vmmov %vm16167_vm0  ;;  %v16189_v53 = vld [vmem:[#allocation42_spill] sm:$0xff] }
 0xafc   : > { %vm16185_vm7 = vmmov %vm16172_vm3 }
 0xafe   : > { %v3984_v4 = vpop.permute.xlu0 %3983 }
 0xaff   : > { %v12753_v59 = vpop.permute.xlu1 %4065  ;;  %v3999_v19 = vsel %vm16172_vm3, %v3982_v42, %v3984_v4 }
 0xb02   : > { %v12755_v26 = vpop.permute.xlu0 %4067 }
 0xb03   : > { %v12757_v14 = vpop.permute.xlu1 %4233 }
 0xb06   : > { %v12759_v50 = vpop.permute.xlu0 %4235 }
 0xb07   : > { %v12761_v10 = vpop.permute.xlu1 %4317 }
 0xb0a   : > { %v12763_v2 = vpop.permute.xlu0 %4319 }
 0xb0b   : > { %v4154_v46 = vpop.permute.xlu1 %4153 }
 0xb0e   : > { %v4156_v45 = vpop.permute.xlu0 %4155 }
 0xb0f   : > { %v12765_v20 = vpop.permute.xlu1 %4301  ;;  %4574 = vmatprep.subr.mxu1 %v4156_v45  ;;  %v4168_v47 = vsel %vm16166_vm5, %v4154_v46, %v4156_v45  ;;  %vm16177_vm5 = vmmov %vm16172_vm3  ;;  %v16195_v45 = vld [vmem:[#allocation67_spill] sm:$0xff] }
 0xb10   : > { %4575 = vmatpush1.msra.mxu1 %v4168_v47 }
 0xb11   : > { %4576 = vmatprep.subr.mxu1 %v4152_v36 }
 0xb12   : > { %4577 = vmatpush1.msra.mxu1 %v4167_v31  ;;  %v12769_v23 = vpop.permute.xlu0 %4303 }
 0xb13   : > { %v3986_v38 = vpop.permute.xlu1 %3985  ;;  %4578 = vmatprep.subr.mxu1 %v4148_v34  ;;  %v4451_v34 = vld [vmem:[%s16161_s2 + $0x30] sm:$0xff] }
 0xb14   : > { %4579 = vmatpush1.msra.mxu1 %v4166_v61 }
 0xb15   : > { %4580 = vmatprep.subr.mxu1 %v4144_v63 }
 0xb16   : > { %4581 = vmatpush1.msra.mxu1 %v4165_v48  ;;  %v3988_v22 = vpop.permute.xlu0 %3987  ;;  %v4163_v48 = vsel %vm16173_vm15, %v12450_v11, %v12452_v13  ;;  %v4161_v11 = vsel %vm16176_vm2, %v12358_v21, %v12352_v37  ;;  %v4159_v21 = vsel %vm16179_vm14, %v12366_v35, %v12360_v25  ;;  %v4445_v35 = vld [vmem:[%s16161_s2] sm:$0xff]  ;;  %vm16182_vm15 = vmmov %vm16167_vm0  ;;  %vm16188_vm2 = vcmask 998400  }
 0xb17   : > { %v4070_v16 = vpop.permute.xlu1 %4069  ;;  %4539 = vmatprep.subr.mxu0 %v3988_v22  ;;  %4582 = vmatprep.subr.mxu1 %v12472_v24  ;;  %v4000_v46 = vsel %vm16170_vm12, %v3986_v38, %v3988_v22  ;;  %v4162_v24 = vsel %vm16175_vm8, %v12354_v27, %v12436_v17  ;;  %v4160_v27 = vsel %vm16167_vm0, %v12362_v0, %v12356_v40  ;;  %vm16180_vm12 = vmmov %vm16172_vm3  ;;  %vm16186_vm8 = vcmask 1031168   ;;  %v16198_v38 = vld [vmem:[#allocation63_spill] sm:$0xff] }
 0xb18   : > { %4540 = vmatpush2.msra.mxu0 %v4000_v46  ;;  %4583 = vmatpush1.msra.mxu1 %v4164_v49  ;;  %v3995_v0 = vsel %vm16180_vm12, %v12454_v51, %v12456_v52  ;;  %v16183_v51 = vld [vmem:[#allocation71_spill] sm:$0xff]  ;;  %vm16192_vm0 = vmmov %vm16188_vm2 }
 0xb19   : > { %4541 = vmatprep.subr.mxu0 %v3984_v4  ;;  %4584 = vmatprep.subr.mxu1 %v12452_v13  ;;  %v3997_v13 = vsel %vm16177_vm5, %v12706_v54, %v12712_v62  ;;  %vm16190_vm5 = vmmov %vm16186_vm8 }
 0xb1a   : > { %4542 = vmatpush2.msra.mxu0 %v3999_v19  ;;  %4585 = vmatpush1.msra.mxu1 %v4163_v48  ;;  %v12783_v55 = vpop.permute.xlu0 %4211  ;;  %vm16196_vm14 = vmmov %vm16192_vm0  ;;  %v16201_v19 = vld [vmem:[#allocation72_spill] sm:$0xff] }
 0xb1b   : > { %v12785_v22 = vpop.permute.xlu1 %4237  ;;  %4543 = vmatprep.subr.mxu0 %v3980_v33  ;;  %4586 = vmatprep.subr.mxu1 %v12436_v17  ;;  %v16191_v33 = vld [vmem:[#allocation40_spill] sm:$0xff]  ;;  %vm16199_vm12 = vmmov %vm16192_vm0 }
 0xb1c   : > { %4544 = vmatpush2.msra.mxu0 %v3998_v5  ;;  %4587 = vmatpush1.msra.mxu1 %v4162_v24  ;;  %v4415_v36 = vsel %vm16192_vm0, %v16191_v33, %v16189_v53  ;;  %v16202_v48 = vld [vmem:[#allocation64_spill] sm:$0xff]  ;;  %v16204_v24 = vld [vmem:[#allocation62_spill] sm:$0xff] }
 0xb1d   : > { %4545 = vmatprep.subr.mxu0 %v12712_v62  ;;  %4588 = vmatprep.subr.mxu1 %v12352_v37  ;;  %v3996_v37 = vsel %vm16178_vm9, %v12474_v32, %v12476_v56  ;;  %v16187_v62 = vld [vmem:[#allocation74_spill] sm:$0xff]  ;;  %vm16193_vm9 = vmmov %vm16190_vm5 }
 0xb1e   : > { %4546 = vmatpush2.msra.mxu0 %v3997_v13  ;;  %4589 = vmatpush1.msra.mxu1 %v4161_v11  ;;  %v12800_v63 = vpop.permute.xlu0 %4299  ;;  %v4082_v4 = vsel %vm16193_vm9, %v12741_v41, %v12743_v58  ;;  %v4457_v41 = vld [vmem:[%s16161_s2 + $0x60] sm:$0xff] }
 0xb1f   : > { %v12805_v17 = vpop.permute.xlu1 %4321  ;;  %4547 = vmatprep.subr.mxu0 %v12476_v56  ;;  %4590 = vmatprep.subr.mxu1 %v12356_v40  ;;  %v4158_v56 = vsel %vm16181_vm13, %v12370_v57, %v12364_v3  ;;  %v4157_v57 = vsel %vm16182_vm15, %v12378_v15, %v12368_v7  ;;  %v4452_v15 = vld [vmem:[%s16161_s2 + $0x38] sm:$0xff]  ;;  %vm16200_vm13 = vmmov %vm16190_vm5 }
 0xb20   : > { %4548 = vmatpush2.msra.mxu0 %v3996_v37  ;;  %4591 = vmatpush1.msra.mxu1 %v4160_v27  ;;  %v4081_v46 = vsel %vm16200_vm13, %v12714_v39, %v12720_v9  ;;  %v16205_v11 = vld [vmem:[#allocation52_spill] sm:$0xff]  ;;  %vm16206_vm15 = vmmov %vm16192_vm0  ;;  %v16207_v39 = vld [vmem:[#allocation65_spill] sm:$0xff] }
 0xb21   : > { %4549 = vmatprep.subr.mxu0 %v12456_v52  ;;  %4592 = vmatprep.subr.mxu1 %v12360_v25  ;;  %v3994_v25 = vsel %vm16172_vm3, %v12374_v28, %v12440_v43  ;;  %v16184_v52 = vld [vmem:[#allocation68_spill] sm:$0xff]  ;;  %vm16203_vm3 = vcmask 1006592   ;;  %v4412_v13 = vsel %vm16206_vm15, %v16205_v11, %v16204_v24 }
 0xb22   : > { %4550 = vmatpush2.msra.mxu0 %v3995_v0  ;;  %4593 = vmatpush1.msra.mxu1 %v4159_v21  ;;  %v12820_v40 = vpop.permute.xlu0 %4207  ;;  %v3993_v54 = vsel %vm16185_vm7, %v16184_v52, %v16183_v51  ;;  %v4328_v5 = vsel %vm16203_vm3, %v16202_v48, %v16201_v19  ;;  %vm16209_vm7 = vmmov %vm16203_vm3  ;;  %v16210_v0 = vld [vmem:[#allocation51_spill] sm:$0xff] }
 0xb23   : > { %v12825_v32 = vpop.permute.xlu1 %4209  ;;  %4551 = vmatprep.subr.mxu0 %v12440_v43  ;;  %4594 = vmatprep.subr.mxu1 %v12364_v3  ;;  %v16216_v52 = vld [vmem:[#allocation47_spill] sm:$0xff] }
 0xb24   : > { %4552 = vmatpush2.msra.mxu0 %v3994_v25  ;;  %4595 = vmatpush1.msra.mxu1 %v4158_v56  ;;  %v16211_v56 = vld [vmem:[#allocation48_spill] sm:$0xff] }
 0xb25   : > { %4553 = vmatprep.subr.mxu0 %v16183_v51  ;;  %4596 = vmatprep.subr.mxu1 %v12368_v7  ;;  %v4416_v7 = vsel %vm16188_vm2, %v16187_v62, %v12480_v8  ;;  %vm16215_vm2 = vmmov %vm16203_vm3  ;;  %v16220_v62 = vld [vmem:[#allocation43_spill] sm:$0xff] }
 0xb26   : > { %4554 = vmatpush2.msra.mxu0 %v3993_v54  ;;  %4597 = vmatpush1.msra.mxu1 %v4157_v57  ;;  %v4072_v3 = vpop.permute.xlu0 %4071  ;;  %v16214_v57 = vld [vmem:[#allocation49_spill] sm:$0xff] }
 0xb27   : > { %v12843_v28 = vpop.permute.xlu1 %4297  ;;  %4556 = vmatmul.mubr.f32.vlgmr.msra.gmra.mxu0 %v4445_v35  ;;  %4598 = vmatprep.subr.mxu1 %v4072_v3  ;;  %v4084_v43 = vsel %vm16186_vm8, %v4070_v16, %v4072_v3  ;;  %v4083_v16 = vsel %vm16190_vm5, %v12753_v59, %v12755_v26  ;;  %v4458_v59 = vld [vmem:[%s16161_s2 + $0x68] sm:$0xff]  ;;  %vm16212_vm8 = vmmov %vm16192_vm0 }
 0xb28   : > { %4657 = vmatprep.subr.mxu0 %v12480_v8  ;;  %4599 = vmatpush1.msra.mxu1 %v4084_v43  ;;  %v4411_v25 = vsel %vm16212_vm8, %v16211_v56, %v16210_v0  ;;  %v16213_v35 = vld [vmem:[#allocation61_spill] sm:$0xff]  ;;  %vm16218_vm5 = vmmov %vm16192_vm0 }
 0xb29   : > { %4658 = vmatpush1.msra.mxu0 %v4416_v7  ;;  %4600 = vmatprep.subr.mxu1 %v12755_v26  ;;  %v16194_v26 = vld [vmem:[#allocation44_spill] sm:$0xff]  ;;  %v4326_v51 = vsel %vm16215_vm2, %v16214_v57, %v16213_v35  ;;  %v16217_v54 = vld [vmem:[#allocation45_spill] sm:$0xff]  ;;  %vm16221_vm0 = vmmov %vm16215_vm2 }
 0xb2a   : > { %4659 = vmatprep.subr.mxu0 %v16189_v53  ;;  %4561 = vmatprep.mubr.f32.mxu0 %v4452_v15  ;;  %v12864_v42 = vpop.permute.xlu0 %4295  ;;  %v4414_v47 = vsel %vm16196_vm14, %v16195_v45, %v16194_v26  ;;  %v4410_v3 = vsel %vm16218_vm5, %v16217_v54, %v16216_v52  ;;  %v16219_v15 = vld [vmem:[#allocation50_spill] sm:$0xff]  ;;  %vm16224_vm9 = vmmov %vm16218_vm5  ;;  %v4453_v56 = vld [vmem:[%s16161_s2 + $0x40] sm:$0xff] }
 0xb2b   : > { %4601 = vmatpush1.msra.mxu1 %v4083_v16  ;;  %4660 = vmatpush1.msra.mxu0 %v4415_v36  ;;  %v12866_v8 = vpop.permute.xlu1 %4205  ;;  %v4325_v7 = vsel %vm16221_vm0, %v16220_v62, %v16219_v15  ;;  %v16222_v53 = vld [vmem:[#allocation46_spill] sm:$0xff]  ;;  %v16223_v16 = vld [vmem:[#allocation41_spill] sm:$0xff]  ;;  %vm16225_vm14 = vmmov %vm16221_vm0 }
 0xb2c   : > { %4562 = vmatmul.mubr.f32.gmra.mxu0 %v4451_v34  ;;  %4602 = vmatprep.subr.mxu1 %v12743_v58  ;;  %v16197_v58 = vld [vmem:[#allocation66_spill] sm:$0xff]  ;;  %v4409_v33 = vsel %vm16224_vm9, %v16223_v16, %v16222_v53  ;;  %vm16228_vm3 = vmmov %vm16221_vm0  ;;  %v16262_v62 = vld [vmem:[#allocation7_spill] sm:$0xff] }
 0xb2d   : > { %4661 = vmatprep.subr.mxu0 %v16194_v26  ;;  %4603 = vmatpush1.msra.mxu1 %v4082_v4  ;;  %v4413_v61 = vsel %vm16199_vm12, %v16198_v38, %v16197_v58  ;;  %vm16226_vm12 = vcmask 1014784   ;;  %vm16232_vm2 = vmmov %vm16221_vm0  ;;  %v4455_v57 = vld [vmem:[%s16161_s2 + $0x50] sm:$0xff]  ;;  %v4462_v54 = vld [vmem:[%s16161_s2 + $0x88] sm:$0xff] }
 0xb2e   : > { %4662 = vmatpush1.msra.mxu0 %v4414_v47  ;;  %4604 = vmatprep.subr.mxu1 %v12720_v9  ;;  %v12880_v31 = vpop.permute.xlu0 %4203  ;;  %v16208_v9 = vld [vmem:[#allocation53_spill] sm:$0xff]  ;;  %vm16227_vm13 = vmmov %vm16226_vm12  ;;  %v16236_v47 = vld [vmem:[#allocation70_spill] sm:$0xff] }
 0xb2f   : > { %4663 = vmatprep.subr.mxu0 %v16197_v58  ;;  %4567 = vmatprep.mubr.f32.mxu0 %v4458_v59  ;;  %v12892_v49 = vpop.permute.xlu1 %4293  ;;  %v4327_v37 = vsel %vm16209_vm7, %v16208_v9, %v16207_v39  ;;  %v4251_v26 = vsel %vm16227_vm13, %v12757_v14, %v12759_v50  ;;  %vm16229_vm15 = vmmov %vm16226_vm12  ;;  %v16238_v58 = vld [vmem:[#allocation59_spill] sm:$0xff]  ;;  %v4450_v9 = vld [vmem:[%s16161_s2 + $0x28] sm:$0xff] }
 0xb30   : > { %4605 = vmatpush1.msra.mxu1 %v4081_v46  ;;  %4664 = vmatpush1.msra.mxu0 %v4413_v61  ;;  %vm16230_vm7 = vmmov %vm16221_vm0  ;;  %v16242_v46 = vld [vmem:[#allocation77_spill] sm:$0xff] }
 0xb31   : > { %4568 = vmatmul.mubr.f32.gmra.mxu0 %v4457_v41  ;;  %4606 = vmatprep.subr.mxu1 %v16201_v19  ;;  %v4334_v14 = vsel %vm16230_vm7, %v12749_v30, %v12751_v44  ;;  %vm16231_vm8 = vmmov %vm16226_vm12  ;;  %v16234_v30 = vld [vmem:[#allocation76_spill] sm:$0xff]  ;;  %v16243_v19 = vld [vmem:[#allocation69_spill] sm:$0xff]  ;;  %vm16248_vm7 = vcmask 998400  }
 0xb32   : > { %4665 = vmatprep.subr.mxu0 %v16204_v24  ;;  %4607 = vmatpush2.msra.mxu1 %v4328_v5  ;;  %v4240_v27 = vpop.permute.xlu0 %4239  ;;  %vm16235_vm5 = vmmov %vm16231_vm8  ;;  %v16270_v16 = vld [vmem:[#allocation13_spill] sm:$0xff] }
 0xb33   : > { %4666 = vmatpush1.msra.mxu0 %v4412_v13  ;;  %4608 = vmatprep.subr.mxu1 %v16207_v39  ;;  %v12906_v21 = vpop.permute.xlu1 %4201  ;;  %v4252_v4 = vsel %vm16226_vm12, %v12785_v22, %v4240_v27  ;;  %v4250_v22 = vsel %vm16229_vm15, %v12745_v6, %v12747_v12  ;;  %v4333_v6 = vsel %vm16232_vm2, %v12737_v29, %v12739_v18  ;;  %v16239_v29 = vld [vmem:[#allocation60_spill] sm:$0xff]  ;;  %vm16240_vm9 = vmmov %vm16235_vm5 }
 0xb34   : > { %4667 = vmatprep.subr.mxu0 %v16210_v0  ;;  %4609 = vmatpush2.msra.mxu1 %v4327_v37  ;;  %vm16244_vm12 = vmmov %vm16235_vm5  ;;  %v4454_v37 = vld [vmem:[%s16161_s2 + $0x48] sm:$0xff]  ;;  %v4456_v0 = vld [vmem:[%s16161_s2 + $0x58] sm:$0xff] }
 0xb35   : > { %4668 = vmatpush1.msra.mxu0 %v4411_v25  ;;  %4610 = vmatprep.subr.mxu1 %v16213_v35  ;;  %v4246_v48 = vsel %vm16244_vm12, %v16243_v19, %v16242_v46  ;;  %vm16245_vm13 = vmmov %vm16221_vm0  ;;  %v4460_v25 = vld [vmem:[%s16161_s2 + $0x78] sm:$0xff]  ;;  %v16256_v35 = vmov 0.0  }
 0xb36   : > { %4669 = vmatprep.subr.mxu0 %v16216_v52  ;;  %4611 = vmatpush2.msra.mxu1 %v4326_v51  ;;  %v4324_v43 = vpop.permute.xlu0 %4323  ;;  %v4330_v5 = vsel %vm16245_vm13, %v12843_v28, %v12800_v63  ;;  %vm16247_vm15 = vmmov %vm16221_vm0  ;;  %vm4481_vm13 = vcmask 261120   ;;  %v16257_v51 = vmov 0.5   ;;  %v16258_v52 = vld [vmem:[#allocation5_spill] sm:$0xff] }
 0xb37   : > { %4670 = vmatpush1.msra.mxu0 %v4410_v3  ;;  %4612 = vmatprep.subr.mxu1 %v16219_v15  ;;  %v4406_v34 = vpop.permute.xlu1 %4405  ;;  %v4336_v36 = vsel %vm16225_vm14, %v12805_v17, %v4324_v43  ;;  %v4335_v17 = vsel %vm16228_vm3, %v12761_v10, %v12763_v2  ;;  %v4249_v10 = vsel %vm16231_vm8, %v12725_v60, %v12732_v1  ;;  %v16237_v60 = vld [vmem:[#allocation75_spill] sm:$0xff]  ;;  %vm16241_vm14 = vmmov %vm16221_vm0  ;;  %v4461_v15 = vld [vmem:[%s16161_s2 + $0x80] sm:$0xff] }
 0xb38   : > { %4671 = vmatprep.subr.mxu0 %v16222_v53  ;;  %4613 = vmatpush2.msra.mxu1 %v4325_v7  ;;  %v4331_v61 = vsel %vm16241_vm14, %v12765_v20, %v12769_v23  ;;  %vm16246_vm3 = vmmov %vm16235_vm5  ;;  %v4329_v20 = vsel %vm16247_vm15, %v12892_v49, %v12864_v42  ;;  %v4459_v3 = vld [vmem:[%s16161_s2 + $0x70] sm:$0xff]  ;;  %v16264_v7 = vld [vmem:[#allocation21_spill] sm:$0xff] }
 0xb39   : > { %4672 = vmatpush1.msra.mxu0 %v4409_v33  ;;  %4614 = vmatprep.subr.mxu1 %v4240_v27  ;;  %v4245_v11 = vsel %vm16246_vm3, %v12825_v32, %v12783_v55  ;;  %vm16249_vm8 = vmmov %vm16246_vm3  ;;  %v16268_v53 = vld [vmem:[#allocation26_spill] sm:$0xff]  ;;  %v16272_v33 = vld [vmem:[#allocation17_spill] sm:$0xff] }
 0xb3a   : > { %4673 = vmatprep.subr.mxu0 %v4324_v43  ;;  %4615 = vmatpush2.msra.mxu1 %v4252_v4  ;;  %v12932_v59 = vpop.permute.xlu0 %4199  ;;  %vm16250_vm2 = vmmov %vm16246_vm3  ;;  %vm16259_vm3 = vnez %v16258_v52  ;;  %v16260_v43 = vld [vmem:[#allocation29_spill] sm:$0xff] }
 0xb3b   : > { %4674 = vmatpush1.msra.mxu0 %v4336_v36  ;;  %4616 = vmatprep.subr.mxu1 %v12759_v50  ;;  %v4198_v45 = vpop.permute.xlu1 %4197  ;;  %v4243_v32 = vsel %vm16250_vm2, %v12906_v21, %v12880_v31  ;;  %vm16254_vm14 = vmmov %vm16250_vm2  ;;  %v4449_v21 = vld [vmem:[%s16161_s2 + $0x20] sm:$0xff]  ;;  %vm16261_vm15 = vnez %v16260_v43  ;;  %v16274_v36 = vld [vmem:[#allocation18_spill] sm:$0xff] }
 0xb3c   : > { %4675 = vmatprep.subr.mxu0 %v12763_v2  ;;  %4617 = vmatpush2.msra.mxu1 %v4251_v26  ;;  %v16276_v4 = vld [vmem:[#allocation9_spill] sm:$0xff]  ;;  %v16280_v26 = vld [vmem:[#allocation12_spill] sm:$0xff]  ;;  %v16377_v43 = vld [vmem:[#allocation14_spill] sm:$0xff] }
 0xb3d   : > { %4676 = vmatpush1.msra.mxu0 %v4335_v17  ;;  %4618 = vmatprep.subr.mxu1 %v12747_v12  ;;  %v16233_v12 = vld [vmem:[#allocation73_spill] sm:$0xff]  ;;  %vm16281_vm1 = vnez %v16280_v26  ;;  %v16284_v17 = vld [vmem:[#allocation10_spill] sm:$0xff] }
 0xb3e   : > { %4677 = vmatprep.subr.mxu0 %v12751_v44  ;;  %4619 = vmatpush2.msra.mxu1 %v4250_v22  ;;  %v4404_v50 = vpop.permute.xlu0 %4403  ;;  %v4248_v44 = vsel %vm16235_vm5, %v16234_v30, %v16233_v12  ;;  %vm16251_vm5 = vmmov %vm16248_vm7  ;;  %v16286_v22 = vld [vmem:[#allocation15_spill] sm:$0xff] }
 0xb3f   : > { %4678 = vmatpush1.msra.mxu0 %v4334_v14  ;;  %4620 = vmatprep.subr.mxu1 %v12732_v1  ;;  %v4402_v2 = vpop.permute.xlu1 %4401  ;;  %v4332_v1 = vsel %vm16221_vm0, %v16237_v60, %v16236_v47  ;;  %vm16252_vm0 = vmmov %vm16251_vm5  ;;  %v16288_v14 = vld [vmem:[#allocation19_spill] sm:$0xff]  ;;  %v16306_v60 = vld [vmem:[#allocation33_spill] sm:$0xff] }
 0xb40   : > { %4679 = vmatprep.subr.mxu0 %v12739_v18  ;;  %4621 = vmatpush2.msra.mxu1 %v4249_v10  ;;  %v4247_v18 = vsel %vm16240_vm9, %v16239_v29, %v16238_v58  ;;  %vm16253_vm9 = vmmov %vm16250_vm2  ;;  %v16292_v10 = vld [vmem:[#allocation16_spill] sm:$0xff]  ;;  %v16300_v30 = vld [vmem:[#allocation27_spill] sm:$0xff] }
 0xb41   : > { %4680 = vmatpush1.msra.mxu0 %v4333_v6  ;;  %4622 = vmatprep.subr.mxu1 %v16233_v12  ;;  %vm16255_vm12 = vmmov %vm16252_vm0  ;;  %v16296_v6 = vld [vmem:[#allocation31_spill] sm:$0xff] }
 0xb42   : > { %4681 = vmatprep.subr.mxu0 %v16236_v47  ;;  %4623 = vmatpush2.msra.mxu1 %v4248_v44  ;;  %v4196_v41 = vpop.permute.xlu0 %4195  ;;  %v16298_v12 = vld [vmem:[#allocation23_spill] sm:$0xff]  ;;  %v16302_v44 = vld [vmem:[#allocation28_spill] sm:$0xff] }
 0xb43   : > { %4682 = vmatpush1.msra.mxu0 %v4332_v1  ;;  %4624 = vmatprep.subr.mxu1 %v16238_v58  ;;  %v4194_v38 = vpop.permute.xlu1 %4193  ;;  %v16304_v47 = vld [vmem:[#allocation24_spill] sm:$0xff]  ;;  %v16308_v1 = vld [vmem:[#allocation34_spill] sm:$0xff] }
 0xb44   : > { %4683 = vmatprep.subr.mxu0 %v12769_v23  ;;  %4625 = vmatpush2.msra.mxu1 %v4247_v18  ;;  %v4241_v27 = vsel %vm16254_vm14, %v4194_v38, %v4196_v41  ;;  %vm16275_vm14 = vnez %v16274_v36  ;;  %v16312_v58 = vld [vmem:[#allocation36_spill] sm:$0xff]  ;;  %v13189_v38 = vld [vmem:[#allocation2 + $0x8] sm:$0xff] }
 0xb45   : > { %4684 = vmatpush1.msra.mxu0 %v4331_v61  ;;  %4626 = vmatprep.subr.mxu1 %v16242_v46 }
 0xb46   : > { %4685 = vmatprep.subr.mxu0 %v12800_v63  ;;  %4627 = vmatpush2.msra.mxu1 %v4246_v48  ;;  %v4408_v24 = vpop.permute.xlu0 %4407  ;;  %v4244_v63 = vsel %vm16249_vm8, %v12866_v8, %v12820_v40  ;;  %v4242_v8 = vsel %vm16253_vm9, %v4198_v45, %v12932_v59  ;;  %vm16265_vm8 = vnez %v16264_v7  ;;  %vm16273_vm9 = vnez %v16272_v33  ;;  %v16282_v45 = vld [vmem:[#allocation14_spill] sm:$0xff]  ;;  %v16381_v7 = vld [vmem:[#allocation15_spill] sm:$0xff] }
 0xb47   : > { %4686 = vmatpush1.msra.mxu0 %v4330_v5  ;;  %4628 = vmatprep.subr.mxu1 %v12783_v55  ;;  %v4398_v23 = vpop.permute.xlu1 %4397  ;;  %v4420_v28 = vsel %vm16248_vm7, %v4406_v34, %v4408_v24  ;;  %vm16263_vm7 = vnez %v16262_v62  ;;  %v16266_v34 = vld [vmem:[#allocation25_spill] sm:$0xff]  ;;  %vm16283_vm11 = vnez %v16282_v45  ;;  %v16379_v62 = vld [vmem:[#allocation10_spill] sm:$0xff] }
 0xb48   : > { %4687 = vmatprep.subr.mxu0 %v12864_v42  ;;  %4629 = vmatpush2.msra.mxu1 %v4245_v11  ;;  %v4419_v42 = vsel %vm16251_vm5, %v4402_v2, %v4404_v50  ;;  %vm16267_vm2 = vnez %v16266_v34  ;;  %vm16269_vm5 = vnez %v16268_v53  ;;  %v16294_v2 = vld [vmem:[#allocation30_spill] sm:$0xff]  ;;  %v16383_v34 = vld [vmem:[#allocation19_spill] sm:$0xff] }
 0xb49   : > { %4688 = vmatpush1.msra.mxu0 %v4329_v20  ;;  %4630 = vmatprep.subr.mxu1 %v12820_v40 }
 0xb4a   : > { %4713 = vmatprep.subr.mxu0 %v4408_v24  ;;  %4631 = vmatpush2.msra.mxu1 %v4244_v63  ;;  %v4400_v55 = vpop.permute.xlu0 %4399 }
 0xb4b   : > { %4714 = vmatpush2.msra.mxu0 %v4420_v28  ;;  %4632 = vmatprep.subr.mxu1 %v12880_v31  ;;  %v4418_v49 = vsel %vm16252_vm0, %v4398_v23, %v4400_v55  ;;  %v4394_v40 = vpop.permute.xlu1 %4393  ;;  %v4447_v31 = vld [vmem:[%s16161_s2 + $0x10] sm:$0xff]  ;;  %vm16271_vm0 = vnez %v16270_v16 }
 0xb4c   : > { %4715 = vmatprep.subr.mxu0 %v4404_v50  ;;  %4633 = vmatpush2.msra.mxu1 %v4243_v32  ;;  %v16290_v50 = vld [vmem:[#allocation20_spill] sm:$0xff] }
 0xb4d   : > { %4716 = vmatpush2.msra.mxu0 %v4419_v42  ;;  %4634 = vmatprep.subr.mxu1 %v12932_v59  ;;  %v16278_v59 = vld [vmem:[#allocation11_spill] sm:$0xff] }
 0xb4e   : > { %4717 = vmatprep.subr.mxu0 %v4400_v55  ;;  %4635 = vmatpush2.msra.mxu1 %v4242_v8  ;;  %v4396_v13 = vpop.permute.xlu0 %4395 }
 0xb4f   : > { %4718 = vmatpush2.msra.mxu0 %v4418_v49  ;;  %4636 = vmatprep.subr.mxu1 %v4196_v41  ;;  %v4417_v39 = vsel %vm16255_vm12, %v4394_v40, %v4396_v13  ;;  %vm16277_vm12 = vnez %v16276_v4  ;;  %v16310_v41 = vld [vmem:[#allocation35_spill] sm:$0xff] }
 0xb50   : > { %4637 = vmatpush2.msra.mxu1 %v4241_v27  ;;  %4719 = vmatprep.subr.mxu0 %v4396_v13 }
 0xb51   : > { %4639 = vmatmul.mubr.f32.vlgmr.msra.gmra.mxu1 %v4447_v31  ;;  %4720 = vmatpush2.msra.mxu0 %v4417_v39 }
 0xb52   : > { %7588 = vmatprep.mubr.msk.f32.mxu0 %vm4481_vm13, %v4450_v9  ;;  %4644 = vmatprep.mubr.f32.mxu1 %v4454_v37 }
 0xb53   : > { %4722 = vmatmul.mubr.f32.vlgmr.msra.gmra.mxu0 %v4449_v21  ;;  %4756 = vmatprep.subr.mxu1 %v16256_v35 }
 0xb54   : > { %7589 = vmatprep.mubr.msk.f32.mxu0 %vm4481_vm13, %v4456_v0  ;;  %7591 = vmatpush1.msk.msra.mxu1 %vm16259_vm3, %v16257_v51 }
 0xb55   : > { %4645 = vmatmul.mubr.f32.gmra.mxu1 %v4453_v56  ;;  %4758 = vmatprep.subr.mxu1 %v16256_v35 }
 0xb56   : > { %4650 = vmatprep.mubr.f32.mxu1 %v4460_v25  ;;  %7592 = vmatpush1.msk.msra.mxu1 %vm16261_vm15, %v16257_v51 }
 0xb57   : > { %4728 = vmatmul.mubr.f32.gmra.mxu0 %v4455_v57  ;;  %4760 = vmatprep.subr.mxu1 %v16256_v35 }
 0xb58   : > { %7590 = vmatprep.mubr.msk.f32.mxu0 %vm4481_vm13, %v4462_v54  ;;  %7593 = vmatpush1.msk.msra.mxu1 %vm16263_vm7, %v16257_v51  ;;  %vm16279_vm13 = vnez %v16278_v59  ;;  %v4469_v24 = vpop.permute.xlu1 %4468 }
 0xb59   : > { %4651 = vmatmul.mubr.f32.gmra.mxu1 %v4459_v3  ;;  %4762 = vmatprep.subr.mxu1 %v16256_v35 }
 0xb5a   : > { %7594 = vmatpush1.msk.msra.mxu1 %vm16265_vm8, %v16257_v51  ;;  %4981 = vmatprep.subr.mxu0 %v16256_v35 }
 0xb5b   : > { %4734 = vmatmul.mubr.f32.gmra.mxu0 %v4461_v15  ;;  %4764 = vmatprep.subr.mxu1 %v16256_v35  ;;  %v4474_v28 = vpop.permute.xlu0 %4473 }
 0xb5c   : > { %7595 = vmatpush1.msk.msra.mxu1 %vm16267_vm2, %v16257_v51  ;;  %v4479_v27 = vpop.permute.xlu1 %4478 }
 0xb5d   : > { %4766 = vmatprep.subr.mxu1 %v16256_v35 }
 0xb5e   : > { %7596 = vmatpush1.msk.msra.mxu1 %vm16269_vm5, %v16257_v51 }
 0xb5f   : > { %4768 = vmatprep.subr.mxu1 %v16256_v35 }
 0xb60   : > { %7597 = vmatpush1.msk.msra.mxu1 %vm16271_vm0, %v16257_v51 }
 0xb61   : > { %4770 = vmatprep.subr.mxu1 %v16256_v35 }
 0xb62   : > { %7598 = vmatpush1.msk.msra.mxu1 %vm16273_vm9, %v16257_v51 }
 0xb63   : > { %4772 = vmatprep.subr.mxu1 %v16256_v35 }
 0xb64   : > { %7599 = vmatpush1.msk.msra.mxu1 %vm16275_vm14, %v16257_v51 }
 0xb65   : > { %4774 = vmatprep.subr.mxu1 %v16256_v35 }
 0xb66   : > { %7600 = vmatpush1.msk.msra.mxu1 %vm16277_vm12, %v16257_v51  ;;  %vm16285_vm12 = vnez %v16284_v17 }
 0xb67   : > { %4776 = vmatprep.subr.mxu1 %v16256_v35 }
 0xb68   : > { %7601 = vmatpush1.msk.msra.mxu1 %vm16279_vm13, %v16257_v51  ;;  %vm16287_vm13 = vnez %v16286_v22 }
 0xb69   : > { %4778 = vmatprep.subr.mxu1 %v16256_v35 }
 0xb6a   : > { %7602 = vmatpush1.msk.msra.mxu1 %vm16281_vm1, %v16257_v51  ;;  %vm16289_vm1 = vnez %v16288_v14 }
 0xb6b   : > { %4780 = vmatprep.subr.mxu1 %v16256_v35 }
 0xb6c   : > { %7603 = vmatpush1.msk.msra.mxu1 %vm16283_vm11, %v16257_v51  ;;  %vm16291_vm11 = vnez %v16290_v50 }
 0xb6d   : > { %4782 = vmatprep.subr.mxu1 %v16256_v35 }
 0xb6e   : > { %7604 = vmatpush1.msk.msra.mxu1 %vm16285_vm12, %v16257_v51  ;;  %vm16293_vm12 = vnez %v16292_v10 }
 0xb6f   : > { %4784 = vmatprep.subr.mxu1 %v16256_v35 }
 0xb70   : > { %7605 = vmatpush1.msk.msra.mxu1 %vm16287_vm13, %v16257_v51  ;;  %vm16295_vm13 = vnez %v16294_v2 }
 0xb71   : > { %4786 = vmatprep.subr.mxu1 %v16256_v35 }
 0xb72   : > { %7606 = vmatpush1.msk.msra.mxu1 %vm16289_vm1, %v16257_v51  ;;  %vm16297_vm1 = vnez %v16296_v6 }
 0xb73   : > { %4790 = vmatprep.subr.mxu1 %v16256_v35 }
 0xb74   : > { %7607 = vmatpush2.msk.msra.mxu1 %vm16291_vm11, %v16257_v51  ;;  %vm16299_vm11 = vnez %v16298_v12 }
 0xb75   : > { %4792 = vmatprep.subr.mxu1 %v16256_v35 }
 0xb76   : > { %7608 = vmatpush2.msk.msra.mxu1 %vm16293_vm12, %v16257_v51  ;;  %vm16301_vm12 = vnez %v16300_v30 }
 0xb77   : > { %4794 = vmatprep.subr.mxu1 %v16256_v35 }
 0xb78   : > { %7609 = vmatpush2.msk.msra.mxu1 %vm16295_vm13, %v16257_v51  ;;  %vm16303_vm13 = vnez %v16302_v44 }
 0xb79   : > { %4796 = vmatprep.subr.mxu1 %v16256_v35 }
 0xb7a   : > { %7610 = vmatpush2.msk.msra.mxu1 %vm16297_vm1, %v16257_v51  ;;  %vm16305_vm1 = vnez %v16304_v47 }
 0xb7b   : > { %4798 = vmatprep.subr.mxu1 %v16256_v35 }
 0xb7c   : > { %7611 = vmatpush2.msk.msra.mxu1 %vm16299_vm11, %v16257_v51  ;;  %vm16307_vm11 = vnez %v16306_v60 }
 0xb7d   : > { %4800 = vmatprep.subr.mxu1 %v16256_v35 }
 0xb7e   : > { %7612 = vmatpush2.msk.msra.mxu1 %vm16301_vm12, %v16257_v51  ;;  %vm16309_vm12 = vnez %v16308_v1 }
 0xb7f   : > { %4802 = vmatprep.subr.mxu1 %v16256_v35 }
 0xb80   : > { %7613 = vmatpush2.msk.msra.mxu1 %vm16303_vm13, %v16257_v51  ;;  %vm16311_vm13 = vnez %v16310_v41 }
 0xb81   : > { %4804 = vmatprep.subr.mxu1 %v16256_v35 }
 0xb82   : > { %7614 = vmatpush2.msk.msra.mxu1 %vm16305_vm1, %v16257_v51  ;;  %vm16313_vm1 = vnez %v16312_v58 }
 0xb83   : > { %4806 = vmatprep.subr.mxu1 %v16256_v35 }
 0xb84   : > { %7615 = vmatpush2.msk.msra.mxu1 %vm16307_vm11, %v16257_v51 }
 0xb85   : > { %4808 = vmatprep.subr.mxu1 %v16256_v35 }
 0xb86   : > { %7616 = vmatpush2.msk.msra.mxu1 %vm16309_vm12, %v16257_v51 }
 0xb87   : > { %4810 = vmatprep.subr.mxu1 %v16256_v35 }
 0xb88   : > { %7617 = vmatpush2.msk.msra.mxu1 %vm16311_vm13, %v16257_v51  ;;  %vm4859_vm13 = vcmask 1039384  }
 0xb89   : > { %4812 = vmatprep.subr.mxu1 %v16256_v35 }
 0xb8a   : > { %7618 = vmatpush2.msk.msra.mxu1 %vm16313_vm1, %v16257_v51  ;;  %vm16320_vm1 = vcmask 23552  }
 0xb8b   : > { %4814 = vmatprep.subr.mxu1 %v16256_v35 }
 0xb8c   : > { %7619 = vmatpush2.msk.msra.mxu1 %vm11095_vm4, %v16257_v51  ;;  %vm15287_vm4 = vcmask 982016  }
 0xb8d   : > { %4816 = vmatprep.subr.mxu1 %v16256_v35 }
 0xb8e   : > { %7620 = vmatpush2.msk.msra.mxu1 %vm11113_vm10, %v16257_v51  ;;  %vm4839_vm10 = vcmask 1048568  }
 0xb8f   : > { %4818 = vmatprep.subr.mxu1 %v16256_v35  ;;  %4840 = vst.msk [vmem:[#allocation2] sm:$0xff] %vm4839_vm10, %v16256_v35  ;;  %4843 = vst.msk [vmem:[#allocation2 + $0x20] sm:$0xff] %vm4839_vm10, %v16256_v35 }
 0xb90   : > { %7621 = vmatpush2.msk.msra.mxu1 %vm11127_vm6, %v16257_v51  ;;  %4845 = vst.msk [vmem:[#allocation2 + $0x40] sm:$0xff] %vm4839_vm10, %v16256_v35  ;;  %5076 = vst.msk [vmem:[#allocation2 + $0x60] sm:$0xff] %vm4839_vm10, %v16256_v35  ;;  %vm16317_vm6 = vcmask 15360  }
 0xb91   : > { %7938 = vmatprep.subr.mxu1 %v16256_v35  ;;  %5078 = vst.msk [vmem:[#allocation2 + $0x80] sm:$0xff] %vm4839_vm10, %v16256_v35  ;;  %5080 = vst.msk [vmem:[#allocation2 + $0xa0] sm:$0xff] %vm4839_vm10, %v16256_v35 }
 0xb92   : > { %5489 = vst.msk [vmem:[#allocation2 + $0xc0] sm:$0xff] %vm4839_vm10, %v16256_v35  ;;  %5491 = vst.msk [vmem:[#allocation2 + $0xe0] sm:$0xff] %vm4839_vm10, %v16256_v35 }
 0xb93   : > { %5493 = vst.msk [vmem:[#allocation2 + $0x100] sm:$0xff] %vm4839_vm10, %v16256_v35  ;;  %vm16318_vm11 = vmmov %vm16317_vm6 }
 0xb94   : > { %5071 = vst.msk [vmem:[#allocation2 + $0x8] sm:$0xff] %vm16317_vm6, %v16256_v35  ;;  %vm16319_vm12 = vmmov %vm16317_vm6 }
 0xb95   : > { %vm16321_vm6 = vmmov %vm16320_vm1 }
 0xbe7   : > { %v4557_v61 = vpop.f32.mrf.mxu0 }
 0xbe8   : > { %v4558_v11 = vadd.f32 %v4557_v61, %v4469_v24 }
 0xbe9   : > { %v4559_v46 = vpop.f32.mrf.mxu0 }
 0xbea   : > { %v4560_v63 = vadd.f32 %v4559_v46, %v4469_v24 }
 0xbec   : > { %v4563_v19 = vpop.f32.mrf.mxu0 }
 0xbed   : > { %v4564_v49 = vadd.f32 %v4563_v19, %v4474_v28 }
 0xbee   : > { %v4565_v48 = vpop.f32.mrf.mxu0 }
 0xbef   : > { %v4566_v39 = vadd.f32 %v4565_v48, %v4474_v28 }
 0xbf1   : > { %v4569_v5 = vpop.f32.mrf.mxu0 }
 0xbf2   : > { %v4570_v56 = vadd.f32 %v4569_v5, %v4479_v27 }
 0xbf3   : > { %v4571_v20 = vpop.f32.mrf.mxu0 }
 0xbf4   : > { %v4572_v10 = vadd.f32 %v4571_v20, %v4479_v27  ;;  %v4867_v20 = vld [vmem:[#allocation2 + $0x28] sm:$0xff] }
 0xbf5   : > { %5073 = vst.msk [vmem:[#allocation2 + $0x28] sm:$0xff] %vm16319_vm12, %v16256_v35  ;;  %vm16323_vm12 = vmmov %vm16320_vm1 }
 0xc11   : > { %v4640_v23 = vpop.f32.mrf.mxu1 }
 0xc12   : > { %v4641_v55 = vadd.f32 %v4640_v23, %v4558_v11  ;;  %v4868_v11 = vld [vmem:[#allocation2 + $0x48] sm:$0xff] }
 0xc13   : > { %v4642_v32 = vpop.f32.mrf.mxu1  ;;  %v4723_v42 = vpop.f32.mrf.mxu0  ;;  %5075 = vst.msk [vmem:[#allocation2 + $0x48] sm:$0xff] %vm16318_vm11, %v16256_v35  ;;  %vm16322_vm11 = vmmov %vm16320_vm1 }
 0xc14   : > { %v4643_v8 = vadd.f32 %v4642_v32, %v4560_v63  ;;  %v4724_v40 = vadd.f32 %v4723_v42, %v4641_v55 }
 0xc15   : > { %v4646_v13 = vpop.f32.mrf.mxu1  ;;  %v4725_v31 = vpop.f32.mrf.mxu0 }
 0xc16   : > { %v4647_v9 = vadd.f32 %v4646_v13, %v4564_v49  ;;  %v4726_v37 = vadd.f32 %v4725_v31, %v4643_v8  ;;  %v4740_v54 = vmax.f32 %v4724_v40, 0.0 }
 0xc17   : > { %v4648_v21 = vpop.f32.mrf.mxu1  ;;  %v4729_v0 = vpop.f32.mrf.mxu0 }
 0xc18   : > { %v4741_v25 = vmax.f32 %v4726_v37, 0.0  ;;  %v4649_v57 = vadd.f32 %v4648_v21, %v4566_v39  ;;  %v4730_v3 = vadd.f32 %v4729_v0, %v4647_v9  ;;  %v4948_v39 = vld [vmem:[%s16327_s1 + $0x8] sm:$0xff]  ;;  %v4955_v9 = vld [vmem:[%s15074_s10 + $0x10] sm:$0xff]  ;;  %v4953_v37 = vld [vmem:[%s15074_s10] sm:$0xff] }
 0xc19   : > { %v4652_v15 = vpop.f32.mrf.mxu1  ;;  %v4731_v50 = vpop.f32.mrf.mxu0  ;;  %v4954_v21 = vld [vmem:[%s15074_s10 + $0x8] sm:$0xff] }
 0xc1a   : > { %v4653_v2 = vadd.f32 %v4652_v15, %v4570_v56  ;;  %v4732_v6 = vadd.f32 %v4731_v50, %v4649_v57  ;;  %7622 = vmatprep.mubr.msk.f32.mxu1 %vm15287_vm4, %v4741_v25  ;;  %v4742_v60 = vmax.f32 %v4730_v3, 0.0 }
 0xc1b   : > { %v4654_v12 = vpop.f32.mrf.mxu1  ;;  %v4735_v30 = vpop.f32.mrf.mxu0  ;;  %4821 = vmatmul.mubr.f32.vlgmr.msra.gmra.mxu1 %v4740_v54 }
 0xc1c   : > { %v4743_v44 = vmax.f32 %v4732_v6, 0.0  ;;  %v4655_v47 = vadd.f32 %v4654_v12, %v4572_v10  ;;  %v4736_v1 = vadd.f32 %v4735_v30, %v4653_v2 }
 0xc1d   : > { %v4737_v41 = vpop.f32.mrf.mxu0 }
 0xc1e   : > { %v4738_v58 = vadd.f32 %v4737_v41, %v4655_v47  ;;  %7623 = vmatprep.mubr.msk.f32.mxu1 %vm15287_vm4, %v4743_v44  ;;  %v4744_v18 = vmax.f32 %v4736_v1, 0.0 }
 0xc1f   : > { %4826 = vmatmul.mubr.f32.gmra.mxu1 %v4742_v60 }
 0xc20   : > { %v4745_v29 = vmax.f32 %v4738_v58, 0.0 }
 0xc22   : > { %7624 = vmatprep.mubr.msk.f32.mxu1 %vm15287_vm4, %v4745_v29  ;;  %vm16332_vm4 = vcmask 1006592  }
 0xc23   : > { %4831 = vmatmul.mubr.f32.gmra.mxu1 %v4744_v18 }
 0xcdb   : > { %v4822_v61 = vpop.f32.mrf.mxu1 }
 0xcdc   : > { %4850 = vrot.lane.b32.xlu0 %v4822_v61, %s15885_s28 }
 0xcdd   : > { %v4824_v46 = vpop.f32.mrf.mxu1 }
 0xcdf   : > { %v4827_v19 = vpop.f32.mrf.mxu1 }
 0xce0   : > { %4852 = vrot.lane.b32.xlu0 %v4827_v19, %s15885_s28 }
 0xce1   : > { %v4829_v48 = vpop.f32.mrf.mxu1 }
 0xce3   : > { %v4832_v5 = vpop.f32.mrf.mxu1 }
 0xce4   : > { %4854 = vrot.lane.b32.xlu1 %v4832_v5, %s15885_s28  ;;  %4913 = vrot.lane.b32.xlu0 %v13189_v38, %s15323_s9 }
 0xce5   : > { %v4834_v24 = vpop.f32.mrf.mxu1 }
 0xd4e   : > { %v4851_v23 = vpop.permute.xlu0 %4850 }
 0xd4f   : > { %4860 = vst.msk [vmem:[#allocation2] sm:$0xff] %vm4859_vm13, %v4851_v23 }
 0xd52   : > { %v4853_v28 = vpop.permute.xlu0 %4852 }
 0xd53   : > { %4861 = vst.msk [vmem:[#allocation2 + $0x20] sm:$0xff] %vm4859_vm13, %v4853_v28 }
 0xd56   : > { %v13204_v63 = vld [vmem:[#allocation2] sm:$0xff]  ;;  %v4855_v55 = vpop.permute.xlu1 %4854  ;;  %v4914_v0 = vpop.permute.xlu0 %4913 }
 0xd57   : > { %5064 = vst.msk [vmem:[#allocation2] sm:$0xff] %vm16320_vm1, %v16256_v35  ;;  %4911 = vrot.lane.b32.xlu1 %v13204_v63, %s15323_s9 }
 0xd58   : > { %4862 = vst.msk [vmem:[#allocation2 + $0x40] sm:$0xff] %vm4859_vm13, %v4855_v55 }
 0xd59   : > { %5070 = vst.msk [vmem:[#allocation2] sm:$0xff] %vm4839_vm10, %v16256_v35 }
 0xd5a   : > { %5094 = vst.msk [vmem:[#allocation2] sm:$0xff] %vm4859_vm13, %v4851_v23  ;;  %v13214_v32 = vld [vmem:[#allocation2 + $0x20] sm:$0xff] }
 0xd5b   : > { %5065 = vst.msk [vmem:[#allocation2 + $0x20] sm:$0xff] %vm16321_vm6, %v16256_v35  ;;  %4901 = vrot.lane.b32.xlu0 %v13214_v32, %s15328_s7  ;;  %vm16324_vm6 = vmmov %vm16320_vm1 }
 0xd5c   : > { %5072 = vst.msk [vmem:[#allocation2 + $0x20] sm:$0xff] %vm4839_vm10, %v16256_v35 }
 0xd5d   : > { %5095 = vst.msk [vmem:[#allocation2 + $0x20] sm:$0xff] %vm4859_vm13, %v4853_v28 }
 0xd5f   : > { %v13223_v42 = vld [vmem:[#allocation2 + $0x40] sm:$0xff]  ;;  %4890 = vrot.lane.b32.xlu0 %v13204_v63, %s15909_s26 }
 0xd60   : > { %5066 = vst.msk [vmem:[#allocation2 + $0x40] sm:$0xff] %vm16322_vm11, %v16256_v35  ;;  %4903 = vrot.lane.b32.xlu1 %v13223_v42, %s15328_s7  ;;  %vm16325_vm11 = vmmov %vm16320_vm1 }
 0xd61   : > { %v13231_v49 = vld [vmem:[#allocation2] sm:$0xff]  ;;  %5074 = vst.msk [vmem:[#allocation2 + $0x40] sm:$0xff] %vm4839_vm10, %v16256_v35 }
 0xd62   : > { %5468 = vst.msk [vmem:[#allocation2] sm:$0xff] %vm16323_vm12, %v16256_v35  ;;  %vm16326_vm12 = vmmov %vm16320_vm1 }
 0xd63   : > { %5096 = vst.msk [vmem:[#allocation2 + $0x40] sm:$0xff] %vm4859_vm13, %v4855_v55  ;;  %4894 = vrot.lane.b32.xlu0 %v13223_v42, %s15909_s26 }
 0xd64   : > { %5477 = vst.msk [vmem:[#allocation2] sm:$0xff] %vm4839_vm10, %v16256_v35  ;;  %4899 = vrot.lane.b32.xlu1 %v13204_v63, %s15328_s7  ;;  %v13245_v8 = vld [vmem:[#allocation2 + $0x20] sm:$0xff] }
 0xd65   : > { %5507 = vst.msk [vmem:[#allocation2] sm:$0xff] %vm4859_vm13, %v4851_v23 }
 0xd66   : > { %5469 = vst.msk [vmem:[#allocation2 + $0x20] sm:$0xff] %vm16320_vm1, %v16256_v35 }
 0xd67   : > { %5479 = vst.msk [vmem:[#allocation2 + $0x20] sm:$0xff] %vm4839_vm10, %v16256_v35  ;;  %4883 = vrot.lane.b32.xlu0 %v13214_v32, %s15915_s27 }
 0xd68   : > { %5508 = vst.msk [vmem:[#allocation2 + $0x20] sm:$0xff] %vm4859_vm13, %v4853_v28  ;;  %4892 = vrot.lane.b32.xlu1 %v13214_v32, %s15909_s26  ;;  %v4950_v28 = vld [vmem:[%s16327_s1 + $0x18] sm:$0xff] }
 0xd6a   : > { %v13256_v40 = vld [vmem:[#allocation2 + $0x40] sm:$0xff] }
 0xd6b   : > { %5470 = vst.msk [vmem:[#allocation2 + $0x40] sm:$0xff] %vm16324_vm6, %v16256_v35  ;;  %4872 = vrot.lane.b32.xlu0 %v13204_v63, %s15919_s4  ;;  %vm4971_vm6 = vcmask 326656  }
 0xd6c   : > { %5481 = vst.msk [vmem:[#allocation2 + $0x40] sm:$0xff] %vm4839_vm10, %v16256_v35  ;;  %v13262_v13 = vld [vmem:[#allocation2] sm:$0xff]  ;;  %4885 = vrot.lane.b32.xlu1 %v13223_v42, %s15915_s27  ;;  %7625 = vmatprep.mubr.msk.f32.mxu0 %vm4971_vm6, %v4948_v39  ;;  %v13364_v39 = vld [vmem:[#allocation2 + $0x8] sm:$0xff] }
 0xd6d   : > { %5509 = vst.msk [vmem:[#allocation2 + $0x40] sm:$0xff] %vm4859_vm13, %v4855_v55  ;;  %v4952_v55 = vld [vmem:[%s16327_s1 + $0x28] sm:$0xff] }
 0xd6e   : > { %6031 = vst.msk [vmem:[#allocation2] sm:$0xff] %vm16325_vm11, %v16256_v35  ;;  %vm16328_vm11 = vcmask 1006592  }
 0xd6f   : > { %v13271_v31 = vld [vmem:[#allocation2 + $0x20] sm:$0xff]  ;;  %4876 = vrot.lane.b32.xlu0 %v13223_v42, %s15919_s4 }
 0xd70   : > { %4881 = vrot.lane.b32.xlu1 %v13204_v63, %s15915_s27  ;;  %6032 = vst.msk [vmem:[#allocation2 + $0x20] sm:$0xff] %vm16326_vm12, %v16256_v35  ;;  %vm16329_vm12 = vcmask 998400  }
 0xd73   : > { %4939 = vrot.lane.b32.xlu0 %v4868_v11, %s15926_s5 }
 0xd74   : > { %v13279_v27 = vld [vmem:[#allocation2 + $0x40] sm:$0xff]  ;;  %4874 = vrot.lane.b32.xlu1 %v13214_v32, %s15919_s4 }
 0xd75   : > { %6186 = vst.msk [vmem:[#allocation2 + $0x40] sm:$0xff] %vm16320_vm1, %v16256_v35  ;;  %vm16330_vm1 = vmmov %vm16329_vm12 }
 0xd77   : > { %4935 = vrot.lane.b32.xlu0 %v4867_v20, %s15926_s5 }
 0xd78   : > { %4933 = vrot.lane.b32.xlu1 %v13214_v32, %s15926_s5 }
 0xd7b   : > { %4931 = vrot.lane.b32.xlu0 %v13189_v38, %s15926_s5 }
 0xd7c   : > { %4929 = vrot.lane.b32.xlu1 %v13204_v63, %s15926_s5 }
 0xd7f   : > { %4921 = vrot.lane.b32.xlu0 %v4868_v11, %s15323_s9 }
 0xd80   : > { %4937 = vrot.lane.b32.xlu1 %v13223_v42, %s15926_s5 }
 0xd83   : > { %4917 = vrot.lane.b32.xlu0 %v4867_v20, %s15323_s9  ;;  %v4947_v20 = vld [vmem:[%s16327_s1] sm:$0xff] }
 0xd84   : > { %4919 = vrot.lane.b32.xlu1 %v13223_v42, %s15323_s9 }
 0xd87   : > { %4968 = vperm.xlu0 %8088, %v4955_v9   ;;  %v13368_v9 = vld [vmem:[#allocation2 + $0xa8] sm:$0xff] }
 0xd88   : > { %4915 = vrot.lane.b32.xlu1 %v13214_v32, %s15323_s9 }
 0xd8c   : > { %4958 = vperm.xlu1 %8089, %v4953_v37   ;;  %v13372_v37 = vld [vmem:[#allocation2 + $0x88] sm:$0xff] }
 0xd90   : > { %4963 = vperm.xlu1 %8089, %v4954_v21   ;;  %v13376_v21 = vld [vmem:[#allocation2 + $0x68] sm:$0xff] }
 0xdc9   : > { %v4912_v56 = vpop.permute.xlu1 %4911 }
 0xdca   : > { %v4923_v25 = vsel %vm16328_vm11, %v4912_v56, %v4914_v0  ;;  %vm16331_vm11 = vmmov %vm16330_vm1  ;;  %v13380_v0 = vld [vmem:[#allocation2 + $0x48] sm:$0xff] }
 0xdcb   : > { %4982 = vmatpush1.msra.mxu0 %v4923_v25 }
 0xdcc   : > { %4983 = vmatprep.subr.mxu0 %v16256_v35 }
 0xdcd   : > { %v4902_v57 = vpop.permute.xlu0 %4901 }
 0xdd1   : > { %v4891_v3 = vpop.permute.xlu0 %4890 }
 0xdd2   : > { %v4904_v54 = vpop.permute.xlu1 %4903 }
 0xdd3   : > { %4984 = vmatpush1.msra.mxu0 %v4904_v54 }
 0xdd4   : > { %4985 = vmatprep.subr.mxu0 %v16256_v35 }
 0xdd5   : > { %4986 = vmatpush1.msra.mxu0 %v4902_v57  ;;  %v4895_v50 = vpop.permute.xlu0 %4894 }
 0xdd6   : > { %v4900_v15 = vpop.permute.xlu1 %4899  ;;  %4987 = vmatprep.subr.mxu0 %v16256_v35 }
 0xdd7   : > { %4988 = vmatpush1.msra.mxu0 %v4900_v15 }
 0xdd8   : > { %4989 = vmatprep.subr.mxu0 %v16256_v35 }
 0xdd9   : > { %4990 = vmatpush1.msra.mxu0 %v4895_v50  ;;  %v4884_v2 = vpop.permute.xlu0 %4883 }
 0xdda   : > { %v4893_v10 = vpop.permute.xlu1 %4892  ;;  %4991 = vmatprep.subr.mxu0 %v16256_v35 }
 0xddb   : > { %4992 = vmatpush1.msra.mxu0 %v4893_v10 }
 0xddc   : > { %4993 = vmatprep.subr.mxu0 %v16256_v35 }
 0xddd   : > { %4994 = vmatpush1.msra.mxu0 %v4891_v3  ;;  %v4873_v12 = vpop.permute.xlu0 %4872 }
 0xdde   : > { %v4886_v6 = vpop.permute.xlu1 %4885  ;;  %4995 = vmatprep.subr.mxu0 %v16256_v35 }
 0xddf   : > { %4996 = vmatpush1.msra.mxu0 %v4886_v6 }
 0xde0   : > { %4997 = vmatprep.subr.mxu0 %v16256_v35 }
 0xde1   : > { %4998 = vmatpush1.msra.mxu0 %v4884_v2  ;;  %v4877_v44 = vpop.permute.xlu0 %4876 }
 0xde2   : > { %v4882_v30 = vpop.permute.xlu1 %4881  ;;  %4999 = vmatprep.subr.mxu0 %v16256_v35 }
 0xde3   : > { %5000 = vmatpush1.msra.mxu0 %v4882_v30 }
 0xde4   : > { %5001 = vmatprep.subr.mxu0 %v16256_v35 }
 0xde5   : > { %5002 = vmatpush1.msra.mxu0 %v4877_v44  ;;  %v4940_v60 = vpop.permute.xlu0 %4939 }
 0xde6   : > { %v4875_v47 = vpop.permute.xlu1 %4874  ;;  %5003 = vmatprep.subr.mxu0 %v16256_v35 }
 0xde7   : > { %5004 = vmatpush1.msra.mxu0 %v4875_v47 }
 0xde8   : > { %5005 = vmatprep.subr.mxu0 %v16256_v35 }
 0xde9   : > { %5006 = vmatpush1.msra.mxu0 %v4873_v12  ;;  %v4936_v41 = vpop.permute.xlu0 %4935 }
 0xdea   : > { %v4934_v1 = vpop.permute.xlu1 %4933  ;;  %5007 = vmatprep.subr.mxu0 %v16256_v35 }
 0xdeb   : > { %5008 = vmatpush1.msra.mxu0 %v13223_v42  ;;  %v4942_v46 = vsel %vm16330_vm1, %v4934_v1, %v4936_v41  ;;  %v13360_v42 = vld [vmem:[#allocation2 + $0x28] sm:$0xff] }
 0xdec   : > { %5009 = vmatprep.subr.mxu0 %v16256_v35 }
 0xded   : > { %5010 = vmatpush1.msra.mxu0 %v13214_v32  ;;  %v4932_v29 = vpop.permute.xlu0 %4931  ;;  %v4951_v32 = vld [vmem:[%s16327_s1 + $0x20] sm:$0xff] }
 0xdee   : > { %v4930_v58 = vpop.permute.xlu1 %4929  ;;  %5011 = vmatprep.subr.mxu0 %v16256_v35 }
 0xdef   : > { %5012 = vmatpush1.msra.mxu0 %v13204_v63  ;;  %v4941_v48 = vsel %vm16331_vm11, %v4930_v58, %v4932_v29  ;;  %v4949_v63 = vld [vmem:[%s16327_s1 + $0x10] sm:$0xff] }
 0xdf0   : > { %5035 = vmatprep.subr.mxu0 %v16256_v35 }
 0xdf1   : > { %v4922_v38 = vpop.permute.xlu0 %4921 }
 0xdf2   : > { %v4938_v18 = vpop.permute.xlu1 %4937 }
 0xdf3   : > { %v4943_v61 = vsel %vm16329_vm12, %v4938_v18, %v4940_v60  ;;  %vm16333_vm12 = vmmov %vm16332_vm4 }
 0xdf4   : > { %5036 = vmatpush2.msra.mxu0 %v4943_v61 }
 0xdf5   : > { %5037 = vmatprep.subr.mxu0 %v16256_v35  ;;  %v4918_v5 = vpop.permute.xlu0 %4917 }
 0xdf6   : > { %v4920_v19 = vpop.permute.xlu1 %4919  ;;  %5038 = vmatpush2.msra.mxu0 %v4942_v46 }
 0xdf7   : > { %5039 = vmatprep.subr.mxu0 %v16256_v35  ;;  %v4925_v24 = vsel %vm16332_vm4, %v4920_v19, %v4922_v38  ;;  %vm16334_vm4 = vcmask 15360  }
 0xdf8   : > { %5040 = vmatpush2.msra.mxu0 %v4941_v48  ;;  %5480 = vst.msk [vmem:[#allocation2 + $0x28] sm:$0xff] %vm16334_vm4, %v16256_v35  ;;  %vm16335_vm1 = vmmov %vm16334_vm4 }
 0xdf9   : > { %5041 = vmatprep.subr.mxu0 %v16256_v35  ;;  %5478 = vst.msk [vmem:[#allocation2 + $0x8] sm:$0xff] %vm16335_vm1, %v16256_v35  ;;  %vm16336_vm11 = vmmov %vm16335_vm1 }
 0xdfa   : > { %v4916_v11 = vpop.permute.xlu1 %4915  ;;  %5042 = vmatpush2.msra.mxu0 %v4925_v24  ;;  %5488 = vst.msk [vmem:[#allocation2 + $0xa8] sm:$0xff] %vm16336_vm11, %v16256_v35  ;;  %vm16339_vm4 = vmmov %vm16335_vm1  ;;  %v5278_v24 = vld [vmem:[%s15076_s12 + $0x8] sm:$0xff] }
 0xdfb   : > { %v4924_v23 = vsel %vm16333_vm12, %v4916_v11, %v4918_v5  ;;  %5043 = vmatprep.subr.mxu0 %v16256_v35  ;;  %vm16338_vm12 = vmmov %vm16335_vm1  ;;  %5482 = vst.msk [vmem:[#allocation2 + $0x48] sm:$0xff] %vm16339_vm4, %v16256_v35  ;;  %v5269_v5 = vld [vmem:[%s15075_s11 + $0x8] sm:$0xff] }
 0xdfc   : > { %5044 = vmatpush2.msra.mxu0 %v4924_v23  ;;  %5484 = vst.msk [vmem:[#allocation2 + $0x68] sm:$0xff] %vm16338_vm12, %v16256_v35 }
 0xdfd   : > { %5046 = vmatmul.mubr.f32.vlgmr.msra.gmra.mxu0 %v4947_v20 }
 0xdfe   : > { %7626 = vmatprep.mubr.msk.f32.mxu0 %vm4971_vm6, %v4950_v28 }
 0xdff   : > { %v13522_v23 = vld [vmem:[#allocation2 + $0x28] sm:$0xff] }
 0xe01   : > { %5051 = vmatmul.mubr.f32.gmra.mxu0 %v4949_v63  ;;  %v5279_v63 = vld [vmem:[%s15076_s12 + $0x10] sm:$0xff] }
 0xe02   : > { %7627 = vmatprep.mubr.msk.f32.mxu0 %vm4971_vm6, %v4952_v55  ;;  %vm16337_vm6 = vmmov %vm16335_vm1  ;;  %v4969_v12 = vpop.permute.xlu0 %4968  ;;  %vm16340_vm1 = vcmask 23552   ;;  %v13516_v11 = vld [vmem:[#allocation2 + $0x48] sm:$0xff] }
 0xe03   : > { %5486 = vst.msk [vmem:[#allocation2 + $0x88] sm:$0xff] %vm16337_vm6, %v16256_v35  ;;  %vm16341_vm11 = vmmov %vm16340_vm1  ;;  %vm16342_vm6 = vcmask 1006592   ;;  %v13531_v55 = vld [vmem:[#allocation2 + $0x8] sm:$0xff] }
 0xe04   : > { %vm16343_vm12 = vmmov %vm16340_vm1 }
 0xe05   : > { %5056 = vmatmul.mubr.f32.gmra.mxu0 %v4951_v32  ;;  %vm16344_vm4 = vmmov %vm16340_vm1  ;;  %v5277_v32 = vld [vmem:[%s15076_s12] sm:$0xff] }
 0xe06   : > { %5369 = vmatprep.mubr.f32.mxu0 %v5269_v5 }
 0xe07   : > { %v4959_v56 = vpop.permute.xlu1 %4958 }
 0xe0b   : > { %v4964_v15 = vpop.permute.xlu1 %4963 }
 0xebd   : > { %v5047_v25 = vpop.f32.mrf.mxu0 }
 0xebe   : > { %v5048_v57 = vadd.f32 %v5047_v25, %v4959_v56 }
 0xebf   : > { %v5049_v54 = vpop.f32.mrf.mxu0 }
 0xec0   : > { %v5061_v3 = vmax.f32 %v5048_v57, 0.0 }
 0xec1   : > { %v5052_v50 = vpop.f32.mrf.mxu0 }
 0xec2   : > { %v5053_v10 = vadd.f32 %v5052_v50, %v4964_v15  ;;  %5085 = vrot.lane.b32.xlu0 %v5061_v3, %s15885_s28 }
 0xec3   : > { %v5054_v2 = vpop.f32.mrf.mxu0 }
 0xec4   : > { %v5062_v6 = vmax.f32 %v5053_v10, 0.0 }
 0xec5   : > { %v5057_v30 = vpop.f32.mrf.mxu0 }
 0xec6   : > { %v5058_v44 = vadd.f32 %v5057_v30, %v4969_v12  ;;  %5087 = vrot.lane.b32.xlu0 %v5062_v6, %s15885_s28 }
 0xec7   : > { %v5059_v47 = vpop.f32.mrf.mxu0 }
 0xec8   : > { %v5063_v60 = vmax.f32 %v5058_v44, 0.0 }
 0xeca   : > { %5202 = vrot.lane.b32.xlu0 %v13360_v42, %s15323_s9  ;;  %5089 = vrot.lane.b32.xlu1 %v5063_v60, %s15885_s28 }
 0xece   : > { %5196 = vrot.lane.b32.xlu0 %v13231_v49, %s15323_s9  ;;  %5200 = vrot.lane.b32.xlu1 %v13245_v8, %s15323_s9 }
 0xed2   : > { %5140 = vrot.lane.b32.xlu0 %v13256_v40, %s15915_s27  ;;  %5198 = vrot.lane.b32.xlu1 %v13364_v39, %s15323_s9 }
 0xed6   : > { %5138 = vrot.lane.b32.xlu0 %v13245_v8, %s15915_s27  ;;  %5176 = vrot.lane.b32.xlu1 %v13256_v40, %s15328_s7 }
 0xeda   : > { %5136 = vrot.lane.b32.xlu0 %v13231_v49, %s15915_s27  ;;  %5174 = vrot.lane.b32.xlu1 %v13245_v8, %s15328_s7 }
 0xede   : > { %5122 = vrot.lane.b32.xlu0 %v13256_v40, %s15919_s4  ;;  %5172 = vrot.lane.b32.xlu1 %v13231_v49, %s15328_s7 }
 0xee2   : > { %5120 = vrot.lane.b32.xlu0 %v13245_v8, %s15919_s4  ;;  %5254 = vrot.lane.b32.xlu1 %v13368_v9, %s15926_s5 }
 0xee6   : > { %5118 = vrot.lane.b32.xlu0 %v13231_v49, %s15919_s4  ;;  %5250 = vrot.lane.b32.xlu1 %v13372_v37, %s15926_s5 }
 0xeea   : > { %5158 = vrot.lane.b32.xlu0 %v13256_v40, %s15909_s26  ;;  %5156 = vrot.lane.b32.xlu1 %v13245_v8, %s15909_s26 }
 0xeee   : > { %5246 = vrot.lane.b32.xlu0 %v13376_v21, %s15926_s5  ;;  %5242 = vrot.lane.b32.xlu1 %v13380_v0, %s15926_s5 }
 0xef2   : > { %5240 = vrot.lane.b32.xlu0 %v13256_v40, %s15926_s5 }
 0xef6   : > { %5154 = vrot.lane.b32.xlu0 %v13231_v49, %s15909_s26 }
 0xf34   : > { %v5086_v1 = vpop.permute.xlu0 %5085 }
 0xf35   : > { %5097 = vst.msk [vmem:[#allocation2 + $0x60] sm:$0xff] %vm4859_vm13, %v5086_v1 }
 0xf38   : > { %v5088_v41 = vpop.permute.xlu0 %5087 }
 0xf39   : > { %5098 = vst.msk [vmem:[#allocation2 + $0x80] sm:$0xff] %vm4859_vm13, %v5088_v41 }
 0xf3c   : > { %v13431_v58 = vld [vmem:[#allocation2 + $0x60] sm:$0xff]  ;;  %v5090_v29 = vpop.permute.xlu1 %5089  ;;  %v5203_v38 = vpop.permute.xlu0 %5202 }
 0xf3d   : > { %5471 = vst.msk [vmem:[#allocation2 + $0x60] sm:$0xff] %vm16340_vm1, %v16256_v35  ;;  %5124 = vrot.lane.b32.xlu0 %v13431_v58, %s15919_s4  ;;  %5142 = vrot.lane.b32.xlu1 %v13431_v58, %s15915_s27  ;;  %vm16345_vm1 = vmmov %vm16342_vm6 }
 0xf3e   : > { %5099 = vst.msk [vmem:[#allocation2 + $0xa0] sm:$0xff] %vm4859_vm13, %v5090_v29 }
 0xf3f   : > { %5483 = vst.msk [vmem:[#allocation2 + $0x60] sm:$0xff] %vm4839_vm10, %v16256_v35 }
 0xf40   : > { %5510 = vst.msk [vmem:[#allocation2 + $0x60] sm:$0xff] %vm4859_vm13, %v5086_v1  ;;  %v13443_v18 = vld [vmem:[#allocation2 + $0x80] sm:$0xff]  ;;  %v5201_v61 = vpop.permute.xlu1 %5200  ;;  %v5197_v20 = vpop.permute.xlu0 %5196 }
 0xf41   : > { %5472 = vst.msk [vmem:[#allocation2 + $0x80] sm:$0xff] %vm16341_vm11, %v16256_v35  ;;  %5126 = vrot.lane.b32.xlu0 %v13443_v18, %s15919_s4  ;;  %5178 = vrot.lane.b32.xlu1 %v13431_v58, %s15328_s7  ;;  %v5221_v46 = vsel %vm16342_vm6, %v5201_v61, %v5203_v38  ;;  %vm16346_vm11 = vcmask 998400  }
 0xf42   : > { %5485 = vst.msk [vmem:[#allocation2 + $0x80] sm:$0xff] %vm4839_vm10, %v16256_v35  ;;  %7679 = vmatprep.subr.mxu0 %v5221_v46  ;;  %vm16347_vm6 = vmmov %vm16346_vm11 }
 0xf43   : > { %5511 = vst.msk [vmem:[#allocation2 + $0x80] sm:$0xff] %vm4859_vm13, %v5088_v41 }
 0xf44   : > { %v5141_v28 = vpop.permute.xlu0 %5140 }
 0xf45   : > { %v13455_v19 = vld [vmem:[#allocation2 + $0xa0] sm:$0xff]  ;;  %5248 = vrot.lane.b32.xlu0 %v13443_v18, %s15926_s5  ;;  %5160 = vrot.lane.b32.xlu1 %v13431_v58, %s15909_s26 }
 0xf46   : > { %5473 = vst.msk [vmem:[#allocation2 + $0xa0] sm:$0xff] %vm16343_vm12, %v16256_v35  ;;  %vm16348_vm12 = vmmov %vm16347_vm6 }
 0xf47   : > { %5487 = vst.msk [vmem:[#allocation2 + $0xa0] sm:$0xff] %vm4839_vm10, %v16256_v35  ;;  %v13465_v48 = vld [vmem:[#allocation2 + $0x60] sm:$0xff]  ;;  %vm8108_vm10 = vmmov 0  }
 0xf48   : > { %5512 = vst.msk [vmem:[#allocation2 + $0xa0] sm:$0xff] %vm4859_vm13, %v5090_v29  ;;  %7958 = vmatprep.mubr.msk.f32.mxu1 %vm8108_vm10, %v16256_v35 }
 0xf49   : > { %6187 = vst.msk [vmem:[#allocation2 + $0x60] sm:$0xff] %vm16344_vm4, %v16256_v35  ;;  %5238 = vrot.lane.b32.xlu0 %v13360_v42, %s15926_s5  ;;  %5244 = vrot.lane.b32.xlu1 %v13431_v58, %s15926_s5  ;;  %v5139_v42 = vpop.permute.xlu0 %5138  ;;  %vm16349_vm4 = vmmov %vm16347_vm6 }
 0xf4a   : > { %v13562_v54 = vld [vmem:[#allocation2 + $0x80] sm:$0xff] }
 0xf4d   : > { %5128 = vrot.lane.b32.xlu0 %v13455_v19, %s15919_s4  ;;  %5180 = vrot.lane.b32.xlu1 %v13443_v18, %s15328_s7 }
 0xf51   : > { %5232 = vrot.lane.b32.xlu0 %v13231_v49, %s15926_s5  ;;  %5162 = vrot.lane.b32.xlu1 %v13443_v18, %s15909_s26 }
 0xf55   : > { %5252 = vrot.lane.b32.xlu0 %v13455_v19, %s15926_s5  ;;  %5182 = vrot.lane.b32.xlu1 %v13455_v19, %s15328_s7 }
 0xf59   : > { %5144 = vrot.lane.b32.xlu0 %v13443_v18, %s15915_s27  ;;  %5236 = vrot.lane.b32.xlu1 %v13245_v8, %s15926_s5 }
 0xf5d   : > { %5218 = vrot.lane.b32.xlu0 %v13368_v9, %s15323_s9  ;;  %5234 = vrot.lane.b32.xlu1 %v13364_v39, %s15926_s5  ;;  %v5137_v39 = vpop.permute.xlu0 %5136  ;;  %v5199_v9 = vpop.permute.xlu1 %5198 }
 0xf5e   : > { %v5220_v1 = vsel %vm16345_vm1, %v5197_v20, %v5199_v9  ;;  %vm16350_vm1 = vmmov %vm16349_vm4 }
 0xf61   : > { %5214 = vrot.lane.b32.xlu0 %v13372_v37, %s15323_s9  ;;  %5164 = vrot.lane.b32.xlu1 %v13455_v19, %s15909_s26  ;;  %v13544_v37 = vld [vmem:[#allocation2 + $0xa0] sm:$0xff] }
 0xf65   : > { %5210 = vrot.lane.b32.xlu0 %v13376_v21, %s15323_s9  ;;  %5212 = vrot.lane.b32.xlu1 %v13443_v18, %s15323_s9  ;;  %v13550_v21 = vpop.permute.xlu0 %5122 }
 0xf69   : > { %5206 = vrot.lane.b32.xlu0 %v13380_v0, %s15323_s9  ;;  %5146 = vrot.lane.b32.xlu1 %v13455_v19, %s15915_s27  ;;  %v5177_v0 = vpop.permute.xlu1 %5176  ;;  %v13554_v56 = vpop.permute.xlu0 %5120 }
 0xf6d   : > { %5287 = vperm.xlu0 %8088, %v5278_v24   ;;  %5216 = vrot.lane.b32.xlu1 %v13455_v19, %s15323_s9  ;;  %v5175_v25 = vpop.permute.xlu1 %5174  ;;  %v13560_v57 = vpop.permute.xlu0 %5118 }
 0xf71   : > { %5670 = vrot.lane.b32.xlu0 %v13516_v11, %s15323_s9  ;;  %5208 = vrot.lane.b32.xlu1 %v13431_v58, %s15323_s9  ;;  %v5173_v3 = vpop.permute.xlu1 %5172  ;;  %v13566_v15 = vpop.permute.xlu0 %5158 }
 0xf75   : > { %5666 = vrot.lane.b32.xlu0 %v13522_v23, %s15323_s9  ;;  %5204 = vrot.lane.b32.xlu1 %v13256_v40, %s15323_s9  ;;  %v5255_v50 = vpop.permute.xlu1 %5254  ;;  %v5247_v10 = vpop.permute.xlu0 %5246 }
 0xf79   : > { %5292 = vperm.xlu1 %8089, %v5279_v63   ;;  %5662 = vrot.lane.b32.xlu0 %v13531_v55, %s15323_s9  ;;  %v5251_v2 = vpop.permute.xlu1 %5250  ;;  %v5241_v6 = vpop.permute.xlu0 %5240 }
 0xf7d   : > { %5282 = vperm.xlu1 %8089, %v5277_v32   ;;  %5626 = vrot.lane.b32.xlu0 %v13271_v31, %s15328_s7  ;;  %v13568_v12 = vpop.permute.xlu1 %5156  ;;  %v13570_v44 = vpop.permute.xlu0 %5154 }
 0xf81   : > { %5668 = vrot.lane.b32.xlu1 %v13279_v27, %s15323_s9  ;;  %5630 = vrot.lane.b32.xlu0 %v13465_v48, %s15328_s7  ;;  %v5243_v30 = vpop.permute.xlu1 %5242 }
 0xf85   : > { %5664 = vrot.lane.b32.xlu1 %v13271_v31, %s15323_s9  ;;  %5634 = vrot.lane.b32.xlu0 %v13544_v37, %s15328_s7 }
 0xf89   : > { %5660 = vrot.lane.b32.xlu1 %v13262_v13, %s15323_s9 }
 0xf8d   : > { %5628 = vrot.lane.b32.xlu1 %v13279_v27, %s15328_s7 }
 0xf91   : > { %5624 = vrot.lane.b32.xlu1 %v13262_v13, %s15328_s7 }
 0xf95   : > { %5632 = vrot.lane.b32.xlu1 %v13562_v54, %s15328_s7 }
 0xfaf   : > { %v5125_v47 = vpop.permute.xlu0 %5124  ;;  %v5143_v60 = vpop.permute.xlu1 %5142 }
 0xfb0   : > { %7680 = vmatpush3.msra.mxu0 %v5143_v60 }
 0xfb1   : > { %7681 = vmatprep.subr.mxu0 %v5220_v1 }
 0xfb2   : > { %7682 = vmatpush3.msra.mxu0 %v5141_v28 }
 0xfb3   : > { %v5127_v41 = vpop.permute.xlu0 %5126  ;;  %v5179_v29 = vpop.permute.xlu1 %5178 }
 0xfb7   : > { %v5249_v38 = vpop.permute.xlu0 %5248  ;;  %v5161_v61 = vpop.permute.xlu1 %5160 }
 0xfb8   : > { %v5260_v20 = vsel %vm16347_vm6, %v5249_v38, %v5251_v2  ;;  %vm16352_vm6 = vcmask 1006592  }
 0xfbb   : > { %v5239_v46 = vpop.permute.xlu0 %5238  ;;  %v5245_v5 = vpop.permute.xlu1 %5244 }
 0xfbc   : > { %v5259_v9 = vsel %vm16348_vm12, %v5245_v5, %v5247_v10  ;;  %vm16353_vm12 = vmmov %vm16352_vm6  ;;  %v5275_v10 = vld [vmem:[%s15075_s11 + $0x38] sm:$0xff] }
 0xfbf   : > { %v5129_v24 = vpop.permute.xlu0 %5128  ;;  %v5181_v63 = vpop.permute.xlu1 %5180 }
 0xfc3   : > { %v5233_v32 = vpop.permute.xlu0 %5232  ;;  %v5163_v14 = vpop.permute.xlu1 %5162 }
 0xfc7   : > { %v5253_v22 = vpop.permute.xlu0 %5252  ;;  %v5183_v17 = vpop.permute.xlu1 %5182 }
 0xfc8   : > { %v5261_v45 = vsel %vm16346_vm11, %v5253_v22, %v5255_v50  ;;  %7683 = vmatprep.subr.mxu0 %v5183_v17  ;;  %v5258_v22 = vsel %vm16349_vm4, %v5241_v6, %v5243_v30  ;;  %vm16351_vm11 = vmmov %vm16350_vm1  ;;  %v5270_v6 = vld [vmem:[%s15075_s11 + $0x10] sm:$0xff] }
 0xfc9   : > { %7684 = vmatpush3.msra.mxu0 %v5139_v42  ;;  %7939 = vmatpush3.msra.mxu1 %v5261_v45  ;;  %vm16354_vm4 = vmmov %vm16352_vm6  ;;  %v5274_v30 = vld [vmem:[%s15075_s11 + $0x30] sm:$0xff] }
 0xfca   : > { %7685 = vmatprep.subr.mxu0 %v5181_v63  ;;  %7940 = vmatprep.subr.mxu1 %v16256_v35 }
 0xfcb   : > { %7686 = vmatpush3.msra.mxu0 %v5137_v39  ;;  %7941 = vmatpush3.msra.mxu1 %v5260_v20  ;;  %v5237_v28 = vpop.permute.xlu1 %5236  ;;  %v5145_v39 = vpop.permute.xlu0 %5144 }
 0xfcc   : > { %7687 = vmatprep.subr.mxu0 %v5179_v29  ;;  %7942 = vmatprep.subr.mxu1 %v16256_v35  ;;  %v5257_v17 = vsel %vm16350_vm1, %v5237_v28, %v5239_v46  ;;  %vm5295_vm1 = vcmask 654336  }
 0xfcd   : > { %7688 = vmatpush3.msra.mxu0 %v5129_v24  ;;  %7943 = vmatpush3.msra.mxu1 %v5259_v9 }
 0xfce   : > { %7689 = vmatprep.subr.mxu0 %v5177_v0  ;;  %7944 = vmatprep.subr.mxu1 %v16256_v35 }
 0xfcf   : > { %7690 = vmatpush3.msra.mxu0 %v5127_v41  ;;  %7945 = vmatpush3.msra.mxu1 %v5258_v22  ;;  %v5235_v45 = vpop.permute.xlu1 %5234 }
 0xfd0   : > { %7691 = vmatprep.subr.mxu0 %v5175_v25  ;;  %7946 = vmatprep.subr.mxu1 %v16256_v35  ;;  %v5256_v42 = vsel %vm16351_vm11, %v5233_v32, %v5235_v45  ;;  %v5219_v25 = vpop.permute.xlu0 %5218  ;;  %vm16355_vm11 = vmmov %vm16354_vm4 }
 0xfd1   : > { %7692 = vmatpush3.msra.mxu0 %v5125_v47  ;;  %7947 = vmatpush3.msra.mxu1 %v5257_v17  ;;  %v5276_v47 = vld [vmem:[%s15075_s11 + $0x40] sm:$0xff] }
 0xfd2   : > { %7693 = vmatprep.subr.mxu0 %v5173_v3  ;;  %7948 = vmatprep.subr.mxu1 %v16256_v35 }
 0xfd3   : > { %7694 = vmatpush3.msra.mxu0 %v13550_v21  ;;  %7949 = vmatpush3.msra.mxu1 %v5256_v42  ;;  %v5165_v0 = vpop.permute.xlu1 %5164 }
 0xfd4   : > { %7695 = vmatprep.subr.mxu0 %v5165_v0  ;;  %7950 = vmatprep.subr.mxu1 %v16256_v35  ;;  %v5215_v3 = vpop.permute.xlu0 %5214 }
 0xfd5   : > { %7696 = vmatpush3.msra.mxu0 %v13554_v56 }
 0xfd6   : > { %7697 = vmatprep.subr.mxu0 %v5163_v14 }
 0xfd7   : > { %7698 = vmatpush3.msra.mxu0 %v13560_v57  ;;  %v5213_v50 = vpop.permute.xlu1 %5212 }
 0xfd8   : > { %7699 = vmatprep.subr.mxu0 %v5161_v61  ;;  %v5211_v57 = vpop.permute.xlu0 %5210 }
 0xfd9   : > { %7700 = vmatpush3.msra.mxu0 %v13455_v19  ;;  %v5224_v19 = vsel %vm16353_vm12, %v5213_v50, %v5215_v3  ;;  %vm16357_vm12 = vmmov %vm16354_vm4 }
 0xfda   : > { %7701 = vmatprep.subr.mxu0 %v13566_v15  ;;  %v5271_v15 = vld [vmem:[%s15075_s11 + $0x18] sm:$0xff] }
 0xfdb   : > { %7702 = vmatpush3.msra.mxu0 %v13443_v18  ;;  %v5147_v21 = vpop.permute.xlu1 %5146  ;;  %v5268_v18 = vld [vmem:[%s15075_s11] sm:$0xff] }
 0xfdc   : > { %7703 = vmatprep.subr.mxu0 %v13568_v12 }
 0xfdd   : > { %7704 = vmatpush3.msra.mxu0 %v13431_v58 }
 0xfde   : > { %7705 = vmatprep.subr.mxu0 %v13570_v44  ;;  %v5273_v44 = vld [vmem:[%s15075_s11 + $0x28] sm:$0xff] }
 0xfdf   : > { %7706 = vmatpush3.msra.mxu0 %v13256_v40  ;;  %v5217_v14 = vpop.permute.xlu1 %5216  ;;  %v5272_v40 = vld [vmem:[%s15075_s11 + $0x20] sm:$0xff] }
 0xfe0   : > { %v5225_v56 = vsel %vm16352_vm6, %v5217_v14, %v5219_v25  ;;  %7707 = vmatprep.subr.mxu0 %v5147_v21  ;;  %vm16356_vm6 = vmmov %vm16354_vm4 }
 0xfe1   : > { %7708 = vmatpush3.msra.mxu0 %v13245_v8  ;;  %7951 = vmatpush3.msra.mxu1 %v5225_v56 }
 0xfe2   : > { %7709 = vmatprep.subr.mxu0 %v5145_v39  ;;  %7952 = vmatprep.subr.mxu1 %v16256_v35 }
 0xfe3   : > { %7710 = vmatpush3.msra.mxu0 %v13231_v49  ;;  %7953 = vmatpush3.msra.mxu1 %v5224_v19  ;;  %v5209_v58 = vpop.permute.xlu1 %5208  ;;  %v5207_v49 = vpop.permute.xlu0 %5206 }
 0xfe4   : > { %v5223_v8 = vsel %vm16354_vm4, %v5209_v58, %v5211_v57  ;;  %5370 = vmatmul.mubr.f32.vlgmr.msra.gmra.mxu0 %v5268_v18  ;;  %7954 = vmatprep.subr.mxu1 %v16256_v35 }
 0xfe5   : > { %7955 = vmatpush3.msra.mxu1 %v5223_v8  ;;  %5374 = vmatprep.mubr.f32.mxu0 %v5272_v40 }
 0xfe6   : > { %7956 = vmatprep.subr.mxu1 %v16256_v35 }
 0xfe7   : > { %v5205_v2 = vpop.permute.xlu1 %5204 }
 0xfe8   : > { %v5222_v12 = vsel %vm16355_vm11, %v5205_v2, %v5207_v49  ;;  %5375 = vmatmul.mubr.f32.gmra.mxu0 %v5271_v15  ;;  %v5288_v60 = vpop.permute.xlu0 %5287 }
 0xfe9   : > { %7957 = vmatpush3.msra.mxu1 %v5222_v12  ;;  %5379 = vmatprep.mubr.f32.mxu0 %v5275_v10  ;;  %v5532_v12 = vld [vmem:[#allocation2 + $0xe8] sm:$0xff] }
 0xfea   : > { %7959 = vmatmul.mubr.msk.f32.vlgmr.msra.gmra.mxu1 %vm5295_vm1, %v5270_v6  ;;  %5869 = vmatprep.subr.mxu1 %v16256_v35  ;;  %v5533_v6 = vld [vmem:[#allocation2 + $0x108] sm:$0xff] }
 0xfeb   : > { %7961 = vmatprep.mubr.msk.f32.mxu1 %vm8108_vm10, %v16256_v35 }
 0xfec   : > { %5380 = vmatmul.mubr.f32.gmra.mxu0 %v5274_v30  ;;  %v5671_v41 = vpop.permute.xlu0 %5670  ;;  %v5531_v30 = vld [vmem:[#allocation2 + $0xc8] sm:$0xff] }
 0xfee   : > { %7962 = vmatmul.mubr.msk.f32.gmra.mxu1 %vm5295_vm1, %v5273_v44  ;;  %v5530_v44 = vld [vmem:[#allocation2 + $0xa8] sm:$0xff] }
 0xfef   : > { %7964 = vmatprep.mubr.msk.f32.mxu1 %vm8108_vm10, %v16256_v35 }
 0xff0   : > { %v5667_v46 = vpop.permute.xlu0 %5666 }
 0xff2   : > { %7965 = vmatmul.mubr.msk.f32.gmra.mxu1 %vm5295_vm1, %v5276_v47  ;;  %v13673_v47 = vld [vmem:[#allocation2 + $0x88] sm:$0xff]  ;;  %vm16359_vm1 = vcmask 998400  }
 0xff3   : > { %vm16360_vm11 = vmmov %vm16359_vm1 }
 0xff4   : > { %v5293_v1 = vpop.permute.xlu1 %5292  ;;  %v5663_v63 = vpop.permute.xlu0 %5662 }
 0xff8   : > { %v5283_v29 = vpop.permute.xlu1 %5282 }
 0xffc   : > { %v5669_v38 = vpop.permute.xlu1 %5668 }
 0xffd   : > { %v5698_v61 = vsel %vm16356_vm6, %v5669_v38, %v5671_v41  ;;  %vm16361_vm6 = vmmov %vm16359_vm1 }
 0xffe   : > { %5870 = vmatpush1.msra.mxu1 %v5698_v61 }
 0xfff   : > { %5871 = vmatprep.subr.mxu1 %v16256_v35 }
0x1000   : > { %v5665_v5 = vpop.permute.xlu1 %5664 }
0x1001   : > { %v5697_v24 = vsel %vm16357_vm12, %v5665_v5, %v5667_v46  ;;  %vm16362_vm12 = vmmov %vm16359_vm1 }
0x1002   : > { %5872 = vmatpush1.msra.mxu1 %v5697_v24 }
0x1003   : > { %5873 = vmatprep.subr.mxu1 %v16256_v35 }
0x1004   : > { %v5661_v32 = vpop.permute.xlu1 %5660 }
0x1005   : > { %v5696_v20 = vsel %vm16354_vm4, %v5661_v32, %v5663_v63  ;;  %vm16363_vm4 = vmmov %vm16359_vm1 }
0x1006   : > { %5874 = vmatpush1.msra.mxu1 %v5696_v20 }
0x1007   : > { %5875 = vmatprep.subr.mxu1 %v16256_v35 }
0x10a4   : > { %v7711_v28 = vpop.f32.mrf.mxu0 }
0x10a6   : > { %v7712_v9 = vpop.f32.mrf.mxu0 }
0x10a7   : > { %v7713_v22 = vadd.f32 %v7712_v9, %v7711_v28  ;;  %v5528_v28 = vld [vmem:[#allocation2 + $0x68] sm:$0xff] }
0x10a8   : > { %v7714_v45 = vpop.f32.mrf.mxu0 }
0x10a9   : > { %v5372_v17 = vadd.f32 %v7713_v22, %v5283_v29 }
0x10aa   : > { %v7715_v42 = vpop.f32.mrf.mxu0  ;;  %v5451_v39 = vpop.f32.mrf.mxu1 }
0x10ab   : > { %v7716_v0 = vadd.f32 %v7715_v42, %v7714_v45  ;;  %v5452_v25 = vadd.f32 %v5451_v39, %v5372_v17  ;;  %v5771_v17 = vld [vmem:[%s15077_s13 + $0x18] sm:$0xff] }
0x10ac   : > { %v7717_v50 = vpop.f32.mrf.mxu0  ;;  %v7960_v21 = vpop.f32.mrf.mxu1 }
0x10ad   : > { %v5465_v3 = vmax.f32 %v5452_v25, 0.0  ;;  %v5377_v14 = vadd.f32 %v7716_v0, %v5288_v60  ;;  %v13682_v60 = vpop.permute.xlu0 %5626  ;;  %v5777_v0 = vld [vmem:[%s15078_s14 + $0x8] sm:$0xff]  ;;  %v5776_v21 = vld [vmem:[%s15078_s14] sm:$0xff] }
0x10ae   : > { %v7718_v56 = vpop.f32.mrf.mxu0  ;;  %v5456_v57 = vpop.f32.mrf.mxu1 }
0x10af   : > { %v7719_v18 = vadd.f32 %v7718_v56, %v7717_v50  ;;  %v5457_v19 = vadd.f32 %v5456_v57, %v5377_v14  ;;  %5498 = vrot.lane.b32.xlu0 %v5465_v3, %s15885_s28 }
0x10b0   : > { %v7963_v40 = vpop.f32.mrf.mxu1 }
0x10b1   : > { %v5466_v58 = vmax.f32 %v5457_v19, 0.0  ;;  %v5382_v8 = vadd.f32 %v7719_v18, %v5293_v1  ;;  %v13684_v1 = vpop.permute.xlu1 %5628  ;;  %v13686_v41 = vpop.permute.xlu0 %5630 }
0x10b2   : > { %v5461_v15 = vpop.f32.mrf.mxu1 }
0x10b3   : > { %v5462_v10 = vadd.f32 %v5461_v15, %v5382_v8  ;;  %5500 = vrot.lane.b32.xlu1 %v5466_v58, %s15885_s28 }
0x10b4   : > { %v7966_v49 = vpop.f32.mrf.mxu1 }
0x10b5   : > { %v5467_v2 = vmax.f32 %v5462_v10, 0.0  ;;  %v13688_v29 = vpop.permute.xlu1 %5624  ;;  %v13690_v38 = vpop.permute.xlu0 %5634 }
0x10b7   : > { %5603 = vrot.lane.b32.xlu1 %v13465_v48, %s15909_s26  ;;  %5502 = vrot.lane.b32.xlu0 %v5467_v2, %s15885_s28 }
0x10b9   : > { %v13692_v61 = vpop.permute.xlu1 %5632 }
0x10bb   : > { %5551 = vrot.lane.b32.xlu1 %v13562_v54, %s15919_s4  ;;  %5605 = vrot.lane.b32.xlu0 %v13562_v54, %s15909_s26 }
0x10bf   : > { %5599 = vrot.lane.b32.xlu1 %v13271_v31, %s15909_s26  ;;  %5553 = vrot.lane.b32.xlu0 %v13544_v37, %s15919_s4 }
0x10c3   : > { %5607 = vrot.lane.b32.xlu1 %v13544_v37, %s15909_s26  ;;  %5601 = vrot.lane.b32.xlu0 %v13279_v27, %s15909_s26 }
0x10c7   : > { %5547 = vrot.lane.b32.xlu1 %v13279_v27, %s15919_s4  ;;  %5549 = vrot.lane.b32.xlu0 %v13465_v48, %s15919_s4 }
0x10cb   : > { %5545 = vrot.lane.b32.xlu1 %v13271_v31, %s15919_s4  ;;  %5597 = vrot.lane.b32.xlu0 %v13262_v13, %s15909_s26 }
0x10cf   : > { %5543 = vrot.lane.b32.xlu1 %v13262_v13, %s15919_s4  ;;  %5748 = vrot.lane.b32.xlu0 %v5533_v6, %s15926_s5 }
0x10d3   : > { %5734 = vrot.lane.b32.xlu1 %v13544_v37, %s15926_s5  ;;  %5744 = vrot.lane.b32.xlu0 %v5532_v12, %s15926_s5 }
0x10d7   : > { %5580 = vrot.lane.b32.xlu1 %v13544_v37, %s15915_s27  ;;  %5740 = vrot.lane.b32.xlu0 %v5531_v30, %s15926_s5 }
0x10db   : > { %5736 = vrot.lane.b32.xlu0 %v5530_v44, %s15926_s5  ;;  %5732 = vrot.lane.b32.xlu1 %v13673_v47, %s15926_s5 }
0x10df   : > { %5730 = vrot.lane.b32.xlu0 %v13562_v54, %s15926_s5 }
0x10e3   : > { %5578 = vrot.lane.b32.xlu0 %v13562_v54, %s15915_s27 }
0x1121   : > { %v5499_v46 = vpop.permute.xlu0 %5498 }
0x1122   : > { %5513 = vst.msk [vmem:[#allocation2 + $0xc0] sm:$0xff] %vm4859_vm13, %v5499_v46 }
0x1125   : > { %v5501_v5 = vpop.permute.xlu1 %5500 }
0x1126   : > { %5514 = vst.msk [vmem:[#allocation2 + $0xe0] sm:$0xff] %vm4859_vm13, %v5501_v5 }
0x1129   : > { %v5503_v24 = vpop.permute.xlu0 %5502  ;;  %v13696_v63 = vld [vmem:[#allocation2 + $0xc0] sm:$0xff] }
0x112a   : > { %5515 = vst.msk [vmem:[#allocation2 + $0x100] sm:$0xff] %vm4859_vm13, %v5503_v24  ;;  %5609 = vrot.lane.b32.xlu0 %v13696_v63, %s15909_s26  ;;  %5636 = vrot.lane.b32.xlu1 %v13696_v63, %s15328_s7  ;;  %vm16358_vm13 = vcmask 982016  }
0x112b   : > { %7631 = vmatprep.mubr.msk.f32.mxu1 %vm16358_vm13, %v5771_v17  ;;  %vm16364_vm13 = vmmov %vm16359_vm1 }
0x112d   : > { %v5606_v32 = vpop.permute.xlu0 %5605  ;;  %v13707_v20 = vld [vmem:[#allocation2 + $0xe0] sm:$0xff] }
0x112e   : > { %5582 = vrot.lane.b32.xlu0 %v13696_v63, %s15915_s27  ;;  %5555 = vrot.lane.b32.xlu1 %v13696_v63, %s15919_s4 }
0x112f   : > { %7733 = vmatprep.subr.mxu0 %v5606_v32 }
0x1131   : > { %v13720_v9 = vld [vmem:[#allocation2 + $0x100] sm:$0xff] }
0x1132   : > { %5638 = vrot.lane.b32.xlu0 %v13707_v20, %s15328_s7  ;;  %5738 = vrot.lane.b32.xlu1 %v13696_v63, %s15926_s5 }
0x1136   : > { %5584 = vrot.lane.b32.xlu0 %v13707_v20, %s15915_s27  ;;  %5611 = vrot.lane.b32.xlu1 %v13707_v20, %s15909_s26 }
0x113a   : > { %5728 = vrot.lane.b32.xlu0 %v5528_v28, %s15926_s5  ;;  %5742 = vrot.lane.b32.xlu1 %v13707_v20, %s15926_s5 }
0x113e   : > { %5722 = vrot.lane.b32.xlu0 %v13279_v27, %s15926_s5  ;;  %5640 = vrot.lane.b32.xlu1 %v13720_v9, %s15328_s7 }
0x1142   : > { %5574 = vrot.lane.b32.xlu0 %v13279_v27, %s15915_s27  ;;  %5726 = vrot.lane.b32.xlu1 %v13465_v48, %s15926_s5 }
0x1146   : > { %5720 = vrot.lane.b32.xlu0 %v13522_v23, %s15926_s5  ;;  %5576 = vrot.lane.b32.xlu1 %v13465_v48, %s15915_s27  ;;  %v5769_v23 = vld [vmem:[%s15077_s13 + $0x8] sm:$0xff] }
0x1147   : > { %5858 = vmatprep.mubr.f32.mxu0 %v5769_v23 }
0x114a   : > { %5714 = vrot.lane.b32.xlu0 %v13262_v13, %s15926_s5  ;;  %5724 = vrot.lane.b32.xlu1 %v13516_v11, %s15926_s5  ;;  %v5554_v11 = vpop.permute.xlu0 %5553 }
0x114e   : > { %5613 = vrot.lane.b32.xlu0 %v13720_v9, %s15909_s26  ;;  %5718 = vrot.lane.b32.xlu1 %v13271_v31, %s15926_s5  ;;  %v5602_v22 = vpop.permute.xlu0 %5601 }
0x1152   : > { %5570 = vrot.lane.b32.xlu0 %v13262_v13, %s15915_s27  ;;  %5572 = vrot.lane.b32.xlu1 %v13271_v31, %s15915_s27  ;;  %v5550_v42 = vpop.permute.xlu0 %5549 }
0x1156   : > { %5586 = vrot.lane.b32.xlu0 %v13720_v9, %s15915_s27  ;;  %5716 = vrot.lane.b32.xlu1 %v13531_v55, %s15926_s5  ;;  %v5604_v55 = vpop.permute.xlu1 %5603  ;;  %v5598_v25 = vpop.permute.xlu0 %5597 }
0x115a   : > { %5694 = vrot.lane.b32.xlu0 %v5533_v6, %s15323_s9  ;;  %5746 = vrot.lane.b32.xlu1 %v13720_v9, %s15926_s5  ;;  %v5552_v45 = vpop.permute.xlu1 %5551  ;;  %v13790_v3 = vpop.permute.xlu0 %5748 }
0x115e   : > { %5688 = vrot.lane.b32.xlu0 %v13707_v20, %s15323_s9  ;;  %5690 = vrot.lane.b32.xlu1 %v5532_v12, %s15323_s9  ;;  %v5600_v39 = vpop.permute.xlu1 %5599  ;;  %v13792_v56 = vpop.permute.xlu0 %5744 }
0x1162   : > { %5557 = vrot.lane.b32.xlu0 %v13707_v20, %s15919_s4  ;;  %5684 = vrot.lane.b32.xlu1 %v13696_v63, %s15323_s9  ;;  %v13783_v50 = vpop.permute.xlu1 %5607  ;;  %v13796_v18 = vpop.permute.xlu0 %5740 }
0x1166   : > { %5686 = vrot.lane.b32.xlu0 %v5531_v30, %s15323_s9  ;;  %5680 = vrot.lane.b32.xlu1 %v13544_v37, %s15323_s9  ;;  %v5548_v14 = vpop.permute.xlu1 %5547  ;;  %v13800_v40 = vpop.permute.xlu0 %5736 }
0x116a   : > { %5682 = vrot.lane.b32.xlu0 %v5530_v44, %s15323_s9  ;;  %5692 = vrot.lane.b32.xlu1 %v13720_v9, %s15323_s9  ;;  %v13794_v57 = vpop.permute.xlu1 %5545  ;;  %v13804_v8 = vpop.permute.xlu0 %5730 }
0x116e   : > { %5678 = vrot.lane.b32.xlu0 %v13673_v47, %s15323_s9  ;;  %5559 = vrot.lane.b32.xlu1 %v13720_v9, %s15919_s4  ;;  %v13798_v19 = vpop.permute.xlu1 %5543  ;;  %v13810_v49 = vpop.permute.xlu0 %5578 }
0x1172   : > { %5674 = vrot.lane.b32.xlu0 %v5528_v28, %s15323_s9  ;;  %5676 = vrot.lane.b32.xlu1 %v13562_v54, %s15323_s9  ;;  %v13802_v58 = vpop.permute.xlu1 %5734 }
0x1176   : > { %5785 = vperm.xlu0 %8088, %v5777_v0   ;;  %5672 = vrot.lane.b32.xlu1 %v13465_v48, %s15323_s9  ;;  %v13806_v15 = vpop.permute.xlu1 %5580 }
0x117a   : > { %5780 = vperm.xlu1 %8089, %v5776_v21   ;;  %v13808_v10 = vpop.permute.xlu1 %5732 }
0x119c   : > { %v5637_v2 = vpop.permute.xlu1 %5636  ;;  %v5610_v6 = vpop.permute.xlu0 %5609 }
0x11a0   : > { %v5556_v12 = vpop.permute.xlu1 %5555  ;;  %v13812_v30 = vpop.permute.xlu0 %5582 }
0x11a1   : > { %7734 = vmatpush3.msra.mxu0 %v5556_v12 }
0x11a2   : > { %7735 = vmatprep.subr.mxu0 %v5604_v55 }
0x11a3   : > { %7736 = vmatpush3.msra.mxu0 %v5554_v11 }
0x11a4   : > { %v13814_v44 = vpop.permute.xlu1 %5738  ;;  %7737 = vmatprep.subr.mxu0 %v5602_v22  ;;  %v5639_v47 = vpop.permute.xlu0 %5638 }
0x11a5   : > { %7738 = vmatpush3.msra.mxu0 %v5552_v45 }
0x11a6   : > { %7739 = vmatprep.subr.mxu0 %v5600_v39 }
0x11a7   : > { %7740 = vmatpush3.msra.mxu0 %v5550_v42 }
0x11a8   : > { %v5612_v46 = vpop.permute.xlu1 %5611  ;;  %7741 = vmatprep.subr.mxu0 %v5598_v25  ;;  %v5585_v5 = vpop.permute.xlu0 %5584 }
0x11a9   : > { %7742 = vmatpush3.msra.mxu0 %v5548_v14 }
0x11ac   : > { %v5743_v24 = vpop.permute.xlu1 %5742  ;;  %v13816_v32 = vpop.permute.xlu0 %5728 }
0x11b0   : > { %v5641_v28 = vpop.permute.xlu1 %5640  ;;  %v13818_v23 = vpop.permute.xlu0 %5722 }
0x11b1   : > { %5876 = vmatpush1.msra.mxu1 %v5641_v28 }
0x11b2   : > { %5877 = vmatprep.subr.mxu1 %v16256_v35 }
0x11b3   : > { %5878 = vmatpush1.msra.mxu1 %v5639_v47  ;;  %v5772_v47 = vld [vmem:[%s15077_s13 + $0x20] sm:$0xff] }
0x11b4   : > { %v13821_v11 = vpop.permute.xlu1 %5726  ;;  %5879 = vmatprep.subr.mxu1 %v16256_v35  ;;  %v13824_v55 = vpop.permute.xlu0 %5574 }
0x11b5   : > { %5880 = vmatpush1.msra.mxu1 %v5637_v2 }
0x11b6   : > { %5881 = vmatprep.subr.mxu1 %v16256_v35 }
0x11b7   : > { %5882 = vmatpush1.msra.mxu1 %v13690_v38 }
0x11b8   : > { %v5577_v22 = vpop.permute.xlu1 %5576  ;;  %5883 = vmatprep.subr.mxu1 %v16256_v35  ;;  %v13829_v45 = vpop.permute.xlu0 %5720 }
0x11b9   : > { %5884 = vmatpush1.msra.mxu1 %v13692_v61 }
0x11ba   : > { %5885 = vmatprep.subr.mxu1 %v16256_v35 }
0x11bb   : > { %5886 = vmatpush1.msra.mxu1 %v13686_v41 }
0x11bc   : > { %v13834_v17 = vpop.permute.xlu1 %5724  ;;  %5887 = vmatprep.subr.mxu1 %v16256_v35  ;;  %v13837_v42 = vpop.permute.xlu0 %5714 }
0x11bd   : > { %5888 = vmatpush1.msra.mxu1 %v13684_v1 }
0x11be   : > { %5889 = vmatprep.subr.mxu1 %v16256_v35 }
0x11bf   : > { %5890 = vmatpush1.msra.mxu1 %v13682_v60 }
0x11c0   : > { %v13842_v38 = vpop.permute.xlu1 %5718  ;;  %5891 = vmatprep.subr.mxu1 %v16256_v35  ;;  %v5614_v61 = vpop.permute.xlu0 %5613 }
0x11c1   : > { %5892 = vmatpush1.msra.mxu1 %v13688_v29 }
0x11c2   : > { %5893 = vmatprep.subr.mxu1 %v16256_v35 }
0x11c3   : > { %5894 = vmatpush1.msra.mxu1 %v5614_v61 }
0x11c4   : > { %v5573_v41 = vpop.permute.xlu1 %5572  ;;  %5895 = vmatprep.subr.mxu1 %v16256_v35  ;;  %v5571_v39 = vpop.permute.xlu0 %5570 }
0x11c5   : > { %5896 = vmatpush1.msra.mxu1 %v5612_v46  ;;  %v5770_v46 = vld [vmem:[%s15077_s13 + $0x10] sm:$0xff] }
0x11c6   : > { %5897 = vmatprep.subr.mxu1 %v16256_v35 }
0x11c7   : > { %5898 = vmatpush1.msra.mxu1 %v5610_v6  ;;  %v5773_v6 = vld [vmem:[%s15077_s13 + $0x28] sm:$0xff] }
0x11c8   : > { %v5717_v1 = vpop.permute.xlu1 %5716  ;;  %5899 = vmatprep.subr.mxu1 %v16256_v35  ;;  %v5587_v60 = vpop.permute.xlu0 %5586 }
0x11c9   : > { %7743 = vmatprep.subr.mxu0 %v5587_v60  ;;  %5900 = vmatpush1.msra.mxu1 %v13783_v50  ;;  %v5757_v50 = vsel %vm16360_vm11, %v5743_v24, %v13792_v56  ;;  %vm16365_vm11 = vmmov %vm16359_vm1  ;;  %v5775_v24 = vld [vmem:[%s15077_s13 + $0x38] sm:$0xff] }
0x11ca   : > { %7744 = vmatpush3.msra.mxu0 %v13794_v57  ;;  %5903 = vmatprep.subr.mxu1 %v16256_v35  ;;  %v5754_v57 = vsel %vm16363_vm4, %v13804_v8, %v13808_v10 }
0x11cb   : > { %7745 = vmatprep.subr.mxu0 %v5585_v5 }
0x11cc   : > { %v5747_v29 = vpop.permute.xlu1 %5746  ;;  %7746 = vmatpush3.msra.mxu0 %v13798_v19  ;;  %v5695_v0 = vpop.permute.xlu0 %5694  ;;  %v5752_v19 = vsel %vm16359_vm1, %v13818_v23, %v13834_v17 }
0x11cd   : > { %v5758_v25 = vsel %vm16359_vm1, %v5747_v29, %v13790_v3  ;;  %7747 = vmatprep.subr.mxu0 %v13812_v30  ;;  %v5756_v3 = vsel %vm16361_vm6, %v13814_v44, %v13796_v18  ;;  %vm16366_vm6 = vmmov %vm16359_vm1  ;;  %vm5952_vm1 = vcmask 1043456  }
0x11ce   : > { %7748 = vmatpush3.msra.mxu0 %v13720_v9  ;;  %5904 = vmatpush2.msra.mxu1 %v5758_v25  ;;  %v5755_v9 = vsel %vm16362_vm12, %v13802_v58, %v13800_v40  ;;  %v5750_v58 = vsel %vm16366_vm6, %v13837_v42, %v5717_v1  ;;  %vm16367_vm12 = vcmask 1006592   ;;  %v6087_v25 = vld [vmem:[%s15079_s15] sm:$0xff] }
0x11cf   : > { %7749 = vmatprep.subr.mxu0 %v13806_v15  ;;  %5905 = vmatprep.subr.mxu1 %v16256_v35  ;;  %vm16368_vm4 = vmmov %vm16367_vm12 }
0x11d0   : > { %v5691_v21 = vpop.permute.xlu1 %5690  ;;  %7750 = vmatpush3.msra.mxu0 %v13707_v20  ;;  %5906 = vmatpush2.msra.mxu1 %v5757_v50  ;;  %v5689_v14 = vpop.permute.xlu0 %5688  ;;  %vm16371_vm6 = vmmov %vm16368_vm4  ;;  %v6090_v50 = vld [vmem:[%s15080_s16 + $0x8] sm:$0xff] }
0x11d1   : > { %7751 = vmatprep.subr.mxu0 %v13810_v49  ;;  %5907 = vmatprep.subr.mxu1 %v16256_v35  ;;  %v5703_v10 = vsel %vm16368_vm4, %v5689_v14, %v5691_v21  ;;  %v5768_v49 = vld [vmem:[%s15077_s13] sm:$0xff] }
0x11d2   : > { %7752 = vmatpush3.msra.mxu0 %v13696_v63  ;;  %5908 = vmatpush2.msra.mxu1 %v5756_v3  ;;  %v5753_v63 = vsel %vm16364_vm13, %v13821_v11, %v13816_v32  ;;  %vm16369_vm13 = vmmov %vm16368_vm4  ;;  %v5774_v32 = vld [vmem:[%s15077_s13 + $0x30] sm:$0xff]  ;;  %v6089_v21 = vld [vmem:[%s15080_s16] sm:$0xff] }
0x11d3   : > { %7753 = vmatprep.subr.mxu0 %v5577_v22  ;;  %5909 = vmatprep.subr.mxu1 %v16256_v35 }
0x11d4   : > { %v5685_v20 = vpop.permute.xlu1 %5684  ;;  %7754 = vmatpush3.msra.mxu0 %v13544_v37  ;;  %5910 = vmatpush2.msra.mxu1 %v5755_v9  ;;  %v5558_v56 = vpop.permute.xlu0 %5557 }
0x11d5   : > { %7755 = vmatprep.subr.mxu0 %v13824_v55  ;;  %5911 = vmatprep.subr.mxu1 %v16256_v35 }
0x11d6   : > { %7756 = vmatpush3.msra.mxu0 %v13562_v54  ;;  %5912 = vmatpush2.msra.mxu1 %v5754_v57  ;;  %v5751_v54 = vsel %vm16365_vm11, %v13842_v38, %v13829_v45  ;;  %vm16370_vm11 = vmmov %vm16368_vm4 }
0x11d7   : > { %7757 = vmatprep.subr.mxu0 %v5573_v41  ;;  %5913 = vmatprep.subr.mxu1 %v16256_v35 }
0x11d8   : > { %v5681_v37 = vpop.permute.xlu1 %5680  ;;  %7758 = vmatpush3.msra.mxu0 %v13465_v48  ;;  %5914 = vmatpush2.msra.mxu1 %v5753_v63  ;;  %v5687_v18 = vpop.permute.xlu0 %5686 }
0x11d9   : > { %7759 = vmatprep.subr.mxu0 %v5571_v39  ;;  %5915 = vmatprep.subr.mxu1 %v16256_v35  ;;  %v5702_v2 = vsel %vm16369_vm13, %v5685_v20, %v5687_v18  ;;  %vm6033_vm13 = vcmask 556552  }
0x11da   : > { %7760 = vmatpush3.msra.mxu0 %v13279_v27  ;;  %5916 = vmatpush2.msra.mxu1 %v5752_v19  ;;  %6035 = vst.msk [vmem:[#allocation2 + $0x20] sm:$0xff] %vm6033_vm13, %v16256_v35  ;;  %6034 = vst.msk [vmem:[#allocation2] sm:$0xff] %vm6033_vm13, %v16256_v35 }
0x11db   : > { %5917 = vmatprep.subr.mxu1 %v16256_v35  ;;  %6190 = vst.msk [vmem:[#allocation2 + $0x40] sm:$0xff] %vm6033_vm13, %v16256_v35  ;;  %6191 = vst.msk [vmem:[#allocation2 + $0x60] sm:$0xff] %vm6033_vm13, %v16256_v35 }
0x11dc   : > { %v5693_v40 = vpop.permute.xlu1 %5692  ;;  %5918 = vmatpush2.msra.mxu1 %v5751_v54  ;;  %v5683_v48 = vpop.permute.xlu0 %5682 }
0x11dd   : > { %5919 = vmatprep.subr.mxu1 %v16256_v35  ;;  %v5704_v8 = vsel %vm16367_vm12, %v5693_v40, %v5695_v0  ;;  %v5701_v30 = vsel %vm16370_vm11, %v5681_v37, %v5683_v48  ;;  %vm16373_vm12 = vcmask 982016   ;;  %vm16387_vm11 = vcmask 23552   ;;  %v6088_v48 = vld [vmem:[%s15079_s15 + $0x8] sm:$0xff] }
0x11de   : > { %5920 = vmatpush2.msra.mxu1 %v5750_v58 }
0x11df   : > { %5921 = vmatprep.subr.mxu1 %v16256_v35 }
0x11e0   : > { %v5560_v27 = vpop.permute.xlu1 %5559  ;;  %5922 = vmatpush2.msra.mxu1 %v5704_v8  ;;  %v5679_v15 = vpop.permute.xlu0 %5678 }
0x11e1   : > { %7761 = vmatprep.subr.mxu0 %v5560_v27  ;;  %5923 = vmatprep.subr.mxu1 %v16256_v35 }
0x11e2   : > { %7762 = vmatpush3.msra.mxu0 %v13271_v31  ;;  %5924 = vmatpush2.msra.mxu1 %v5703_v10  ;;  %v2472_v31 = vsel %vm16259_vm3, 0.5, %v16256_v35  ;;  %vm16372_vm3 = vmmov %vm16368_vm4 }
0x11e3   : > { %7763 = vmatprep.subr.mxu0 %v5558_v56  ;;  %5925 = vmatprep.subr.mxu1 %v16256_v35 }
0x11e4   : > { %v5677_v12 = vpop.permute.xlu1 %5676  ;;  %7764 = vmatpush3.msra.mxu0 %v13262_v13  ;;  %5926 = vmatpush2.msra.mxu1 %v5702_v2  ;;  %v5675_v44 = vpop.permute.xlu0 %5674 }
0x11e5   : > { %5859 = vmatmul.mubr.f32.vlgmr.msra.gmra.mxu0 %v5768_v49  ;;  %5927 = vmatprep.subr.mxu1 %v16256_v35  ;;  %v5700_v13 = vsel %vm16371_vm6, %v5677_v12, %v5679_v15  ;;  %vm16388_vm6 = vmmov %vm16387_vm11 }
0x11e6   : > { %5928 = vmatpush2.msra.mxu1 %v5701_v30  ;;  %5863 = vmatprep.mubr.f32.mxu0 %v5773_v6 }
0x11e7   : > { %5929 = vmatprep.subr.mxu1 %v16256_v35  ;;  %7967 = vmatprep.subr.msk.mxu0 %vm5952_vm1, %v2472_v31 }
0x11e8   : > { %v5673_v52 = vpop.permute.xlu1 %5672  ;;  %5930 = vmatpush2.msra.mxu1 %v5700_v13  ;;  %7968 = vmatpush3.msk.msra.mxu0 %vm5952_vm1, %v2472_v31  ;;  %vm6044_vm1 = vcmask 531480  }
0x11e9   : > { %v5699_v5 = vsel %vm16372_vm3, %v5673_v52, %v5675_v44  ;;  %5864 = vmatmul.mubr.f32.gmra.mxu0 %v5772_v47  ;;  %5931 = vmatprep.subr.mxu1 %v16256_v35  ;;  %vm16389_vm3 = vcmask 916480   ;;  %v6285_v52 = vld [vmem:[%s15081_s17 + $0x8] sm:$0xff] }
0x11ea   : > { %5932 = vmatpush2.msra.mxu1 %v5699_v5  ;;  %7969 = vmatprep.subr.msk.mxu0 %vm16261_vm15, %v16257_v51  ;;  %v6288_v5 = vld [vmem:[%s15082_s18] sm:$0xff] }
0x11eb   : > { %5934 = vmatmul.mubr.f32.vlgmr.msra.gmra.mxu1 %v5770_v46  ;;  %7970 = vmatpush3.msk.msra.mxu0 %vm16261_vm15, %v16257_v51  ;;  %vm16374_vm15 = vnez %v16276_v4  ;;  %v6289_v46 = vld [vmem:[%s15082_s18 + $0x8] sm:$0xff] }
0x11ec   : > { %7632 = vmatprep.mubr.msk.f32.mxu1 %vm16373_vm12, %v5775_v24  ;;  %7971 = vmatprep.subr.msk.mxu0 %vm16263_vm7, %v16257_v51  ;;  %vm16390_vm12 = vmmov %vm16389_vm3  ;;  %v6398_v24 = vld [vmem:[%s15083_s19 + $0x78] sm:$0xff] }
0x11ed   : > { %7972 = vmatpush3.msk.msra.mxu0 %vm16263_vm7, %v16257_v51  ;;  %6306 = vmatprep.subr.mxu1 %v16256_v35  ;;  %vm16375_vm7 = vnez %v16278_v59 }
0x11ee   : > { %7973 = vmatprep.subr.msk.mxu0 %vm16265_vm8, %v16257_v51 }
0x11ef   : > { %5939 = vmatmul.mubr.f32.gmra.mxu1 %v5774_v32  ;;  %7974 = vmatpush3.msk.msra.mxu0 %vm16265_vm8, %v16257_v51  ;;  %vm16376_vm8 = vnez %v16280_v26 }
0x11f0   : > { %7975 = vmatprep.subr.msk.mxu0 %vm16267_vm2, %v16257_v51 }
0x11f1   : > { %7976 = vmatpush3.msk.msra.mxu0 %vm16267_vm2, %v16257_v51  ;;  %vm16378_vm2 = vnez %v16377_v43  ;;  %v5786_v55 = vpop.permute.xlu0 %5785  ;;  %v6414_v43 = vld [vmem:[%s15083_s19 + $0xf8] sm:$0xff] }
0x11f2   : > { %7977 = vmatprep.subr.msk.mxu0 %vm16269_vm5, %v16257_v51 }
0x11f3   : > { %7978 = vmatpush3.msk.msra.mxu0 %vm16269_vm5, %v16257_v51  ;;  %vm16380_vm5 = vnez %v16379_v62  ;;  %v6413_v62 = vld [vmem:[%s15083_s19 + $0xf0] sm:$0xff] }
0x11f4   : > { %7979 = vmatprep.subr.msk.mxu0 %vm16271_vm0, %v16257_v51 }
0x11f5   : > { %7980 = vmatpush3.msk.msra.mxu0 %vm16271_vm0, %v16257_v51  ;;  %vm16382_vm0 = vnez %v16381_v7  ;;  %v5781_v36 = vpop.permute.xlu1 %5780 }
0x11f6   : > { %7981 = vmatprep.subr.msk.mxu0 %vm16273_vm9, %v16257_v51 }
0x11f7   : > { %7982 = vmatpush3.msk.msra.mxu0 %vm16273_vm9, %v16257_v51  ;;  %vm16384_vm9 = vnez %v16383_v34 }
0x11f8   : > { %7983 = vmatprep.subr.msk.mxu0 %vm16275_vm14, %v16257_v51 }
0x11f9   : > { %7984 = vmatpush3.msk.msra.mxu0 %vm16275_vm14, %v16257_v51  ;;  %vm16385_vm14 = vcmask 1014784  }
0x11fa   : > { %7985 = vmatprep.subr.msk.mxu0 %vm16374_vm15, %v16257_v51  ;;  %vm16386_vm4 = vmmov %vm16385_vm14 }
0x11fb   : > { %7986 = vmatpush3.msk.msra.mxu0 %vm16374_vm15, %v16257_v51  ;;  %vm16391_vm15 = vcmask 785408  }
0x11fc   : > { %7987 = vmatprep.subr.msk.mxu0 %vm16375_vm7, %v16257_v51  ;;  %7653 = vmatprep.mubr.msk.f32.mxu1 %vm16391_vm15, %v6285_v52 }
0x11fd   : > { %7988 = vmatpush3.msk.msra.mxu0 %vm16375_vm7, %v16257_v51  ;;  %vm6575_vm7 = vcmask 506880  }
0x11fe   : > { %7989 = vmatprep.subr.msk.mxu0 %vm16376_vm8, %v16257_v51 }
0x11ff   : > { %7990 = vmatpush3.msk.msra.mxu0 %vm16376_vm8, %v16257_v51  ;;  %vm16392_vm8 = vmmov %vm16391_vm15 }
0x1200   : > { %7991 = vmatprep.subr.msk.mxu0 %vm16378_vm2, %v16257_v51 }
0x1201   : > { %7992 = vmatpush3.msk.msra.mxu0 %vm16378_vm2, %v16257_v51 }
0x1202   : > { %7993 = vmatprep.subr.msk.mxu0 %vm16380_vm5, %v16257_v51 }
0x1203   : > { %7994 = vmatpush3.msk.msra.mxu0 %vm16380_vm5, %v16257_v51 }
0x1204   : > { %7995 = vmatprep.subr.msk.mxu0 %vm16382_vm0, %v16257_v51 }
0x1205   : > { %7996 = vmatpush3.msk.msra.mxu0 %vm16382_vm0, %v16257_v51 }
0x1206   : > { %7997 = vmatprep.subr.msk.mxu0 %vm16384_vm9, %v16257_v51 }
0x1207   : > { %7998 = vmatpush3.msk.msra.mxu0 %vm16384_vm9, %v16257_v51 }
0x12a5   : > { %v7765_v53 = vpop.f32.mrf.mxu0 }
0x12a7   : > { %v7766_v16 = vpop.f32.mrf.mxu0 }
0x12a8   : > { %v7767_v33 = vadd.f32 %v7766_v16, %v7765_v53  ;;  %v6397_v16 = vld [vmem:[%s15083_s19 + $0x70] sm:$0xff] }
0x12a9   : > { %v7768_v4 = vpop.f32.mrf.mxu0 }
0x12aa   : > { %v5861_v59 = vadd.f32 %v7767_v33, %v5781_v36  ;;  %v6410_v33 = vld [vmem:[%s15083_s19 + $0xd8] sm:$0xff] }
0x12ab   : > { %v7769_v26 = vpop.f32.mrf.mxu0  ;;  %v5935_v28 = vpop.f32.mrf.mxu1 }
0x12ac   : > { %v7770_v23 = vadd.f32 %v7769_v26, %v7768_v4  ;;  %v5936_v11 = vadd.f32 %v5935_v28, %v5861_v59  ;;  %v6396_v28 = vld [vmem:[%s15083_s19 + $0x68] sm:$0xff] }
0x12ad   : > { %v5937_v22 = vpop.f32.mrf.mxu1 }
0x12ae   : > { %v5944_v45 = vmax.f32 %v5936_v11, 0.0  ;;  %v5866_v17 = vadd.f32 %v7770_v23, %v5786_v55  ;;  %v6409_v23 = vld [vmem:[%s15083_s19 + $0xd0] sm:$0xff] }
0x12af   : > { %v5940_v42 = vpop.f32.mrf.mxu1 }
0x12b0   : > { %v5941_v38 = vadd.f32 %v5940_v42, %v5866_v17  ;;  %7999 = vmatprep.mubr.msk.f32.mxu0 %vm16385_vm14, %v5944_v45  ;;  %v6395_v17 = vld [vmem:[%s15083_s19 + $0x60] sm:$0xff]  ;;  %v6408_v42 = vld [vmem:[%s15083_s19 + $0xc8] sm:$0xff] }
0x12b1   : > { %v5942_v61 = vpop.f32.mrf.mxu1 }
0x12b2   : > { %v5945_v51 = vmax.f32 %v5941_v38, 0.0 }
0x12b4   : > { %8000 = vmatmul.mubr.msk.f32.vlgmr.msra.gmra.mxu0 %vm16386_vm4, %v5945_v51 }
0x12b5   : > { %8030 = vmatprep.mubr.msk.f32.mxu0 %vm16389_vm3, %v6087_v25 }
0x1374   : > { %v14034_v41 = vpop.f32.mrf.mxu0 }
0x1375   : > { %6040 = vrot.lane.b32.xlu1 %v14034_v41, %s15885_s28  ;;  %v6510_v7 = vmul.f32 %v14034_v41, %v6414_v43  ;;  %v6492_v55 = vmul.f32 %v14034_v41, %v6396_v28 }
0x1376   : > { %v14038_v39 = vpop.f32.mrf.mxu0 }
0x1377   : > { %6038 = vrot.lane.b32.xlu0 %v14038_v39, %s15885_s28  ;;  %v6509_v53 = vmul.f32 %v6413_v62, %v14038_v39  ;;  %v6669_v36 = vsel %vm6575_vm7, %v6510_v7, 0.0  ;;  %v6615_v38 = vsel %vm6575_vm7, %v6492_v55, 0.0  ;;  %v6491_v61 = vmul.f32 %v6395_v17, %v14038_v39  ;;  %v6446_v55 = vld [vmem:[%s15083_s19 + $0x1f8] sm:$0xff] }
0x1379   : > { %v6666_v59 = vsel %vm6575_vm7, %v6509_v53, 0.0 }
0x13e7   : > { %v6041_v1 = vpop.permute.xlu1 %6040 }
0x13e8   : > { %6046 = vst.msk [vmem:[#allocation2 + $0x20] sm:$0xff] %vm6044_vm1, %v6041_v1 }
0x13e9   : > { %v6039_v60 = vpop.permute.xlu0 %6038 }
0x13ea   : > { %6045 = vst.msk [vmem:[#allocation2] sm:$0xff] %vm6044_vm1, %v6039_v60 }
0x13ef   : > { %v6048_v29 = vld [vmem:[#allocation2 + $0x20] sm:$0xff] }
0x13f0   : > { %6185 = vst.msk [vmem:[#allocation2 + $0x20] sm:$0xff] %vm16387_vm11, %v16256_v35  ;;  %6083 = vrot.lane.b32.xlu1 %v6048_v29, %s15926_s5 }
0x13f1   : > { %6189 = vst.msk [vmem:[#allocation2 + $0x20] sm:$0xff] %vm6033_vm13, %v16256_v35  ;;  %v6047_v0 = vld [vmem:[#allocation2] sm:$0xff] }
0x13f2   : > { %6201 = vst.msk [vmem:[#allocation2 + $0x20] sm:$0xff] %vm6044_vm1, %v6041_v1  ;;  %6081 = vrot.lane.b32.xlu0 %v6047_v0, %s15926_s5  ;;  %v6504_v1 = vmul.f32 %v14034_v41, %v6408_v42 }
0x13f3   : > { %6184 = vst.msk [vmem:[#allocation2] sm:$0xff] %vm16388_vm6, %v16256_v35 }
0x13f4   : > { %6188 = vst.msk [vmem:[#allocation2] sm:$0xff] %vm6033_vm13, %v16256_v35  ;;  %6077 = vrot.lane.b32.xlu1 %v6048_v29, %s15323_s9 }
0x13f5   : > { %6200 = vst.msk [vmem:[#allocation2] sm:$0xff] %vm6044_vm1, %v6039_v60  ;;  %v6392_v60 = vld [vmem:[%s15083_s19 + $0x48] sm:$0xff] }
0x13f6   : > { %6075 = vrot.lane.b32.xlu0 %v6047_v0, %s15323_s9 }
0x13f8   : > { %6071 = vrot.lane.b32.xlu1 %v6048_v29, %s15328_s7 }
0x13f9   : > { %v14098_v47 = vld [vmem:[#allocation2 + $0x20] sm:$0xff] }
0x13fa   : > { %6069 = vrot.lane.b32.xlu0 %v6047_v0, %s15328_s7 }
0x13fc   : > { %6065 = vrot.lane.b32.xlu1 %v6048_v29, %s15909_s26  ;;  %v14102_v13 = vld [vmem:[#allocation2] sm:$0xff] }
0x13fe   : > { %6063 = vrot.lane.b32.xlu0 %v6047_v0, %s15909_s26 }
0x1400   : > { %6059 = vrot.lane.b32.xlu1 %v6048_v29, %s15915_s27 }
0x1402   : > { %6057 = vrot.lane.b32.xlu0 %v6047_v0, %s15915_s27 }
0x1404   : > { %6053 = vrot.lane.b32.xlu1 %v6048_v29, %s15919_s4 }
0x1406   : > { %6051 = vrot.lane.b32.xlu0 %v6047_v0, %s15919_s4 }
0x1408   : > { %6098 = vperm.xlu1 %8089, %v6090_v50   ;;  %v6651_v50 = vsel %vm6575_vm7, %v6504_v1, 0.0  ;;  %v6462_v1 = vld [vmem:[%s15083_s19 + $0x278] sm:$0xff] }
0x140a   : > { %6093 = vperm.xlu0 %8088, %v6089_v21  }
0x1462   : > { %v6084_v14 = vpop.permute.xlu1 %6083 }
0x1463   : > { %8002 = vmatprep.subr.mxu0 %v6084_v14 }
0x1464   : > { %8003 = vmatpush3.msra.mxu0 %v6084_v14  ;;  %v6082_v3 = vpop.permute.xlu0 %6081  ;;  %v6391_v14 = vld [vmem:[%s15083_s19 + $0x40] sm:$0xff] }
0x1465   : > { %8004 = vmatprep.subr.mxu0 %v6082_v3 }
0x1466   : > { %v6078_v9 = vpop.permute.xlu1 %6077  ;;  %8005 = vmatpush3.msra.mxu0 %v6082_v3  ;;  %v6404_v3 = vld [vmem:[%s15083_s19 + $0xa8] sm:$0xff] }
0x1467   : > { %8006 = vmatprep.subr.mxu0 %v6078_v9 }
0x1468   : > { %8007 = vmatpush3.msra.mxu0 %v6078_v9  ;;  %v6076_v20 = vpop.permute.xlu0 %6075 }
0x1469   : > { %8008 = vmatprep.subr.mxu0 %v6076_v20 }
0x146a   : > { %v6072_v56 = vpop.permute.xlu1 %6071  ;;  %8009 = vmatpush3.msra.mxu0 %v6076_v20 }
0x146b   : > { %8010 = vmatprep.subr.mxu0 %v6072_v56 }
0x146c   : > { %8011 = vmatpush3.msra.mxu0 %v6072_v56  ;;  %v6070_v57 = vpop.permute.xlu0 %6069 }
0x146d   : > { %8012 = vmatprep.subr.mxu0 %v6070_v57 }
0x146e   : > { %v6066_v63 = vpop.permute.xlu1 %6065  ;;  %8013 = vmatpush3.msra.mxu0 %v6070_v57 }
0x146f   : > { %8014 = vmatprep.subr.mxu0 %v6066_v63 }
0x1470   : > { %8015 = vmatpush3.msra.mxu0 %v6066_v63  ;;  %v6064_v37 = vpop.permute.xlu0 %6063  ;;  %v6390_v63 = vld [vmem:[%s15083_s19 + $0x38] sm:$0xff] }
0x1471   : > { %8016 = vmatprep.subr.mxu0 %v6064_v37 }
0x1472   : > { %v6060_v18 = vpop.permute.xlu1 %6059  ;;  %8017 = vmatpush3.msra.mxu0 %v6064_v37  ;;  %v6403_v37 = vld [vmem:[%s15083_s19 + $0xa0] sm:$0xff] }
0x1473   : > { %8018 = vmatprep.subr.mxu0 %v6060_v18 }
0x1474   : > { %8019 = vmatpush3.msra.mxu0 %v6060_v18  ;;  %v6058_v19 = vpop.permute.xlu0 %6057 }
0x1475   : > { %8020 = vmatprep.subr.mxu0 %v6058_v19 }
0x1476   : > { %v6054_v54 = vpop.permute.xlu1 %6053  ;;  %8021 = vmatpush3.msra.mxu0 %v6058_v19  ;;  %v6486_v19 = vmul.f32 %v14034_v41, %v6390_v63 }
0x1477   : > { %8022 = vmatprep.subr.mxu0 %v6054_v54 }
0x1478   : > { %8023 = vmatpush3.msra.mxu0 %v6054_v54  ;;  %v6052_v40 = vpop.permute.xlu0 %6051 }
0x1479   : > { %8024 = vmatprep.subr.mxu0 %v6052_v40 }
0x147a   : > { %8025 = vmatpush3.msra.mxu0 %v6052_v40 }
0x147b   : > { %8026 = vmatprep.subr.mxu0 %v6048_v29 }
0x147c   : > { %8027 = vmatpush3.msra.mxu0 %v6048_v29  ;;  %v6407_v29 = vld [vmem:[%s15083_s19 + $0xc0] sm:$0xff] }
0x147d   : > { %8028 = vmatprep.subr.mxu0 %v6047_v0  ;;  %v6503_v21 = vmul.f32 %v6407_v29, %v14038_v39 }
0x147e   : > { %8029 = vmatpush3.msra.mxu0 %v6047_v0  ;;  %v6612_v0 = vsel %vm6575_vm7, %v6491_v61, 0.0 }
0x147f   : > { %8031 = vmatmul.mubr.msk.f32.vlgmr.msra.gmra.mxu0 %vm16390_vm12, %v6088_v48  ;;  %v6648_v56 = vsel %vm6575_vm7, %v6503_v21, 0.0  ;;  %v6389_v48 = vld [vmem:[%s15083_s19 + $0x30] sm:$0xff] }
0x1483   : > { %v6099_v58 = vpop.permute.xlu1 %6098 }
0x1485   : > { %v6094_v15 = vpop.permute.xlu0 %6093 }
0x153f   : > { %v8032_v8 = vpop.f32.mrf.mxu0 }
0x1540   : > { %v6179_v27 = vadd.f32 %v8032_v8, %v6099_v58  ;;  %v6402_v58 = vld [vmem:[%s15083_s19 + $0x98] sm:$0xff]  ;;  %v6597_v8 = vsel %vm6575_vm7, %v6486_v19, 0.0  ;;  %v6476_v19 = vld [vmem:[%s15083_s19 + $0x2e8] sm:$0xff] }
0x1541   : > { %v6173_v10 = vpop.f32.mrf.mxu0 }
0x1542   : > { %v14080_v49 = vmax.f32 %v6179_v27, 0.0  ;;  %v6174_v2 = vadd.f32 %v6173_v10, %v6094_v15  ;;  %v6485_v27 = vmul.f32 %v6389_v48, %v14038_v39  ;;  %v6498_v10 = vmul.f32 %v14034_v41, %v6402_v58 }
0x1544   : > { %v14082_v6 = vmax.f32 %v6174_v2, 0.0  ;;  %6196 = vrot.lane.b32.xlu1 %v14080_v49, %s15885_s28  ;;  %v6494_v32 = vmul.f32 %v6398_v24, %v14080_v49  ;;  %v6506_v26 = vmul.f32 %v6410_v33, %v14080_v49  ;;  %v6488_v25 = vmul.f32 %v6392_v60, %v14080_v49  ;;  %v6386_v2 = vld [vmem:[%s15083_s19 + $0x18] sm:$0xff]  ;;  %v6385_v24 = vld [vmem:[%s15083_s19 + $0x10] sm:$0xff]  ;;  %v6384_v33 = vld [vmem:[%s15083_s19 + $0x8] sm:$0xff] }
0x1545   : > { %v6500_v57 = vmul.f32 %v6404_v3, %v14080_v49  ;;  %v6482_v52 = vmul.f32 %v6386_v2, %v14080_v49  ;;  %v6542_v42 = vmul.f32 %v6446_v55, %v14080_v49  ;;  %v6428_v60 = vld [vmem:[%s15083_s19 + $0x168] sm:$0xff]  ;;  %v6461_v3 = vld [vmem:[%s15083_s19 + $0x270] sm:$0xff]  ;;  %v6572_v58 = vmul.f32 %v6476_v19, %v14080_v49  ;;  %v6426_v2 = vld [vmem:[%s15083_s19 + $0x158] sm:$0xff] }
0x1546   : > { %6194 = vrot.lane.b32.xlu0 %v14082_v6, %s15885_s28  ;;  %v6621_v34 = vsel %vm6575_vm7, %v6494_v32, 0.0  ;;  %v6493_v4 = vmul.f32 %v6397_v16, %v14082_v6  ;;  %v6657_v22 = vsel %vm6575_vm7, %v6506_v26, 0.0  ;;  %v6505_v45 = vmul.f32 %v6409_v23, %v14082_v6  ;;  %v6383_v32 = vld [vmem:[%s15083_s19] sm:$0xff] }
0x1547   : > { %v6603_v9 = vsel %vm6575_vm7, %v6488_v25, 0.0  ;;  %v6487_v20 = vmul.f32 %v6391_v14, %v14082_v6  ;;  %v6639_v54 = vsel %vm6575_vm7, %v6500_v57, 0.0  ;;  %v6499_v40 = vmul.f32 %v6403_v37, %v14082_v6 }
0x1548   : > { %v6618_v11 = vsel %vm6575_vm7, %v6493_v4, 0.0  ;;  %v6654_v51 = vsel %vm6575_vm7, %v6505_v45, 0.0  ;;  %v6585_v62 = vsel %vm6575_vm7, %v6482_v52, 0.0  ;;  %v6481_v7 = vmul.f32 %v6385_v24, %v14082_v6 }
0x1549   : > { %v6600_v18 = vsel %vm6575_vm7, %v6487_v20, 0.0  ;;  %v6636_v15 = vsel %vm6575_vm7, %v6499_v40, 0.0  ;;  %v6479_v16 = vmul.f32 %v6383_v32, %v14038_v39  ;;  %v6480_v26 = vmul.f32 %v14034_v41, %v6384_v33  ;;  %v6474_v32 = vld [vmem:[%s15083_s19 + $0x2d8] sm:$0xff] }
0x154a   : > { %v6558_v25 = vmul.f32 %v14034_v41, %v6462_v1  ;;  %v6524_v14 = vmul.f32 %v6428_v60, %v14080_v49  ;;  %v6557_v57 = vmul.f32 %v6461_v3, %v14038_v39  ;;  %v6522_v24 = vmul.f32 %v14034_v41, %v6426_v2  ;;  %v6287_v2 = vld [vmem:[%s15081_s17 + $0x18] sm:$0xff] }
0x154b   : > { %v6576_v23 = vsel %vm6575_vm7, %v6479_v16, 0.0  ;;  %v6579_v17 = vsel %vm6575_vm7, %v6480_v26, 0.0  ;;  %v6458_v16 = vld [vmem:[%s15083_s19 + $0x258] sm:$0xff]  ;;  %v6473_v26 = vld [vmem:[%s15083_s19 + $0x2d0] sm:$0xff] }
0x154c   : > { %v6711_v37 = vsel %vm6575_vm7, %v6524_v14, 0.0  ;;  %v6810_v48 = vsel %vm6575_vm7, %v6557_v57, 0.0  ;;  %v6569_v55 = vmul.f32 %v6473_v26, %v14038_v39 }
0x15b6   : > { %v6197_v12 = vpop.permute.xlu1 %6196 }
0x15b7   : > { %6203 = vst.msk [vmem:[#allocation2 + $0x60] sm:$0xff] %vm6044_vm1, %v6197_v12  ;;  %v6401_v12 = vld [vmem:[%s15083_s19 + $0x90] sm:$0xff] }
0x15b8   : > { %v6195_v31 = vpop.permute.xlu0 %6194 }
0x15b9   : > { %6202 = vst.msk [vmem:[#allocation2 + $0x40] sm:$0xff] %vm6044_vm1, %v6195_v31  ;;  %v6594_v31 = vsel %vm6575_vm7, %v6485_v27, 0.0 }
0x15be   : > { %v14090_v30 = vld [vmem:[#allocation2 + $0x60] sm:$0xff] }
0x15bf   : > { %6242 = vrot.lane.b32.xlu1 %v14090_v30, %s15909_s26 }
0x15c0   : > { %v14094_v44 = vld [vmem:[#allocation2 + $0x40] sm:$0xff] }
0x15c1   : > { %6240 = vrot.lane.b32.xlu0 %v14094_v44, %s15909_s26 }
0x15c3   : > { %6238 = vrot.lane.b32.xlu1 %v14098_v47, %s15909_s26 }
0x15c5   : > { %6236 = vrot.lane.b32.xlu0 %v14102_v13, %s15909_s26 }
0x15c7   : > { %6230 = vrot.lane.b32.xlu1 %v14090_v30, %s15915_s27 }
0x15c9   : > { %6228 = vrot.lane.b32.xlu0 %v14094_v44, %s15915_s27 }
0x15cb   : > { %6226 = vrot.lane.b32.xlu1 %v14098_v47, %s15915_s27 }
0x15cd   : > { %6224 = vrot.lane.b32.xlu0 %v14102_v13, %s15915_s27  ;;  %s16429_s27 = sld [smem:[#allocation88_spill]] }
0x15cf   : > { %6218 = vrot.lane.b32.xlu1 %v14090_v30, %s15919_s4 }
0x15d1   : > { %6216 = vrot.lane.b32.xlu0 %v14094_v44, %s15919_s4 }
0x15d3   : > { %6214 = vrot.lane.b32.xlu1 %v14098_v47, %s15919_s4 }
0x15d5   : > { %6212 = vrot.lane.b32.xlu0 %v14102_v13, %s15919_s4 }
0x15d7   : > { %6278 = vrot.lane.b32.xlu1 %v14090_v30, %s15926_s5 }
0x15d9   : > { %6276 = vrot.lane.b32.xlu0 %v14094_v44, %s15926_s5 }
0x15db   : > { %6274 = vrot.lane.b32.xlu1 %v14098_v47, %s15926_s5 }
0x15dd   : > { %6272 = vrot.lane.b32.xlu0 %v14102_v13, %s15926_s5  ;;  %s16431_s5 = sld [smem:[#allocation89_spill]] }
0x15df   : > { %6266 = vrot.lane.b32.xlu1 %v14090_v30, %s15323_s9 }
0x15e1   : > { %6264 = vrot.lane.b32.xlu0 %v14094_v44, %s15323_s9 }
0x15e3   : > { %6262 = vrot.lane.b32.xlu1 %v14098_v47, %s15323_s9  ;;  %s762_s29 = scalar_lea.vmem %s16431_s5, %s16434_s30 }
0x15e5   : > { %6260 = vrot.lane.b32.xlu0 %v14102_v13, %s15323_s9 }
0x15e7   : > { %6254 = vrot.lane.b32.xlu1 %v14090_v30, %s15328_s7 }
0x15e9   : > { %6252 = vrot.lane.b32.xlu0 %v14094_v44, %s15328_s7 }
0x15eb   : > { %6250 = vrot.lane.b32.xlu1 %v14098_v47, %s15328_s7 }
0x15ed   : > { %6248 = vrot.lane.b32.xlu0 %v14102_v13, %s15328_s7 }
0x15ef   : > { %6297 = vperm.xlu1 %8089, %v6289_v46   ;;  %v6633_v46 = vsel %vm6575_vm7, %v6498_v10, 0.0  ;;  %v6475_v10 = vld [vmem:[%s15083_s19 + $0x2e0] sm:$0xff] }
0x15f0   : > { %v6571_v52 = vmul.f32 %v6475_v10, %v14082_v6 }
0x15f1   : > { %6292 = vperm.xlu0 %8088, %v6288_v5   ;;  %v6497_v5 = vmul.f32 %v6401_v12, %v14038_v39 }
0x15f3   : > { %v6630_v53 = vsel %vm6575_vm7, %v6497_v5, 0.0 }
0x1610   : > { %6622 = vadd.xlane.f32.xlu0 %v6621_v34 }
0x1613   : > { %6670 = vadd.xlane.f32.xlu1 %v6669_v36  ;;  %v6445_v36 = vld [vmem:[%s15083_s19 + $0x1f0] sm:$0xff] }
0x1614   : > { %6667 = vadd.xlane.f32.xlu0 %v6666_v59  ;;  %v6582_v59 = vsel %vm6575_vm7, %v6481_v7, 0.0  ;;  %v6570_v7 = vmul.f32 %v14034_v41, %v6474_v32 }
0x1616   : > { %v6849_v33 = vsel %vm6575_vm7, %v6570_v7, 0.0 }
0x1617   : > { %6619 = vadd.xlane.f32.xlu1 %v6618_v11  ;;  %v6541_v11 = vmul.f32 %v6445_v36, %v14082_v6  ;;  %v6554_v36 = vmul.f32 %v6458_v16, %v14080_v49 }
0x1618   : > { %6658 = vadd.xlane.f32.xlu0 %v6657_v22  ;;  %v6444_v22 = vld [vmem:[%s15083_s19 + $0x1e8] sm:$0xff] }
0x1619   : > { %v6762_v61 = vsel %vm6575_vm7, %v6541_v11, 0.0  ;;  %v6801_v11 = vsel %vm6575_vm7, %v6554_v36, 0.0 }
0x161b   : > { %6616 = vadd.xlane.f32.xlu1 %v6615_v38 }
0x161c   : > { %6655 = vadd.xlane.f32.xlu0 %v6654_v51  ;;  %v6540_v51 = vmul.f32 %v14034_v41, %v6444_v22 }
0x161e   : > { %v6759_v21 = vsel %vm6575_vm7, %v6540_v51, 0.0 }
0x161f   : > { %6613 = vadd.xlane.f32.xlu1 %v6612_v0  ;;  %v6765_v0 = vsel %vm6575_vm7, %v6542_v42, 0.0  ;;  %v6438_v42 = vld [vmem:[%s15083_s19 + $0x1b8] sm:$0xff] }
0x1620   : > { %6652 = vadd.xlane.f32.xlu0 %v6651_v50 }
0x1623   : > { %6604 = vadd.xlane.f32.xlu1 %v6603_v9  ;;  %v6443_v9 = vld [vmem:[%s15083_s19 + $0x1e0] sm:$0xff] }
0x1624   : > { %6649 = vadd.xlane.f32.xlu0 %v6648_v56  ;;  %v6813_v56 = vsel %vm6575_vm7, %v6558_v25, 0.0  ;;  %v6422_v25 = vld [vmem:[%s15083_s19 + $0x138] sm:$0xff] }
0x1627   : > { %6601 = vadd.xlane.f32.xlu1 %v6600_v18  ;;  %v6539_v18 = vmul.f32 %v6443_v9, %v14038_v39  ;;  %v6518_v9 = vmul.f32 %v6422_v25, %v14080_v49  ;;  %v6405_v25 = vld [vmem:[%s15083_s19 + $0xb0] sm:$0xff] }
0x1628   : > { %6640 = vadd.xlane.f32.xlu0 %v6639_v54  ;;  %v6427_v54 = vld [vmem:[%s15083_s19 + $0x160] sm:$0xff] }
0x1629   : > { %v6756_v27 = vsel %vm6575_vm7, %v6539_v18, 0.0  ;;  %v6693_v18 = vsel %vm6575_vm7, %v6518_v9, 0.0 }
0x162b   : > { %6598 = vadd.xlane.f32.xlu1 %v6597_v8 }
0x162c   : > { %6637 = vadd.xlane.f32.xlu0 %v6636_v15  ;;  %v6523_v15 = vmul.f32 %v6427_v54, %v14082_v6  ;;  %v6470_v54 = vld [vmem:[%s15083_s19 + $0x2b8] sm:$0xff] }
0x162e   : > { %v6708_v5 = vsel %vm6575_vm7, %v6523_v15, 0.0 }
0x162f   : > { %6595 = vadd.xlane.f32.xlu1 %v6594_v31  ;;  %v6855_v31 = vsel %vm6575_vm7, %v6572_v58, 0.0 }
0x1630   : > { %6634 = vadd.xlane.f32.xlu0 %v6633_v46 }
0x1631   : > { %v6243_v43 = vpop.permute.xlu1 %6242 }
0x1632   : > { %6307 = vmatpush1.msra.mxu1 %v6243_v43 }
0x1633   : > { %6308 = vmatprep.subr.mxu1 %v16256_v35  ;;  %v6241_v34 = vpop.permute.xlu0 %6240  ;;  %6586 = vadd.xlane.f32.xlu1 %v6585_v62  ;;  %v6852_v62 = vsel %vm6575_vm7, %v6571_v52, 0.0  ;;  %v6420_v52 = vld [vmem:[%s15083_s19 + $0x128] sm:$0xff] }
0x1634   : > { %6309 = vmatpush1.msra.mxu1 %v6241_v34  ;;  %6631 = vadd.xlane.f32.xlu0 %v6630_v53 }
0x1635   : > { %v6239_v4 = vpop.permute.xlu1 %6238  ;;  %6310 = vmatprep.subr.mxu1 %v16256_v35 }
0x1636   : > { %6311 = vmatpush1.msra.mxu1 %v6239_v4 }
0x1637   : > { %6312 = vmatprep.subr.mxu1 %v16256_v35  ;;  %v6237_v28 = vpop.permute.xlu0 %6236  ;;  %6583 = vadd.xlane.f32.xlu1 %v6582_v59 }
0x1638   : > { %6313 = vmatpush1.msra.mxu1 %v6237_v28  ;;  %6577 = vadd.xlane.f32.xlu0 %v6576_v23  ;;  %v6439_v28 = vld [vmem:[%s15083_s19 + $0x1c0] sm:$0xff] }
0x1639   : > { %v6231_v45 = vpop.permute.xlu1 %6230  ;;  %6314 = vmatprep.subr.mxu1 %v16256_v35 }
0x163a   : > { %6315 = vmatpush1.msra.mxu1 %v6231_v45  ;;  %v6535_v45 = vmul.f32 %v6439_v28, %v14082_v6 }
0x163b   : > { %6316 = vmatprep.subr.mxu1 %v16256_v35  ;;  %v6229_v38 = vpop.permute.xlu0 %6228  ;;  %6580 = vadd.xlane.f32.xlu1 %v6579_v17  ;;  %v6457_v17 = vld [vmem:[%s15083_s19 + $0x250] sm:$0xff] }
0x163c   : > { %6317 = vmatpush1.msra.mxu1 %v6229_v38  ;;  %6763 = vadd.xlane.f32.xlu0 %v6762_v61  ;;  %v6846_v61 = vsel %vm6575_vm7, %v6569_v55, 0.0  ;;  %v6553_v51 = vmul.f32 %v6457_v17, %v14082_v6  ;;  %v6744_v60 = vsel %vm6575_vm7, %v6535_v45, 0.0 }
0x163d   : > { %v6227_v29 = vpop.permute.xlu1 %6226  ;;  %6318 = vmatprep.subr.mxu1 %v16256_v35 }
0x163e   : > { %6319 = vmatpush1.msra.mxu1 %v6227_v29  ;;  %v6534_v29 = vmul.f32 %v14034_v41, %v6438_v42 }
0x163f   : > { %6320 = vmatprep.subr.mxu1 %v16256_v35  ;;  %v6225_v50 = vpop.permute.xlu0 %6224  ;;  %6766 = vadd.xlane.f32.xlu1 %v6765_v0  ;;  %v6456_v0 = vld [vmem:[%s15083_s19 + $0x248] sm:$0xff] }
0x1640   : > { %6321 = vmatpush1.msra.mxu1 %v6225_v50  ;;  %6760 = vadd.xlane.f32.xlu0 %v6759_v21  ;;  %v6798_v50 = vsel %vm6575_vm7, %v6553_v51, 0.0  ;;  %v6552_v21 = vmul.f32 %v14034_v41, %v6456_v0  ;;  %v6741_v3 = vsel %vm6575_vm7, %v6534_v29, 0.0  ;;  %v6393_v51 = vld [vmem:[%s15083_s19 + $0x50] sm:$0xff]  ;;  %v6387_v0 = vld [vmem:[%s15083_s19 + $0x20] sm:$0xff] }
0x1641   : > { %v6219_v20 = vpop.permute.xlu1 %6218  ;;  %6322 = vmatprep.subr.mxu1 %v16256_v35 }
0x1642   : > { %6323 = vmatpush1.msra.mxu1 %v6219_v20  ;;  %v6455_v20 = vld [vmem:[%s15083_s19 + $0x240] sm:$0xff] }
0x1643   : > { %6324 = vmatprep.subr.mxu1 %v16256_v35  ;;  %v6217_v63 = vpop.permute.xlu0 %6216  ;;  %6814 = vadd.xlane.f32.xlu1 %v6813_v56  ;;  %v6437_v56 = vld [vmem:[%s15083_s19 + $0x1b0] sm:$0xff] }
0x1644   : > { %6325 = vmatpush1.msra.mxu1 %v6217_v63  ;;  %6712 = vadd.xlane.f32.xlu0 %v6711_v37  ;;  %v6795_v63 = vsel %vm6575_vm7, %v6552_v21, 0.0  ;;  %v6551_v37 = vmul.f32 %v6455_v20, %v14038_v39  ;;  %v6533_v19 = vmul.f32 %v6437_v56, %v14038_v39 }
0x1645   : > { %v6215_v40 = vpop.permute.xlu1 %6214  ;;  %6326 = vmatprep.subr.mxu1 %v16256_v35 }
0x1646   : > { %6327 = vmatpush1.msra.mxu1 %v6215_v40  ;;  %v6421_v40 = vld [vmem:[%s15083_s19 + $0x130] sm:$0xff]  ;;  %v6792_v58 = vsel %vm6575_vm7, %v6551_v37, 0.0  ;;  %v6738_v10 = vsel %vm6575_vm7, %v6533_v19, 0.0 }
0x1647   : > { %6328 = vmatprep.subr.mxu1 %v16256_v35  ;;  %v6213_v8 = vpop.permute.xlu0 %6212  ;;  %6811 = vadd.xlane.f32.xlu1 %v6810_v48 }
0x1648   : > { %6329 = vmatpush1.msra.mxu1 %v6213_v8  ;;  %6757 = vadd.xlane.f32.xlu0 %v6756_v27  ;;  %v6284_v8 = vld [vmem:[%s15081_s17] sm:$0xff]  ;;  %v6566_v27 = vmul.f32 %v6470_v54, %v14080_v49 }
0x1649   : > { %v6279_v12 = vpop.permute.xlu1 %6278  ;;  %6330 = vmatprep.subr.mxu1 %v16256_v35 }
0x164a   : > { %6331 = vmatpush1.msra.mxu1 %v14090_v30  ;;  %v6425_v30 = vld [vmem:[%s15083_s19 + $0x150] sm:$0xff] }
0x164b   : > { %6332 = vmatprep.subr.mxu1 %v16256_v35  ;;  %v6277_v46 = vpop.permute.xlu0 %6276  ;;  %6856 = vadd.xlane.f32.xlu1 %v6855_v31  ;;  %v6521_v53 = vmul.f32 %v6425_v30, %v14038_v39  ;;  %v6469_v31 = vld [vmem:[%s15083_s19 + $0x2b0] sm:$0xff]  ;;  %v6516_v30 = vmul.f32 %v14034_v41, %v6420_v52 }
0x164c   : > { %6333 = vmatpush1.msra.mxu1 %v14094_v44  ;;  %6709 = vadd.xlane.f32.xlu0 %v6708_v5  ;;  %v6705_v44 = vsel %vm6575_vm7, %v6522_v24, 0.0  ;;  %v6286_v5 = vld [vmem:[%s15081_s17 + $0x10] sm:$0xff]  ;;  %v6565_v24 = vmul.f32 %v6469_v31, %v14082_v6 }
0x164d   : > { %v6275_v43 = vpop.permute.xlu1 %6274  ;;  %6334 = vmatprep.subr.mxu1 %v16256_v35  ;;  %v6702_v59 = vsel %vm6575_vm7, %v6521_v53, 0.0  ;;  %v6441_v31 = vld [vmem:[%s15083_s19 + $0x1d0] sm:$0xff] }
0x164e   : > { %6335 = vmatpush1.msra.mxu1 %v14098_v47  ;;  %v6440_v47 = vld [vmem:[%s15083_s19 + $0x1c8] sm:$0xff] }
0x164f   : > { %6336 = vmatprep.subr.mxu1 %v16256_v35  ;;  %v6273_v34 = vpop.permute.xlu0 %6272  ;;  %6853 = vadd.xlane.f32.xlu1 %v6852_v62  ;;  %v6834_v62 = vsel %vm6575_vm7, %v6565_v24, 0.0 }
0x1650   : > { %6337 = vmatpush1.msra.mxu1 %v14102_v13  ;;  %6706 = vadd.xlane.f32.xlu0 %v6705_v44  ;;  %v6536_v13 = vmul.f32 %v6440_v47, %v14080_v49 }
0x1651   : > { %6346 = vmatprep.subr.mxu1 %v16256_v35  ;;  %v6267_v4 = vpop.permute.xlu1 %6266 }
0x1652   : > { %6347 = vmatpush2.msra.mxu1 %v6279_v12  ;;  %v6747_v22 = vsel %vm6575_vm7, %v6536_v13, 0.0  ;;  %v6517_v12 = vmul.f32 %v6421_v40, %v14082_v6 }
0x1653   : > { %6348 = vmatprep.subr.mxu1 %v16256_v35  ;;  %6850 = vadd.xlane.f32.xlu1 %v6849_v33  ;;  %v6265_v23 = vpop.permute.xlu0 %6264 }
0x1654   : > { %6349 = vmatpush2.msra.mxu1 %v6277_v46  ;;  %6703 = vadd.xlane.f32.xlu0 %v6702_v59  ;;  %v6837_v46 = vsel %vm6575_vm7, %v6566_v27, 0.0  ;;  %v6690_v32 = vsel %vm6575_vm7, %v6517_v12, 0.0  ;;  %v6471_v12 = vld [vmem:[%s15083_s19 + $0x2c0] sm:$0xff] }
0x1655   : > { %6350 = vmatprep.subr.mxu1 %v16256_v35  ;;  %v6263_v38 = vpop.permute.xlu1 %6262 }
0x1656   : > { %6351 = vmatpush2.msra.mxu1 %v6275_v43  ;;  %v6468_v43 = vld [vmem:[%s15083_s19 + $0x2a8] sm:$0xff] }
0x1657   : > { %6352 = vmatprep.subr.mxu1 %v16256_v35  ;;  %6802 = vadd.xlane.f32.xlu1 %v6801_v11  ;;  %v6261_v1 = vpop.permute.xlu0 %6260  ;;  %v6564_v7 = vmul.f32 %v14034_v41, %v6468_v43 }
0x1658   : > { %6353 = vmatpush2.msra.mxu1 %v6273_v34  ;;  %6748 = vadd.xlane.f32.xlu0 %v6747_v22  ;;  %v6687_v34 = vsel %vm6575_vm7, %v6516_v30, 0.0  ;;  %v6423_v30 = vld [vmem:[%s15083_s19 + $0x140] sm:$0xff] }
0x1659   : > { %6354 = vmatprep.subr.mxu1 %v16256_v35  ;;  %v6255_v14 = vpop.permute.xlu1 %6254  ;;  %v6831_v44 = vsel %vm6575_vm7, %v6564_v7, 0.0 }
0x165a   : > { %6355 = vmatpush2.msra.mxu1 %v6267_v4 }
0x165b   : > { %6356 = vmatprep.subr.mxu1 %v16256_v35  ;;  %6847 = vadd.xlane.f32.xlu1 %v6846_v61  ;;  %v6253_v57 = vpop.permute.xlu0 %6252 }
0x165c   : > { %6357 = vmatpush2.msra.mxu1 %v6265_v23  ;;  %6745 = vadd.xlane.f32.xlu0 %v6744_v60 }
0x165d   : > { %6358 = vmatprep.subr.mxu1 %v16256_v35  ;;  %v6251_v48 = vpop.permute.xlu1 %6250 }
0x165e   : > { %6359 = vmatpush2.msra.mxu1 %v6263_v38 }
0x165f   : > { %6360 = vmatprep.subr.mxu1 %v16256_v35  ;;  %6799 = vadd.xlane.f32.xlu1 %v6798_v50  ;;  %v6249_v15 = vpop.permute.xlu0 %6248 }
0x1660   : > { %6361 = vmatpush2.msra.mxu1 %v6261_v1  ;;  %6742 = vadd.xlane.f32.xlu0 %v6741_v3  ;;  %v6411_v1 = vld [vmem:[%s15083_s19 + $0xe0] sm:$0xff] }
0x1661   : > { %6362 = vmatprep.subr.mxu1 %v16256_v35 }
0x1662   : > { %6363 = vmatpush2.msra.mxu1 %v6255_v14 }
0x1663   : > { %6364 = vmatprep.subr.mxu1 %v16256_v35  ;;  %6796 = vadd.xlane.f32.xlu1 %v6795_v63  ;;  %v6399_v63 = vld [vmem:[%s15083_s19 + $0x80] sm:$0xff] }
0x1664   : > { %6365 = vmatpush2.msra.mxu1 %v6253_v57  ;;  %6694 = vadd.xlane.f32.xlu0 %v6693_v18  ;;  %v6477_v57 = vld [vmem:[%s15083_s19 + $0x2f0] sm:$0xff] }
0x1665   : > { %6366 = vmatprep.subr.mxu1 %v16256_v35 }
0x1666   : > { %6367 = vmatpush2.msra.mxu1 %v6251_v48  ;;  %v6459_v48 = vld [vmem:[%s15083_s19 + $0x260] sm:$0xff] }
0x1667   : > { %6368 = vmatprep.subr.mxu1 %v16256_v35  ;;  %6793 = vadd.xlane.f32.xlu1 %v6792_v58  ;;  %v6429_v58 = vld [vmem:[%s15083_s19 + $0x170] sm:$0xff] }
0x1668   : > { %6369 = vmatpush2.msra.mxu1 %v6249_v15  ;;  %6739 = vadd.xlane.f32.xlu0 %v6738_v10 }
0x1669   : > { %6371 = vmatmul.mubr.f32.vlgmr.msra.gmra.mxu1 %v6284_v8 }
0x166a   : > { %7654 = vmatprep.mubr.msk.f32.mxu1 %vm16392_vm8, %v6287_v2  ;;  %v14447_v16 = vpop.permute.xlu1 %6297 }
0x166b   : > { %6838 = vadd.xlane.f32.xlu1 %v6837_v46 }
0x166c   : > { %6691 = vadd.xlane.f32.xlu0 %v6690_v32  ;;  %v6293_v53 = vpop.permute.xlu0 %6292  ;;  %v6453_v32 = vld [vmem:[%s15083_s19 + $0x230] sm:$0xff] }
0x166d   : > { %6376 = vmatmul.mubr.f32.gmra.mxu1 %v6286_v5 }
0x166f   : > { %6835 = vadd.xlane.f32.xlu1 %v6834_v62 }
0x1670   : > { %6688 = vadd.xlane.f32.xlu0 %v6687_v34 }
0x1673   : > { %6832 = vadd.xlane.f32.xlu1 %v6831_v44 }
0x1699   : > { %v6623_v47 = vpop.xlane.xlu0 %6622 }
0x169c   : > { %v6671_v33 = vpop.xlane.xlu1 %6670 }
0x169d   : > { %7805 = vmatprep.subr.mxu0 %v6671_v33  ;;  %v6668_v36 = vpop.xlane.xlu0 %6667  ;;  %v6435_v33 = vld [vmem:[%s15083_s19 + $0x1a0] sm:$0xff] }
0x169e   : > { %7806 = vmatpush3.msra.mxu0 %v6623_v47  ;;  %v6452_v47 = vld [vmem:[%s15083_s19 + $0x228] sm:$0xff] }
0x169f   : > { %7807 = vmatprep.subr.mxu0 %v6668_v36 }
0x16a0   : > { %v6620_v4 = vpop.xlane.xlu1 %6619 }
0x16a1   : > { %7808 = vmatpush3.msra.mxu0 %v6620_v4  ;;  %v14493_v37 = vpop.xlane.xlu0 %6658 }
0x16a4   : > { %v14449_v59 = vpop.xlane.xlu1 %6616 }
0x16a5   : > { %v14505_v8 = vpop.xlane.xlu0 %6655 }
0x16a8   : > { %v14451_v13 = vpop.xlane.xlu1 %6613 }
0x16a9   : > { %v14527_v43 = vpop.xlane.xlu0 %6652 }
0x16ac   : > { %v14453_v26 = vpop.xlane.xlu1 %6604 }
0x16ad   : > { %v14541_v36 = vpop.xlane.xlu0 %6649 }
0x16b0   : > { %v14455_v28 = vpop.xlane.xlu1 %6601 }
0x16b4   : > { %v14457_v23 = vpop.xlane.xlu1 %6598 }
0x16b8   : > { %v14459_v11 = vpop.xlane.xlu1 %6595 }
0x16bc   : > { %v14461_v55 = vpop.xlane.xlu1 %6586 }
0x16c0   : > { %v14463_v22 = vpop.xlane.xlu1 %6583 }
0x16c4   : > { %v14465_v45 = vpop.xlane.xlu1 %6580 }
0x16c8   : > { %v6767_v17 = vpop.xlane.xlu1 %6766 }
0x16c9   : > { %7843 = vmatprep.subr.mxu1 %v6767_v17 }
0x1729   : > { %v6372_v42 = vpop.f32.mrf.mxu1 }
0x172a   : > { %v6373_v38 = vadd.f32 %v6372_v42, %v6293_v53 }
0x172b   : > { %v6374_v61 = vpop.f32.mrf.mxu1 }
0x172c   : > { %v14473_v60 = vmax.f32 %v6373_v38, 0.0  ;;  %v6467_v61 = vld [vmem:[%s15083_s19 + $0x2a0] sm:$0xff] }
0x172d   : > { %v6377_v29 = vpop.f32.mrf.mxu1 }
0x172e   : > { %v6489_v50 = vmul.f32 %v6393_v51, %v14473_v60  ;;  %v6507_v21 = vmul.f32 %v6411_v1, %v14473_v60  ;;  %v6483_v20 = vmul.f32 %v6387_v0, %v14473_v60  ;;  %v6501_v56 = vmul.f32 %v6405_v25, %v14473_v60  ;;  %v6412_v51 = vld [vmem:[%s15083_s19 + $0xe8] sm:$0xff] }
0x172f   : > { %v6379_v14 = vpop.f32.mrf.mxu1  ;;  %v6573_v54 = vmul.f32 %v6477_v57, %v14473_v60  ;;  %v6495_v40 = vmul.f32 %v6399_v63, %v14473_v60  ;;  %v6555_v10 = vmul.f32 %v6459_v48, %v14473_v60  ;;  %v6525_v2 = vmul.f32 %v6429_v58, %v14473_v60  ;;  %v6451_v57 = vld [vmem:[%s15083_s19 + $0x220] sm:$0xff]  ;;  %v6434_v63 = vld [vmem:[%s15083_s19 + $0x198] sm:$0xff] }
0x1730   : > { %v6606_v3 = vsel %vm6575_vm7, %v6489_v50, 0.0  ;;  %v6660_v9 = vsel %vm6575_vm7, %v6507_v21, 0.0  ;;  %v6588_v18 = vsel %vm6575_vm7, %v6483_v20, 0.0  ;;  %v6642_v19 = vsel %vm6575_vm7, %v6501_v56, 0.0  ;;  %v6394_v50 = vld [vmem:[%s15083_s19 + $0x58] sm:$0xff]  ;;  %v6419_v21 = vld [vmem:[%s15083_s19 + $0x120] sm:$0xff]  ;;  %v14564_v14 = vpop.xlane.xlu0 %6640 }
0x1731   : > { %6607 = vadd.xlane.f32.xlu1 %v6606_v3  ;;  %6661 = vadd.xlane.f32.xlu0 %v6660_v9  ;;  %v6858_v27 = vsel %vm6575_vm7, %v6573_v54, 0.0  ;;  %v6624_v15 = vsel %vm6575_vm7, %v6495_v40, 0.0  ;;  %v6804_v52 = vsel %vm6575_vm7, %v6555_v10, 0.0  ;;  %v6714_v46 = vsel %vm6575_vm7, %v6525_v2, 0.0  ;;  %v6450_v58 = vld [vmem:[%s15083_s19 + $0x218] sm:$0xff] }
0x1732   : > { %v6567_v5 = vmul.f32 %v6471_v12, %v14473_v60  ;;  %v6537_v24 = vmul.f32 %v6441_v31, %v14473_v60  ;;  %v6378_v62 = vadd.f32 %v6377_v29, %v14447_v16  ;;  %v6549_v44 = vmul.f32 %v6453_v32, %v14473_v60  ;;  %v6388_v31 = vld [vmem:[%s15083_s19 + $0x28] sm:$0xff] }
0x1733   : > { %v6519_v53 = vmul.f32 %v6423_v30, %v14473_v60  ;;  %v6548_v16 = vmul.f32 %v6452_v47, %v14080_v49  ;;  %v6531_v38 = vmul.f32 %v6435_v33, %v14473_v60  ;;  %v6563_v0 = vmul.f32 %v6467_v61, %v14038_v39 }
0x1734   : > { %v6840_v7 = vsel %vm6575_vm7, %v6567_v5, 0.0  ;;  %v6750_v34 = vsel %vm6575_vm7, %v6537_v24, 0.0  ;;  %v14543_v4 = vmax.f32 %v6378_v62, 0.0  ;;  %v6786_v17 = vsel %vm6575_vm7, %v6549_v44, 0.0  ;;  %v6465_v62 = vld [vmem:[%s15083_s19 + $0x290] sm:$0xff] }
0x1735   : > { %6589 = vadd.xlane.f32.xlu1 %v6588_v18  ;;  %6643 = vadd.xlane.f32.xlu0 %v6642_v19  ;;  %v6696_v42 = vsel %vm6575_vm7, %v6519_v53, 0.0  ;;  %v6783_v1 = vsel %vm6575_vm7, %v6548_v16, 0.0  ;;  %v6732_v29 = vsel %vm6575_vm7, %v6531_v38, 0.0  ;;  %v6828_v3 = vsel %vm6575_vm7, %v6563_v0, 0.0  ;;  %v14576_v18 = vpop.xlane.xlu0 %6637  ;;  %v6430_v16 = vld [vmem:[%s15083_s19 + $0x178] sm:$0xff] }
0x1736   : > { %v6508_v25 = vmul.f32 %v6412_v51, %v14543_v4  ;;  %v6490_v20 = vmul.f32 %v6394_v50, %v14543_v4  ;;  %v6515_v56 = vmul.f32 %v6419_v21, %v14038_v39  ;;  %v6547_v40 = vmul.f32 %v6451_v57, %v14082_v6 }
0x1737   : > { %v6530_v48 = vmul.f32 %v6434_v63, %v14080_v49  ;;  %v6546_v2 = vmul.f32 %v14034_v41, %v6450_v58  ;;  %v6484_v32 = vmul.f32 %v6388_v31, %v14543_v4  ;;  %v6561_v47 = vmul.f32 %v6465_v62, %v14473_v60  ;;  %v14668_v31 = vpop.xlane.xlu1 %6814  ;;  %v6431_v62 = vld [vmem:[%s15083_s19 + $0x180] sm:$0xff] }
0x1738   : > { %v6663_v9 = vsel %vm6575_vm7, %v6508_v25, 0.0  ;;  %v6609_v19 = vsel %vm6575_vm7, %v6490_v20, 0.0  ;;  %v6684_v54 = vsel %vm6575_vm7, %v6515_v56, 0.0  ;;  %v6526_v61 = vmul.f32 %v6430_v16, %v14543_v4  ;;  %v6416_v20 = vld [vmem:[%s15083_s19 + $0x108] sm:$0xff] }
0x1739   : > { %6859 = vadd.xlane.f32.xlu1 %v6858_v27  ;;  %6625 = vadd.xlane.f32.xlu0 %v6624_v15  ;;  %v6406_v27 = vld [vmem:[%s15083_s19 + $0xb8] sm:$0xff]  ;;  %v6780_v15 = vsel %vm6575_vm7, %v6547_v40, 0.0  ;;  %v6729_v10 = vsel %vm6575_vm7, %v6530_v48, 0.0  ;;  %v6777_v5 = vsel %vm6575_vm7, %v6546_v2, 0.0  ;;  %v6591_v44 = vsel %vm6575_vm7, %v6484_v32, 0.0  ;;  %v6424_v2 = vld [vmem:[%s15083_s19 + $0x148] sm:$0xff] }
0x173a   : > { %v6502_v12 = vmul.f32 %v6406_v27, %v14543_v4  ;;  %v6717_v25 = vsel %vm6575_vm7, %v6526_v61, 0.0  ;;  %v6442_v40 = vld [vmem:[%s15083_s19 + $0x1d8] sm:$0xff]  ;;  %v6520_v32 = vmul.f32 %v6424_v2, %v14543_v4 }
0x173b   : > { %v16394_v61 = vld [vmem:[#allocation8_spill] sm:$0xff] }
0x173c   : > { %v6645_v24 = vsel %vm6575_vm7, %v6502_v12, 0.0 }
0x173d   : > { %6805 = vadd.xlane.f32.xlu1 %v6804_v52  ;;  %6715 = vadd.xlane.f32.xlu0 %v6714_v46  ;;  %v6433_v52 = vld [vmem:[%s15083_s19 + $0x190] sm:$0xff]  ;;  %v14598_v46 = vpop.xlane.xlu0 %6634 }
0x173e   : > { %v6529_v30 = vmul.f32 %v6433_v52, %v14082_v6 }
0x1740   : > { %v6726_v53 = vsel %vm6575_vm7, %v6529_v30, 0.0  ;;  %v6454_v30 = vld [vmem:[%s15083_s19 + $0x238] sm:$0xff] }
0x1741   : > { %6841 = vadd.xlane.f32.xlu1 %v6840_v7  ;;  %6751 = vadd.xlane.f32.xlu0 %v6750_v34  ;;  %v6417_v7 = vld [vmem:[%s15083_s19 + $0x110] sm:$0xff]  ;;  %v14610_v34 = vpop.xlane.xlu0 %6631 }
0x1742   : > { %v6513_v33 = vmul.f32 %v6417_v7, %v14473_v60  ;;  %v16393_v7 = vld [vmem:[#allocation6_spill] sm:$0xff] }
0x1744   : > { %v6678_v38 = vsel %vm6575_vm7, %v6513_v33, 0.0  ;;  %v6527_v33 = vmul.f32 %v6431_v62, %v14038_v39 }
0x1745   : > { %6787 = vadd.xlane.f32.xlu1 %v6786_v17  ;;  %6697 = vadd.xlane.f32.xlu0 %v6696_v42  ;;  %v6400_v17 = vld [vmem:[%s15083_s19 + $0x88] sm:$0xff]  ;;  %v6822_v42 = vsel %vm6575_vm7, %v6561_v47, 0.0  ;;  %v14632_v0 = vpop.xlane.xlu0 %6577  ;;  %v6550_v47 = vmul.f32 %v6454_v30, %v14543_v4  ;;  %v6463_v30 = vld [vmem:[%s15083_s19 + $0x280] sm:$0xff] }
0x1746   : > { %v6496_v51 = vmul.f32 %v6400_v17, %v14543_v4  ;;  %v14688_v17 = vpop.xlane.xlu1 %6811 }
0x1748   : > { %v6627_v50 = vsel %vm6575_vm7, %v6496_v51, 0.0 }
0x1749   : > { %6784 = vadd.xlane.f32.xlu1 %v6783_v1  ;;  %6733 = vadd.xlane.f32.xlu0 %v6732_v29  ;;  %v6478_v1 = vld [vmem:[%s15083_s19 + $0x2f8] sm:$0xff]  ;;  %v6432_v29 = vld [vmem:[%s15083_s19 + $0x188] sm:$0xff]  ;;  %v14644_v56 = vpop.xlane.xlu0 %6763 }
0x174a   : > { %v6574_v21 = vmul.f32 %v6478_v1, %v14543_v4  ;;  %v6464_v1 = vld [vmem:[%s15083_s19 + $0x288] sm:$0xff] }
0x174c   : > { %v6861_v57 = vsel %vm6575_vm7, %v6574_v21, 0.0  ;;  %v6560_v21 = vmul.f32 %v6464_v1, %v14080_v49 }
0x174d   : > { %6829 = vadd.xlane.f32.xlu1 %v6828_v3  ;;  %6664 = vadd.xlane.f32.xlu0 %v6663_v9  ;;  %v6528_v3 = vmul.f32 %v14034_v41, %v6432_v29  ;;  %v6460_v9 = vld [vmem:[%s15083_s19 + $0x268] sm:$0xff]  ;;  %v6512_v41 = vmul.f32 %v6416_v20, %v14080_v49  ;;  %v14666_v12 = vpop.xlane.xlu0 %6760  ;;  %v16395_v29 = vld [vmem:[#allocation32_spill] sm:$0xff] }
0x174f   : > { %v6723_v63 = vsel %vm6575_vm7, %v6528_v3, 0.0  ;;  %v6675_v58 = vsel %vm6575_vm7, %v6512_v41, 0.0  ;;  %v6819_v41 = vsel %vm6575_vm7, %v6560_v21, 0.0  ;;  %v14784_v21 = vadd.s32 640, %v16395_v29 }
0x1751   : > { %6610 = vadd.xlane.f32.xlu1 %v6609_v19  ;;  %6685 = vadd.xlane.f32.xlu0 %v6684_v54  ;;  %v6556_v19 = vmul.f32 %v6460_v9, %v14543_v4  ;;  %v6449_v54 = vld [vmem:[%s15083_s19 + $0x210] sm:$0xff]  ;;  %v14686_v16 = vpop.xlane.xlu0 %6712  ;;  %v15289_v9 = vmov 1.0   ;;  %16400 = vst [vmem:[#allocation56_spill] sm:$0xff] %v14784_v21 }
0x1752   : > { %v6545_v27 = vmul.f32 %v6449_v54, %v14038_v39  ;;  %v6436_v39 = vld [vmem:[%s15083_s19 + $0x1a8] sm:$0xff] }
0x1753   : > { %v6807_v48 = vsel %vm6575_vm7, %v6556_v19, 0.0  ;;  %v6532_v3 = vmul.f32 %v6436_v39, %v14543_v4  ;;  %v14725_v19 = vpop.xlane.xlu1 %6856 }
0x1754   : > { %v6774_v52 = vsel %vm6575_vm7, %v6545_v27, 0.0  ;;  %v6415_v27 = vld [vmem:[%s15083_s19 + $0x100] sm:$0xff] }
0x1755   : > { %6781 = vadd.xlane.f32.xlu1 %v6780_v15  ;;  %6730 = vadd.xlane.f32.xlu0 %v6729_v10  ;;  %v6538_v15 = vmul.f32 %v6442_v40, %v14543_v4  ;;  %v6472_v10 = vld [vmem:[%s15083_s19 + $0x2c8] sm:$0xff]  ;;  %v14723_v49 = vpop.xlane.xlu0 %6757  ;;  %v6735_v54 = vsel %vm6575_vm7, %v6532_v3, 0.0  ;;  %v14787_v3 = vadd.s32 512, %v16395_v29 }
0x1757   : > { %16401 = vst [vmem:[#allocation57_spill] sm:$0xff] %v14787_v3 }
0x1759   : > { %6778 = vadd.xlane.f32.xlu1 %v6777_v5  ;;  %6646 = vadd.xlane.f32.xlu0 %v6645_v24  ;;  %v6753_v5 = vsel %vm6575_vm7, %v6538_v15, 0.0  ;;  %v6568_v24 = vmul.f32 %v6472_v10, %v14543_v4  ;;  %v14737_v15 = vpop.xlane.xlu0 %6709  ;;  %v14739_v10 = vpop.xlane.xlu1 %6853 }
0x175d   : > { %6592 = vadd.xlane.f32.xlu1 %v6591_v44  ;;  %6727 = vadd.xlane.f32.xlu0 %v6726_v53  ;;  %v14681_v44 = vmul.u32 48, %v16393_v7  ;;  %v6882_v53 = vadd.s32 1, %v16393_v7 }
0x175f   : > { %vm6871_vm2 = vcmp.ge.s32.totalorder %v16394_v61, %v14681_v44  ;;  %v14694_v51 = vmul.u32 48, %v6882_v53  ;;  %vm6870_vm5 = vcmp.ge.s32.totalorder %v16395_v29, %v14681_v44  ;;  %vm6875_vm15 = vcmp.ge.s32.totalorder %v14784_v21, %v14681_v44 }
0x1760   : > { %vm6874_vm8 = vcmp.ge.s32.totalorder %v14787_v3, %v14681_v44 }
0x1761   : > { %6823 = vadd.xlane.f32.xlu1 %v6822_v42  ;;  %6679 = vadd.xlane.f32.xlu0 %v6678_v38  ;;  %v6843_v42 = vsel %vm6575_vm7, %v6568_v24, 0.0  ;;  %v6699_v38 = vsel %vm6575_vm7, %v6520_v32, 0.0  ;;  %vm6887_vm0 = vcmp.lt.s32.totalorder %v16394_v61, %v14694_v51  ;;  %vm6886_vm9 = vcmp.lt.s32.totalorder %v16395_v29, %v14694_v51  ;;  %v6447_v32 = vld [vmem:[%s15083_s19 + $0x200] sm:$0xff] }
0x1762   : > { %vm6899_vm14 = vmand %vm6871_vm2, %vm6887_vm0  ;;  %v6511_v24 = vmul.f32 %v6415_v27, %v14082_v6  ;;  %v6543_v53 = vmul.f32 %v6447_v32, %v14473_v60  ;;  %v14766_v60 = vadd.s32 384, %v16395_v29  ;;  %vm6890_vm2 = vcmp.lt.s32.totalorder %v14787_v3, %v14694_v51 }
0x1763   : > { %7655 = vmatprep.mubr.msk.f32.mxu0 %vm6899_vm14, %v15289_v9  ;;  %vm14713_vm4 = vmand %vm6870_vm5, %vm6886_vm9 }
0x1764   : > { %v6672_v7 = vsel %vm6575_vm7, %v6511_v24, 0.0  ;;  %16398 = vst [vmem:[#allocation54_spill] sm:$0xff] %v14766_v60  ;;  %vm6873_vm13 = vcmp.ge.s32.totalorder %v14766_v60, %v14681_v44  ;;  %vm6889_vm1 = vcmp.lt.s32.totalorder %v14766_v60, %v14694_v51  ;;  %vm14810_vm0 = vmand %vm6874_vm8, %vm6890_vm2 }
0x1765   : > { %6718 = vadd.xlane.f32.xlu1 %v6717_v25  ;;  %6628 = vadd.xlane.f32.xlu0 %v6627_v50  ;;  %v6789_v25 = vsel %vm6575_vm7, %v6550_v47, 0.0  ;;  %v6720_v50 = vsel %vm6575_vm7, %v6527_v33, 0.0  ;;  %v14755_v47 = vpop.xlane.xlu0 %6706  ;;  %v14757_v33 = vpop.xlane.xlu1 %6850  ;;  %vm6901_vm3 = vmand %vm6873_vm13, %vm6889_vm1 }
0x1766   : > { %7659 = vmatprep.mubr.msk.f32.mxu1 %vm6901_vm3, %v15289_v9 }
0x1769   : > { %6862 = vadd.xlane.f32.xlu1 %v6861_v57  ;;  %6724 = vadd.xlane.f32.xlu0 %v6723_v63  ;;  %v6466_v57 = vld [vmem:[%s15083_s19 + $0x298] sm:$0xff]  ;;  %v14761_v1 = vpop.xlane.xlu0 %6703  ;;  %v14763_v39 = vpop.xlane.xlu1 %6802 }
0x176a   : > { %v6418_v63 = vld [vmem:[%s15083_s19 + $0x118] sm:$0xff]  ;;  %v6562_v40 = vmul.f32 %v6466_v57, %v14543_v4  ;;  %v16402_v57 = vmov 0 }
0x176c   : > { %v6825_v2 = vsel %vm6575_vm7, %v6562_v40, 0.0  ;;  %v16407_v40 = vmov 0 }
0x176d   : > { %6808 = vadd.xlane.f32.xlu1 %v6807_v48  ;;  %6676 = vadd.xlane.f32.xlu0 %v6675_v58  ;;  %v6514_v48 = vmul.f32 %v6418_v63, %v14543_v4  ;;  %v6448_v58 = vld [vmem:[%s15083_s19 + $0x208] sm:$0xff]  ;;  %v16408_v40 = vsel %vm14810_vm0, 4294967295, %v16407_v40  ;;  %v7151_v63 = vld [vmem:[%s15085_s21] sm:$0xff] }
0x176e   : > { %16409 = vst [vmem:[#allocation71_spill] sm:$0xff] %v16408_v40 }
0x1771   : > { %6775 = vadd.xlane.f32.xlu1 %v6774_v52  ;;  %6754 = vadd.xlane.f32.xlu0 %v6753_v5  ;;  %v6681_v52 = vsel %vm6575_vm7, %v6514_v48, 0.0  ;;  %v6544_v5 = vmul.f32 %v6448_v58, %v14543_v4  ;;  %v6559_v4 = vmul.f32 %v6463_v30, %v14082_v6  ;;  %v14768_v6 = vpop.xlane.xlu0 %6748 }
0x1773   : > { %v6771_v62 = vsel %vm6575_vm7, %v6544_v5, 0.0 }
0x1775   : > { %6844 = vadd.xlane.f32.xlu1 %v6843_v42  ;;  %6700 = vadd.xlane.f32.xlu0 %v6699_v38  ;;  %v6768_v42 = vsel %vm6575_vm7, %v6543_v53, 0.0  ;;  %v6816_v38 = vsel %vm6575_vm7, %v6559_v4, 0.0  ;;  %vm6891_vm7 = vcmp.lt.s32.totalorder %v14784_v21, %v14694_v51 }
0x1776   : > { %vm14802_vm5 = vmand %vm6875_vm15, %vm6891_vm7 }
0x1779   : > { %6790 = vadd.xlane.f32.xlu1 %v6789_v25  ;;  %6721 = vadd.xlane.f32.xlu0 %v6720_v50  ;;  %v14770_v25 = vpop.xlane.xlu1 %6847  ;;  %v14773_v50 = vadd.s32 256, %v16395_v29 }
0x177b   : > { %16399 = vst [vmem:[#allocation55_spill] sm:$0xff] %v14773_v50  ;;  %vm6872_vm11 = vcmp.ge.s32.totalorder %v14773_v50, %v14681_v44  ;;  %vm6888_vm6 = vcmp.lt.s32.totalorder %v14773_v50, %v14694_v51 }
0x177c   : > { %vm14790_vm12 = vmand %vm6872_vm11, %vm6888_vm6 }
0x177d   : > { %6820 = vadd.xlane.f32.xlu1 %v6819_v41  ;;  %6736 = vadd.xlane.f32.xlu0 %v6735_v54  ;;  %v16403_v57 = vsel %vm14790_vm12, 4294967295, %v16402_v57  ;;  %v14806_v41 = vpop.xlane.xlu0 %6745  ;;  %v14808_v54 = vpop.xlane.xlu1 %6799 }
0x177e   : > { %16404 = vst [vmem:[#allocation58_spill] sm:$0xff] %v16403_v57 }
0x1781   : > { %6826 = vadd.xlane.f32.xlu1 %v6825_v2  ;;  %6682 = vadd.xlane.f32.xlu0 %v6681_v52  ;;  %v14814_v48 = vpop.xlane.xlu0 %6742  ;;  %v14816_v58 = vpop.xlane.xlu1 %6796 }
0x1785   : > { %6772 = vadd.xlane.f32.xlu1 %v6771_v62  ;;  %6673 = vadd.xlane.f32.xlu0 %v6672_v7  ;;  %v14818_v44 = vpop.xlane.xlu0 %6694  ;;  %v14820_v27 = vpop.xlane.xlu1 %6793 }
0x1789   : > { %6769 = vadd.xlane.f32.xlu1 %v6768_v42  ;;  %6817 = vadd.xlane.f32.xlu0 %v6816_v38  ;;  %v14822_v51 = vpop.xlane.xlu0 %6739  ;;  %v14824_v2 = vpop.xlane.xlu1 %6838 }
0x178d   : > { %v14826_v52 = vpop.xlane.xlu0 %6691  ;;  %v14828_v5 = vpop.xlane.xlu1 %6835 }
0x178e   : > { %16410 = vst [vmem:[#allocation68_spill] sm:$0xff] %v14826_v52 }
0x1791   : > { %v14830_v24 = vpop.xlane.xlu0 %6688  ;;  %v14832_v32 = vpop.xlane.xlu1 %6832 }
0x1792   : > { %16411 = vst [vmem:[#allocation74_spill] sm:$0xff] %v14830_v24  ;;  %16412 = vst [vmem:[#allocation42_spill] sm:$0xff] %v14832_v32 }
0x1799   : > { %v16419_v20 = vld [vmem:[#allocation74_spill] sm:$0xff] }
0x17ba   : > { %v6608_v30 = vpop.xlane.xlu1 %6607  ;;  %v6662_v62 = vpop.xlane.xlu0 %6661 }
0x17be   : > { %v6590_v7 = vpop.xlane.xlu1 %6589  ;;  %v6644_v53 = vpop.xlane.xlu0 %6643 }
0x17c2   : > { %v14834_v4 = vpop.xlane.xlu1 %6859  ;;  %v6626_v42 = vpop.xlane.xlu0 %6625 }
0x17c6   : > { %v14836_v38 = vpop.xlane.xlu1 %6805  ;;  %v6716_v9 = vpop.xlane.xlu0 %6715 }
0x17ca   : > { %v14838_v35 = vpop.xlane.xlu1 %6841  ;;  %v14840_v40 = vpop.xlane.xlu0 %6751 }
0x17ce   : > { %v14842_v3 = vpop.xlane.xlu1 %6787  ;;  %v14844_v57 = vpop.xlane.xlu0 %6697 }
0x17d2   : > { %v14846_v50 = vpop.xlane.xlu1 %6784  ;;  %v14848_v21 = vpop.xlane.xlu0 %6733 }
0x17d3   : > { %16413 = vst [vmem:[#allocation40_spill] sm:$0xff] %v14846_v50  ;;  %16414 = vst [vmem:[#allocation44_spill] sm:$0xff] %v14848_v21 }
0x17d6   : > { %v14850_v60 = vpop.xlane.xlu1 %6829  ;;  %v6665_v24 = vpop.xlane.xlu0 %6664 }
0x17d7   : > { %7809 = vmatprep.subr.mxu0 %v6665_v24  ;;  %v6923_v24 = vld [vmem:[%s15084_s20 + $0x8] sm:$0xff] }
0x17d8   : > { %7810 = vmatpush3.msra.mxu0 %v14449_v59 }
0x17d9   : > { %7811 = vmatprep.subr.mxu0 %v6662_v62 }
0x17da   : > { %v6611_v32 = vpop.xlane.xlu1 %6610  ;;  %7812 = vmatpush3.msra.mxu0 %v14451_v13  ;;  %v14854_v52 = vpop.xlane.xlu0 %6685 }
0x17db   : > { %7813 = vmatprep.subr.mxu0 %v14493_v37 }
0x17dc   : > { %7814 = vmatpush3.msra.mxu0 %v6611_v32 }
0x17dd   : > { %7815 = vmatprep.subr.mxu0 %v14505_v8 }
0x17de   : > { %v14858_v50 = vpop.xlane.xlu1 %6781  ;;  %7816 = vmatpush3.msra.mxu0 %v6608_v30  ;;  %v14860_v21 = vpop.xlane.xlu0 %6730 }
0x17df   : > { %7817 = vmatprep.subr.mxu0 %v14527_v43 }
0x17e0   : > { %7818 = vmatpush3.msra.mxu0 %v14453_v26  ;;  %v16415_v26 = vld [vmem:[#allocation22_spill] sm:$0xff] }
0x17e1   : > { %7819 = vmatprep.subr.mxu0 %v14541_v36  ;;  %v6883_v43 = vadd.s32 1, %v16415_v26 }
0x17e2   : > { %v14865_v59 = vpop.xlane.xlu1 %6778  ;;  %7820 = vmatpush3.msra.mxu0 %v14455_v28  ;;  %v6647_v13 = vpop.xlane.xlu0 %6646 }
0x17e3   : > { %7821 = vmatprep.subr.mxu0 %v6647_v13 }
0x17e4   : > { %7822 = vmatpush3.msra.mxu0 %v14457_v23  ;;  %v14882_v23 = vmul.u32 48, %v16415_v26 }
0x17e5   : > { %7823 = vmatprep.subr.mxu0 %v6644_v53 }
0x17e6   : > { %v6593_v37 = vpop.xlane.xlu1 %6592  ;;  %7824 = vmatpush3.msra.mxu0 %v14459_v11  ;;  %v14870_v8 = vpop.xlane.xlu0 %6727  ;;  %v14884_v11 = vmul.u32 48, %v6883_v43  ;;  %vm6877_vm9 = vcmp.ge.s32.totalorder %v16394_v61, %v14882_v23  ;;  %vm6876_vm13 = vcmp.ge.s32.totalorder %v16395_v29, %v14882_v23 }
0x17e7   : > { %7825 = vmatprep.subr.mxu0 %v14564_v14 }
0x17e8   : > { %7826 = vmatpush3.msra.mxu0 %v6593_v37  ;;  %vm6893_vm14 = vcmp.lt.s32.totalorder %v16394_v61, %v14884_v11  ;;  %vm6892_vm1 = vcmp.lt.s32.totalorder %v16395_v29, %v14884_v11  ;;  %v16417_v29 = vld [vmem:[#allocation68_spill] sm:$0xff] }
0x17e9   : > { %7827 = vmatprep.subr.mxu0 %v14576_v18  ;;  %vm6905_vm11 = vmand %vm6877_vm9, %vm6893_vm14 }
0x17ea   : > { %v14875_v36 = vpop.xlane.xlu1 %6823  ;;  %7828 = vmatpush3.msra.mxu0 %v6590_v7  ;;  %v14877_v28 = vpop.xlane.xlu0 %6679  ;;  %vm6904_vm6 = vmand %vm6876_vm13, %vm6892_vm1 }
0x17eb   : > { %7829 = vmatprep.subr.mxu0 %v14598_v46 }
0x17ec   : > { %7830 = vmatpush3.msra.mxu0 %v14461_v55 }
0x17ed   : > { %7831 = vmatprep.subr.mxu0 %v14610_v34 }
0x17ee   : > { %v6719_v14 = vpop.xlane.xlu1 %6718  ;;  %7832 = vmatpush3.msra.mxu0 %v14463_v22  ;;  %v6629_v18 = vpop.xlane.xlu0 %6628 }
0x17ef   : > { %7833 = vmatprep.subr.mxu0 %v6629_v18  ;;  %7844 = vmatpush3.msra.mxu1 %v6719_v14  ;;  %v7154_v14 = vld [vmem:[%s15085_s21 + $0x18] sm:$0xff]  ;;  %v7155_v18 = vld [vmem:[%s15085_s21 + $0x20] sm:$0xff] }
0x17f0   : > { %7834 = vmatpush3.msra.mxu0 %v14465_v45  ;;  %7845 = vmatprep.subr.mxu1 %v14644_v56  ;;  %v16416_v45 = vmov 1.0  }
0x17f1   : > { %7835 = vmatprep.subr.mxu0 %v6626_v42  ;;  %7846 = vmatpush3.msra.mxu1 %v6716_v9  ;;  %v16418_v9 = vld [vmem:[#allocation42_spill] sm:$0xff] }
0x17f2   : > { %v6863_v55 = vpop.xlane.xlu1 %6862  ;;  %7836 = vmatpush3.msra.mxu0 %v14632_v0  ;;  %7847 = vmatprep.subr.mxu1 %v14666_v12  ;;  %v14896_v22 = vpop.xlane.xlu0 %6724 }
0x17f3   : > { %7848 = vmatpush3.msra.mxu1 %v14686_v16  ;;  %7881 = vmatprep.subr.mxu0 %v6863_v55  ;;  %v7156_v55 = vld [vmem:[%s15085_s21 + $0x28] sm:$0xff] }
0x17f4   : > { %7656 = vmatmul.mubr.msk.f32.vlgmr.msra.gmra.mxu0 %vm14713_vm4, %v16416_v45  ;;  %7849 = vmatprep.subr.mxu1 %v14723_v49  ;;  %v16420_v49 = vld [vmem:[#allocation40_spill] sm:$0xff] }
0x17f5   : > { %7882 = vmatpush3.msra.mxu0 %v14668_v31  ;;  %7850 = vmatpush3.msra.mxu1 %v14737_v15 }
0x17f6   : > { %7883 = vmatprep.subr.mxu0 %v14834_v4  ;;  %v6809_v46 = vpop.xlane.xlu1 %6808  ;;  %v14910_v34 = vpop.xlane.xlu0 %6676  ;;  %7657 = vmatprep.mubr.msk.f32.mxu0 %vm6905_vm11, %v16416_v45  ;;  %vm7167_vm11 = vcmask 130048  }
0x17f7   : > { %7884 = vmatpush3.msra.mxu0 %v14688_v17 }
0x17f8   : > { %7885 = vmatprep.subr.mxu0 %v14725_v19  ;;  %7658 = vmatmul.mubr.msk.f32.gmra.mxu0 %vm6904_vm6, %v16416_v45  ;;  %v16421_v19 = vld [vmem:[#allocation44_spill] sm:$0xff] }
0x17f9   : > { %7886 = vmatpush3.msra.mxu0 %v6809_v46  ;;  %7663 = vmatprep.mubr.msk.f32.mxu0 %vm14802_vm5, %v16416_v45 }
0x17fa   : > { %7887 = vmatprep.subr.mxu0 %v14739_v10  ;;  %v6776_v0 = vpop.xlane.xlu1 %6775  ;;  %v6755_v56 = vpop.xlane.xlu0 %6754 }
0x17fb   : > { %7888 = vmatpush3.msra.mxu0 %v14836_v38  ;;  %7851 = vmatprep.subr.mxu1 %v6755_v56 }
0x17fc   : > { %7889 = vmatprep.subr.mxu0 %v14757_v33  ;;  %7852 = vmatpush3.msra.mxu1 %v14755_v47 }
0x17fd   : > { %7890 = vmatpush3.msra.mxu0 %v14763_v39  ;;  %7853 = vmatprep.subr.mxu1 %v14840_v40  ;;  %v16423_v39 = vld [vmem:[#allocation56_spill] sm:$0xff] }
0x17fe   : > { %7891 = vmatprep.subr.mxu0 %v14770_v25  ;;  %v6845_v12 = vpop.xlane.xlu1 %6844  ;;  %7854 = vmatpush3.msra.mxu1 %v14761_v1  ;;  %v6701_v31 = vpop.xlane.xlu0 %6700  ;;  %v16422_v1 = vld [vmem:[#allocation54_spill] sm:$0xff]  ;;  %vm6881_vm15 = vcmp.ge.s32.totalorder %v16423_v39, %v14882_v23  ;;  %vm6897_vm7 = vcmp.lt.s32.totalorder %v16423_v39, %v14884_v11 }
0x17ff   : > { %7892 = vmatpush3.msra.mxu0 %v14808_v54  ;;  %7855 = vmatprep.subr.mxu1 %v14768_v6  ;;  %vm6879_vm4 = vcmp.ge.s32.totalorder %v16422_v1, %v14882_v23  ;;  %vm6895_vm3 = vcmp.lt.s32.totalorder %v16422_v1, %v14884_v11  ;;  %vm6909_vm9 = vmand %vm6881_vm15, %vm6897_vm7  ;;  %v7161_v1 = vld [vmem:[%s15086_s22 + $0x10] sm:$0xff] }
0x1800   : > { %7893 = vmatprep.subr.mxu0 %v6845_v12  ;;  %7856 = vmatpush3.msra.mxu1 %v6701_v31  ;;  %vm6907_vm8 = vmand %vm6879_vm4, %vm6895_vm3 }
0x1801   : > { %7894 = vmatpush3.msra.mxu0 %v14816_v58  ;;  %7857 = vmatprep.subr.mxu1 %v14806_v41 }
0x1802   : > { %7895 = vmatprep.subr.mxu0 %v14838_v35  ;;  %v6791_v16 = vpop.xlane.xlu1 %6790  ;;  %7858 = vmatpush3.msra.mxu1 %v14844_v57  ;;  %v6722_v17 = vpop.xlane.xlu0 %6721  ;;  %v16428_v57 = vmov 0.0  }
0x1803   : > { %7896 = vmatpush3.msra.mxu0 %v14820_v27  ;;  %7859 = vmatprep.subr.mxu1 %v14814_v48  ;;  %v6922_v27 = vld [vmem:[%s15084_s20] sm:$0xff] }
0x1804   : > { %7897 = vmatprep.subr.mxu0 %v14824_v2  ;;  %7860 = vmatpush3.msra.mxu1 %v14818_v44 }
0x1805   : > { %7898 = vmatpush3.msra.mxu0 %v6791_v16  ;;  %7861 = vmatprep.subr.mxu1 %v14822_v51  ;;  %v7166_v16 = vld [vmem:[%s15086_s22 + $0x38] sm:$0xff] }
0x1806   : > { %7899 = vmatprep.subr.mxu0 %v14828_v5  ;;  %v6821_v61 = vpop.xlane.xlu1 %6820  ;;  %7862 = vmatpush3.msra.mxu1 %v16417_v29  ;;  %v6737_v35 = vpop.xlane.xlu0 %6736  ;;  %v7165_v29 = vld [vmem:[%s15086_s22 + $0x30] sm:$0xff] }
0x1807   : > { %7900 = vmatpush3.msra.mxu0 %v14842_v3  ;;  %7863 = vmatprep.subr.mxu1 %v6737_v35 }
0x1808   : > { %7901 = vmatprep.subr.mxu0 %v16418_v9  ;;  %7864 = vmatpush3.msra.mxu1 %v16419_v20  ;;  %v7163_v9 = vld [vmem:[%s15086_s22 + $0x20] sm:$0xff] }
0x1809   : > { %7902 = vmatpush3.msra.mxu0 %v16420_v49  ;;  %7865 = vmatprep.subr.mxu1 %v16421_v19 }
0x180a   : > { %7903 = vmatprep.subr.mxu0 %v14850_v60  ;;  %v6827_v15 = vpop.xlane.xlu1 %6826  ;;  %7866 = vmatpush3.msra.mxu1 %v14854_v52  ;;  %v6683_v10 = vpop.xlane.xlu0 %6682  ;;  %v16424_v60 = vld [vmem:[#allocation55_spill] sm:$0xff] }
0x180b   : > { %7904 = vmatpush3.msra.mxu0 %v14858_v50  ;;  %7867 = vmatprep.subr.mxu1 %v14860_v21  ;;  %vm6878_vm2 = vcmp.ge.s32.totalorder %v16424_v60, %v14882_v23  ;;  %vm6894_vm5 = vcmp.lt.s32.totalorder %v16424_v60, %v14884_v11  ;;  %v16426_v21 = vld [vmem:[#allocation57_spill] sm:$0xff] }
0x180c   : > { %7905 = vmatprep.subr.mxu0 %v6827_v15  ;;  %7868 = vmatpush3.msra.mxu1 %v6683_v10  ;;  %vm6880_vm14 = vcmp.ge.s32.totalorder %v16426_v21, %v14882_v23  ;;  %vm6896_vm13 = vcmp.lt.s32.totalorder %v16426_v21, %v14884_v11  ;;  %vm6906_vm1 = vmand %vm6878_vm2, %vm6894_vm5  ;;  %v7152_v23 = vld [vmem:[%s15085_s21 + $0x8] sm:$0xff]  ;;  %v7153_v11 = vld [vmem:[%s15085_s21 + $0x10] sm:$0xff] }
0x180d   : > { %7906 = vmatpush3.msra.mxu0 %v14865_v59  ;;  %7869 = vmatprep.subr.mxu1 %v14870_v8  ;;  %v7162_v10 = vld [vmem:[%s15086_s22 + $0x18] sm:$0xff]  ;;  %v7159_v21 = vld [vmem:[%s15086_s22] sm:$0xff] }
0x180e   : > { %7907 = vmatprep.subr.mxu0 %v14875_v36  ;;  %v6773_v47 = vpop.xlane.xlu1 %6772  ;;  %7870 = vmatpush3.msra.mxu1 %v14877_v28  ;;  %v6674_v33 = vpop.xlane.xlu0 %6673 }
0x180f   : > { %7908 = vmatpush3.msra.mxu0 %v6776_v0  ;;  %7871 = vmatprep.subr.mxu1 %v14896_v22  ;;  %v7157_v22 = vld [vmem:[%s15085_s21 + $0x30] sm:$0xff] }
0x1810   : > { %7909 = vmatprep.subr.mxu0 %v6821_v61  ;;  %7872 = vmatpush3.msra.mxu1 %v14910_v34 }
0x1811   : > { %7910 = vmatpush3.msra.mxu0 %v6773_v47  ;;  %7873 = vmatprep.subr.mxu1 %v6722_v17  ;;  %v7164_v17 = vld [vmem:[%s15086_s22 + $0x28] sm:$0xff] }
0x1812   : > { %v6770_v6 = vpop.xlane.xlu1 %6769  ;;  %7874 = vmatpush3.msra.mxu1 %v6674_v33  ;;  %v6818_v25 = vpop.xlane.xlu0 %6817 }
0x1813   : > { %7660 = vmatmul.mubr.msk.f32.vlgmr.msra.gmra.mxu1 %vm14790_vm12, %v16416_v45  ;;  %7911 = vmatprep.subr.mxu0 %v6818_v25  ;;  %vm6908_vm12 = vmand %vm6880_vm14, %vm6896_vm13 }
0x1814   : > { %7912 = vmatpush3.msra.mxu0 %v6770_v6  ;;  %7661 = vmatprep.mubr.msk.f32.mxu1 %vm6907_vm8, %v16416_v45  ;;  %v7160_v6 = vld [vmem:[%s15086_s22 + $0x8] sm:$0xff] }
0x1815   : > { %7664 = vmatmul.mubr.msk.f32.vlgmr.msra.gmra.mxu0 %vm14810_vm0, %v16416_v45  ;;  %8049 = vmatprep.subr.mxu0 %v16428_v57  ;;  %vm7380_vm0 = vcmask 0  }
0x1816   : > { %7665 = vmatprep.mubr.msk.f32.mxu0 %vm6909_vm9, %v16416_v45 }
0x1817   : > { %7662 = vmatmul.mubr.msk.f32.gmra.mxu1 %vm6906_vm1, %v16416_v45 }
0x1818   : > { %8037 = vmatprep.mubr.msk.f32.mxu1 %vm7167_vm11, %v7151_v63 }
0x1819   : > { %7666 = vmatmul.mubr.msk.f32.gmra.mxu0 %vm6908_vm12, %v16416_v45  ;;  %v7158_v45 = vld [vmem:[%s15085_s21 + $0x38] sm:$0xff] }
0x181a   : > { %8065 = vmatprep.mubr.msk.f32.mxu0 %vm8108_vm10, %v16428_v57  ;;  %vm16430_vm10 = vcmask 523264  }
0x18b4   : > { %v7837_v41 = vpop.f32.mrf.mxu0 }
0x18b6   : > { %v7838_v54 = vpop.f32.mrf.mxu0 }
0x18b7   : > { %v7839_v44 = vadd.f32 %v7838_v54, %v7837_v41 }
0x18b8   : > { %v7840_v40 = vpop.f32.mrf.mxu0 }
0x18b9   : > { %v6991_v62 = vadd.f32 %v7839_v44, %v6922_v27  ;;  %v7306_v44 = vld [vmem:[#allocation3] sm:$0x1] }
0x18ba   : > { %v7841_v48 = vpop.f32.mrf.mxu0 }
0x18bb   : > { %v7842_v52 = vadd.f32 %v7841_v48, %v7840_v40 }
0x18bd   : > { %v6996_v4 = vadd.f32 %v7842_v52, %v6923_v24 }
0x18d3   : > { %v7875_v58 = vpop.f32.mrf.mxu1 }
0x18d5   : > { %v7876_v51 = vpop.f32.mrf.mxu1  ;;  %v7913_v2 = vpop.f32.mrf.mxu0 }
0x18d6   : > { %v7877_v5 = vadd.f32 %v7876_v51, %v7875_v58  ;;  %v7305_v58 = vld [vmem:[%s16429_s27] sm:$0x1] }
0x18d7   : > { %v7878_v32 = vpop.f32.mrf.mxu1  ;;  %v7914_v30 = vpop.f32.mrf.mxu0 }
0x18d8   : > { %v7066_v42 = vadd.f32 %v7877_v5, %v6991_v62  ;;  %v7915_v38 = vadd.f32 %v7914_v30, %v7913_v2 }
0x18d9   : > { %v7879_v7 = vpop.f32.mrf.mxu1  ;;  %v7916_v53 = vpop.f32.mrf.mxu0 }
0x18da   : > { %v7880_v59 = vadd.f32 %v7879_v7, %v7878_v32  ;;  %v7141_v26 = vadd.f32 %v7915_v38, %v7066_v42 }
0x18db   : > { %v7917_v13 = vpop.f32.mrf.mxu0 }
0x18dc   : > { %v7071_v37 = vadd.f32 %v7880_v59, %v6996_v4  ;;  %v7918_v8 = vadd.f32 %v7917_v13, %v7916_v53  ;;  %v7149_v28 = vmax.f32 %v7141_v26, 0.0 }
0x18de   : > { %v7146_v43 = vadd.f32 %v7918_v8, %v7071_v37 }
0x18e0   : > { %v7150_v36 = vmax.f32 %v7146_v43, 0.0 }
0x18e2   : > { %8033 = vmatprep.subr.mxu1 %v7150_v36 }
0x18e3   : > { %8034 = vmatpush3.msra.mxu1 %v7150_v36 }
0x18e4   : > { %8035 = vmatprep.subr.mxu1 %v7149_v28 }
0x18e5   : > { %8036 = vmatpush3.msra.mxu1 %v7149_v28 }
0x18e6   : > { %8038 = vmatmul.mubr.msk.f32.vlgmr.msra.gmra.mxu1 %vm7167_vm11, %v7152_v23 }
0x18e7   : > { %8040 = vmatprep.mubr.msk.f32.mxu1 %vm7167_vm11, %v7153_v11 }
0x18ea   : > { %8041 = vmatmul.mubr.msk.f32.gmra.mxu1 %vm7167_vm11, %v7154_v14 }
0x18eb   : > { %8043 = vmatprep.mubr.msk.f32.mxu1 %vm7167_vm11, %v7155_v18 }
0x18ee   : > { %8044 = vmatmul.mubr.msk.f32.gmra.mxu1 %vm7167_vm11, %v7156_v55 }
0x18ef   : > { %8046 = vmatprep.mubr.msk.f32.mxu1 %vm7167_vm11, %v7157_v22 }
0x18f2   : > { %8047 = vmatmul.mubr.msk.f32.gmra.mxu1 %vm7167_vm11, %v7158_v45 }
0x19a6   : > { %v8039_v46 = vpop.f32.mrf.mxu1 }
0x19a7   : > { %v7264_v3 = vadd.f32 %v8039_v46, %v7160_v6 }
0x19a8   : > { %v7258_v34 = vpop.f32.mrf.mxu1 }
0x19a9   : > { %v7259_v41 = vadd.f32 %v7258_v34, %v7159_v21  ;;  %v7298_v40 = vmax.f32 %v7264_v3, 0.0 }
0x19aa   : > { %v8042_v0 = vpop.f32.mrf.mxu1 }
0x19ab   : > { %v7274_v39 = vadd.f32 %v8042_v0, %v7162_v10  ;;  %v7297_v48 = vmax.f32 %v7259_v41, 0.0 }
0x19ac   : > { %v7268_v56 = vpop.f32.mrf.mxu1 }
0x19ad   : > { %v7269_v25 = vadd.f32 %v7268_v56, %v7161_v1  ;;  %v7300_v63 = vmax.f32 %v7274_v39, 0.0 }
0x19ae   : > { %v8045_v12 = vpop.f32.mrf.mxu1 }
0x19af   : > { %v7284_v49 = vadd.f32 %v8045_v12, %v7164_v17  ;;  %v7299_v54 = vmax.f32 %v7269_v25, 0.0 }
0x19b0   : > { %v7278_v31 = vpop.f32.mrf.mxu1 }
0x19b1   : > { %v7279_v47 = vadd.f32 %v7278_v31, %v7163_v9  ;;  %v7302_v60 = vmax.f32 %v7284_v49, 0.0 }
0x19b2   : > { %v8048_v61 = vpop.f32.mrf.mxu1 }
0x19b3   : > { %v7294_v35 = vadd.f32 %v8048_v61, %v7166_v16  ;;  %v7301_v50 = vmax.f32 %v7279_v47, 0.0 }
0x19b4   : > { %v7288_v20 = vpop.f32.mrf.mxu1 }
0x19b5   : > { %v7304_v19 = vmax.f32 %v7294_v35, 0.0  ;;  %v7289_v15 = vadd.f32 %v7288_v20, %v7165_v29 }
0x19b7   : > { %v7303_v33 = vmax.f32 %v7289_v15, 0.0  ;;  %8050 = vmatpush3.msra.mxu0 %v7304_v19 }
0x19b8   : > { %8051 = vmatprep.subr.mxu0 %v16428_v57 }
0x19b9   : > { %8052 = vmatpush3.msra.mxu0 %v7303_v33 }
0x19ba   : > { %8053 = vmatprep.subr.mxu0 %v16428_v57 }
0x19bb   : > { %8054 = vmatpush3.msra.mxu0 %v7302_v60 }
0x19bc   : > { %8055 = vmatprep.subr.mxu0 %v16428_v57 }
0x19bd   : > { %8056 = vmatpush3.msra.mxu0 %v7301_v50 }
0x19be   : > { %8057 = vmatprep.subr.mxu0 %v16428_v57 }
0x19bf   : > { %8058 = vmatpush3.msra.mxu0 %v7300_v63 }
0x19c0   : > { %8059 = vmatprep.subr.mxu0 %v16428_v57 }
0x19c1   : > { %8060 = vmatpush3.msra.mxu0 %v7299_v54 }
0x19c2   : > { %8061 = vmatprep.subr.mxu0 %v16428_v57 }
0x19c3   : > { %8062 = vmatpush3.msra.mxu0 %v7298_v40 }
0x19c4   : > { %8063 = vmatprep.subr.mxu0 %v16428_v57 }
0x19c5   : > { %8064 = vmatpush3.msra.mxu0 %v7297_v48 }
0x19c6   : > { %8066 = vmatmul.mubr.msk.f32.vlgmr.msra.gmra.mxu0 %vm16430_vm10, %v7305_v58 }
0x1a86   : > { %v7376_v27 = vpop.f32.mrf.mxu0 }
0x1a87   : > { %v7377_v51 = vadd.f32 %v7376_v27, %v7306_v44 }
0x1a88   : > { %v8067_v2 = vpop.f32.mrf.mxu0 }
0x1a89   : > { %7381 = vst.msk [vmem:[%s762_s29] sm:$0x1] %vm7380_vm0, %v7377_v51 }
0x1a8a PF: > { %s16432_s25 = sld [smem:[#allocation4_spill]] }
0x1a90   : > { %s37_s6 = sadd.s32 1, %s16432_s25  }
0x1a91   : > { %p34_p4 = scmp.ge.s32.totalorder %s37_s6, 4  }
0x1a93   :  { %36 = sbr.rel (!%p34_p4) target bundleno = 13 (0xd), region = 150 }

</bundles_post_ra>
